<compile_context>
chip_gen: v7x
topology: tpu7x:2x2x1
jax: 0.10.0
libtpu: 0.0.40
codegen_flags: <defaults>
</compile_context>

<pallas_src>
import functools
import math

import jax
import jax.numpy as jnp
from jax.experimental import pallas as pl
from jax.experimental.pallas import tpu as pltpu


def _encoder_layer_kernel(
    x_ref,                                # (1, S, D)  f32
    g1_ref, be1_ref,                      # LayerNorm1 gamma/beta   (1, D) f32
    wq_ref, bq_ref, wk_ref, bk_ref,       # (D, D) bf16, (1, D) f32
    wv_ref, bv_ref, wo_ref, bo_ref,
    w1_ref, bf1_ref, w2_ref, bf2_ref,     # (D, F) bf16, (1, F) f32, (F, D) bf16, (1, D) f32
    g2_ref, be2_ref,                      # LayerNorm2 gamma/beta   (1, D) f32
    out_ref, attnw_ref,                   # (1, TQ, D) f32, (1, H, TQ, S) f32
    y_s, k_s, v_s, q_s, ctx_s,            # VMEM scratch
    *, num_heads, head_dim, tq,
):
    eps = 1e-5
    cdt = wq_ref.dtype                    # matmul-operand (compute) dtype, bf16
    qi = pl.program_id(1)

    # ---- once per batch element: LayerNorm1 over the full sequence and the
    #      K / V projections, stored head-major in VMEM scratch ----------------
    @pl.when(qi == 0)
    def _():
        x = x_ref[0]                                                   # (S, D) f32
        mu = jnp.mean(x, axis=-1, keepdims=True)
        var = jnp.mean((x - mu) ** 2, axis=-1, keepdims=True)
        y = (x - mu) * jax.lax.rsqrt(var + eps) * g1_ref[0] + be1_ref[0]
        y_s[...] = y

        y_c = y.astype(cdt)
        k = jnp.dot(y_c, wk_ref[...], preferred_element_type=jnp.float32) + bk_ref[0]
        v = jnp.dot(y_c, wv_ref[...], preferred_element_type=jnp.float32) + bv_ref[0]
        for h in range(num_heads):                                     # static unroll
            sl = slice(h * head_dim, (h + 1) * head_dim)
            k_s[h] = k[:, sl].astype(cdt)
            v_s[h] = v[:, sl].astype(cdt)

    # ---- per query tile -------------------------------------------------------
    qs = pl.multiple_of(qi * tq, tq)
    y_q = y_s[pl.ds(qs, tq), :]                                        # (TQ, D) f32

    scale = 1.0 / math.sqrt(head_dim)
    q = jnp.dot(y_q.astype(cdt), wq_ref[...],
                preferred_element_type=jnp.float32) + bq_ref[0]
    q = q * scale                                   # fold softmax scale into q
    for h in range(num_heads):
        q_s[h] = q[:, h * head_dim:(h + 1) * head_dim].astype(cdt)

    # batched-over-heads scores / softmax / context (no transposes, no concat)
    s = jnp.einsum("hqd,hkd->hqk", q_s[...], k_s[...],
                   preferred_element_type=jnp.float32)                 # (H, TQ, S)
    s = s - jnp.max(s, axis=-1, keepdims=True)
    e = jnp.exp(s)
    p = e * pl.reciprocal(jnp.sum(e, axis=-1, keepdims=True), approx=True)
    attnw_ref[0] = p.astype(attnw_ref.dtype)        # one contiguous store per tile

    ctx = jnp.einsum("hqk,hkd->hqd", p.astype(cdt), v_s[...],
                     preferred_element_type=jnp.float32)               # (H, TQ, hd)
    for h in range(num_heads):                      # merge heads into (TQ, D) scratch
        ctx_s[:, h * head_dim:(h + 1) * head_dim] = ctx[h]

    attn_out = jnp.dot(ctx_s[...].astype(cdt), wo_ref[...],
                       preferred_element_type=jnp.float32) + bo_ref[0]

    # residual 1 (on the LayerNorm'd activation, exactly as the module does)
    sub1 = y_q + attn_out

    # position-wise FF: Linear -> ReLU -> Linear (hidden is only (TQ, F))
    h1 = jnp.dot(sub1.astype(cdt), w1_ref[...],
                 preferred_element_type=jnp.float32) + bf1_ref[0]
    h1 = jnp.maximum(h1, 0.0)
    ff = jnp.dot(h1.astype(cdt), w2_ref[...],
                 preferred_element_type=jnp.float32) + bf2_ref[0]

    # residual 2 + LayerNorm2
    z = sub1 + ff
    mu2 = jnp.mean(z, axis=-1, keepdims=True)
    var2 = jnp.mean((z - mu2) ** 2, axis=-1, keepdims=True)
    out_ref[0] = ((z - mu2) * jax.lax.rsqrt(var2 + eps) * g2_ref[0]
                  + be2_ref[0]).astype(out_ref.dtype)


def encoder_layer_forward(x, params, *, num_heads, seq_tile=128,
                          compute_dtype=jnp.bfloat16):
    """x: (B, S, D) float32. Returns (out (B,S,D) f32, attn_w (B,H,S,S) f32)."""
    B, S, D = x.shape
    F = params["w1"].shape[1]
    assert D % num_heads == 0
    head_dim = D // num_heads
    H = num_heads

    # query-tile size: prefer seq_tile (sublane-aligned); fall back to the full
    # sequence for shapes that don't tile evenly (block == full dim is always legal).
    tq = seq_tile if (S % seq_tile == 0 and seq_tile % 8 == 0) else S
    nq = S // tq

    kernel = functools.partial(_encoder_layer_kernel, num_heads=H,
                               head_dim=head_dim, tq=tq)

    def const_spec(shape):
        # constant index_map across the grid -> block stays resident, no re-DMA.
        return pl.BlockSpec(shape, lambda b, q: tuple(0 for _ in shape))

    in_specs = [
        pl.BlockSpec((1, S, D), lambda b, q: (b, 0, 0)),     # x: full sequence per b
        const_spec((1, D)), const_spec((1, D)),              # ln1 gamma/beta
        const_spec((D, D)), const_spec((1, D)),              # Wq, bq
        const_spec((D, D)), const_spec((1, D)),              # Wk, bk
        const_spec((D, D)), const_spec((1, D)),              # Wv, bv
        const_spec((D, D)), const_spec((1, D)),              # Wo, bo
        const_spec((D, F)), const_spec((1, F)),              # W1, b1
        const_spec((F, D)), const_spec((1, D)),              # W2, b2
        const_spec((1, D)), const_spec((1, D)),              # ln2 gamma/beta
    ]
    out_specs = (
        pl.BlockSpec((1, tq, D), lambda b, q: (b, q, 0)),
        pl.BlockSpec((1, H, tq, S), lambda b, q: (b, 0, q, 0)),
    )
    out_shape = (
        jax.ShapeDtypeStruct((B, S, D), jnp.float32),
        # TODO(synk): emit attention weights in bfloat16 if only used for inspection
        # (halves the dominant (B,H,S,S) HBM writeback stream).
        jax.ShapeDtypeStruct((B, H, S, S), jnp.float32),
    )
    scratch_shapes = [
        pltpu.VMEM((S, D), jnp.float32),                 # y = LN1(x), full sequence
        pltpu.VMEM((H, S, head_dim), compute_dtype),     # K, head-major
        pltpu.VMEM((H, S, head_dim), compute_dtype),     # V, head-major
        pltpu.VMEM((H, tq, head_dim), compute_dtype),    # Q tile, head-major
        pltpu.VMEM((tq, D), jnp.float32),                # merged per-head context
    ]

    # Scoped-VMEM estimate: bf16 weights (constant blocks), double-buffered
    # activation blocks, f32/bf16 scratch, plus live temporaries; 2x headroom.
    bpe_w = jnp.dtype(compute_dtype).itemsize
    est = ((4 * D * D + 2 * D * F) * bpe_w
           + 2 * S * D * 4
           + 2 * (tq * D + H * tq * S) * 4
           + (S * D + tq * D) * 4
           + 3 * H * S * head_dim * bpe_w
           + 4 * tq * max(F, S) * 4)
    vmem_limit = int(min(64 * 2**20, max(32 * 2**20, 2 * est)))

    f = pl.pallas_call(
        kernel,
        grid=(B, nq),
        in_specs=in_specs,
        out_specs=out_specs,
        out_shape=out_shape,
        scratch_shapes=scratch_shapes,
        compiler_params=pltpu.CompilerParams(
            dimension_semantics=("parallel", "arbitrary"),
            vmem_limit_bytes=vmem_limit),
    )

    cd = compute_dtype
    return f(
        x,
        params["ln1_g"], params["ln1_b"],
        params["wq"].astype(cd), params["bq"],
        params["wk"].astype(cd), params["bk"],
        params["wv"].astype(cd), params["bv"],
        params["wo"].astype(cd), params["bo"],
        params["w1"].astype(cd), params["b1"],
        params["w2"].astype(cd), params["b2"],
        params["ln2_g"], params["ln2_b"],
    )


def encoder_layer_reference(x, params, *, num_heads):
    """Plain-JAX f32 reference mirroring the PyTorch forward (eval mode)."""
    B, S, D = x.shape
    hd = D // num_heads
    eps = 1e-5

    def ln(z, g, b):
        mu = jnp.mean(z, axis=-1, keepdims=True)
        var = jnp.mean((z - mu) ** 2, axis=-1, keepdims=True)
        return (z - mu) / jnp.sqrt(var + eps) * g[0] + b[0]

    y = ln(x, params["ln1_g"], params["ln1_b"])
    q = y @ params["wq"] + params["bq"][0]
    k = y @ params["wk"] + params["bk"][0]
    v = y @ params["wv"] + params["bv"][0]

    def split(t):  # (B,S,D) -> (B,H,S,hd)
        return t.reshape(B, S, num_heads, hd).transpose(0, 2, 1, 3)

    qh, kh, vh = split(q), split(k), split(v)
    s = jnp.einsum("bhqd,bhkd->bhqk", qh, kh) / math.sqrt(hd)
    aw = jax.nn.softmax(s, axis=-1)
    ctx = jnp.einsum("bhqk,bhkd->bhqd", aw, vh)
    ctx = ctx.transpose(0, 2, 1, 3).reshape(B, S, D)
    attn_out = ctx @ params["wo"] + params["bo"][0]

    sub1 = y + attn_out
    h1 = jnp.maximum(sub1 @ params["w1"] + params["b1"][0], 0.0)
    ff = h1 @ params["w2"] + params["b2"][0]
    out = ln(sub1 + ff, params["ln2_g"], params["ln2_b"])
    return out, aw


def init_params(key, d_model, d_ff):
    ks = jax.random.split(key, 8)
    sc = 0.05
    return {
        "ln1_g": jnp.ones((1, d_model), jnp.float32),
        "ln1_b": jnp.zeros((1, d_model), jnp.float32),
        "wq": sc * jax.random.normal(ks[0], (d_model, d_model), jnp.float32),
        "bq": jnp.zeros((1, d_model), jnp.float32),
        "wk": sc * jax.random.normal(ks[1], (d_model, d_model), jnp.float32),
        "bk": jnp.zeros((1, d_model), jnp.float32),
        "wv": sc * jax.random.normal(ks[2], (d_model, d_model), jnp.float32),
        "bv": jnp.zeros((1, d_model), jnp.float32),
        "wo": sc * jax.random.normal(ks[3], (d_model, d_model), jnp.float32),
        "bo": jnp.zeros((1, d_model), jnp.float32),
        "w1": sc * jax.random.normal(ks[4], (d_model, d_ff), jnp.float32),
        "b1": sc * jax.random.normal(ks[5], (1, d_ff), jnp.float32),
        "w2": sc * jax.random.normal(ks[6], (d_ff, d_model), jnp.float32),
        "b2": sc * jax.random.normal(ks[7], (1, d_model), jnp.float32),
        "ln2_g": jnp.ones((1, d_model), jnp.float32),
        "ln2_b": jnp.zeros((1, d_model), jnp.float32),
    }


if __name__ == "__main__":
    # Lane-aligned small shapes (multiples of 128) so output stores are lane-dense
    # and the query-tile grid (grid = (2, 2)) is actually exercised.
    B, S = 2, 256
    d_model, num_heads, d_ff = 128, 4, 256

    key = jax.random.PRNGKey(0)
    kx, kp = jax.random.split(key)
    x = jax.random.normal(kx, (B, S, d_model), jnp.float32)
    params = init_params(kp, d_model, d_ff)

    out, attn_w = encoder_layer_forward(x, params, num_heads=num_heads)
    out, attn_w = jax.block_until_ready((out, attn_w))

    ref_out, ref_aw = encoder_layer_reference(x, params, num_heads=num_heads)
    assert out.shape == (B, S, d_model)
    assert attn_w.shape == (B, num_heads, S, S)
    # Tolerances account for bf16 MXU operands + approx-reciprocal softmax
    # (reference is pure f32); real indexing/tiling bugs would be O(1) errors.
    assert jnp.allclose(out, ref_out, atol=5e-2, rtol=5e-2), \
        float(jnp.max(jnp.abs(out - ref_out)))
    assert jnp.allclose(attn_w, ref_aw, atol=5e-3, rtol=5e-2), \
        float(jnp.max(jnp.abs(attn_w - ref_aw)))

    print("KERNEL_OK")
</pallas_src>

<mosaic_0001>
module attributes {stable_mosaic.version = 11 : i64} {
  func.func @_encoder_layer_kernel(%arg0: i32, %arg1: i32, %arg2: memref<1x256x128xf32, #tpu.memory_space<vmem>>, %arg3: memref<1x128xf32, #tpu.memory_space<vmem>>, %arg4: memref<1x128xf32, #tpu.memory_space<vmem>>, %arg5: memref<128x128xbf16, #tpu.memory_space<vmem>>, %arg6: memref<1x128xf32, #tpu.memory_space<vmem>>, %arg7: memref<128x128xbf16, #tpu.memory_space<vmem>>, %arg8: memref<1x128xf32, #tpu.memory_space<vmem>>, %arg9: memref<128x128xbf16, #tpu.memory_space<vmem>>, %arg10: memref<1x128xf32, #tpu.memory_space<vmem>>, %arg11: memref<128x128xbf16, #tpu.memory_space<vmem>>, %arg12: memref<1x128xf32, #tpu.memory_space<vmem>>, %arg13: memref<128x256xbf16, #tpu.memory_space<vmem>>, %arg14: memref<1x256xf32, #tpu.memory_space<vmem>>, %arg15: memref<256x128xbf16, #tpu.memory_space<vmem>>, %arg16: memref<1x128xf32, #tpu.memory_space<vmem>>, %arg17: memref<1x128xf32, #tpu.memory_space<vmem>>, %arg18: memref<1x128xf32, #tpu.memory_space<vmem>>, %arg19: memref<1x128x128xf32, #tpu.memory_space<vmem>>, %arg20: memref<1x4x128x256xf32, #tpu.memory_space<vmem>>, %arg21: memref<256x128xf32, #tpu.memory_space<vmem>>, %arg22: memref<4x256x32xbf16, #tpu.memory_space<vmem>>, %arg23: memref<4x256x32xbf16, #tpu.memory_space<vmem>>, %arg24: memref<4x128x32xbf16, #tpu.memory_space<vmem>>, %arg25: memref<128x128xf32, #tpu.memory_space<vmem>>) attributes {dimension_semantics = [#tpu.dimension_semantics<parallel>, #tpu.dimension_semantics<arbitrary>], iteration_bounds = array<i64: 2, 2>, scalar_prefetch = 0 : i64, scratch_operands = 5 : i64, tpu.core_type = #tpu.core_type<tc>, window_params = [{transform_indices = @transform_0, window_bounds = array<i64: 1, 256, 128>}, {pipeline_mode = #tpu.pipeline_mode<synchronous>, transform_indices = @transform_1, window_bounds = array<i64: 1, 128>}, {pipeline_mode = #tpu.pipeline_mode<synchronous>, transform_indices = @transform_2, window_bounds = array<i64: 1, 128>}, {pipeline_mode = #tpu.pipeline_mode<synchronous>, transform_indices = @transform_3, window_bounds = array<i64: 128, 128>}, {pipeline_mode = #tpu.pipeline_mode<synchronous>, transform_indices = @transform_4, window_bounds = array<i64: 1, 128>}, {pipeline_mode = #tpu.pipeline_mode<synchronous>, transform_indices = @transform_5, window_bounds = array<i64: 128, 128>}, {pipeline_mode = #tpu.pipeline_mode<synchronous>, transform_indices = @transform_6, window_bounds = array<i64: 1, 128>}, {pipeline_mode = #tpu.pipeline_mode<synchronous>, transform_indices = @transform_7, window_bounds = array<i64: 128, 128>}, {pipeline_mode = #tpu.pipeline_mode<synchronous>, transform_indices = @transform_8, window_bounds = array<i64: 1, 128>}, {pipeline_mode = #tpu.pipeline_mode<synchronous>, transform_indices = @transform_9, window_bounds = array<i64: 128, 128>}, {pipeline_mode = #tpu.pipeline_mode<synchronous>, transform_indices = @transform_10, window_bounds = array<i64: 1, 128>}, {pipeline_mode = #tpu.pipeline_mode<synchronous>, transform_indices = @transform_11, window_bounds = array<i64: 128, 256>}, {pipeline_mode = #tpu.pipeline_mode<synchronous>, transform_indices = @transform_12, window_bounds = array<i64: 1, 256>}, {pipeline_mode = #tpu.pipeline_mode<synchronous>, transform_indices = @transform_13, window_bounds = array<i64: 256, 128>}, {pipeline_mode = #tpu.pipeline_mode<synchronous>, transform_indices = @transform_14, window_bounds = array<i64: 1, 128>}, {pipeline_mode = #tpu.pipeline_mode<synchronous>, transform_indices = @transform_15, window_bounds = array<i64: 1, 128>}, {pipeline_mode = #tpu.pipeline_mode<synchronous>, transform_indices = @transform_16, window_bounds = array<i64: 1, 128>}, {transform_indices = @transform_17, window_bounds = array<i64: 1, 128, 128>}, {transform_indices = @transform_18, window_bounds = array<i64: 1, 4, 128, 256>}]} {
    %c0_i32 = arith.constant 0 : i32
    %0 = arith.cmpi eq, %arg1, %c0_i32 : i32
    %1 = arith.extui %0 : i1 to i32
    %c0_i32_0 = arith.constant 0 : i32
    %2 = arith.cmpi ne, %1, %c0_i32_0 : i32
    scf.if %2 {
      %c0_67 = arith.constant 0 : index
      %c0_68 = arith.constant 0 : index
      %c0_69 = arith.constant 0 : index
      %128 = vector.load %arg2[%c0_67, %c0_68, %c0_69] : memref<1x256x128xf32, #tpu.memory_space<vmem>>, vector<1x256x128xf32>
      %129 = vector.shape_cast %128 : vector<1x256x128xf32> to vector<256x128xf32>
      %cst_70 = arith.constant dense<0.000000e+00> : vector<256xf32>
      %130 = vector.multi_reduction <add>, %129, %cst_70 [1] : vector<256x128xf32> to vector<256xf32>
      %131 = vector.shape_cast %130 : vector<256xf32> to vector<256x1xf32>
      %cst_71 = arith.constant 1.280000e+02 : f32
      %132 = vector.broadcast %cst_71 : f32 to vector<256x1xf32>
      %133 = arith.divf %131, %132 : vector<256x1xf32>
      %134 = vector.broadcast %133 : vector<256x1xf32> to vector<256x128xf32>
      %135 = arith.subf %129, %134 : vector<256x128xf32>
      %136 = arith.mulf %135, %135 : vector<256x128xf32>
      %cst_72 = arith.constant dense<0.000000e+00> : vector<256xf32>
      %137 = vector.multi_reduction <add>, %136, %cst_72 [1] : vector<256x128xf32> to vector<256xf32>
      %138 = vector.shape_cast %137 : vector<256xf32> to vector<256x1xf32>
      %cst_73 = arith.constant 1.280000e+02 : f32
      %139 = vector.broadcast %cst_73 : f32 to vector<256x1xf32>
      %140 = arith.divf %138, %139 : vector<256x1xf32>
      %141 = vector.broadcast %133 : vector<256x1xf32> to vector<256x128xf32>
      %142 = arith.subf %129, %141 : vector<256x128xf32>
      %cst_74 = arith.constant 9.99999974E-6 : f32
      %143 = vector.broadcast %cst_74 : f32 to vector<256x1xf32>
      %144 = arith.addf %140, %143 : vector<256x1xf32>
      %145 = math.rsqrt %144 : vector<256x1xf32>
      %146 = vector.broadcast %145 : vector<256x1xf32> to vector<256x128xf32>
      %147 = arith.mulf %142, %146 : vector<256x128xf32>
      %c0_75 = arith.constant 0 : index
      %c0_76 = arith.constant 0 : index
      %148 = vector.load %arg3[%c0_75, %c0_76] : memref<1x128xf32, #tpu.memory_space<vmem>>, vector<1x128xf32>
      %149 = vector.shape_cast %148 : vector<1x128xf32> to vector<128xf32>
      %150 = vector.shape_cast %149 : vector<128xf32> to vector<1x128xf32>
      %151 = vector.broadcast %150 : vector<1x128xf32> to vector<256x128xf32>
      %152 = arith.mulf %147, %151 : vector<256x128xf32>
      %c0_77 = arith.constant 0 : index
      %c0_78 = arith.constant 0 : index
      %153 = vector.load %arg4[%c0_77, %c0_78] : memref<1x128xf32, #tpu.memory_space<vmem>>, vector<1x128xf32>
      %154 = vector.shape_cast %153 : vector<1x128xf32> to vector<128xf32>
      %155 = vector.shape_cast %154 : vector<128xf32> to vector<1x128xf32>
      %156 = vector.broadcast %155 : vector<1x128xf32> to vector<256x128xf32>
      %157 = arith.addf %152, %156 : vector<256x128xf32>
      %c0_79 = arith.constant 0 : index
      %c0_80 = arith.constant 0 : index
      %158 = vector.load %arg21[%c0_79, %c0_80] : memref<256x128xf32, #tpu.memory_space<vmem>>, vector<256x128xf32>
      tpu.vector_store %arg21[%c0_79, %c0_80], %157 {strides = array<i32>} : memref<256x128xf32, #tpu.memory_space<vmem>>, vector<256x128xf32>,
      %159 = arith.truncf %157 : vector<256x128xf32> to vector<256x128xbf16>
      %c0_81 = arith.constant 0 : index
      %c0_82 = arith.constant 0 : index
      %160 = vector.load %arg7[%c0_81, %c0_82] : memref<128x128xbf16, #tpu.memory_space<vmem>>, vector<128x128xbf16>
      %cst_83 = arith.constant dense<0.000000e+00> : vector<256x128xf32>
      %161 = tpu.matmul %159, %160, %cst_83 {dimension_numbers = #tpu.dot_dimension_numbers<[1], [0], [0], [1], [0, 0, 1, 1], [], []>} : vector<256x128xbf16>, vector<128x128xbf16>, vector<256x128xf32> -> vector<256x128xf32>
      %c0_84 = arith.constant 0 : index
      %c0_85 = arith.constant 0 : index
      %162 = vector.load %arg8[%c0_84, %c0_85] : memref<1x128xf32, #tpu.memory_space<vmem>>, vector<1x128xf32>
      %163 = vector.shape_cast %162 : vector<1x128xf32> to vector<128xf32>
      %164 = vector.shape_cast %163 : vector<128xf32> to vector<1x128xf32>
      %165 = vector.broadcast %164 : vector<1x128xf32> to vector<256x128xf32>
      %166 = arith.addf %161, %165 : vector<256x128xf32>
      %c0_86 = arith.constant 0 : index
      %c0_87 = arith.constant 0 : index
      %167 = vector.load %arg9[%c0_86, %c0_87] : memref<128x128xbf16, #tpu.memory_space<vmem>>, vector<128x128xbf16>
      %cst_88 = arith.constant dense<0.000000e+00> : vector<256x128xf32>
      %168 = tpu.matmul %159, %167, %cst_88 {dimension_numbers = #tpu.dot_dimension_numbers<[1], [0], [0], [1], [0, 0, 1, 1], [], []>} : vector<256x128xbf16>, vector<128x128xbf16>, vector<256x128xf32> -> vector<256x128xf32>
      %c0_89 = arith.constant 0 : index
      %c0_90 = arith.constant 0 : index
      %169 = vector.load %arg10[%c0_89, %c0_90] : memref<1x128xf32, #tpu.memory_space<vmem>>, vector<1x128xf32>
      %170 = vector.shape_cast %169 : vector<1x128xf32> to vector<128xf32>
      %171 = vector.shape_cast %170 : vector<128xf32> to vector<1x128xf32>
      %172 = vector.broadcast %171 : vector<1x128xf32> to vector<256x128xf32>
      %173 = arith.addf %168, %172 : vector<256x128xf32>
      %174 = vector.extract_strided_slice %166 {offsets = [0, 0], sizes = [256, 32], strides = [1, 1]} : vector<256x128xf32> to vector<256x32xf32>
      %175 = arith.truncf %174 : vector<256x32xf32> to vector<256x32xbf16>
      %c0_91 = arith.constant 0 : index
      %c0_92 = arith.constant 0 : index
      %c0_93 = arith.constant 0 : index
      %176 = vector.load %arg22[%c0_91, %c0_92, %c0_93] : memref<4x256x32xbf16, #tpu.memory_space<vmem>>, vector<1x256x32xbf16>
      %177 = vector.shape_cast %176 : vector<1x256x32xbf16> to vector<256x32xbf16>
      %178 = vector.shape_cast %175 : vector<256x32xbf16> to vector<1x256x32xbf16>
      tpu.vector_store %arg22[%c0_91, %c0_92, %c0_93], %178 {strides = array<i32>} : memref<4x256x32xbf16, #tpu.memory_space<vmem>>, vector<1x256x32xbf16>,
      %179 = vector.extract_strided_slice %173 {offsets = [0, 0], sizes = [256, 32], strides = [1, 1]} : vector<256x128xf32> to vector<256x32xf32>
      %180 = arith.truncf %179 : vector<256x32xf32> to vector<256x32xbf16>
      %c0_94 = arith.constant 0 : index
      %c0_95 = arith.constant 0 : index
      %c0_96 = arith.constant 0 : index
      %181 = vector.load %arg23[%c0_94, %c0_95, %c0_96] : memref<4x256x32xbf16, #tpu.memory_space<vmem>>, vector<1x256x32xbf16>
      %182 = vector.shape_cast %181 : vector<1x256x32xbf16> to vector<256x32xbf16>
      %183 = vector.shape_cast %180 : vector<256x32xbf16> to vector<1x256x32xbf16>
      tpu.vector_store %arg23[%c0_94, %c0_95, %c0_96], %183 {strides = array<i32>} : memref<4x256x32xbf16, #tpu.memory_space<vmem>>, vector<1x256x32xbf16>,
      %184 = vector.extract_strided_slice %166 {offsets = [0, 32], sizes = [256, 32], strides = [1, 1]} : vector<256x128xf32> to vector<256x32xf32>
      %185 = arith.truncf %184 : vector<256x32xf32> to vector<256x32xbf16>
      %c1_97 = arith.constant 1 : index
      %c0_98 = arith.constant 0 : index
      %c0_99 = arith.constant 0 : index
      %186 = vector.load %arg22[%c1_97, %c0_98, %c0_99] : memref<4x256x32xbf16, #tpu.memory_space<vmem>>, vector<1x256x32xbf16>
      %187 = vector.shape_cast %186 : vector<1x256x32xbf16> to vector<256x32xbf16>
      %188 = vector.shape_cast %185 : vector<256x32xbf16> to vector<1x256x32xbf16>
      tpu.vector_store %arg22[%c1_97, %c0_98, %c0_99], %188 {strides = array<i32>} : memref<4x256x32xbf16, #tpu.memory_space<vmem>>, vector<1x256x32xbf16>,
      %189 = vector.extract_strided_slice %173 {offsets = [0, 32], sizes = [256, 32], strides = [1, 1]} : vector<256x128xf32> to vector<256x32xf32>
      %190 = arith.truncf %189 : vector<256x32xf32> to vector<256x32xbf16>
      %c1_100 = arith.constant 1 : index
      %c0_101 = arith.constant 0 : index
      %c0_102 = arith.constant 0 : index
      %191 = vector.load %arg23[%c1_100, %c0_101, %c0_102] : memref<4x256x32xbf16, #tpu.memory_space<vmem>>, vector<1x256x32xbf16>
      %192 = vector.shape_cast %191 : vector<1x256x32xbf16> to vector<256x32xbf16>
      %193 = vector.shape_cast %190 : vector<256x32xbf16> to vector<1x256x32xbf16>
      tpu.vector_store %arg23[%c1_100, %c0_101, %c0_102], %193 {strides = array<i32>} : memref<4x256x32xbf16, #tpu.memory_space<vmem>>, vector<1x256x32xbf16>,
      %194 = vector.extract_strided_slice %166 {offsets = [0, 64], sizes = [256, 32], strides = [1, 1]} : vector<256x128xf32> to vector<256x32xf32>
      %195 = arith.truncf %194 : vector<256x32xf32> to vector<256x32xbf16>
      %c2_103 = arith.constant 2 : index
      %c0_104 = arith.constant 0 : index
      %c0_105 = arith.constant 0 : index
      %196 = vector.load %arg22[%c2_103, %c0_104, %c0_105] : memref<4x256x32xbf16, #tpu.memory_space<vmem>>, vector<1x256x32xbf16>
      %197 = vector.shape_cast %196 : vector<1x256x32xbf16> to vector<256x32xbf16>
      %198 = vector.shape_cast %195 : vector<256x32xbf16> to vector<1x256x32xbf16>
      tpu.vector_store %arg22[%c2_103, %c0_104, %c0_105], %198 {strides = array<i32>} : memref<4x256x32xbf16, #tpu.memory_space<vmem>>, vector<1x256x32xbf16>,
      %199 = vector.extract_strided_slice %173 {offsets = [0, 64], sizes = [256, 32], strides = [1, 1]} : vector<256x128xf32> to vector<256x32xf32>
      %200 = arith.truncf %199 : vector<256x32xf32> to vector<256x32xbf16>
      %c2_106 = arith.constant 2 : index
      %c0_107 = arith.constant 0 : index
      %c0_108 = arith.constant 0 : index
      %201 = vector.load %arg23[%c2_106, %c0_107, %c0_108] : memref<4x256x32xbf16, #tpu.memory_space<vmem>>, vector<1x256x32xbf16>
      %202 = vector.shape_cast %201 : vector<1x256x32xbf16> to vector<256x32xbf16>
      %203 = vector.shape_cast %200 : vector<256x32xbf16> to vector<1x256x32xbf16>
      tpu.vector_store %arg23[%c2_106, %c0_107, %c0_108], %203 {strides = array<i32>} : memref<4x256x32xbf16, #tpu.memory_space<vmem>>, vector<1x256x32xbf16>,
      %204 = vector.extract_strided_slice %166 {offsets = [0, 96], sizes = [256, 32], strides = [1, 1]} : vector<256x128xf32> to vector<256x32xf32>
      %205 = arith.truncf %204 : vector<256x32xf32> to vector<256x32xbf16>
      %c3_109 = arith.constant 3 : index
      %c0_110 = arith.constant 0 : index
      %c0_111 = arith.constant 0 : index
      %206 = vector.load %arg22[%c3_109, %c0_110, %c0_111] : memref<4x256x32xbf16, #tpu.memory_space<vmem>>, vector<1x256x32xbf16>
      %207 = vector.shape_cast %206 : vector<1x256x32xbf16> to vector<256x32xbf16>
      %208 = vector.shape_cast %205 : vector<256x32xbf16> to vector<1x256x32xbf16>
      tpu.vector_store %arg22[%c3_109, %c0_110, %c0_111], %208 {strides = array<i32>} : memref<4x256x32xbf16, #tpu.memory_space<vmem>>, vector<1x256x32xbf16>,
      %209 = vector.extract_strided_slice %173 {offsets = [0, 96], sizes = [256, 32], strides = [1, 1]} : vector<256x128xf32> to vector<256x32xf32>
      %210 = arith.truncf %209 : vector<256x32xf32> to vector<256x32xbf16>
      %c3_112 = arith.constant 3 : index
      %c0_113 = arith.constant 0 : index
      %c0_114 = arith.constant 0 : index
      %211 = vector.load %arg23[%c3_112, %c0_113, %c0_114] : memref<4x256x32xbf16, #tpu.memory_space<vmem>>, vector<1x256x32xbf16>
      %212 = vector.shape_cast %211 : vector<1x256x32xbf16> to vector<256x32xbf16>
      %213 = vector.shape_cast %210 : vector<256x32xbf16> to vector<1x256x32xbf16>
      tpu.vector_store %arg23[%c3_112, %c0_113, %c0_114], %213 {strides = array<i32>} : memref<4x256x32xbf16, #tpu.memory_space<vmem>>, vector<1x256x32xbf16>,
    } else {
    }
    %c128_i32 = arith.constant 128 : i32
    %3 = arith.muli %arg1, %c128_i32 : i32
    %4 = tpu.assume_multiple %3, 128 : i32
    %5 = arith.index_cast %4 : i32 to index
    %c0 = arith.constant 0 : index
    %6 = vector.load %arg21[%5, %c0] : memref<256x128xf32, #tpu.memory_space<vmem>>, vector<128x128xf32>
    %7 = arith.truncf %6 : vector<128x128xf32> to vector<128x128xbf16>
    %c0_1 = arith.constant 0 : index
    %c0_2 = arith.constant 0 : index
    %8 = vector.load %arg5[%c0_1, %c0_2] : memref<128x128xbf16, #tpu.memory_space<vmem>>, vector<128x128xbf16>
    %cst = arith.constant dense<0.000000e+00> : vector<128x128xf32>
    %9 = tpu.matmul %7, %8, %cst {dimension_numbers = #tpu.dot_dimension_numbers<[1], [0], [0], [1], [0, 0, 1, 1], [], []>} : vector<128x128xbf16>, vector<128x128xbf16>, vector<128x128xf32> -> vector<128x128xf32>
    %c0_3 = arith.constant 0 : index
    %c0_4 = arith.constant 0 : index
    %10 = vector.load %arg6[%c0_3, %c0_4] : memref<1x128xf32, #tpu.memory_space<vmem>>, vector<1x128xf32>
    %11 = vector.shape_cast %10 : vector<1x128xf32> to vector<128xf32>
    %12 = vector.shape_cast %11 : vector<128xf32> to vector<1x128xf32>
    %13 = vector.broadcast %12 : vector<1x128xf32> to vector<128x128xf32>
    %14 = arith.addf %9, %13 : vector<128x128xf32>
    %cst_5 = arith.constant 0.176776692 : f32
    %15 = vector.broadcast %cst_5 : f32 to vector<128x128xf32>
    %16 = arith.mulf %14, %15 : vector<128x128xf32>
    %17 = vector.extract_strided_slice %16 {offsets = [0, 0], sizes = [128, 32], strides = [1, 1]} : vector<128x128xf32> to vector<128x32xf32>
    %18 = arith.truncf %17 : vector<128x32xf32> to vector<128x32xbf16>
    %c0_6 = arith.constant 0 : index
    %c0_7 = arith.constant 0 : index
    %c0_8 = arith.constant 0 : index
    %19 = vector.load %arg24[%c0_6, %c0_7, %c0_8] : memref<4x128x32xbf16, #tpu.memory_space<vmem>>, vector<1x128x32xbf16>
    %20 = vector.shape_cast %19 : vector<1x128x32xbf16> to vector<128x32xbf16>
    %21 = vector.shape_cast %18 : vector<128x32xbf16> to vector<1x128x32xbf16>
    tpu.vector_store %arg24[%c0_6, %c0_7, %c0_8], %21 {strides = array<i32>} : memref<4x128x32xbf16, #tpu.memory_space<vmem>>, vector<1x128x32xbf16>,
    %22 = vector.extract_strided_slice %16 {offsets = [0, 32], sizes = [128, 32], strides = [1, 1]} : vector<128x128xf32> to vector<128x32xf32>
    %23 = arith.truncf %22 : vector<128x32xf32> to vector<128x32xbf16>
    %c1 = arith.constant 1 : index
    %c0_9 = arith.constant 0 : index
    %c0_10 = arith.constant 0 : index
    %24 = vector.load %arg24[%c1, %c0_9, %c0_10] : memref<4x128x32xbf16, #tpu.memory_space<vmem>>, vector<1x128x32xbf16>
    %25 = vector.shape_cast %24 : vector<1x128x32xbf16> to vector<128x32xbf16>
    %26 = vector.shape_cast %23 : vector<128x32xbf16> to vector<1x128x32xbf16>
    tpu.vector_store %arg24[%c1, %c0_9, %c0_10], %26 {strides = array<i32>} : memref<4x128x32xbf16, #tpu.memory_space<vmem>>, vector<1x128x32xbf16>,
    %27 = vector.extract_strided_slice %16 {offsets = [0, 64], sizes = [128, 32], strides = [1, 1]} : vector<128x128xf32> to vector<128x32xf32>
    %28 = arith.truncf %27 : vector<128x32xf32> to vector<128x32xbf16>
    %c2 = arith.constant 2 : index
    %c0_11 = arith.constant 0 : index
    %c0_12 = arith.constant 0 : index
    %29 = vector.load %arg24[%c2, %c0_11, %c0_12] : memref<4x128x32xbf16, #tpu.memory_space<vmem>>, vector<1x128x32xbf16>
    %30 = vector.shape_cast %29 : vector<1x128x32xbf16> to vector<128x32xbf16>
    %31 = vector.shape_cast %28 : vector<128x32xbf16> to vector<1x128x32xbf16>
    tpu.vector_store %arg24[%c2, %c0_11, %c0_12], %31 {strides = array<i32>} : memref<4x128x32xbf16, #tpu.memory_space<vmem>>, vector<1x128x32xbf16>,
    %32 = vector.extract_strided_slice %16 {offsets = [0, 96], sizes = [128, 32], strides = [1, 1]} : vector<128x128xf32> to vector<128x32xf32>
    %33 = arith.truncf %32 : vector<128x32xf32> to vector<128x32xbf16>
    %c3 = arith.constant 3 : index
    %c0_13 = arith.constant 0 : index
    %c0_14 = arith.constant 0 : index
    %34 = vector.load %arg24[%c3, %c0_13, %c0_14] : memref<4x128x32xbf16, #tpu.memory_space<vmem>>, vector<1x128x32xbf16>
    %35 = vector.shape_cast %34 : vector<1x128x32xbf16> to vector<128x32xbf16>
    %36 = vector.shape_cast %33 : vector<128x32xbf16> to vector<1x128x32xbf16>
    tpu.vector_store %arg24[%c3, %c0_13, %c0_14], %36 {strides = array<i32>} : memref<4x128x32xbf16, #tpu.memory_space<vmem>>, vector<1x128x32xbf16>,
    %c0_15 = arith.constant 0 : index
    %c0_16 = arith.constant 0 : index
    %c0_17 = arith.constant 0 : index
    %37 = vector.load %arg24[%c0_15, %c0_16, %c0_17] : memref<4x128x32xbf16, #tpu.memory_space<vmem>>, vector<4x128x32xbf16>
    %c0_18 = arith.constant 0 : index
    %c0_19 = arith.constant 0 : index
    %c0_20 = arith.constant 0 : index
    %38 = vector.load %arg22[%c0_18, %c0_19, %c0_20] : memref<4x256x32xbf16, #tpu.memory_space<vmem>>, vector<4x256x32xbf16>
    "tpu.trace_start"() <{level = 10 : i32, message = "hqd,hkd->hqk"}> : () -> ()
    %cst_21 = arith.constant dense<0.000000e+00> : vector<4x128x256xf32>
    %39 = tpu.matmul %37, %38, %cst_21 {dimension_numbers = #tpu.dot_dimension_numbers<[2], [2], [1], [1], [0, 0, 0, 1, 1, 1], [0], [0]>} : vector<4x128x32xbf16>, vector<4x256x32xbf16>, vector<4x128x256xf32> -> vector<4x128x256xf32>
    "tpu.trace_stop"() : () -> ()
    %cst_22 = arith.constant dense<0xFF800000> : vector<4x128xf32>
    %40 = vector.multi_reduction <maximumf>, %39, %cst_22 [2] : vector<4x128x256xf32> to vector<4x128xf32>
    %41 = vector.shape_cast %40 : vector<4x128xf32> to vector<4x128x1xf32>
    %42 = vector.broadcast %41 : vector<4x128x1xf32> to vector<4x128x256xf32>
    %43 = arith.subf %39, %42 : vector<4x128x256xf32>
    %44 = math.exp %43 : vector<4x128x256xf32>
    %cst_23 = arith.constant dense<0.000000e+00> : vector<4x128xf32>
    %45 = vector.multi_reduction <add>, %44, %cst_23 [2] : vector<4x128x256xf32> to vector<4x128xf32>
    %46 = vector.shape_cast %45 : vector<4x128xf32> to vector<4x128x1xf32>
    %47 = tpu.reciprocal %46 {approx = true} : vector<4x128x1xf32> -> vector<4x128x1xf32>
    %48 = vector.broadcast %47 : vector<4x128x1xf32> to vector<4x128x256xf32>
    %49 = arith.mulf %44, %48 : vector<4x128x256xf32>
    %c0_24 = arith.constant 0 : index
    %c0_25 = arith.constant 0 : index
    %c0_26 = arith.constant 0 : index
    %c0_27 = arith.constant 0 : index
    %50 = vector.load %arg20[%c0_24, %c0_25, %c0_26, %c0_27] : memref<1x4x128x256xf32, #tpu.memory_space<vmem>>, vector<1x4x128x256xf32>
    %51 = vector.shape_cast %50 : vector<1x4x128x256xf32> to vector<4x128x256xf32>
    %52 = vector.shape_cast %49 : vector<4x128x256xf32> to vector<1x4x128x256xf32>
    tpu.vector_store %arg20[%c0_24, %c0_25, %c0_26, %c0_27], %52 {strides = array<i32>} : memref<1x4x128x256xf32, #tpu.memory_space<vmem>>, vector<1x4x128x256xf32>,
    %53 = arith.truncf %49 : vector<4x128x256xf32> to vector<4x128x256xbf16>
    %c0_28 = arith.constant 0 : index
    %c0_29 = arith.constant 0 : index
    %c0_30 = arith.constant 0 : index
    %54 = vector.load %arg23[%c0_28, %c0_29, %c0_30] : memref<4x256x32xbf16, #tpu.memory_space<vmem>>, vector<4x256x32xbf16>
    "tpu.trace_start"() <{level = 10 : i32, message = "hqk,hkd->hqd"}> : () -> ()
    %cst_31 = arith.constant dense<0.000000e+00> : vector<4x128x32xf32>
    %55 = tpu.matmul %53, %54, %cst_31 {dimension_numbers = #tpu.dot_dimension_numbers<[2], [1], [1], [2], [0, 0, 0, 1, 1, 2], [0], [0]>} : vector<4x128x256xbf16>, vector<4x256x32xbf16>, vector<4x128x32xf32> -> vector<4x128x32xf32>
    "tpu.trace_stop"() : () -> ()
    %56 = vector.extract_strided_slice %55 {offsets = [0, 0, 0], sizes = [1, 128, 32], strides = [1, 1, 1]} : vector<4x128x32xf32> to vector<1x128x32xf32>
    %57 = vector.shape_cast %56 : vector<1x128x32xf32> to vector<128x32xf32>
    %c0_32 = arith.constant 0 : index
    %c0_33 = arith.constant 0 : index
    %58 = vector.load %arg25[%c0_32, %c0_33] : memref<128x128xf32, #tpu.memory_space<vmem>>, vector<128x32xf32>
    tpu.vector_store %arg25[%c0_32, %c0_33], %57 {strides = array<i32>} : memref<128x128xf32, #tpu.memory_space<vmem>>, vector<128x32xf32>,
    %59 = vector.extract_strided_slice %55 {offsets = [1, 0, 0], sizes = [1, 128, 32], strides = [1, 1, 1]} : vector<4x128x32xf32> to vector<1x128x32xf32>
    %60 = vector.shape_cast %59 : vector<1x128x32xf32> to vector<128x32xf32>
    %c0_34 = arith.constant 0 : index
    %c32 = arith.constant 32 : index
    %61 = vector.load %arg25[%c0_34, %c32] : memref<128x128xf32, #tpu.memory_space<vmem>>, vector<128x32xf32>
    tpu.vector_store %arg25[%c0_34, %c32], %60 {strides = array<i32>} : memref<128x128xf32, #tpu.memory_space<vmem>>, vector<128x32xf32>,
    %62 = vector.extract_strided_slice %55 {offsets = [2, 0, 0], sizes = [1, 128, 32], strides = [1, 1, 1]} : vector<4x128x32xf32> to vector<1x128x32xf32>
    %63 = vector.shape_cast %62 : vector<1x128x32xf32> to vector<128x32xf32>
    %c0_35 = arith.constant 0 : index
    %c64 = arith.constant 64 : index
    %64 = vector.load %arg25[%c0_35, %c64] : memref<128x128xf32, #tpu.memory_space<vmem>>, vector<128x32xf32>
    tpu.vector_store %arg25[%c0_35, %c64], %63 {strides = array<i32>} : memref<128x128xf32, #tpu.memory_space<vmem>>, vector<128x32xf32>,
    %65 = vector.extract_strided_slice %55 {offsets = [3, 0, 0], sizes = [1, 128, 32], strides = [1, 1, 1]} : vector<4x128x32xf32> to vector<1x128x32xf32>
    %66 = vector.shape_cast %65 : vector<1x128x32xf32> to vector<128x32xf32>
    %c0_36 = arith.constant 0 : index
    %c96 = arith.constant 96 : index
    %67 = vector.load %arg25[%c0_36, %c96] : memref<128x128xf32, #tpu.memory_space<vmem>>, vector<128x32xf32>
    tpu.vector_store %arg25[%c0_36, %c96], %66 {strides = array<i32>} : memref<128x128xf32, #tpu.memory_space<vmem>>, vector<128x32xf32>,
    %c0_37 = arith.constant 0 : index
    %c0_38 = arith.constant 0 : index
    %68 = vector.load %arg25[%c0_37, %c0_38] : memref<128x128xf32, #tpu.memory_space<vmem>>, vector<128x128xf32>
    %69 = arith.truncf %68 : vector<128x128xf32> to vector<128x128xbf16>
    %c0_39 = arith.constant 0 : index
    %c0_40 = arith.constant 0 : index
    %70 = vector.load %arg11[%c0_39, %c0_40] : memref<128x128xbf16, #tpu.memory_space<vmem>>, vector<128x128xbf16>
    %cst_41 = arith.constant dense<0.000000e+00> : vector<128x128xf32>
    %71 = tpu.matmul %69, %70, %cst_41 {dimension_numbers = #tpu.dot_dimension_numbers<[1], [0], [0], [1], [0, 0, 1, 1], [], []>} : vector<128x128xbf16>, vector<128x128xbf16>, vector<128x128xf32> -> vector<128x128xf32>
    %c0_42 = arith.constant 0 : index
    %c0_43 = arith.constant 0 : index
    %72 = vector.load %arg12[%c0_42, %c0_43] : memref<1x128xf32, #tpu.memory_space<vmem>>, vector<1x128xf32>
    %73 = vector.shape_cast %72 : vector<1x128xf32> to vector<128xf32>
    %74 = vector.shape_cast %73 : vector<128xf32> to vector<1x128xf32>
    %75 = vector.broadcast %74 : vector<1x128xf32> to vector<128x128xf32>
    %76 = arith.addf %71, %75 : vector<128x128xf32>
    %77 = arith.addf %6, %76 : vector<128x128xf32>
    %78 = arith.truncf %77 : vector<128x128xf32> to vector<128x128xbf16>
    %c0_44 = arith.constant 0 : index
    %c0_45 = arith.constant 0 : index
    %79 = vector.load %arg13[%c0_44, %c0_45] : memref<128x256xbf16, #tpu.memory_space<vmem>>, vector<128x256xbf16>
    %cst_46 = arith.constant dense<0.000000e+00> : vector<128x256xf32>
    %80 = tpu.matmul %78, %79, %cst_46 {dimension_numbers = #tpu.dot_dimension_numbers<[1], [0], [0], [1], [0, 0, 1, 1], [], []>} : vector<128x128xbf16>, vector<128x256xbf16>, vector<128x256xf32> -> vector<128x256xf32>
    %c0_47 = arith.constant 0 : index
    %c0_48 = arith.constant 0 : index
    %81 = vector.load %arg14[%c0_47, %c0_48] : memref<1x256xf32, #tpu.memory_space<vmem>>, vector<1x256xf32>
    %82 = vector.shape_cast %81 : vector<1x256xf32> to vector<256xf32>
    %83 = vector.shape_cast %82 : vector<256xf32> to vector<1x256xf32>
    %84 = vector.broadcast %83 : vector<1x256xf32> to vector<128x256xf32>
    %85 = arith.addf %80, %84 : vector<128x256xf32>
    %cst_49 = arith.constant 0.000000e+00 : f32
    %86 = vector.broadcast %cst_49 : f32 to vector<128x256xf32>
    %87 = arith.maximumf %85, %86 : vector<128x256xf32>
    %88 = arith.truncf %87 : vector<128x256xf32> to vector<128x256xbf16>
    %c0_50 = arith.constant 0 : index
    %c0_51 = arith.constant 0 : index
    %89 = vector.load %arg15[%c0_50, %c0_51] : memref<256x128xbf16, #tpu.memory_space<vmem>>, vector<256x128xbf16>
    %cst_52 = arith.constant dense<0.000000e+00> : vector<128x128xf32>
    %90 = tpu.matmul %88, %89, %cst_52 {dimension_numbers = #tpu.dot_dimension_numbers<[1], [0], [0], [1], [0, 0, 1, 1], [], []>} : vector<128x256xbf16>, vector<256x128xbf16>, vector<128x128xf32> -> vector<128x128xf32>
    %c0_53 = arith.constant 0 : index
    %c0_54 = arith.constant 0 : index
    %91 = vector.load %arg16[%c0_53, %c0_54] : memref<1x128xf32, #tpu.memory_space<vmem>>, vector<1x128xf32>
    %92 = vector.shape_cast %91 : vector<1x128xf32> to vector<128xf32>
    %93 = vector.shape_cast %92 : vector<128xf32> to vector<1x128xf32>
    %94 = vector.broadcast %93 : vector<1x128xf32> to vector<128x128xf32>
    %95 = arith.addf %90, %94 : vector<128x128xf32>
    %96 = arith.addf %77, %95 : vector<128x128xf32>
    %cst_55 = arith.constant dense<0.000000e+00> : vector<128xf32>
    %97 = vector.multi_reduction <add>, %96, %cst_55 [1] : vector<128x128xf32> to vector<128xf32>
    %98 = vector.shape_cast %97 : vector<128xf32> to vector<128x1xf32>
    %cst_56 = arith.constant 1.280000e+02 : f32
    %99 = vector.broadcast %cst_56 : f32 to vector<128x1xf32>
    %100 = arith.divf %98, %99 : vector<128x1xf32>
    %101 = vector.broadcast %100 : vector<128x1xf32> to vector<128x128xf32>
    %102 = arith.subf %96, %101 : vector<128x128xf32>
    %103 = arith.mulf %102, %102 : vector<128x128xf32>
    %cst_57 = arith.constant dense<0.000000e+00> : vector<128xf32>
    %104 = vector.multi_reduction <add>, %103, %cst_57 [1] : vector<128x128xf32> to vector<128xf32>
    %105 = vector.shape_cast %104 : vector<128xf32> to vector<128x1xf32>
    %cst_58 = arith.constant 1.280000e+02 : f32
    %106 = vector.broadcast %cst_58 : f32 to vector<128x1xf32>
    %107 = arith.divf %105, %106 : vector<128x1xf32>
    %108 = vector.broadcast %100 : vector<128x1xf32> to vector<128x128xf32>
    %109 = arith.subf %96, %108 : vector<128x128xf32>
    %cst_59 = arith.constant 9.99999974E-6 : f32
    %110 = vector.broadcast %cst_59 : f32 to vector<128x1xf32>
    %111 = arith.addf %107, %110 : vector<128x1xf32>
    %112 = math.rsqrt %111 : vector<128x1xf32>
    %113 = vector.broadcast %112 : vector<128x1xf32> to vector<128x128xf32>
    %114 = arith.mulf %109, %113 : vector<128x128xf32>
    %c0_60 = arith.constant 0 : index
    %c0_61 = arith.constant 0 : index
    %115 = vector.load %arg17[%c0_60, %c0_61] : memref<1x128xf32, #tpu.memory_space<vmem>>, vector<1x128xf32>
    %116 = vector.shape_cast %115 : vector<1x128xf32> to vector<128xf32>
    %117 = vector.shape_cast %116 : vector<128xf32> to vector<1x128xf32>
    %118 = vector.broadcast %117 : vector<1x128xf32> to vector<128x128xf32>
    %119 = arith.mulf %114, %118 : vector<128x128xf32>
    %c0_62 = arith.constant 0 : index
    %c0_63 = arith.constant 0 : index
    %120 = vector.load %arg18[%c0_62, %c0_63] : memref<1x128xf32, #tpu.memory_space<vmem>>, vector<1x128xf32>
    %121 = vector.shape_cast %120 : vector<1x128xf32> to vector<128xf32>
    %122 = vector.shape_cast %121 : vector<128xf32> to vector<1x128xf32>
    %123 = vector.broadcast %122 : vector<1x128xf32> to vector<128x128xf32>
    %124 = arith.addf %119, %123 : vector<128x128xf32>
    %c0_64 = arith.constant 0 : index
    %c0_65 = arith.constant 0 : index
    %c0_66 = arith.constant 0 : index
    %125 = vector.load %arg19[%c0_64, %c0_65, %c0_66] : memref<1x128x128xf32, #tpu.memory_space<vmem>>, vector<1x128x128xf32>
    %126 = vector.shape_cast %125 : vector<1x128x128xf32> to vector<128x128xf32>
    %127 = vector.shape_cast %124 : vector<128x128xf32> to vector<1x128x128xf32>
    tpu.vector_store %arg19[%c0_64, %c0_65, %c0_66], %127 {strides = array<i32>} : memref<1x128x128xf32, #tpu.memory_space<vmem>>, vector<1x128x128xf32>,
    return
  }
  func.func @transform_0(%arg0: i32, %arg1: i32) -> (i32, i32, i32) {
    %c0_i32 = arith.constant 0 : i32
    %c0_i32_0 = arith.constant 0 : i32
    %c0_i32_1 = arith.constant 0 : i32
    return %arg0, %c0_i32, %c0_i32_0 : i32, i32, i32
  }
  func.func @transform_1(%arg0: i32, %arg1: i32) -> (i32, i32) {
    %c0_i32 = arith.constant 0 : i32
    %c0_i32_0 = arith.constant 0 : i32
    %c0_i32_1 = arith.constant 0 : i32
    return %c0_i32, %c0_i32_0 : i32, i32
  }
  func.func @transform_2(%arg0: i32, %arg1: i32) -> (i32, i32) {
    %c0_i32 = arith.constant 0 : i32
    %c0_i32_0 = arith.constant 0 : i32
    %c0_i32_1 = arith.constant 0 : i32
    return %c0_i32, %c0_i32_0 : i32, i32
  }
  func.func @transform_3(%arg0: i32, %arg1: i32) -> (i32, i32) {
    %c0_i32 = arith.constant 0 : i32
    %c0_i32_0 = arith.constant 0 : i32
    %c0_i32_1 = arith.constant 0 : i32
    return %c0_i32, %c0_i32_0 : i32, i32
  }
  func.func @transform_4(%arg0: i32, %arg1: i32) -> (i32, i32) {
    %c0_i32 = arith.constant 0 : i32
    %c0_i32_0 = arith.constant 0 : i32
    %c0_i32_1 = arith.constant 0 : i32
    return %c0_i32, %c0_i32_0 : i32, i32
  }
  func.func @transform_5(%arg0: i32, %arg1: i32) -> (i32, i32) {
    %c0_i32 = arith.constant 0 : i32
    %c0_i32_0 = arith.constant 0 : i32
    %c0_i32_1 = arith.constant 0 : i32
    return %c0_i32, %c0_i32_0 : i32, i32
  }
  func.func @transform_6(%arg0: i32, %arg1: i32) -> (i32, i32) {
    %c0_i32 = arith.constant 0 : i32
    %c0_i32_0 = arith.constant 0 : i32
    %c0_i32_1 = arith.constant 0 : i32
    return %c0_i32, %c0_i32_0 : i32, i32
  }
  func.func @transform_7(%arg0: i32, %arg1: i32) -> (i32, i32) {
    %c0_i32 = arith.constant 0 : i32
    %c0_i32_0 = arith.constant 0 : i32
    %c0_i32_1 = arith.constant 0 : i32
    return %c0_i32, %c0_i32_0 : i32, i32
  }
  func.func @transform_8(%arg0: i32, %arg1: i32) -> (i32, i32) {
    %c0_i32 = arith.constant 0 : i32
    %c0_i32_0 = arith.constant 0 : i32
    %c0_i32_1 = arith.constant 0 : i32
    return %c0_i32, %c0_i32_0 : i32, i32
  }
  func.func @transform_9(%arg0: i32, %arg1: i32) -> (i32, i32) {
    %c0_i32 = arith.constant 0 : i32
    %c0_i32_0 = arith.constant 0 : i32
    %c0_i32_1 = arith.constant 0 : i32
    return %c0_i32, %c0_i32_0 : i32, i32
  }
  func.func @transform_10(%arg0: i32, %arg1: i32) -> (i32, i32) {
    %c0_i32 = arith.constant 0 : i32
    %c0_i32_0 = arith.constant 0 : i32
    %c0_i32_1 = arith.constant 0 : i32
    return %c0_i32, %c0_i32_0 : i32, i32
  }
  func.func @transform_11(%arg0: i32, %arg1: i32) -> (i32, i32) {
    %c0_i32 = arith.constant 0 : i32
    %c0_i32_0 = arith.constant 0 : i32
    %c0_i32_1 = arith.constant 0 : i32
    return %c0_i32, %c0_i32_0 : i32, i32
  }
  func.func @transform_12(%arg0: i32, %arg1: i32) -> (i32, i32) {
    %c0_i32 = arith.constant 0 : i32
    %c0_i32_0 = arith.constant 0 : i32
    %c0_i32_1 = arith.constant 0 : i32
    return %c0_i32, %c0_i32_0 : i32, i32
  }
  func.func @transform_13(%arg0: i32, %arg1: i32) -> (i32, i32) {
    %c0_i32 = arith.constant 0 : i32
    %c0_i32_0 = arith.constant 0 : i32
    %c0_i32_1 = arith.constant 0 : i32
    return %c0_i32, %c0_i32_0 : i32, i32
  }
  func.func @transform_14(%arg0: i32, %arg1: i32) -> (i32, i32) {
    %c0_i32 = arith.constant 0 : i32
    %c0_i32_0 = arith.constant 0 : i32
    %c0_i32_1 = arith.constant 0 : i32
    return %c0_i32, %c0_i32_0 : i32, i32
  }
  func.func @transform_15(%arg0: i32, %arg1: i32) -> (i32, i32) {
    %c0_i32 = arith.constant 0 : i32
    %c0_i32_0 = arith.constant 0 : i32
    %c0_i32_1 = arith.constant 0 : i32
    return %c0_i32, %c0_i32_0 : i32, i32
  }
  func.func @transform_16(%arg0: i32, %arg1: i32) -> (i32, i32) {
    %c0_i32 = arith.constant 0 : i32
    %c0_i32_0 = arith.constant 0 : i32
    %c0_i32_1 = arith.constant 0 : i32
    return %c0_i32, %c0_i32_0 : i32, i32
  }
  func.func @transform_17(%arg0: i32, %arg1: i32) -> (i32, i32, i32) {
    %c0_i32 = arith.constant 0 : i32
    %c0_i32_0 = arith.constant 0 : i32
    return %arg0, %arg1, %c0_i32 : i32, i32, i32
  }
  func.func @transform_18(%arg0: i32, %arg1: i32) -> (i32, i32, i32, i32) {
    %c0_i32 = arith.constant 0 : i32
    %c0_i32_0 = arith.constant 0 : i32
    %c0_i32_1 = arith.constant 0 : i32
    return %arg0, %c0_i32, %arg1, %c0_i32_0 : i32, i32, i32, i32
  }
}

</mosaic_0001>

<bundles_post_ra>
// kernel: tpu_custom_call.1
= control target key start
LH: loop header
LB: loop body
LE: loop exit
PB: predicated region body
PF: predicated region fallthrough
CT: control target
= control target key end

     0   :  { %s12795_s0 = inlined_call_operand.hbm [shape: f32[2,256,128], index: 0, kind: input, shape index: {}]   ;;  %s12796_s1 = inlined_call_operand.hbm [shape: f32[1,128], index: 1, kind: input, shape index: {}]   ;;  %s12797_s2 = inlined_call_operand.hbm [shape: f32[1,128], index: 2, kind: input, shape index: {}]   ;;  %s12798_s3 = inlined_call_operand.hbm [shape: bf16[128,128], index: 3, kind: input, shape index: {}]   ;;  %s12799_s4 = inlined_call_operand.hbm [shape: f32[1,128], index: 4, kind: input, shape index: {}]   ;;  %s12800_s5 = inlined_call_operand.hbm [shape: bf16[128,128], index: 5, kind: input, shape index: {}]   ;;  %s12801_s6 = inlined_call_operand.hbm [shape: f32[1,128], index: 6, kind: input, shape index: {}]   ;;  %s12802_s7 = inlined_call_operand.hbm [shape: bf16[128,128], index: 7, kind: input, shape index: {}]   ;;  %s12803_s8 = inlined_call_operand.hbm [shape: f32[1,128], index: 8, kind: input, shape index: {}]   ;;  %s12804_s9 = inlined_call_operand.hbm [shape: bf16[128,128], index: 9, kind: input, shape index: {}]   ;;  %s12805_s10 = inlined_call_operand.hbm [shape: f32[1,128], index: 10, kind: input, shape index: {}]   ;;  %s12806_s11 = inlined_call_operand.hbm [shape: bf16[128,256], index: 11, kind: input, shape index: {}]   ;;  %s12807_s12 = inlined_call_operand.hbm [shape: f32[1,256], index: 12, kind: input, shape index: {}]   ;;  %s12808_s13 = inlined_call_operand.hbm [shape: bf16[256,128], index: 13, kind: input, shape index: {}]   ;;  %s12809_s14 = inlined_call_operand.hbm [shape: f32[1,128], index: 14, kind: input, shape index: {}]   ;;  %s12810_s15 = inlined_call_operand.hbm [shape: f32[1,128], index: 15, kind: input, shape index: {}]   ;;  %s12811_s16 = inlined_call_operand.hbm [shape: f32[1,128], index: 16, kind: input, shape index: {}]   ;;  %s12812_s17 = inlined_call_operand.hbm [shape: f32[2,256,128], index: 17, kind: output, shape index: {0}]   ;;  %s12813_s18 = inlined_call_operand.hbm [shape: f32[2,4,256,256], index: 18, kind: output, shape index: {1}]  }
   0x1   :  { %12991 = sst [smem:[#allocation152_spill]] %s12795_s0 }
   0x2   :  { %12992 = sst [smem:[#allocation153_spill]] %s12796_s1 }
   0x3   :  { %12993 = sst [smem:[#allocation154_spill]] %s12797_s2 }
   0x4   :  { %12994 = sst [smem:[#allocation155_spill]] %s12798_s3 }
   0x5   :  { %12995 = sst [smem:[#allocation156_spill]] %s12799_s4 }
   0x6   :  { %12996 = sst [smem:[#allocation157_spill]] %s12800_s5 }
   0x7   :  { %12997 = sst [smem:[#allocation158_spill]] %s12801_s6 }
   0x8   :  { %12998 = sst [smem:[#allocation159_spill]] %s12802_s7 }
   0x9   :  { %12999 = sst [smem:[#allocation160_spill]] %s12803_s8 }
   0xa   :  { %13000 = sst [smem:[#allocation161_spill]] %s12804_s9 }
   0xb   :  { %13001 = sst [smem:[#allocation162_spill]] %s12805_s10 }
   0xc   :  { %13002 = sst [smem:[#allocation163_spill]] %s12806_s11 }
   0xd   :  { %13003 = sst [smem:[#allocation164_spill]] %s12811_s16 }
   0xe   :  { %13004 = sst [smem:[#allocation165_spill]] %s12812_s17 }
   0xf   :  { %13005 = sst [smem:[#allocation166_spill]] %s12813_s18 }
  0x10   :  { %24 = vsyncpa [#allocation8], 0 }
  0x11   :  { %26 = vsyncpa [#allocation8 + $0x1], 0 }
  0x12   :  { %27 = vsyncpa [#allocation11], 0 }
  0x13   :  { %28 = vsyncpa [#allocation14], 0 }
  0x14   :  { %29 = vsyncpa [#allocation17], 0 }
  0x15   :  { %30 = vsyncpa [#allocation20], 0 }
  0x16   :  { %31 = vsyncpa [#allocation23], 0 }
  0x17   :  { %32 = vsyncpa [#allocation26], 0 }
  0x18   :  { %33 = vsyncpa [#allocation29], 0 }
  0x19   :  { %34 = vsyncpa [#allocation32], 0 }
  0x1a   :  { %35 = vsyncpa [#allocation9], 0 }
  0x1b   :  { %37 = vsyncpa [#allocation9 + $0x1], 0 }
  0x1c   :  { %38 = vsyncpa [#allocation36], 0 }
  0x1d   :  { %40 = vsyncpa [#allocation36 + $0x1], 0  ;;  %s9166_s27 = smov 0   ;;  %s9168_s28 = smov 0  }
  0x1e   :  { %s9170_s29 = smov 0   ;;  %s9172_s30 = smov 0  }
  0x1f   :  { %s9174_s0 = smov 0   ;;  %s9176_s19 = smov 0  }
  0x20   :  { %s9178_s1 = smov 0   ;;  %s9180_s20 = smov 0  }
  0x21   :  { %s9182_s21 = smov 0   ;;  %s9184_s22 = smov 0  }
  0x22   :  { %s9186_s2 = smov 0  }
  0x23 LB: > { %13006 = sst [smem:[#allocation50_spill]] %s8992_s27  ;;  %s12819_s23 = sadd.s32 4294967295, %s9032_s2   ;;  %s9032_s2 = sphi %s9186_s2, %s46_s2   ;;  %s9028_s22 = sphi %s9184_s22, %s13398_s22   ;;  %s9024_s21 = sphi %s9182_s21, %s13397_s21   ;;  %s9020_s20 = sphi %s9180_s20, %s13393_s20   ;;  %s9016_s1 = sphi %s9178_s1, %s13396_s1   ;;  %s9012_s19 = sphi %s9176_s19, %s13395_s19   ;;  %s9008_s0 = sphi %s9174_s0, %s13392_s0   ;;  %s9004_s30 = sphi %s9172_s30, %s13391_s30   ;;  %s9000_s29 = sphi %s9170_s29, %s13394_s29   ;;  %s8996_s28 = sphi %s9168_s28, %s13390_s28   ;;  %s8992_s27 = sphi %s9166_s27, %s13389_s27  }
  0x24   : > { %13007 = sst [smem:[#allocation51_spill]] %s8996_s28  ;;  %p6654_p0 = scmp.ge.s32.totalorder %s9032_s2, 1 }
  0x25   : > { %13008 = sst [smem:[#allocation52_spill]] %s9000_s29  ;;  %p9225_p1 = scmp.eq.s32.totalorder %s12819_s23, 0 }
  0x26   : > { %13009 = sst [smem:[#allocation53_spill]] %s9004_s30  ;;  %p481_p2 = scmp.lt.s32.totalorder %s9032_s2, 5 }
  0x27   : > { %13010 = sst [smem:[#allocation54_spill]] %s9008_s0  ;;  %s9034_s26 = smov [#allocation10]  }
  0x28   : > { %13011 = sst [smem:[#allocation55_spill]] %s9012_s19  ;;  %p9230_p3 = pnand %p6654_p0, %p481_p2 }
  0x29   : > { %13012 = sst [smem:[#allocation56_spill]] %s9016_s1  ;;  %s494_s18 = sshll.u32 %s9034_s26, 4  ;;  %s495_s18 = int_to_ptr.vmem [resolvable:$true] %s494_s18 }
  0x2a   : > { %13013 = sst [smem:[#allocation57_spill]] %s9020_s20  ;;  %p7611_p4 = pneg %p9230_p3 }
  0x2b   : > { %13014 = sst [smem:[#allocation58_spill]] %s9028_s22  ;;  %s9035_s17 = smov [#allocation13]  }
  0x2c   : > { %s13015_s24 = scalar_select %p9225_p1, 1, 0 }
  0x2d   : > { %s13017_s25 = scalar_select %p9230_p3, 1, 0 }
  0x2e   : > { %13016 = sst [smem:[#allocation59_spill]] %s13015_s24  ;;  %s515_s20 = sshll.u32 %s9035_s17, 4  ;;  %s9242_s20 = int_to_ptr.vmem [resolvable:$true] %s515_s20 }
  0x2f   : > { %13018 = sst [smem:[#allocation60_spill]] %s13017_s25  ;;  %p9238_p5 = pnand %p7611_p4, %p9225_p1 }
  0x30   : > { %s9036_s1 = smov [#allocation16]   ;;  %s13020_s30 = sld [smem:[#allocation153_spill]] }
  0x31   : > { %s9244_s27 = sshll.u32 %s9036_s1, 4  ;;  %p9254_p7 = pneg %p9238_p5  ;;  %s540_s27 = int_to_ptr.vmem [resolvable:$true] %s9244_s27 }
  0x36   : > { %s13021_s16 = smov %s13020_s30  ;;  %s8396_s26 = scalar_lea.hbm %s13020_s30, 16 }
  0x37   : > { %p8397_p6 = scmp.ne.s32.totalorder %s13021_s16, %s8396_s26  ;;  %p8403_p10 = scmp.lt.u32.totalorder %s8396_s26, %s13021_s16 }
  0x39   : > { %p8399_p8 = pnand %p9254_p7, %p8397_p6 }
  0x3b   : > { %p8400_p9 = pneg %p8399_p8 }
  0x3d   : > { %p8405_p11 = pnand %p8403_p10, %p8400_p9 }
  0x3f   : > { %8408 = shalt.err (!%p8405_p11)
}
  0x40   : > { %s8409_s28 = scalar_lea.vmem %s495_s18, 16  ;;  %s8416_s29 = scalar_lea.vmem %s495_s18, 32 }
  0x41   : > { %p8410_p12 = scmp.ne.s32.totalorder %s495_s18, %s8409_s28  ;;  %p8417_p2 = scmp.lt.s32.totalorder %s495_s18, %s495_s18 }
  0x42   : > { %p8418_p4 = scmp.lt.s32.totalorder %s8416_s29, %s8409_s28 }
  0x43   : > { %p8412_p13 = pnand %p8410_p12, %p9254_p7 }
  0x44   : > { %p8419_p3 = por %p8418_p4, %p8417_p2 }
  0x45   : > { %p8413_p0 = pneg %p8412_p13 }
  0x47   : > { %p8420_p1 = pnand %p8419_p3, %p8413_p0 }
  0x49   : > { %8423 = shalt.err (!%p8420_p1)
}
  0x4a   : > { %7614 = dma.hbm_to_vmem [thread:$0]  (!%p9238_p5), %s13021_s16, 16, %s495_s18, [#allocation11]  }
  0x4b   : > { %s13023_s3 = sld [smem:[#allocation155_spill]] }
  0x51   : > { %s8424_s26 = scalar_lea.hbm %s13023_s3, 1024 }
  0x52   : > { %p8425_p6 = scmp.ne.s32.totalorder %s13023_s3, %s8424_s26  ;;  %p8431_p1 = scmp.lt.u32.totalorder %s8424_s26, %s13023_s3 }
  0x54   : > { %p8427_p8 = pnand %p8425_p6, %p9254_p7 }
  0x56   : > { %p8428_p9 = pneg %p8427_p8 }
  0x58   : > { %p8433_p3 = pnand %p8431_p1, %p8428_p9 }
  0x5a   : > { %8436 = shalt.err (!%p8433_p3)
}
  0x5b   : > { %s8437_s18 = scalar_lea.vmem %s9242_s20, 1024  ;;  %p8445_p13 = scmp.lt.s32.totalorder %s9242_s20, %s9242_s20 }
  0x5c   : > { %p8438_p10 = scmp.ne.s32.totalorder %s9242_s20, %s8437_s18  ;;  %p8446_p0 = scmp.lt.s32.totalorder %s8437_s18, %s8437_s18 }
  0x5e   : > { %p8440_p11 = pnand %p8438_p10, %p9254_p7  ;;  %p8447_p2 = por %p8446_p0, %p8445_p13 }
  0x60   : > { %p8441_p12 = pneg %p8440_p11 }
  0x62   : > { %p8448_p4 = pnand %p8447_p2, %p8441_p12 }
  0x64   : > { %8451 = shalt.err (!%p8448_p4)
}
  0x65   : > { %s12834_s19 = smov 64   ;;  %s9038_s30 = smov 4  }
  0x66   : > { %7620 = dma.hbm_to_vmem [thread:$0]  (!%p9238_p5), %s13023_s3, 1024, %s9242_s20, [#allocation14], %s12834_s19, %s12834_s19, %s9038_s30  }
  0x67   : > { %s13024_s5 = sld [smem:[#allocation157_spill]] }
  0x6d   : > { %s8452_s1 = scalar_lea.hbm %s13024_s5, 1024 }
  0x6e   : > { %p8453_p6 = scmp.ne.s32.totalorder %s13024_s5, %s8452_s1  ;;  %p8459_p1 = scmp.lt.u32.totalorder %s8452_s1, %s13024_s5 }
  0x70   : > { %p8455_p8 = pnand %p8453_p6, %p9254_p7 }
  0x72   : > { %p8456_p9 = pneg %p8455_p8 }
  0x74   : > { %p8461_p3 = pnand %p8459_p1, %p8456_p9 }
  0x76   : > { %8464 = shalt.err (!%p8461_p3)
}
  0x77   : > { %s8465_s0 = scalar_lea.vmem %s540_s27, 1024  ;;  %p8473_p13 = scmp.lt.s32.totalorder %s540_s27, %s540_s27 }
  0x78   : > { %p8466_p10 = scmp.ne.s32.totalorder %s540_s27, %s8465_s0  ;;  %p8474_p0 = scmp.lt.s32.totalorder %s8465_s0, %s8465_s0 }
  0x7a   : > { %p8468_p11 = pnand %p8466_p10, %p9254_p7  ;;  %p8475_p2 = por %p8474_p0, %p8473_p13 }
  0x7c   : > { %p8469_p12 = pneg %p8468_p11 }
  0x7e   : > { %p8476_p4 = pnand %p8475_p2, %p8469_p12 }
  0x80   : > { %8479 = shalt.err (!%p8476_p4)
}
  0x81   : > { %7626 = dma.hbm_to_vmem [thread:$0]  (!%p9238_p5), %s13024_s5, 1024, %s540_s27, [#allocation17], %s12834_s19, %s12834_s19, %s9038_s30  }
  0x82   : > { %s9039_s24 = smov [#allocation19]   ;;  %s9040_s26 = smov [#allocation22]  }
  0x83   : > { %s563_s25 = sshll.u32 %s9039_s24, 4  ;;  %s587_s1 = sshll.u32 %s9040_s26, 4  ;;  %s564_s25 = int_to_ptr.vmem [resolvable:$true] %s563_s25  ;;  %s588_s1 = int_to_ptr.vmem [resolvable:$true] %s587_s1 }
  0x84   : > { %s13025_s7 = sld [smem:[#allocation159_spill]] }
  0x8a   : > { %s8480_s18 = scalar_lea.hbm %s13025_s7, 1024 }
  0x8b   : > { %p8481_p6 = scmp.ne.s32.totalorder %s13025_s7, %s8480_s18  ;;  %p8487_p1 = scmp.lt.u32.totalorder %s8480_s18, %s13025_s7 }
  0x8d   : > { %p8483_p8 = pnand %p8481_p6, %p9254_p7 }
  0x8f   : > { %p8484_p9 = pneg %p8483_p8 }
  0x91   : > { %p8489_p3 = pnand %p8487_p1, %p8484_p9 }
  0x93   : > { %8492 = shalt.err (!%p8489_p3)
}
  0x94   : > { %s8493_s27 = scalar_lea.vmem %s564_s25, 1024  ;;  %p8501_p13 = scmp.lt.s32.totalorder %s564_s25, %s564_s25 }
  0x95   : > { %p8494_p10 = scmp.ne.s32.totalorder %s564_s25, %s8493_s27  ;;  %p8502_p0 = scmp.lt.s32.totalorder %s8493_s27, %s8493_s27 }
  0x97   : > { %p8496_p11 = pnand %p8494_p10, %p9254_p7  ;;  %p8503_p2 = por %p8502_p0, %p8501_p13 }
  0x99   : > { %p8497_p12 = pneg %p8496_p11 }
  0x9b   : > { %p8504_p4 = pnand %p8503_p2, %p8497_p12 }
  0x9d   : > { %8507 = shalt.err (!%p8504_p4)
}
  0x9e   : > { %7632 = dma.hbm_to_vmem [thread:$0]  (!%p9238_p5), %s13025_s7, 1024, %s564_s25, [#allocation20], %s12834_s19, %s12834_s19, %s9038_s30  }
  0x9f   : > { %s13026_s9 = sld [smem:[#allocation161_spill]] }
  0xa5   : > { %s8508_s26 = scalar_lea.hbm %s13026_s9, 1024 }
  0xa6   : > { %p8509_p6 = scmp.ne.s32.totalorder %s13026_s9, %s8508_s26  ;;  %p8515_p1 = scmp.lt.u32.totalorder %s8508_s26, %s13026_s9 }
  0xa8   : > { %p8511_p8 = pnand %p8509_p6, %p9254_p7 }
  0xaa   : > { %p8512_p9 = pneg %p8511_p8 }
  0xac   : > { %p8517_p3 = pnand %p8515_p1, %p8512_p9 }
  0xae   : > { %8520 = shalt.err (!%p8517_p3)
}
  0xaf   : > { %s8521_s16 = scalar_lea.vmem %s588_s1, 1024  ;;  %p8529_p13 = scmp.lt.s32.totalorder %s588_s1, %s588_s1 }
  0xb0   : > { %p8522_p10 = scmp.ne.s32.totalorder %s588_s1, %s8521_s16  ;;  %p8530_p0 = scmp.lt.s32.totalorder %s8521_s16, %s8521_s16 }
  0xb2   : > { %p8524_p11 = pnand %p8522_p10, %p9254_p7  ;;  %p8531_p2 = por %p8530_p0, %p8529_p13 }
  0xb4   : > { %p8525_p12 = pneg %p8524_p11 }
  0xb6   : > { %p8532_p4 = pnand %p8531_p2, %p8525_p12 }
  0xb8   : > { %8535 = shalt.err (!%p8532_p4)
}
  0xb9   : > { %7638 = dma.hbm_to_vmem [thread:$0]  (!%p9238_p5), %s13026_s9, 1024, %s588_s1, [#allocation23], %s12834_s19, %s12834_s19, %s9038_s30  }
  0xba   : > { %s9041_s3 = smov [#allocation25]   ;;  %s13027_s11 = sld [smem:[#allocation163_spill]] }
  0xbb   : > { %s611_s22 = sshll.u32 %s9041_s3, 4  ;;  %s612_s22 = int_to_ptr.vmem [resolvable:$true] %s611_s22 }
  0xc0   : > { %s8536_s26 = scalar_lea.hbm %s13027_s11, 2048 }
  0xc1   : > { %p8537_p6 = scmp.ne.s32.totalorder %s13027_s11, %s8536_s26  ;;  %p8543_p1 = scmp.lt.u32.totalorder %s8536_s26, %s13027_s11 }
  0xc3   : > { %p8539_p8 = pnand %p8537_p6, %p9254_p7 }
  0xc5   : > { %p8540_p9 = pneg %p8539_p8 }
  0xc7   : > { %p8545_p3 = pnand %p8543_p1, %p8540_p9 }
  0xc9   : > { %8548 = shalt.err (!%p8545_p3)
}
  0xca   : > { %s8549_s1 = scalar_lea.vmem %s612_s22, 2048  ;;  %p8557_p13 = scmp.lt.s32.totalorder %s612_s22, %s612_s22 }
  0xcb   : > { %p8550_p10 = scmp.ne.s32.totalorder %s612_s22, %s8549_s1  ;;  %p8558_p0 = scmp.lt.s32.totalorder %s8549_s1, %s8549_s1 }
  0xcd   : > { %p8552_p11 = pnand %p8550_p10, %p9254_p7  ;;  %p8559_p2 = por %p8558_p0, %p8557_p13 }
  0xcf   : > { %p8553_p12 = pneg %p8552_p11 }
  0xd1   : > { %p8560_p4 = pnand %p8559_p2, %p8553_p12 }
  0xd3   : > { %8563 = shalt.err (!%p8560_p4)
}
  0xd4   : > { %s12835_s16 = smov 128   ;;  %s12836_s25 = smov 8  }
  0xd5   : > { %7644 = dma.hbm_to_vmem [thread:$0]  (!%p9238_p5), %s13027_s11, 2048, %s612_s22, [#allocation26], %s12835_s16, %s12835_s16, %s12836_s25  }
  0xd6   : > { %s9044_s20 = smov [#allocation28]   ;;  %s9045_s26 = smov [#allocation31]  }
  0xd7   : > { %s635_s24 = sshll.u32 %s9044_s20, 4  ;;  %s660_s28 = sshll.u32 %s9045_s26, 4  ;;  %s636_s24 = int_to_ptr.vmem [resolvable:$true] %s635_s24  ;;  %s9381_s28 = int_to_ptr.vmem [resolvable:$true] %s660_s28 }
  0xd8   : > { %s8564_s0 = scalar_lea.hbm %s12808_s13, 2048 }
  0xd9   : > { %p8565_p6 = scmp.ne.s32.totalorder %s12808_s13, %s8564_s0  ;;  %p8571_p1 = scmp.lt.u32.totalorder %s8564_s0, %s12808_s13 }
  0xdb   : > { %p8567_p8 = pnand %p8565_p6, %p9254_p7 }
  0xdd   : > { %p8568_p9 = pneg %p8567_p8 }
  0xdf   : > { %p8573_p3 = pnand %p8571_p1, %p8568_p9 }
  0xe1   : > { %8576 = shalt.err (!%p8573_p3)
}
  0xe2   : > { %s8577_s3 = scalar_lea.vmem %s636_s24, 2048  ;;  %p8585_p13 = scmp.lt.s32.totalorder %s636_s24, %s636_s24 }
  0xe3   : > { %p8578_p10 = scmp.ne.s32.totalorder %s636_s24, %s8577_s3  ;;  %p8586_p0 = scmp.lt.s32.totalorder %s8577_s3, %s8577_s3 }
  0xe5   : > { %p8580_p11 = pnand %p8578_p10, %p9254_p7  ;;  %p8587_p2 = por %p8586_p0, %p8585_p13 }
  0xe7   : > { %p8581_p12 = pneg %p8580_p11 }
  0xe9   : > { %p8588_p4 = pnand %p8587_p2, %p8581_p12 }
  0xeb   : > { %8591 = shalt.err (!%p8588_p4)
}
  0xec   : > { %s13028_s19 = smov 64   ;;  %s8592_s0 = scalar_lea.hbm %s12810_s15, 16 }
  0xed   : > { %7650 = dma.hbm_to_vmem [thread:$0]  (!%p9238_p5), %s12808_s13, 2048, %s636_s24, [#allocation29], %s13028_s19, %s13028_s19, %s9038_s30  }
  0xee   : > { %p8593_p6 = scmp.ne.s32.totalorder %s12810_s15, %s8592_s0  ;;  %p8599_p1 = scmp.lt.u32.totalorder %s8592_s0, %s12810_s15 }
  0xf0   : > { %p8595_p8 = pnand %p8593_p6, %p9254_p7 }
  0xf2   : > { %p8596_p9 = pneg %p8595_p8 }
  0xf4   : > { %p8601_p3 = pnand %p8599_p1, %p8596_p9 }
  0xf6   : > { %8604 = shalt.err (!%p8601_p3)
}
  0xf7   : > { %s8605_s30 = scalar_lea.vmem %s9381_s28, 16  ;;  %s8612_s24 = scalar_lea.vmem %s9381_s28, 32 }
  0xf8   : > { %p8606_p10 = scmp.ne.s32.totalorder %s9381_s28, %s8605_s30  ;;  %p8613_p13 = scmp.lt.s32.totalorder %s9381_s28, %s9381_s28 }
  0xf9   : > { %p8614_p0 = scmp.lt.s32.totalorder %s8612_s24, %s8605_s30 }
  0xfa   : > { %p8608_p11 = pnand %p8606_p10, %p9254_p7 }
  0xfb   : > { %p8615_p2 = por %p8614_p0, %p8613_p13 }
  0xfc   : > { %p8609_p12 = pneg %p8608_p11 }
  0xfe   : > { %p8616_p4 = pnand %p8615_p2, %p8609_p12 }
 0x100   : > { %8619 = shalt.err (!%p8616_p4)
}
 0x101   : > { %7656 = dma.hbm_to_vmem [thread:$0]  (!%p9238_p5), %s12810_s15, 16, %s9381_s28, [#allocation32]  }
 0x102   : > { %s9046_s26 = smov [#allocation12]   ;;  %s9047_s18 = smov [#allocation15]  }
 0x103   : > { %s505_s29 = sshll.u32 %s9046_s26, 4  ;;  %s529_s0 = sshll.u32 %s9047_s18, 4  ;;  %s506_s29 = int_to_ptr.vmem [resolvable:$true] %s505_s29  ;;  %s9428_s0 = int_to_ptr.vmem [resolvable:$true] %s529_s0 }
 0x104   : > { %s13029_s22 = sld [smem:[#allocation154_spill]] }
 0x10a   : > { %s13030_s3 = smov %s13029_s22  ;;  %s8620_s30 = scalar_lea.hbm %s13029_s22, 16 }
 0x10b   : > { %p8621_p6 = scmp.ne.s32.totalorder %s13030_s3, %s8620_s30  ;;  %p8627_p1 = scmp.lt.u32.totalorder %s8620_s30, %s13030_s3 }
 0x10d   : > { %p8623_p8 = pnand %p8621_p6, %p9254_p7 }
 0x10f   : > { %p8624_p9 = pneg %p8623_p8 }
 0x111   : > { %p8629_p3 = pnand %p8627_p1, %p8624_p9 }
 0x113   : > { %8632 = shalt.err (!%p8629_p3)
}
 0x114   : > { %s8633_s20 = scalar_lea.vmem %s506_s29, 16  ;;  %s8640_s26 = scalar_lea.vmem %s506_s29, 32 }
 0x115   : > { %p8634_p10 = scmp.ne.s32.totalorder %s506_s29, %s8633_s20  ;;  %p8641_p13 = scmp.lt.s32.totalorder %s506_s29, %s506_s29 }
 0x116   : > { %p8642_p0 = scmp.lt.s32.totalorder %s8640_s26, %s8633_s20 }
 0x117   : > { %p8636_p11 = pnand %p8634_p10, %p9254_p7 }
 0x118   : > { %p8643_p2 = por %p8642_p0, %p8641_p13 }
 0x119   : > { %p8637_p12 = pneg %p8636_p11 }
 0x11b   : > { %p8644_p4 = pnand %p8643_p2, %p8637_p12 }
 0x11d   : > { %8647 = shalt.err (!%p8644_p4)
}
 0x11e   : > { %7617 = dma.hbm_to_vmem [thread:$0]  (!%p9238_p5), %s13030_s3, 16, %s506_s29, [#allocation11]  }
 0x11f   : > { %s13031_s4 = sld [smem:[#allocation156_spill]] }
 0x125   : > { %s8648_s22 = scalar_lea.hbm %s13031_s4, 16 }
 0x126   : > { %p8649_p6 = scmp.ne.s32.totalorder %s13031_s4, %s8648_s22  ;;  %p8655_p1 = scmp.lt.u32.totalorder %s8648_s22, %s13031_s4 }
 0x128   : > { %p8651_p8 = pnand %p8649_p6, %p9254_p7 }
 0x12a   : > { %p8652_p9 = pneg %p8651_p8 }
 0x12c   : > { %p8657_p3 = pnand %p8655_p1, %p8652_p9 }
 0x12e   : > { %8660 = shalt.err (!%p8657_p3)
}
 0x12f   : > { %s8661_s29 = scalar_lea.vmem %s9428_s0, 16  ;;  %s8668_s20 = scalar_lea.vmem %s9428_s0, 32 }
 0x130   : > { %p8662_p10 = scmp.ne.s32.totalorder %s9428_s0, %s8661_s29  ;;  %p8669_p13 = scmp.lt.s32.totalorder %s9428_s0, %s9428_s0 }
 0x131   : > { %p8670_p0 = scmp.lt.s32.totalorder %s8668_s20, %s8661_s29 }
 0x132   : > { %p8664_p11 = pnand %p8662_p10, %p9254_p7 }
 0x133   : > { %p8671_p2 = por %p8670_p0, %p8669_p13 }
 0x134   : > { %p8665_p12 = pneg %p8664_p11 }
 0x136   : > { %p8672_p4 = pnand %p8671_p2, %p8665_p12 }
 0x138   : > { %8675 = shalt.err (!%p8672_p4)
}
 0x139   : > { %7623 = dma.hbm_to_vmem [thread:$0]  (!%p9238_p5), %s13031_s4, 16, %s9428_s0, [#allocation14]  }
 0x13a   : > { %s9048_s18 = smov [#allocation18]   ;;  %s9049_s27 = smov [#allocation21]  }
 0x13b   : > { %s553_s1 = sshll.u32 %s9048_s18, 4  ;;  %s577_s22 = sshll.u32 %s9049_s27, 4  ;;  %s554_s1 = int_to_ptr.vmem [resolvable:$true] %s553_s1  ;;  %s9472_s22 = int_to_ptr.vmem [resolvable:$true] %s577_s22 }
 0x13c   : > { %s13032_s6 = sld [smem:[#allocation158_spill]] }
 0x142   : > { %s8676_s19 = scalar_lea.hbm %s13032_s6, 16 }
 0x143   : > { %p8677_p6 = scmp.ne.s32.totalorder %s13032_s6, %s8676_s19  ;;  %p8683_p1 = scmp.lt.u32.totalorder %s8676_s19, %s13032_s6 }
 0x145   : > { %p8679_p8 = pnand %p8677_p6, %p9254_p7 }
 0x147   : > { %p8680_p9 = pneg %p8679_p8 }
 0x149   : > { %p8685_p3 = pnand %p8683_p1, %p8680_p9 }
 0x14b   : > { %8688 = shalt.err (!%p8685_p3)
}
 0x14c   : > { %s8689_s26 = scalar_lea.vmem %s554_s1, 16  ;;  %s8696_s16 = scalar_lea.vmem %s554_s1, 32 }
 0x14d   : > { %p8690_p10 = scmp.ne.s32.totalorder %s554_s1, %s8689_s26  ;;  %p8697_p13 = scmp.lt.s32.totalorder %s554_s1, %s554_s1 }
 0x14e   : > { %p8698_p0 = scmp.lt.s32.totalorder %s8696_s16, %s8689_s26 }
 0x14f   : > { %p8692_p11 = pnand %p8690_p10, %p9254_p7 }
 0x150   : > { %p8699_p2 = por %p8698_p0, %p8697_p13 }
 0x151   : > { %p8693_p12 = pneg %p8692_p11 }
 0x153   : > { %p8700_p4 = pnand %p8699_p2, %p8693_p12 }
 0x155   : > { %8703 = shalt.err (!%p8700_p4)
}
 0x156   : > { %7629 = dma.hbm_to_vmem [thread:$0]  (!%p9238_p5), %s13032_s6, 16, %s554_s1, [#allocation17]  }
 0x157   : > { %s13033_s8 = sld [smem:[#allocation160_spill]] }
 0x15d   : > { %s8704_s19 = scalar_lea.hbm %s13033_s8, 16 }
 0x15e   : > { %p8705_p6 = scmp.ne.s32.totalorder %s13033_s8, %s8704_s19  ;;  %p8711_p1 = scmp.lt.u32.totalorder %s8704_s19, %s13033_s8 }
 0x160   : > { %p8707_p8 = pnand %p8705_p6, %p9254_p7 }
 0x162   : > { %p8708_p9 = pneg %p8707_p8 }
 0x164   : > { %p8713_p3 = pnand %p8711_p1, %p8708_p9 }
 0x166   : > { %8716 = shalt.err (!%p8713_p3)
}
 0x167   : > { %s8717_s1 = scalar_lea.vmem %s9472_s22, 16  ;;  %s8724_s26 = scalar_lea.vmem %s9472_s22, 32 }
 0x168   : > { %p8718_p10 = scmp.ne.s32.totalorder %s9472_s22, %s8717_s1  ;;  %p8725_p13 = scmp.lt.s32.totalorder %s9472_s22, %s9472_s22 }
 0x169   : > { %p8726_p0 = scmp.lt.s32.totalorder %s8724_s26, %s8717_s1 }
 0x16a   : > { %p8720_p11 = pnand %p8718_p10, %p9254_p7 }
 0x16b   : > { %p8727_p2 = por %p8726_p0, %p8725_p13 }
 0x16c   : > { %p8721_p12 = pneg %p8720_p11 }
 0x16e   : > { %p8728_p4 = pnand %p8727_p2, %p8721_p12 }
 0x170   : > { %8731 = shalt.err (!%p8728_p4)
}
 0x171   : > { %7635 = dma.hbm_to_vmem [thread:$0]  (!%p9238_p5), %s13033_s8, 16, %s9472_s22, [#allocation20]  }
 0x172   : > { %s9050_s27 = smov [#allocation24]   ;;  %s9051_s24 = smov [#allocation27]  }
 0x173   : > { %s601_s30 = sshll.u32 %s9050_s27, 4  ;;  %s625_s19 = sshll.u32 %s9051_s24, 4  ;;  %s602_s30 = int_to_ptr.vmem [resolvable:$true] %s601_s30  ;;  %s9516_s19 = int_to_ptr.vmem [resolvable:$true] %s625_s19 }
 0x174   : > { %s13034_s10 = sld [smem:[#allocation162_spill]] }
 0x17a   : > { %s8732_s20 = scalar_lea.hbm %s13034_s10, 16 }
 0x17b   : > { %p8733_p6 = scmp.ne.s32.totalorder %s13034_s10, %s8732_s20  ;;  %p8739_p1 = scmp.lt.u32.totalorder %s8732_s20, %s13034_s10 }
 0x17d   : > { %p8735_p8 = pnand %p8733_p6, %p9254_p7 }
 0x17f   : > { %p8736_p9 = pneg %p8735_p8 }
 0x181   : > { %p8741_p3 = pnand %p8739_p1, %p8736_p9 }
 0x183   : > { %8744 = shalt.err (!%p8741_p3)
}
 0x184   : > { %s8745_s16 = scalar_lea.vmem %s602_s30, 16  ;;  %s8752_s18 = scalar_lea.vmem %s602_s30, 32 }
 0x185   : > { %p8746_p10 = scmp.ne.s32.totalorder %s602_s30, %s8745_s16  ;;  %p8753_p13 = scmp.lt.s32.totalorder %s602_s30, %s602_s30 }
 0x186   : > { %p8754_p0 = scmp.lt.s32.totalorder %s8752_s18, %s8745_s16 }
 0x187   : > { %p8748_p11 = pnand %p8746_p10, %p9254_p7 }
 0x188   : > { %p8755_p2 = por %p8754_p0, %p8753_p13 }
 0x189   : > { %p8749_p12 = pneg %p8748_p11 }
 0x18b   : > { %p8756_p4 = pnand %p8755_p2, %p8749_p12 }
 0x18d   : > { %8759 = shalt.err (!%p8756_p4)
}
 0x18e   : > { %7641 = dma.hbm_to_vmem [thread:$0]  (!%p9238_p5), %s13034_s10, 16, %s602_s30, [#allocation23]  }
 0x18f   : > { %s8760_s20 = scalar_lea.hbm %s12807_s12, 32 }
 0x190   : > { %p8761_p6 = scmp.ne.s32.totalorder %s12807_s12, %s8760_s20  ;;  %p8767_p1 = scmp.lt.u32.totalorder %s8760_s20, %s12807_s12 }
 0x192   : > { %p8763_p8 = pnand %p8761_p6, %p9254_p7 }
 0x194   : > { %p8764_p9 = pneg %p8763_p8 }
 0x196   : > { %p8769_p3 = pnand %p8767_p1, %p8764_p9 }
 0x198   : > { %8772 = shalt.err (!%p8769_p3)
}
 0x199   : > { %s8773_s30 = scalar_lea.vmem %s9516_s19, 32  ;;  %p8781_p13 = scmp.lt.s32.totalorder %s9516_s19, %s9516_s19 }
 0x19a   : > { %p8774_p10 = scmp.ne.s32.totalorder %s9516_s19, %s8773_s30  ;;  %p8782_p0 = scmp.lt.s32.totalorder %s8773_s30, %s8773_s30 }
 0x19c   : > { %p8776_p11 = pnand %p8774_p10, %p9254_p7  ;;  %p8783_p2 = por %p8782_p0, %p8781_p13 }
 0x19e   : > { %p8777_p12 = pneg %p8776_p11 }
 0x1a0   : > { %p8784_p4 = pnand %p8783_p2, %p8777_p12 }
 0x1a2   : > { %8787 = shalt.err (!%p8784_p4)
}
 0x1a3   : > { %7647 = dma.hbm_to_vmem [thread:$0]  (!%p9238_p5), %s12807_s12, 32, %s9516_s19, [#allocation26]  }
 0x1a4   : > { %s9052_s27 = smov [#allocation30]   ;;  %s9053_s28 = smov [#allocation33]  }
 0x1a5   : > { %s649_s24 = sshll.u32 %s9052_s27, 4  ;;  %s671_s29 = sshll.u32 %s9053_s28, 4  ;;  %s650_s24 = int_to_ptr.vmem [resolvable:$true] %s649_s24  ;;  %s9559_s29 = int_to_ptr.vmem [resolvable:$true] %s671_s29 }
 0x1a6   : > { %s8788_s1 = scalar_lea.hbm %s12809_s14, 16 }
 0x1a7   : > { %p8789_p6 = scmp.ne.s32.totalorder %s12809_s14, %s8788_s1  ;;  %p8795_p1 = scmp.lt.u32.totalorder %s8788_s1, %s12809_s14 }
 0x1a9   : > { %p8791_p8 = pnand %p8789_p6, %p9254_p7 }
 0x1ab   : > { %p8792_p9 = pneg %p8791_p8 }
 0x1ad   : > { %p8797_p3 = pnand %p8795_p1, %p8792_p9 }
 0x1af   : > { %8800 = shalt.err (!%p8797_p3)
}
 0x1b0   : > { %s8801_s16 = scalar_lea.vmem %s650_s24, 16  ;;  %s8808_s18 = scalar_lea.vmem %s650_s24, 32 }
 0x1b1   : > { %p8802_p10 = scmp.ne.s32.totalorder %s650_s24, %s8801_s16  ;;  %p8809_p13 = scmp.lt.s32.totalorder %s650_s24, %s650_s24 }
 0x1b2   : > { %p8810_p0 = scmp.lt.s32.totalorder %s8808_s18, %s8801_s16 }
 0x1b3   : > { %p8804_p11 = pnand %p8802_p10, %p9254_p7 }
 0x1b4   : > { %p8811_p2 = por %p8810_p0, %p8809_p13 }
 0x1b5   : > { %p8805_p12 = pneg %p8804_p11 }
 0x1b7   : > { %p8812_p4 = pnand %p8811_p2, %p8805_p12 }
 0x1b9   : > { %8815 = shalt.err (!%p8812_p4)
}
 0x1ba   : > { %7653 = dma.hbm_to_vmem [thread:$0]  (!%p9238_p5), %s12809_s14, 16, %s650_s24, [#allocation29]  }
 0x1bb   : > { %s13035_s1 = sld [smem:[#allocation164_spill]] }
 0x1c1   : > { %s13036_s26 = smov %s13035_s1  ;;  %s8816_s22 = scalar_lea.hbm %s13035_s1, 16 }
 0x1c2   : > { %p8817_p6 = scmp.ne.s32.totalorder %s13036_s26, %s8816_s22  ;;  %p8823_p1 = scmp.lt.u32.totalorder %s8816_s22, %s13036_s26 }
 0x1c4   : > { %p8819_p8 = pnand %p8817_p6, %p9254_p7 }
 0x1c6   : > { %p8820_p9 = pneg %p8819_p8 }
 0x1c8   : > { %p8825_p3 = pnand %p8823_p1, %p8820_p9 }
 0x1ca   : > { %8828 = shalt.err (!%p8825_p3)
}
 0x1cb   : > { %s8829_s24 = scalar_lea.vmem %s9559_s29, 16  ;;  %s8836_s27 = scalar_lea.vmem %s9559_s29, 32 }
 0x1cc   : > { %p8830_p10 = scmp.ne.s32.totalorder %s9559_s29, %s8829_s24  ;;  %p8837_p13 = scmp.lt.s32.totalorder %s9559_s29, %s9559_s29 }
 0x1cd   : > { %p8838_p0 = scmp.lt.s32.totalorder %s8836_s27, %s8829_s24 }
 0x1ce   : > { %p8832_p11 = pnand %p8830_p10, %p9254_p7 }
 0x1cf   : > { %p8839_p2 = por %p8838_p0, %p8837_p13 }
 0x1d0   : > { %p8833_p12 = pneg %p8832_p11 }
 0x1d2   : > { %p8840_p4 = pnand %p8839_p2, %p8833_p12 }
 0x1d4   : > { %8843 = shalt.err (!%p8840_p4)
}
 0x1d5   : > { %s13037_s0 = sld [smem:[#allocation58_spill]]  ;;  %s13038_s1 = sld [smem:[#allocation55_spill]] }
 0x1d6   : > { %s13039_s17 = sld [smem:[#allocation54_spill]]  ;;  %s13040_s22 = sld [smem:[#allocation53_spill]] }
 0x1d7   : > { %s13041_s30 = sld [smem:[#allocation59_spill]]  ;;  %s6653_s16 = sadd.s32 4294967294, %s9032_s2  }
 0x1d8   : > { %7659 = dma.hbm_to_vmem [thread:$0]  (!%p9238_p5), %s13036_s26, 16, %s9559_s29, [#allocation32]  }
 0x1d9   : > { %s13042_s19 = sld [smem:[#allocation52_spill]]  ;;  %s13043_s23 = sld [smem:[#allocation51_spill]] }
 0x1da   : > { %s55_s18 = sadd.s32 1, %s9024_s21  ;;  %p73_p8 = scmp.eq.s32.totalorder %s9032_s2, 0 }
 0x1db   : > { %p56_p7 = scmp.ge.s32.totalorder %s55_s18, 2  ;;  %s58_s24 = sadd.s32 1, %s13037_s0 }
 0x1dc   : > { %s65_s27 = sadd.s32 1, %s13038_s1  ;;  %p72_p6 = scmp.ne.s32.totalorder %s13038_s1, %s13039_s17 }
 0x1dd   : > { %s13400_s18 = smov (%p56_p7, %s55_s18), 0  ;;  %s13402_s24 = smov (!%p56_p7, %s58_s24), %s13037_s0 }
 0x1de   : > { %p78_p9 = scmp.ne.s32.totalorder %s13039_s17, %s13040_s22  ;;  %s13044_s29 = sld [smem:[#allocation50_spill]] }
 0x1df   : > { %p60_p5 = scmp.ge.s32.totalorder %s13402_s24, 2  ;;  %s425_s28 = ssub.s32 %s9024_s21, %s13400_s18 }
 0x1e0   : > { %p9617_p1 = por %p73_p8, %p72_p6  ;;  %p13046_p3 = scmp.ne.s32.totalorder %s13041_s30, 0 }
 0x1e1   : > { %s13404_s24 = smov (%p60_p5, %s13402_s24), 0  ;;  %s429_s3 = sadd.s32 1, %s13042_s19 }
 0x1e2   : > { %p9623_p10 = por %p13046_p3, %p78_p9  ;;  %p439_p11 = scmp.ne.s32.totalorder %s13042_s19, %s13043_s23 }
 0x1e3   : > { %s62_s17 = ssub.s32 %s13037_s0, %s13404_s24  ;;  %s13048_s22 = sadd.s32 4294967295, %s9032_s2  }
 0x1e4   : > { %p440_p12 = scmp.eq.s32.totalorder %s13048_s22, 3  ;;  %p63_p13 = scmp.eq.s32.totalorder %s62_s17, 0 }
 0x1e5   : > { %s426_s4 = sor.u32 %s425_s28, %s62_s17  ;;  %p445_p4 = scmp.ne.s32.totalorder %s13043_s23, %s13044_s29 }
 0x1e6   : > { %p427_p0 = scmp.eq.s32.totalorder %s426_s4, 0  ;;  %p9636_p2 = por %p440_p12, %p439_p11 }
 0x1e7   : > { %s9641_s5 = scalar_select %p63_p13, %s13038_s1, %s65_s27  }
 0x1e8   : > { %s13049_s30 = scalar_select %p9636_p2, 1, 0 }
 0x1e9   : > { %s13406_s19 = smov (!%p427_p0, %s13042_s19), %s429_s3  ;;  %p446_p7 = scmp.eq.s32.totalorder %s6653_s16, 3 }
 0x1ea   : > { %p7687_p6 = scmp.lt.s32.totalorder %s9032_s2, 4  ;;  %s682_s6 = sand.u32 1, %s13038_s1  }
 0x1eb   : > { %p9650_p8 = por %p446_p7, %p445_p4  ;;  %s6672_s22 = sshll.u32 %s682_s6, 8 }
 0x1ec   : > { %s6813_s8 = sshll.u32 %s13037_s0, 12  ;;  %s13051_s17 = sld [smem:[#allocation152_spill]] }
 0x1ed   : > { %s13050_s7 = scalar_select %p9650_p8, 1, 0 }
 0x1ee   : > { %s686_s3 = scalar_lea.vmem [#allocation7], %s6672_s22  ;;  %p9662_p9 = pnand %p7687_p6, %p9617_p1 }
 0x1ef   : > { %s693_s23 = sshll.u32 %s686_s3, 4  ;;  %s9668_s0 = scalar_lea.sflag [#allocation8], %s682_s6  ;;  %s9666_s23 = int_to_ptr.vmem [resolvable:$true] %s693_s23 }
 0x1f0   : > { %p8846_p3 = pneg %p9662_p9 }
 0x1f2   : > { %s9658_s9 = scalar_lea.hbm %s13051_s17, %s6813_s8  ;;  %s8849_s29 = scalar_lea.hbm %s13051_s17, 8192 }
 0x1f3   : > { %s8844_s16 = scalar_lea.hbm %s9658_s9, 4096  ;;  %p8850_p1 = scmp.lt.u32.totalorder %s9658_s9, %s13051_s17 }
 0x1f4   : > { %p8845_p5 = scmp.ne.s32.totalorder %s9658_s9, %s8844_s16  ;;  %p8851_p13 = scmp.lt.u32.totalorder %s8849_s29, %s8844_s16 }
 0x1f5   : > { %p8853_p4 = scmp.lt.u32.totalorder %s8844_s16, %s9658_s9 }
 0x1f6   : > { %p8847_p11 = pnand %p8846_p3, %p8845_p5  ;;  %p8852_p0 = por %p8851_p13, %p8850_p1 }
 0x1f8   : > { %p8848_p12 = pneg %p8847_p11  ;;  %p8854_p7 = por %p8853_p4, %p8852_p0 }
 0x1fa   : > { %p8855_p6 = pnand %p8854_p7, %p8848_p12 }
 0x1fc   : > { %8858 = shalt.err (!%p8855_p6)
}
 0x1fd   : > { %s8859_s6 = scalar_lea.vmem %s9666_s23, 4096  ;;  %s9054_s28 = smov [#allocation7]  }
 0x1fe   : > { %p8860_p5 = scmp.ne.s32.totalorder %s9666_s23, %s8859_s6  ;;  %s8864_s4 = sshll.u32 %s9054_s28, 4  ;;  %s8865_s4 = int_to_ptr.vmem [resolvable:$false] %s8864_s4 }
 0x1ff   : > { %s8866_s3 = scalar_lea.vmem %s8865_s4, 8192  ;;  %p8867_p2 = scmp.lt.s32.totalorder %s9666_s23, %s8865_s4 }
 0x200   : > { %p8862_p11 = pnand %p8860_p5, %p8846_p3  ;;  %p8868_p1 = scmp.lt.s32.totalorder %s8866_s3, %s8859_s6 }
 0x202   : > { %p8863_p8 = pneg %p8862_p11  ;;  %p8869_p13 = por %p8868_p1, %p8867_p2 }
 0x204   : > { %p8870_p0 = pnand %p8869_p13, %p8863_p8 }
 0x206   : > { %8873 = shalt.err (!%p8870_p0)
}
 0x207   : > { %s13053_s16 = smov 8   ;;  %s13054_s8 = smov 128  }
 0x208   : > { %7663 = dma.hbm_to_vmem [thread:$0]  (!%p9662_p9), %s9658_s9, 4096, %s9666_s23, %s9668_s0, %s13054_s8, %s13054_s8, %s13053_s16  }
 0x209   : > { %s13055_s27 = sld [smem:[#allocation60_spill]] }
 0x20f   : > { %p13056_p3 = scmp.ne.s32.totalorder %s13055_s27, 0 }
 0x211   : > { %705 = sbr.rel (%p13056_p3) target bundleno = 3894 (0xf36), region = 88 }
 0x218   : > { %s13057_s29 = sld [smem:[#allocation54_spill]] }
 0x21e   : > { %s707_s20 = sand.u32 1, %s13057_s29  }
 0x21f   : > { %s6676_s22 = sshll.u32 %s707_s20, 8  ;;  %s708_s6 = scalar_lea.sflag [#allocation8], %s707_s20 }
 0x220   : > { %s9702_s28 = scalar_lea.vmem [#allocation7], %s6676_s22 }
 0x221   : > { %8947 = dma.done.wait (%p9623_p10), %s708_s6, 4096  }
 0x222   : > { %8949 = vsyncadd (%p9623_p10), %s708_s6, 4294963200  ;;  %s13058_s1 = sld [smem:[#allocation59_spill]] }
 0x228   : > { %p13059_p2 = scmp.ne.s32.totalorder %s13058_s1, 0 }
 0x22a   : > { %8951 = dma.done.wait (%p13059_p2), [#allocation11], 32  }
 0x22b   : > { %8953 = vsyncadd (%p13059_p2), [#allocation11], 4294967264 }
 0x22c   : > { %8955 = dma.done.wait (%p13059_p2), [#allocation14], 1040  }
 0x22d   : > { %8957 = vsyncadd (%p13059_p2), [#allocation14], 4294966256 }
 0x22e   : > { %8959 = dma.done.wait (%p13059_p2), [#allocation17], 1040  }
 0x22f   : > { %8961 = vsyncadd (%p13059_p2), [#allocation17], 4294966256 }
 0x230   : > { %8963 = dma.done.wait (%p13059_p2), [#allocation20], 1040  }
 0x231   : > { %8965 = vsyncadd (%p13059_p2), [#allocation20], 4294966256 }
 0x232   : > { %8967 = dma.done.wait (%p13059_p2), [#allocation23], 1040  }
 0x233   : > { %8969 = vsyncadd (%p13059_p2), [#allocation23], 4294966256 }
 0x234   : > { %8971 = dma.done.wait (%p13059_p2), [#allocation26], 2080  }
 0x235   : > { %8973 = vsyncadd (%p13059_p2), [#allocation26], 4294965216 }
 0x236   : > { %8975 = dma.done.wait (%p13059_p2), [#allocation29], 2064  }
 0x237   : > { %8977 = vsyncadd (%p13059_p2), [#allocation29], 4294965232 }
 0x238   : > { %8979 = dma.done.wait (%p13059_p2), [#allocation32], 32  }
 0x239   : > { %8981 = vsyncadd (%p13059_p2), [#allocation32], 4294967264  ;;  %s13060_s9 = sld [smem:[#allocation51_spill]]  ;;  %s13061_s16 = sld [smem:[#allocation56_spill]] }
 0x23f   : > { %s9741_s25 = sand.u32 1, %s13060_s9   ;;  %p6695_p10 = scmp.ne.s32.totalorder %s13061_s16, 0 }
 0x240   : > { %s6693_s23 = sshll.u32 %s9741_s25, 7  ;;  %s6694_s0 = sshll.u32 %s9741_s25, 10  ;;  %v9751_v0 = vld [vmem:[%s9702_s28] sm:$0xff] (!%p6695_p10)  ;;  %v9754_v1 = vld [vmem:[%s9702_s28 + $0x10] sm:$0xff] (!%p6695_p10)  ;;  %v9759_v2 = vld [vmem:[%s9702_s28 + $0x8] sm:$0xff] (!%p6695_p10)  ;;  %vm1831_vm0 = vcmask (!%p6695_p10), 261120  }
 0x241   : > { %s9745_s4 = scalar_lea.vmem [#allocation34], %s6693_s23  ;;  %s9747_s3 = scalar_lea.vmem [#allocation35], %s6694_s0  ;;  %872 = vadd.xlane.f32.xlu0 (!%p6695_p10), %v9751_v0  ;;  %876 = vadd.xlane.f32.xlu1 (!%p6695_p10), %v9754_v1  ;;  %v9762_v3 = vld [vmem:[%s9702_s28 + $0x18] sm:$0xff] (!%p6695_p10)  ;;  %v9767_v4 = vld [vmem:[%s9702_s28 + $0x20] sm:$0xff] (!%p6695_p10)  ;;  %v9770_v5 = vld [vmem:[%s9702_s28 + $0x28] sm:$0xff] (!%p6695_p10) }
 0x242   : > { %839 = sbr.rel (%p6695_p10) target bundleno = 1424 (0x590), region = 160  ;;  %v9775_v6 = vld [vmem:[%s9702_s28 + $0x30] sm:$0xff] (!%p6695_p10)  ;;  %v9778_v7 = vld [vmem:[%s9702_s28 + $0x38] sm:$0xff] (!%p6695_p10)  ;;  %v9781_v8 = vld [vmem:[%s9702_s28 + $0x40] sm:$0xff] (!%p6695_p10)  ;;  %s9055_s8 = smov (!%p6695_p10), 96  }
 0x243   : > { %v9784_v9 = vld [vmem:[%s9702_s28 + $0x48] sm:$0xff] (!%p6695_p10)  ;;  %v9789_v10 = vld [vmem:[%s9702_s28 + $0x50] sm:$0xff] (!%p6695_p10)  ;;  %v9792_v11 = vld [vmem:[%s9702_s28 + $0x58] sm:$0xff] (!%p6695_p10)  ;;  %s9056_s27 = smov (!%p6695_p10), 64   ;;  %s9057_s29 = smov (!%p6695_p10), 32  }
 0x244   : > { %v9799_v12 = vld [vmem:[%s9702_s28 + $0x60] sm:$0xff] (!%p6695_p10)  ;;  %v9802_v13 = vld [vmem:[%s9702_s28 + $0x68] sm:$0xff] (!%p6695_p10)  ;;  %v9807_v14 = vld [vmem:[%s9702_s28 + $0x70] sm:$0xff] (!%p6695_p10) }
 0x245   : > { %874 = vadd.xlane.f32.xlu0 (!%p6695_p10), %v9759_v2  ;;  %878 = vadd.xlane.f32.xlu1 (!%p6695_p10), %v9762_v3  ;;  %v9810_v15 = vld [vmem:[%s9702_s28 + $0x78] sm:$0xff] (!%p6695_p10)  ;;  %v9815_v16 = vld [vmem:[%s9702_s28 + $0x80] sm:$0xff] (!%p6695_p10)  ;;  %v9818_v17 = vld [vmem:[%s9702_s28 + $0x88] sm:$0xff] (!%p6695_p10) }
 0x246   : > { %v9823_v18 = vld [vmem:[%s9702_s28 + $0x90] sm:$0xff] (!%p6695_p10)  ;;  %v9826_v19 = vld [vmem:[%s9702_s28 + $0x98] sm:$0xff] (!%p6695_p10)  ;;  %v9831_v20 = vld [vmem:[%s9702_s28 + $0xa0] sm:$0xff] (!%p6695_p10) }
 0x247   : > { %v9834_v21 = vld [vmem:[%s9702_s28 + $0xa8] sm:$0xff] (!%p6695_p10)  ;;  %v9839_v22 = vld [vmem:[%s9702_s28 + $0xb0] sm:$0xff] (!%p6695_p10)  ;;  %v9842_v23 = vld [vmem:[%s9702_s28 + $0xb8] sm:$0xff] (!%p6695_p10) }
 0x248   : > { %v9847_v24 = vld [vmem:[%s9702_s28 + $0xc0] sm:$0xff] (!%p6695_p10)  ;;  %v9850_v25 = vld [vmem:[%s9702_s28 + $0xc8] sm:$0xff] (!%p6695_p10)  ;;  %v9855_v26 = vld [vmem:[%s9702_s28 + $0xd0] sm:$0xff] (!%p6695_p10) }
 0x249   : > { %880 = vadd.xlane.f32.xlu0 %v9767_v4  ;;  %882 = vadd.xlane.f32.xlu1 %v9770_v5  ;;  %v9858_v27 = vld [vmem:[%s9702_s28 + $0xd8] sm:$0xff]  ;;  %v9863_v28 = vld [vmem:[%s9702_s28 + $0xe0] sm:$0xff]  ;;  %v9866_v29 = vld [vmem:[%s9702_s28 + $0xe8] sm:$0xff] }
 0x24a   : > { %v9871_v30 = vld [vmem:[%s9702_s28 + $0xf0] sm:$0xff]  ;;  %v9874_v31 = vld [vmem:[%s9702_s28 + $0xf8] sm:$0xff]  ;;  %v7828_v32 = vld [vmem:[#allocation16] sm:$0xff]  }
 0x24b   : > { %v7829_v33 = vld [vmem:[#allocation19] sm:$0xff]   ;;  %7343 = vmatprep.subr.bf16.mxu0 %v7828_v32 }
 0x24c   : > { %7391 = vmatprep.subr.bf16.mxu1 %v7829_v33  ;;  %7344 = vmatpush3.bf16.msra.mxu0 %v7828_v32 }
 0x24d   : > { %884 = vadd.xlane.f32.xlu0 %v9775_v6  ;;  %886 = vadd.xlane.f32.xlu1 %v9778_v7 }
 0x24e   : > { %7392 = vmatpush3.bf16.msra.mxu1 %v7829_v33 }
 0x251   : > { %888 = vadd.xlane.f32.xlu0 %v9781_v8  ;;  %890 = vadd.xlane.f32.xlu1 %v9784_v9 }
 0x255   : > { %892 = vadd.xlane.f32.xlu0 %v9789_v10  ;;  %894 = vadd.xlane.f32.xlu1 %v9792_v11 }
 0x259   : > { %896 = vadd.xlane.f32.xlu0 %v9799_v12  ;;  %898 = vadd.xlane.f32.xlu1 %v9802_v13 }
 0x25d   : > { %900 = vadd.xlane.f32.xlu0 %v9807_v14  ;;  %902 = vadd.xlane.f32.xlu1 %v9810_v15 }
 0x261   : > { %904 = vadd.xlane.f32.xlu0 %v9815_v16  ;;  %906 = vadd.xlane.f32.xlu1 %v9818_v17 }
 0x265   : > { %908 = vadd.xlane.f32.xlu0 %v9823_v18  ;;  %910 = vadd.xlane.f32.xlu1 %v9826_v19 }
 0x269   : > { %912 = vadd.xlane.f32.xlu0 %v9831_v20  ;;  %914 = vadd.xlane.f32.xlu1 %v9834_v21 }
 0x26d   : > { %916 = vadd.xlane.f32.xlu0 %v9839_v22  ;;  %918 = vadd.xlane.f32.xlu1 %v9842_v23 }
 0x271   : > { %920 = vadd.xlane.f32.xlu0 %v9847_v24  ;;  %922 = vadd.xlane.f32.xlu1 %v9850_v25 }
 0x275   : > { %924 = vadd.xlane.f32.xlu0 %v9855_v26  ;;  %926 = vadd.xlane.f32.xlu1 %v9858_v27 }
 0x279   : > { %928 = vadd.xlane.f32.xlu0 %v9863_v28  ;;  %930 = vadd.xlane.f32.xlu1 %v9866_v29 }
 0x27d   : > { %932 = vadd.xlane.f32.xlu0 %v9871_v30  ;;  %934 = vadd.xlane.f32.xlu1 %v9874_v31 }
 0x2ce   : > { %v873_v34 = vpop.xlane.xlu0 %872  ;;  %v877_v35 = vpop.xlane.xlu1 %876 }
 0x2cf   : > { %v937_v36 = vmul.f32 0.0078125, %v873_v34  ;;  %v939_v37 = vmul.f32 0.0078125, %v877_v35 }
 0x2d1   : > { %v9879_v38 = vsub.f32 %v9751_v0, %v937_v36  ;;  %v9882_v39 = vsub.f32 %v9754_v1, %v939_v37  ;;  %v7830_v37 = vld [vmem:[#allocation16 + $0x8] sm:$0xff]  }
 0x2d2   : > { %v875_v40 = vpop.xlane.xlu0 %874  ;;  %v879_v41 = vpop.xlane.xlu1 %878  ;;  %7345 = vmatprep.subr.bf16.mxu0 %v7830_v37 }
 0x2d3   : > { %v938_v42 = vmul.f32 0.0078125, %v875_v40  ;;  %v1001_v43 = vmul.f32 %v9879_v38, %v9879_v38  ;;  %v940_v44 = vmul.f32 0.0078125, %v879_v41  ;;  %v1003_v45 = vmul.f32 %v9882_v39, %v9882_v39  ;;  %v7831_v40 = vld [vmem:[#allocation19 + $0x8] sm:$0xff]   ;;  %7346 = vmatpush3.bf16.msra.mxu0 %v7830_v37 }
 0x2d4   : > { %7393 = vmatprep.subr.bf16.mxu1 %v7831_v40 }
 0x2d5   : > { %1033 = vadd.xlane.f32.xlu0 %v1001_v43  ;;  %v9889_v46 = vsub.f32 %v9759_v2, %v938_v42  ;;  %v9892_v47 = vsub.f32 %v9762_v3, %v940_v44  ;;  %7394 = vmatpush3.bf16.msra.mxu1 %v7831_v40 }
 0x2d6   : > { %v881_v48 = vpop.xlane.xlu0 %880  ;;  %v883_v49 = vpop.xlane.xlu1 %882 }
 0x2d7   : > { %v941_v50 = vmul.f32 0.0078125, %v881_v48  ;;  %v1002_v51 = vmul.f32 %v9889_v46, %v9889_v46  ;;  %v942_v52 = vmul.f32 0.0078125, %v883_v49  ;;  %v1004_v53 = vmul.f32 %v9892_v47, %v9892_v47 }
 0x2d9   : > { %1037 = vadd.xlane.f32.xlu0 %v1003_v45  ;;  %1035 = vadd.xlane.f32.xlu1 %v1002_v51  ;;  %v9899_v54 = vsub.f32 %v9767_v4, %v941_v50  ;;  %v9902_v55 = vsub.f32 %v9770_v5, %v942_v52  ;;  %v7832_v50 = vld [vmem:[#allocation16 + $0x10] sm:$0xff]  }
 0x2da   : > { %v885_v56 = vpop.xlane.xlu0 %884  ;;  %v887_v57 = vpop.xlane.xlu1 %886  ;;  %v7833_v51 = vld [vmem:[#allocation19 + $0x10] sm:$0xff]   ;;  %7347 = vmatprep.subr.bf16.mxu0 %v7832_v50 }
 0x2db   : > { %v943_v58 = vmul.f32 0.0078125, %v885_v56  ;;  %v1005_v59 = vmul.f32 %v9899_v54, %v9899_v54  ;;  %v944_v60 = vmul.f32 0.0078125, %v887_v57  ;;  %v1006_v61 = vmul.f32 %v9902_v55, %v9902_v55  ;;  %7395 = vmatprep.subr.bf16.mxu1 %v7833_v51  ;;  %7348 = vmatpush3.bf16.msra.mxu0 %v7832_v50 }
 0x2dc   : > { %7396 = vmatpush3.bf16.msra.mxu1 %v7833_v51 }
 0x2dd   : > { %1039 = vadd.xlane.f32.xlu1 %v1004_v53  ;;  %1041 = vadd.xlane.f32.xlu0 %v1005_v59  ;;  %v9909_v62 = vsub.f32 %v9775_v6, %v943_v58  ;;  %v9912_v63 = vsub.f32 %v9778_v7, %v944_v60  ;;  %v7834_v60 = vld [vmem:[#allocation16 + $0x18] sm:$0xff]  }
 0x2de   : > { %v889_v0 = vpop.xlane.xlu0 %888  ;;  %v891_v1 = vpop.xlane.xlu1 %890  ;;  %7349 = vmatprep.subr.bf16.mxu0 %v7834_v60 }
 0x2df   : > { %v945_v2 = vmul.f32 0.0078125, %v889_v0  ;;  %v1007_v3 = vmul.f32 %v9909_v62, %v9909_v62  ;;  %v946_v4 = vmul.f32 0.0078125, %v891_v1  ;;  %v1008_v5 = vmul.f32 %v9912_v63, %v9912_v63  ;;  %7350 = vmatpush3.bf16.msra.mxu0 %v7834_v60 }
 0x2e1   : > { %1043 = vadd.xlane.f32.xlu1 %v1006_v61  ;;  %1045 = vadd.xlane.f32.xlu0 %v1007_v3  ;;  %v9919_v32 = vsub.f32 %v9781_v8, %v945_v2  ;;  %v9922_v6 = vsub.f32 %v9784_v9, %v946_v4  ;;  %v7835_v61 = vld [vmem:[#allocation19 + $0x18] sm:$0xff]  }
 0x2e2   : > { %v893_v7 = vpop.xlane.xlu0 %892  ;;  %v895_v33 = vpop.xlane.xlu1 %894  ;;  %7397 = vmatprep.subr.bf16.mxu1 %v7835_v61 }
 0x2e3   : > { %v947_v34 = vmul.f32 0.0078125, %v893_v7  ;;  %v1009_v35 = vmul.f32 %v9919_v32, %v9919_v32  ;;  %v948_v36 = vmul.f32 0.0078125, %v895_v33  ;;  %v1010_v41 = vmul.f32 %v9922_v6, %v9922_v6  ;;  %7398 = vmatpush3.bf16.msra.mxu1 %v7835_v61  ;;  %v7836_v7 = vld [vmem:[#allocation16 + $0x20] sm:$0xff]  }
 0x2e4   : > { %v7837_v33 = vld [vmem:[#allocation19 + $0x20] sm:$0xff]   ;;  %7351 = vmatprep.subr.bf16.mxu0 %v7836_v7 }
 0x2e5   : > { %1047 = vadd.xlane.f32.xlu1 %v1008_v5  ;;  %1049 = vadd.xlane.f32.xlu0 %v1009_v35  ;;  %v9929_v8 = vsub.f32 %v9789_v10, %v947_v34  ;;  %v9932_v9 = vsub.f32 %v9792_v11, %v948_v36 }
 0x2e6   : > { %v897_v42 = vpop.xlane.xlu0 %896  ;;  %v899_v43 = vpop.xlane.xlu1 %898  ;;  %7399 = vmatprep.subr.bf16.mxu1 %v7837_v33  ;;  %7352 = vmatpush3.bf16.msra.mxu0 %v7836_v7 }
 0x2e7   : > { %v949_v44 = vmul.f32 0.0078125, %v897_v42  ;;  %v1011_v45 = vmul.f32 %v9929_v8, %v9929_v8  ;;  %v950_v48 = vmul.f32 0.0078125, %v899_v43  ;;  %v1012_v10 = vmul.f32 %v9932_v9, %v9932_v9  ;;  %7400 = vmatpush3.bf16.msra.mxu1 %v7837_v33  ;;  %v7838_v42 = vld [vmem:[#allocation16 + $0x28] sm:$0xff]  }
 0x2e8   : > { %v7839_v43 = vld [vmem:[#allocation19 + $0x28] sm:$0xff]   ;;  %7353 = vmatprep.subr.bf16.mxu0 %v7838_v42 }
 0x2e9   : > { %1051 = vadd.xlane.f32.xlu1 %v1010_v41  ;;  %1053 = vadd.xlane.f32.xlu0 %v1011_v45  ;;  %v9939_v49 = vsub.f32 %v9799_v12, %v949_v44  ;;  %v9942_v11 = vsub.f32 %v9802_v13, %v950_v48 }
 0x2ea   : > { %v901_v52 = vpop.xlane.xlu0 %900  ;;  %v903_v53 = vpop.xlane.xlu1 %902  ;;  %7401 = vmatprep.subr.bf16.mxu1 %v7839_v43  ;;  %7354 = vmatpush3.bf16.msra.mxu0 %v7838_v42 }
 0x2eb   : > { %v951_v56 = vmul.f32 0.0078125, %v901_v52  ;;  %v1013_v57 = vmul.f32 %v9939_v49, %v9939_v49  ;;  %v952_v58 = vmul.f32 0.0078125, %v903_v53  ;;  %v1014_v12 = vmul.f32 %v9942_v11, %v9942_v11  ;;  %7402 = vmatpush3.bf16.msra.mxu1 %v7839_v43  ;;  %v7840_v52 = vld [vmem:[#allocation16 + $0x30] sm:$0xff]  }
 0x2ec   : > { %v7841_v53 = vld [vmem:[#allocation19 + $0x30] sm:$0xff]   ;;  %7355 = vmatprep.subr.bf16.mxu0 %v7840_v52 }
 0x2ed   : > { %1055 = vadd.xlane.f32.xlu1 %v1012_v10  ;;  %1057 = vadd.xlane.f32.xlu0 %v1013_v57  ;;  %v9949_v13 = vsub.f32 %v9807_v14, %v951_v56  ;;  %v9952_v59 = vsub.f32 %v9810_v15, %v952_v58 }
 0x2ee   : > { %v905_v0 = vpop.xlane.xlu0 %904  ;;  %v907_v1 = vpop.xlane.xlu1 %906  ;;  %7403 = vmatprep.subr.bf16.mxu1 %v7841_v53  ;;  %7356 = vmatpush3.bf16.msra.mxu0 %v7840_v52 }
 0x2ef   : > { %v953_v2 = vmul.f32 0.0078125, %v905_v0  ;;  %v1015_v3 = vmul.f32 %v9949_v13, %v9949_v13  ;;  %v954_v4 = vmul.f32 0.0078125, %v907_v1  ;;  %v1016_v14 = vmul.f32 %v9952_v59, %v9952_v59  ;;  %7404 = vmatpush3.bf16.msra.mxu1 %v7841_v53  ;;  %v7842_v0 = vld [vmem:[#allocation16 + $0x38] sm:$0xff]  }
 0x2f0   : > { %v7843_v1 = vld [vmem:[#allocation19 + $0x38] sm:$0xff]   ;;  %7357 = vmatprep.subr.bf16.mxu0 %v7842_v0 }
 0x2f1   : > { %1059 = vadd.xlane.f32.xlu1 %v1014_v12  ;;  %1061 = vadd.xlane.f32.xlu0 %v1015_v3  ;;  %v9959_v15 = vsub.f32 %v9815_v16, %v953_v2  ;;  %v9962_v5 = vsub.f32 %v9818_v17, %v954_v4 }
 0x2f2   : > { %v909_v34 = vpop.xlane.xlu0 %908  ;;  %v911_v35 = vpop.xlane.xlu1 %910  ;;  %7405 = vmatprep.subr.bf16.mxu1 %v7843_v1  ;;  %7358 = vmatpush3.bf16.msra.mxu0 %v7842_v0 }
 0x2f3   : > { %v955_v36 = vmul.f32 0.0078125, %v909_v34  ;;  %v1017_v37 = vmul.f32 %v9959_v15, %v9959_v15  ;;  %v956_v40 = vmul.f32 0.0078125, %v911_v35  ;;  %v1018_v16 = vmul.f32 %v9962_v5, %v9962_v5  ;;  %7406 = vmatpush3.bf16.msra.mxu1 %v7843_v1 }
 0x2f5   : > { %1063 = vadd.xlane.f32.xlu1 %v1016_v14  ;;  %1065 = vadd.xlane.f32.xlu0 %v1017_v37  ;;  %v9969_v17 = vsub.f32 %v9823_v18, %v955_v36  ;;  %v9972_v41 = vsub.f32 %v9826_v19, %v956_v40 }
 0x2f6   : > { %v913_v44 = vpop.xlane.xlu0 %912  ;;  %v915_v45 = vpop.xlane.xlu1 %914 }
 0x2f7   : > { %v957_v48 = vmul.f32 0.0078125, %v913_v44  ;;  %v1019_v10 = vmul.f32 %v9969_v17, %v9969_v17  ;;  %v958_v50 = vmul.f32 0.0078125, %v915_v45  ;;  %v1020_v18 = vmul.f32 %v9972_v41, %v9972_v41 }
 0x2f9   : > { %1067 = vadd.xlane.f32.xlu1 %v1018_v16  ;;  %1069 = vadd.xlane.f32.xlu0 %v1019_v10  ;;  %v9979_v19 = vsub.f32 %v9831_v20, %v957_v48  ;;  %v9982_v51 = vsub.f32 %v9834_v21, %v958_v50 }
 0x2fa   : > { %v917_v56 = vpop.xlane.xlu0 %916  ;;  %v919_v57 = vpop.xlane.xlu1 %918 }
 0x2fb   : > { %v959_v58 = vmul.f32 0.0078125, %v917_v56  ;;  %v1021_v12 = vmul.f32 %v9979_v19, %v9979_v19  ;;  %v960_v60 = vmul.f32 0.0078125, %v919_v57  ;;  %v1022_v20 = vmul.f32 %v9982_v51, %v9982_v51 }
 0x2fd   : > { %1071 = vadd.xlane.f32.xlu1 %v1020_v18  ;;  %1073 = vadd.xlane.f32.xlu0 %v1021_v12  ;;  %v9989_v21 = vsub.f32 %v9839_v22, %v959_v58  ;;  %v9992_v61 = vsub.f32 %v9842_v23, %v960_v60 }
 0x2fe   : > { %v921_v2 = vpop.xlane.xlu0 %920  ;;  %v923_v3 = vpop.xlane.xlu1 %922 }
 0x2ff   : > { %v961_v4 = vmul.f32 0.0078125, %v921_v2  ;;  %v1023_v14 = vmul.f32 %v9989_v21, %v9989_v21  ;;  %v962_v7 = vmul.f32 0.0078125, %v923_v3  ;;  %v1024_v22 = vmul.f32 %v9992_v61, %v9992_v61 }
 0x301   : > { %1075 = vadd.xlane.f32.xlu1 %v1022_v20  ;;  %1077 = vadd.xlane.f32.xlu0 %v1023_v14  ;;  %v9999_v23 = vsub.f32 %v9847_v24, %v961_v4  ;;  %v10002_v33 = vsub.f32 %v9850_v25, %v962_v7 }
 0x302   : > { %v925_v34 = vpop.xlane.xlu0 %924  ;;  %v927_v35 = vpop.xlane.xlu1 %926 }
 0x303   : > { %v963_v36 = vmul.f32 0.0078125, %v925_v34  ;;  %v1025_v37 = vmul.f32 %v9999_v23, %v9999_v23  ;;  %v964_v40 = vmul.f32 0.0078125, %v927_v35  ;;  %v1026_v16 = vmul.f32 %v10002_v33, %v10002_v33 }
 0x305   : > { %1079 = vadd.xlane.f32.xlu1 %v1024_v22  ;;  %1081 = vadd.xlane.f32.xlu0 %v1025_v37  ;;  %v10009_v42 = vsub.f32 %v9855_v26, %v963_v36  ;;  %v10012_v24 = vsub.f32 %v9858_v27, %v964_v40 }
 0x306   : > { %v929_v25 = vpop.xlane.xlu0 %928  ;;  %v931_v43 = vpop.xlane.xlu1 %930 }
 0x307   : > { %v965_v44 = vmul.f32 0.0078125, %v929_v25  ;;  %v1027_v45 = vmul.f32 %v10009_v42, %v10009_v42  ;;  %v966_v48 = vmul.f32 0.0078125, %v931_v43  ;;  %v1028_v10 = vmul.f32 %v10012_v24, %v10012_v24 }
 0x309   : > { %1083 = vadd.xlane.f32.xlu1 %v1026_v16  ;;  %1085 = vadd.xlane.f32.xlu0 %v1027_v45  ;;  %v10019_v50 = vsub.f32 %v9863_v28, %v965_v44  ;;  %v10022_v26 = vsub.f32 %v9866_v29, %v966_v48  ;;  %v10038_v48 = vld [vmem:[#allocation10] ss:$0 sm:$0xff] }
 0x30a   : > { %v933_v27 = vpop.xlane.xlu0 %932  ;;  %v935_v18 = vpop.xlane.xlu1 %934 }
 0x30b   : > { %v967_v52 = vmul.f32 0.0078125, %v933_v27  ;;  %v1029_v53 = vmul.f32 %v10019_v50, %v10019_v50  ;;  %v968_v56 = vmul.f32 0.0078125, %v935_v18  ;;  %v1030_v57 = vmul.f32 %v10022_v26, %v10022_v26 }
 0x30d   : > { %1087 = vadd.xlane.f32.xlu1 %v1028_v10  ;;  %1089 = vadd.xlane.f32.xlu0 %v1029_v53  ;;  %v10029_v58 = vsub.f32 %v9871_v30, %v967_v52  ;;  %v10032_v28 = vsub.f32 %v9874_v31, %v968_v56  ;;  %v10041_v56 = vld [vmem:[#allocation12] ss:$0 sm:$0xff] }
 0x30f   : > { %v1031_v29 = vmul.f32 %v10029_v58, %v10029_v58  ;;  %v1032_v12 = vmul.f32 %v10032_v28, %v10032_v28 }
 0x311   : > { %1091 = vadd.xlane.f32.xlu1 %v1030_v57  ;;  %1093 = vadd.xlane.f32.xlu0 %v1031_v29 }
 0x315   : > { %1095 = vadd.xlane.f32.xlu1 %v1032_v12 }
 0x362   : > { %v1034_v60 = vpop.xlane.xlu0 %1033 }
 0x363   : > { %v1097_v20 = vmul.f32 0.0078125, %v1034_v60 }
 0x365   : > { %v1129_v0 = vadd.f32 1e-05, %v1097_v20 }
 0x366   : > { %v1036_v1 = vpop.xlane.xlu1 %1035  ;;  %v1038_v2 = vpop.xlane.xlu0 %1037 }
 0x367   : > { %7844 = vrsqrt.f32 %v1129_v0  ;;  %v1098_v30 = vmul.f32 0.0078125, %v1036_v1  ;;  %v1099_v3 = vmul.f32 0.0078125, %v1038_v2 }
 0x369   : > { %v1130_v4 = vadd.f32 1e-05, %v1098_v30  ;;  %v1131_v31 = vadd.f32 1e-05, %v1099_v3 }
 0x36a   : > { %v1040_v14 = vpop.xlane.xlu1 %1039  ;;  %v1042_v7 = vpop.xlane.xlu0 %1041 }
 0x36b   : > { %7846 = vrsqrt.f32 %v1130_v4  ;;  %v1100_v22 = vmul.f32 0.0078125, %v1040_v14  ;;  %v1101_v34 = vmul.f32 0.0078125, %v1042_v7 }
 0x36c   : > { %7848 = vrsqrt.f32 %v1131_v31 }
 0x36d   : > { %v1132_v35 = vadd.f32 1e-05, %v1100_v22  ;;  %v1133_v36 = vadd.f32 1e-05, %v1101_v34 }
 0x36e   : > { %v1044_v37 = vpop.xlane.xlu1 %1043  ;;  %v1046_v40 = vpop.xlane.xlu0 %1045 }
 0x36f   : > { %7850 = vrsqrt.f32 %v1132_v35  ;;  %v1102_v16 = vmul.f32 0.0078125, %v1044_v37  ;;  %v1103_v25 = vmul.f32 0.0078125, %v1046_v40 }
 0x370   : > { %7852 = vrsqrt.f32 %v1133_v36 }
 0x371   : > { %v7845_v43 = vpop.eup %7844  ;;  %v1134_v44 = vadd.f32 1e-05, %v1102_v16  ;;  %v1135_v45 = vadd.f32 1e-05, %v1103_v25 }
 0x372   : > { %v1048_v10 = vpop.xlane.xlu1 %1047  ;;  %v1050_v27 = vpop.xlane.xlu0 %1049  ;;  %v1193_v18 = vmul.f32 %v7845_v43, %v9879_v38 }
 0x373   : > { %7854 = vrsqrt.f32 %v1134_v44  ;;  %v1104_v52 = vmul.f32 0.0078125, %v1048_v10  ;;  %v1105_v53 = vmul.f32 0.0078125, %v1050_v27 }
 0x374   : > { %7856 = vrsqrt.f32 %v1135_v45  ;;  %v1232_v57 = vmul.f32 %v10038_v48, %v1193_v18 }
 0x375   : > { %v7847_v29 = vpop.eup %7846  ;;  %v1136_v12 = vadd.f32 1e-05, %v1104_v52  ;;  %v1137_v60 = vadd.f32 1e-05, %v1105_v53 }
 0x376   : > { %v7849_v20 = vpop.eup %7848  ;;  %v1052_v0 = vpop.xlane.xlu1 %1051  ;;  %v1194_v2 = vmul.f32 %v7847_v29, %v9889_v46  ;;  %v1271_v30 = vadd.f32 %v10041_v56, %v1232_v57 }
 0x377   : > { %v1054_v1 = vpop.xlane.xlu0 %1053  ;;  %7858 = vrsqrt.f32 %v1136_v12  ;;  %v1106_v38 = vmul.f32 0.0078125, %v1052_v0  ;;  %v1195_v4 = vmul.f32 %v7849_v20, %v9882_v39 }
 0x378   : > { %v1107_v3 = vmul.f32 0.0078125, %v1054_v1  ;;  %7860 = vrsqrt.f32 %v1137_v60  ;;  %v1233_v31 = vmul.f32 %v10038_v48, %v1194_v2  ;;  %1303 = vst [vmem:[#allocation2] sm:$0xff] %v1271_v30 }
 0x379   : > { %v7851_v14 = vpop.eup %7850  ;;  %v1138_v7 = vadd.f32 1e-05, %v1106_v38  ;;  %v1234_v34 = vmul.f32 %v10038_v48, %v1195_v4 }
 0x37a   : > { %v1139_v22 = vadd.f32 1e-05, %v1107_v3  ;;  %v7853_v35 = vpop.eup %7852  ;;  %v1056_v36 = vpop.xlane.xlu1 %1055  ;;  %v1272_v46 = vadd.f32 %v10041_v56, %v1233_v31  ;;  %v1196_v40 = vmul.f32 %v7851_v14, %v9892_v47 }
 0x37b   : > { %v1058_v37 = vpop.xlane.xlu0 %1057  ;;  %7862 = vrsqrt.f32 %v1138_v7  ;;  %v1108_v16 = vmul.f32 0.0078125, %v1056_v36  ;;  %v1273_v39 = vadd.f32 %v10041_v56, %v1234_v34  ;;  %v1197_v45 = vmul.f32 %v7853_v35, %v9899_v54 }
 0x37c   : > { %v1109_v25 = vmul.f32 0.0078125, %v1058_v37  ;;  %7864 = vrsqrt.f32 %v1139_v22  ;;  %1304 = vst [vmem:[#allocation2 + $0x8] sm:$0xff] %v1272_v46  ;;  %v1335_v43 = vpack.c.bf16 %v1272_v46, %v1271_v30  ;;  %v1235_v44 = vmul.f32 %v10038_v48, %v1196_v40 }
 0x37d   : > { %v7855_v10 = vpop.eup %7854  ;;  %v1140_v27 = vadd.f32 1e-05, %v1108_v16  ;;  %1305 = vst [vmem:[#allocation2 + $0x10] sm:$0xff] %v1273_v39  ;;  %v1236_v12 = vmul.f32 %v10038_v48, %v1197_v45 }
 0x37e   : > { %v1141_v18 = vadd.f32 1e-05, %v1109_v25  ;;  %v7857_v52 = vpop.eup %7856  ;;  %v1060_v53 = vpop.xlane.xlu1 %1059  ;;  %7359 = vmatprep.mubr.bf16.mxu0 %v1335_v43  ;;  %7407 = vmatprep.mubr.bf16.mxu1 %v1335_v43  ;;  %v1274_v57 = vadd.f32 %v10041_v56, %v1235_v44  ;;  %v1198_v29 = vmul.f32 %v7855_v10, %v9902_v55 }
 0x37f   : > { %v1062_v47 = vpop.xlane.xlu0 %1061  ;;  %7866 = vrsqrt.f32 %v1140_v27  ;;  %v1110_v60 = vmul.f32 0.0078125, %v1060_v53  ;;  %v1199_v54 = vmul.f32 %v7857_v52, %v9909_v62  ;;  %v1275_v2 = vadd.f32 %v10041_v56, %v1236_v12 }
 0x380   : > { %v1111_v20 = vmul.f32 0.0078125, %v1062_v47  ;;  %7868 = vrsqrt.f32 %v1141_v18  ;;  %1306 = vst [vmem:[#allocation2 + $0x18] sm:$0xff] %v1274_v57  ;;  %v1336_v0 = vpack.c.bf16 %v1274_v57, %v1273_v39  ;;  %v1237_v1 = vmul.f32 %v10038_v48, %v1198_v29 }
 0x381   : > { %v7859_v30 = vpop.eup %7858  ;;  %v1142_v38 = vadd.f32 1e-05, %v1110_v60  ;;  %v1238_v4 = vmul.f32 %v10038_v48, %v1199_v54  ;;  %1307 = vst [vmem:[#allocation2 + $0x20] sm:$0xff] %v1275_v2 }
 0x382   : > { %v1143_v3 = vadd.f32 1e-05, %v1111_v20  ;;  %v7861_v55 = vpop.eup %7860  ;;  %v1064_v31 = vpop.xlane.xlu1 %1063  ;;  %7360 = vmatmul.mubr.bf16.vlgmr.msra.gmra.mrb[0].mxu0 %v1336_v0  ;;  %7408 = vmatmul.mubr.bf16.vlgmr.msra.gmra.mrb[0].mxu1 %v1336_v0  ;;  %v1276_v7 = vadd.f32 %v10041_v56, %v1237_v1  ;;  %v1200_v62 = vmul.f32 %v7859_v30, %v9912_v63 }
 0x383   : > { %v1066_v14 = vpop.xlane.xlu0 %1065  ;;  %7870 = vrsqrt.f32 %v1142_v38  ;;  %v1112_v22 = vmul.f32 0.0078125, %v1064_v31  ;;  %v1277_v35 = vadd.f32 %v10041_v56, %v1238_v4  ;;  %v1201_v46 = vmul.f32 %v7861_v55, %v9919_v32 }
 0x384   : > { %v1113_v34 = vmul.f32 0.0078125, %v1066_v14  ;;  %7872 = vrsqrt.f32 %v1143_v3  ;;  %1308 = vst [vmem:[#allocation2 + $0x28] sm:$0xff] %v1276_v7  ;;  %v1337_v36 = vpack.c.bf16 %v1276_v7, %v1275_v2  ;;  %v1239_v37 = vmul.f32 %v10038_v48, %v1200_v62 }
 0x385   : > { %v7863_v40 = vpop.eup %7862  ;;  %v1144_v16 = vadd.f32 1e-05, %v1112_v22  ;;  %1309 = vst [vmem:[#allocation2 + $0x30] sm:$0xff] %v1277_v35  ;;  %v1240_v10 = vmul.f32 %v10038_v48, %v1201_v46 }
 0x386   : > { %v1145_v25 = vadd.f32 1e-05, %v1113_v34  ;;  %v7865_v39 = vpop.eup %7864  ;;  %v1068_v43 = vpop.xlane.xlu1 %1067  ;;  %7363 = vmatprep.mubr.bf16.mxu0 %v1337_v36  ;;  %7411 = vmatprep.mubr.bf16.mxu1 %v1337_v36  ;;  %v1278_v44 = vadd.f32 %v10041_v56, %v1239_v37  ;;  %v1202_v45 = vmul.f32 %v7863_v40, %v9922_v6 }
 0x387   : > { %v1070_v63 = vpop.xlane.xlu0 %1069  ;;  %7874 = vrsqrt.f32 %v1144_v16  ;;  %v1114_v27 = vmul.f32 0.0078125, %v1068_v43  ;;  %v1203_v32 = vmul.f32 %v7865_v39, %v9929_v8  ;;  %v1279_v47 = vadd.f32 %v10041_v56, %v1240_v10 }
 0x388   : > { %v1115_v18 = vmul.f32 0.0078125, %v1070_v63  ;;  %7876 = vrsqrt.f32 %v1145_v25  ;;  %1310 = vst [vmem:[#allocation2 + $0x38] sm:$0xff] %v1278_v44  ;;  %v1338_v52 = vpack.c.bf16 %v1278_v44, %v1277_v35  ;;  %v1241_v53 = vmul.f32 %v10038_v48, %v1202_v45 }
 0x389   : > { %v7867_v57 = vpop.eup %7866  ;;  %v1146_v29 = vadd.f32 1e-05, %v1114_v27  ;;  %v1242_v60 = vmul.f32 %v10038_v48, %v1203_v32  ;;  %1311 = vst [vmem:[#allocation2 + $0x40] sm:$0xff] %v1279_v47 }
 0x38a   : > { %v1147_v12 = vadd.f32 1e-05, %v1115_v18  ;;  %v7869_v6 = vpop.eup %7868  ;;  %v1072_v20 = vpop.xlane.xlu1 %1071  ;;  %7364 = vmatmul.mubr.bf16.gmra.mrb[4].mxu0 %v1338_v52  ;;  %7412 = vmatmul.mubr.bf16.gmra.mrb[4].mxu1 %v1338_v52  ;;  %v1280_v0 = vadd.f32 %v10041_v56, %v1241_v53  ;;  %v1204_v8 = vmul.f32 %v7867_v57, %v9932_v9 }
 0x38b   : > { %v1074_v54 = vpop.xlane.xlu0 %1073  ;;  %7878 = vrsqrt.f32 %v1146_v29  ;;  %v1116_v1 = vmul.f32 0.0078125, %v1072_v20  ;;  %v1281_v30 = vadd.f32 %v10041_v56, %v1242_v60  ;;  %v1205_v4 = vmul.f32 %v7869_v6, %v9939_v49 }
 0x38c   : > { %v1117_v2 = vmul.f32 0.0078125, %v1074_v54  ;;  %7880 = vrsqrt.f32 %v1147_v12  ;;  %1312 = vst [vmem:[#allocation2 + $0x48] sm:$0xff] %v1280_v0  ;;  %v1339_v38 = vpack.c.bf16 %v1280_v0, %v1279_v47  ;;  %v1243_v3 = vmul.f32 %v10038_v48, %v1204_v8 }
 0x38d   : > { %v7871_v55 = vpop.eup %7870  ;;  %v1148_v31 = vadd.f32 1e-05, %v1116_v1  ;;  %1313 = vst [vmem:[#allocation2 + $0x50] sm:$0xff] %v1281_v30  ;;  %v1244_v35 = vmul.f32 %v10038_v48, %v1205_v4 }
 0x38e   : > { %v1149_v14 = vadd.f32 1e-05, %v1117_v2  ;;  %v7873_v7 = vpop.eup %7872  ;;  %v1076_v62 = vpop.xlane.xlu1 %1075  ;;  %7367 = vmatprep.mubr.bf16.mxu0 %v1339_v38  ;;  %7415 = vmatprep.mubr.bf16.mxu1 %v1339_v38  ;;  %v1282_v22 = vadd.f32 %v10041_v56, %v1243_v3  ;;  %v1206_v34 = vmul.f32 %v7871_v55, %v9942_v11 }
 0x38f   : > { %v1078_v9 = vpop.xlane.xlu0 %1077  ;;  %7882 = vrsqrt.f32 %v1148_v31  ;;  %v1118_v36 = vmul.f32 0.0078125, %v1076_v62  ;;  %v1207_v49 = vmul.f32 %v7873_v7, %v9949_v13  ;;  %v1283_v16 = vadd.f32 %v10041_v56, %v1244_v35 }
 0x390   : > { %v1119_v37 = vmul.f32 0.0078125, %v1078_v9  ;;  %7884 = vrsqrt.f32 %v1149_v14  ;;  %1314 = vst [vmem:[#allocation2 + $0x58] sm:$0xff] %v1282_v22  ;;  %v1340_v46 = vpack.c.bf16 %v1282_v22, %v1281_v30  ;;  %v1245_v40 = vmul.f32 %v10038_v48, %v1206_v34 }
 0x391   : > { %v7875_v25 = vpop.eup %7874  ;;  %v1150_v39 = vadd.f32 1e-05, %v1118_v36  ;;  %v1246_v63 = vmul.f32 %v10038_v48, %v1207_v49  ;;  %1315 = vst [vmem:[#allocation2 + $0x60] sm:$0xff] %v1283_v16 }
 0x392   : > { %v1151_v43 = vadd.f32 1e-05, %v1119_v37  ;;  %v7877_v11 = vpop.eup %7876  ;;  %v1080_v44 = vpop.xlane.xlu1 %1079  ;;  %7368 = vmatmul.mubr.bf16.gmra.mrb[8].mxu0 %v1340_v46  ;;  %7416 = vmatmul.mubr.bf16.gmra.mrb[8].mxu1 %v1340_v46  ;;  %v1284_v10 = vadd.f32 %v10041_v56, %v1245_v40  ;;  %v1208_v13 = vmul.f32 %v7875_v25, %v9952_v59 }
 0x393   : > { %v1082_v45 = vpop.xlane.xlu0 %1081  ;;  %7886 = vrsqrt.f32 %v1150_v39  ;;  %v1120_v27 = vmul.f32 0.0078125, %v1080_v44  ;;  %v1285_v32 = vadd.f32 %v10041_v56, %v1246_v63  ;;  %v1209_v47 = vmul.f32 %v7877_v11, %v9959_v15 }
 0x394   : > { %v1121_v18 = vmul.f32 0.0078125, %v1082_v45  ;;  %7888 = vrsqrt.f32 %v1151_v43  ;;  %1316 = vst [vmem:[#allocation2 + $0x68] sm:$0xff] %v1284_v10  ;;  %v1341_v52 = vpack.c.bf16 %v1284_v10, %v1283_v16  ;;  %v1247_v53 = vmul.f32 %v10038_v48, %v1208_v13 }
 0x395   : > { %v7879_v57 = vpop.eup %7878  ;;  %v1152_v29 = vadd.f32 1e-05, %v1120_v27  ;;  %1317 = vst [vmem:[#allocation2 + $0x70] sm:$0xff] %v1285_v32  ;;  %v1248_v0 = vmul.f32 %v10038_v48, %v1209_v47 }
 0x396   : > { %v1153_v12 = vadd.f32 1e-05, %v1121_v18  ;;  %v7881_v60 = vpop.eup %7880  ;;  %v1084_v6 = vpop.xlane.xlu1 %1083  ;;  %7371 = vmatprep.mubr.bf16.mxu0 %v1341_v52  ;;  %7419 = vmatprep.mubr.bf16.mxu1 %v1341_v52  ;;  %v1286_v20 = vadd.f32 %v10041_v56, %v1247_v53  ;;  %v1210_v54 = vmul.f32 %v7879_v57, %v9962_v5 }
 0x397   : > { %v1086_v59 = vpop.xlane.xlu0 %1085  ;;  %7890 = vrsqrt.f32 %v1152_v29  ;;  %v1122_v8 = vmul.f32 0.0078125, %v1084_v6  ;;  %v1211_v15 = vmul.f32 %v7881_v60, %v9969_v17  ;;  %v1287_v38 = vadd.f32 %v10041_v56, %v1248_v0 }
 0x398   : > { %v1123_v1 = vmul.f32 0.0078125, %v1086_v59  ;;  %7892 = vrsqrt.f32 %v1153_v12  ;;  %1318 = vst [vmem:[#allocation2 + $0x78] sm:$0xff] %v1286_v20  ;;  %v1342_v2 = vpack.c.bf16 %v1286_v20, %v1285_v32  ;;  %v1249_v30 = vmul.f32 %v10038_v48, %v1210_v54 }
 0x399   : > { %v7883_v3 = vpop.eup %7882  ;;  %v1154_v4 = vadd.f32 1e-05, %v1122_v8  ;;  %v1250_v31 = vmul.f32 %v10038_v48, %v1211_v15  ;;  %1319 = vst [vmem:[#allocation2 + $0x80] sm:$0xff] %v1287_v38 }
 0x39a   : > { %v1155_v55 = vadd.f32 1e-05, %v1123_v1  ;;  %v7885_v5 = vpop.eup %7884  ;;  %v1088_v14 = vpop.xlane.xlu1 %1087  ;;  %7372 = vmatmul.mubr.bf16.gmra.mrb[12].mxu0 %v1342_v2  ;;  %7420 = vmatmul.mubr.bf16.gmra.mrb[12].mxu1 %v1342_v2  ;;  %v1288_v62 = vadd.f32 %v10041_v56, %v1249_v30  ;;  %v1212_v17 = vmul.f32 %v7883_v3, %v9972_v41 }
 0x39b   : > { %v1090_v7 = vpop.xlane.xlu0 %1089  ;;  %7894 = vrsqrt.f32 %v1154_v4  ;;  %v1124_v9 = vmul.f32 0.0078125, %v1088_v14  ;;  %v1289_v34 = vadd.f32 %v10041_v56, %v1250_v31  ;;  %v1213_v37 = vmul.f32 %v7885_v5, %v9979_v19 }
 0x39c   : > { %v1125_v22 = vmul.f32 0.0078125, %v1090_v7  ;;  %7896 = vrsqrt.f32 %v1155_v55  ;;  %1320 = vst [vmem:[#allocation2 + $0x88] sm:$0xff] %v1288_v62  ;;  %v1343_v35 = vpack.c.bf16 %v1288_v62, %v1287_v38  ;;  %v1251_v36 = vmul.f32 %v10038_v48, %v1212_v17 }
 0x39d   : > { %v7887_v49 = vpop.eup %7886  ;;  %v1156_v46 = vadd.f32 1e-05, %v1124_v9  ;;  %1321 = vst [vmem:[#allocation2 + $0x90] sm:$0xff] %v1289_v34  ;;  %v1252_v63 = vmul.f32 %v10038_v48, %v1213_v37 }
 0x39e   : > { %v1157_v40 = vadd.f32 1e-05, %v1125_v22  ;;  %v7889_v16 = vpop.eup %7888  ;;  %v1092_v25 = vpop.xlane.xlu1 %1091  ;;  %7375 = vmatprep.mubr.bf16.mxu0 %v1343_v35  ;;  %7423 = vmatprep.mubr.bf16.mxu1 %v1343_v35  ;;  %v1290_v39 = vadd.f32 %v10041_v56, %v1251_v36  ;;  %v1214_v43 = vmul.f32 %v7887_v49, %v9982_v51 }
 0x39f   : > { %v1094_v41 = vpop.xlane.xlu0 %1093  ;;  %7898 = vrsqrt.f32 %v1156_v46  ;;  %v1126_v11 = vmul.f32 0.0078125, %v1092_v25  ;;  %v1215_v19 = vmul.f32 %v7889_v16, %v9989_v21  ;;  %v1291_v13 = vadd.f32 %v10041_v56, %v1252_v63 }
 0x3a0   : > { %v1127_v44 = vmul.f32 0.0078125, %v1094_v41  ;;  %7900 = vrsqrt.f32 %v1157_v40  ;;  %1322 = vst [vmem:[#allocation2 + $0x98] sm:$0xff] %v1290_v39  ;;  %v1344_v45 = vpack.c.bf16 %v1290_v39, %v1289_v34  ;;  %v1253_v10 = vmul.f32 %v10038_v48, %v1214_v43  ;;  %v10138_v41 = vld [vmem:[#allocation18] ss:$0 sm:$0xff] }
 0x3a1   : > { %v7891_v27 = vpop.eup %7890  ;;  %v1158_v18 = vadd.f32 1e-05, %v1126_v11  ;;  %v1254_v52 = vmul.f32 %v10038_v48, %v1215_v19  ;;  %1323 = vst [vmem:[#allocation2 + $0xa0] sm:$0xff] %v1291_v13 }
 0x3a2   : > { %v1159_v32 = vadd.f32 1e-05, %v1127_v44  ;;  %v7893_v51 = vpop.eup %7892  ;;  %v1096_v53 = vpop.xlane.xlu1 %1095  ;;  %7376 = vmatmul.mubr.bf16.gmra.mrb[16].mxu0 %v1344_v45  ;;  %7424 = vmatmul.mubr.bf16.gmra.mrb[16].mxu1 %v1344_v45  ;;  %v1292_v47 = vadd.f32 %v10041_v56, %v1253_v10  ;;  %v1216_v21 = vmul.f32 %v7891_v27, %v9992_v61 }
 0x3a3   : > { %7902 = vrsqrt.f32 %v1158_v18  ;;  %v1128_v57 = vmul.f32 0.0078125, %v1096_v53  ;;  %v1293_v29 = vadd.f32 %v10041_v56, %v1254_v52  ;;  %v1217_v12 = vmul.f32 %v7893_v51, %v9999_v23 }
 0x3a4   : > { %7904 = vrsqrt.f32 %v1159_v32  ;;  %1324 = vst [vmem:[#allocation2 + $0xa8] sm:$0xff] %v1292_v47  ;;  %v1345_v60 = vpack.c.bf16 %v1292_v47, %v1291_v13  ;;  %v1255_v6 = vmul.f32 %v10038_v48, %v1216_v21 }
 0x3a5   : > { %v7895_v59 = vpop.eup %7894  ;;  %v1160_v20 = vadd.f32 1e-05, %v1128_v57  ;;  %1325 = vst [vmem:[#allocation2 + $0xb0] sm:$0xff] %v1293_v29  ;;  %v1256_v54 = vmul.f32 %v10038_v48, %v1217_v12 }
 0x3a6   : > { %v7897_v0 = vpop.eup %7896  ;;  %7379 = vmatprep.mubr.bf16.mxu0 %v1345_v60  ;;  %7427 = vmatprep.mubr.bf16.mxu1 %v1345_v60  ;;  %v1294_v61 = vadd.f32 %v10041_v56, %v1255_v6  ;;  %v1218_v8 = vmul.f32 %v7895_v59, %v10002_v33 }
 0x3a7   : > { %7906 = vrsqrt.f32 %v1160_v20  ;;  %v1295_v23 = vadd.f32 %v10041_v56, %v1256_v54  ;;  %v1219_v1 = vmul.f32 %v7897_v0, %v10009_v42 }
 0x3a8   : > { %1326 = vst [vmem:[#allocation2 + $0xb8] sm:$0xff] %v1294_v61  ;;  %v1346_v15 = vpack.c.bf16 %v1294_v61, %v1293_v29  ;;  %v1257_v2 = vmul.f32 %v10038_v48, %v1218_v8 }
 0x3a9   : > { %v7899_v30 = vpop.eup %7898  ;;  %1327 = vst [vmem:[#allocation2 + $0xc0] sm:$0xff] %v1295_v23  ;;  %v1258_v38 = vmul.f32 %v10038_v48, %v1219_v1 }
 0x3aa   : > { %v7901_v3 = vpop.eup %7900  ;;  %7380 = vmatmul.mubr.bf16.gmra.mrb[20].mxu0 %v1346_v15  ;;  %7428 = vmatmul.mubr.bf16.gmra.mrb[20].mxu1 %v1346_v15  ;;  %v1296_v4 = vadd.f32 %v10041_v56, %v1257_v2  ;;  %v1220_v33 = vmul.f32 %v7899_v30, %v10012_v24 }
 0x3ab   : > { %v1297_v55 = vadd.f32 %v10041_v56, %v1258_v38  ;;  %v1221_v31 = vmul.f32 %v7901_v3, %v10019_v50 }
 0x3ac   : > { %1328 = vst [vmem:[#allocation2 + $0xc8] sm:$0xff] %v1296_v4  ;;  %v1347_v42 = vpack.c.bf16 %v1296_v4, %v1295_v23  ;;  %v1259_v5 = vmul.f32 %v10038_v48, %v1220_v33 }
 0x3ad   : > { %v7903_v14 = vpop.eup %7902  ;;  %1329 = vst [vmem:[#allocation2 + $0xd0] sm:$0xff] %v1297_v55  ;;  %v1260_v7 = vmul.f32 %v10038_v48, %v1221_v31 }
 0x3ae   : > { %v7905_v62 = vpop.eup %7904  ;;  %7383 = vmatprep.mubr.bf16.mxu0 %v1347_v42  ;;  %7431 = vmatprep.mubr.bf16.mxu1 %v1347_v42  ;;  %v1298_v17 = vadd.f32 %v10041_v56, %v1259_v5  ;;  %v1222_v9 = vmul.f32 %v7903_v14, %v10022_v26 }
 0x3af   : > { %v1299_v24 = vadd.f32 %v10041_v56, %v1260_v7  ;;  %v1223_v22 = vmul.f32 %v7905_v62, %v10029_v58 }
 0x3b0   : > { %1330 = vst [vmem:[#allocation2 + $0xd8] sm:$0xff] %v1298_v17  ;;  %v1348_v50 = vpack.c.bf16 %v1298_v17, %v1297_v55  ;;  %v1261_v34 = vmul.f32 %v10038_v48, %v1222_v9 }
 0x3b1   : > { %v7907_v35 = vpop.eup %7906  ;;  %1331 = vst [vmem:[#allocation2 + $0xe0] sm:$0xff] %v1299_v24  ;;  %v1262_v36 = vmul.f32 %v10038_v48, %v1223_v22 }
 0x3b2   : > { %7384 = vmatmul.mubr.bf16.gmra.mrb[24].mxu0 %v1348_v50  ;;  %7432 = vmatmul.mubr.bf16.gmra.mrb[24].mxu1 %v1348_v50  ;;  %v1300_v37 = vadd.f32 %v10041_v56, %v1261_v34  ;;  %v1224_v49 = vmul.f32 %v7907_v35, %v10032_v28  ;;  %v10140_v28 = vld [vmem:[#allocation21] ss:$0 sm:$0xff] }
 0x3b3   : > { %v1301_v26 = vadd.f32 %v10041_v56, %v1262_v36 }
 0x3b4   : > { %1332 = vst [vmem:[#allocation2 + $0xe8] sm:$0xff] %v1300_v37  ;;  %v1349_v46 = vpack.c.bf16 %v1300_v37, %v1299_v24  ;;  %v1263_v58 = vmul.f32 %v10038_v48, %v1224_v49 }
 0x3b5   : > { %1333 = vst [vmem:[#allocation2 + $0xf0] sm:$0xff] %v1301_v26 }
 0x3b6   : > { %7387 = vmatprep.mubr.bf16.mxu0 %v1349_v46  ;;  %7435 = vmatprep.mubr.bf16.mxu1 %v1349_v46  ;;  %v1302_v40 = vadd.f32 %v10041_v56, %v1263_v58 }
 0x3b8   : > { %1334 = vst [vmem:[#allocation2 + $0xf8] sm:$0xff] %v1302_v40  ;;  %v1350_v16 = vpack.c.bf16 %v1302_v40, %v1301_v26 }
 0x3ba   : > { %7388 = vmatmul.mubr.bf16.gmra.mrb[28].mxu0 %v1350_v16  ;;  %7436 = vmatmul.mubr.bf16.gmra.mrb[28].mxu1 %v1350_v16 }
 0x455   : > { %v7361_v25 = vpop.f32.mrb[0].mxu0  ;;  %v7409_v39 = vpop.f32.mrb[0].mxu1 }
 0x456   : > { %v1456_v43 = vpop.f32.mrb[1].mxu0  ;;  %v1688_v63 = vpop.f32.mrb[1].mxu1  ;;  %v1465_v44 = vadd.f32 %v7361_v25, %v10138_v41  ;;  %v1697_v19 = vadd.f32 %v7409_v39, %v10140_v28 }
 0x457   : > { %v7362_v11 = vpop.f32.mrb[2].mxu0  ;;  %v7410_v48 = vpop.f32.mrb[2].mxu1  ;;  %v1457_v27 = vadd.f32 %v10138_v41, %v1456_v43  ;;  %v1689_v18 = vadd.f32 %v10140_v28, %v1688_v63 }
 0x458   : > { %v1468_v56 = vadd.f32 %v7362_v11, %v10138_v41  ;;  %v1700_v45 = vadd.f32 %v7410_v48, %v10140_v28  ;;  %v1459_v10 = vpop.f32.mrb[3].mxu0  ;;  %v1691_v13 = vpop.f32.mrb[3].mxu1 }
 0x459   : > { %v1460_v32 = vadd.f32 %v10138_v41, %v1459_v10  ;;  %v1692_v52 = vadd.f32 %v10140_v28, %v1691_v13 }
 0x45a   : > { %v10150_v51 = vpack.c.bf16 %v1468_v56, %v1465_v44  ;;  %v10152_v53 = vpack.c.bf16 %v1700_v45, %v1697_v19 }
 0x45b   : > { %v10154_v47 = vpack.c.bf16 %v1460_v32, %v1457_v27  ;;  %v10156_v21 = vpack.c.bf16 %v1692_v52, %v1689_v18 }
 0x45c   : > { %1833 = vst.msk [vmem:[#allocation3 + $0x8] sm:$0xff] %vm1831_vm0, %v10150_v51  ;;  %1865 = vst.msk [vmem:[#allocation4 + $0x8] sm:$0xff] %vm1831_vm0, %v10152_v53  ;;  %1898 = vrot.lane.b32.xlu1 %v10150_v51, %s9055_s8 }
 0x45d   : > { %1832 = vst.msk [vmem:[#allocation3] sm:$0xff] %vm1831_vm0, %v10154_v47  ;;  %1864 = vst.msk [vmem:[#allocation4] sm:$0xff] %vm1831_vm0, %v10156_v21  ;;  %1896 = vrot.lane.b32.xlu0 %v10154_v47, %s9055_s8  ;;  %v7365_v57 = vpop.f32.mrb[4].mxu0  ;;  %v7413_v29 = vpop.f32.mrb[4].mxu1 }
 0x45e   : > { %v1472_v12 = vpop.f32.mrb[5].mxu0  ;;  %v1704_v60 = vpop.f32.mrb[5].mxu1  ;;  %v1481_v20 = vadd.f32 %v7365_v57, %v10138_v41  ;;  %v1713_v54 = vadd.f32 %v7413_v29, %v10140_v28 }
 0x45f   : > { %v7366_v6 = vpop.f32.mrb[6].mxu0  ;;  %v7414_v59 = vpop.f32.mrb[6].mxu1  ;;  %v1473_v1 = vadd.f32 %v10138_v41, %v1472_v12  ;;  %v1705_v15 = vadd.f32 %v10140_v28, %v1704_v60 }
 0x460   : > { %v1484_v0 = vadd.f32 %v7366_v6, %v10138_v41  ;;  %v1716_v61 = vadd.f32 %v7414_v59, %v10140_v28  ;;  %1979 = vrot.lane.b32.xlu1 %v10152_v53, %s9055_s8  ;;  %v1475_v8 = vpop.f32.mrb[7].mxu0  ;;  %v1707_v23 = vpop.f32.mrb[7].mxu1 }
 0x461   : > { %v1476_v2 = vadd.f32 %v10138_v41, %v1475_v8  ;;  %v1708_v30 = vadd.f32 %v10140_v28, %v1707_v23  ;;  %1977 = vrot.lane.b32.xlu0 %v10156_v21, %s9055_s8 }
 0x462   : > { %v10182_v38 = vpack.c.bf16 %v1484_v0, %v1481_v20  ;;  %v10184_v3 = vpack.c.bf16 %v1716_v61, %v1713_v54 }
 0x463   : > { %v10186_v4 = vpack.c.bf16 %v1476_v2, %v1473_v1  ;;  %v10188_v33 = vpack.c.bf16 %v1708_v30, %v1705_v15 }
 0x464   : > { %1835 = vst.msk [vmem:[#allocation3 + $0x18] sm:$0xff] %vm1831_vm0, %v10182_v38  ;;  %1867 = vst.msk [vmem:[#allocation4 + $0x18] sm:$0xff] %vm1831_vm0, %v10184_v3  ;;  %2044 = vrot.lane.b32.xlu1 %v10150_v51, %s9056_s27 }
 0x465   : > { %1834 = vst.msk [vmem:[#allocation3 + $0x10] sm:$0xff] %vm1831_vm0, %v10186_v4  ;;  %1866 = vst.msk [vmem:[#allocation4 + $0x10] sm:$0xff] %vm1831_vm0, %v10188_v33  ;;  %2042 = vrot.lane.b32.xlu0 %v10154_v47, %s9056_s27  ;;  %v7369_v55 = vpop.f32.mrb[8].mxu0  ;;  %v7417_v31 = vpop.f32.mrb[8].mxu1 }
 0x466   : > { %v1488_v42 = vpop.f32.mrb[9].mxu0  ;;  %v1720_v5 = vpop.f32.mrb[9].mxu1  ;;  %v1497_v62 = vadd.f32 %v7369_v55, %v10138_v41  ;;  %v1729_v17 = vadd.f32 %v7417_v31, %v10140_v28 }
 0x467   : > { %v7370_v14 = vpop.f32.mrb[10].mxu0  ;;  %v7418_v7 = vpop.f32.mrb[10].mxu1  ;;  %v1489_v34 = vadd.f32 %v10138_v41, %v1488_v42  ;;  %v1721_v35 = vadd.f32 %v10140_v28, %v1720_v5 }
 0x468   : > { %v1500_v9 = vadd.f32 %v7370_v14, %v10138_v41  ;;  %v1732_v24 = vadd.f32 %v7418_v7, %v10140_v28  ;;  %2109 = vrot.lane.b32.xlu1 %v10152_v53, %s9056_s27  ;;  %v1491_v22 = vpop.f32.mrb[11].mxu0  ;;  %v1723_v50 = vpop.f32.mrb[11].mxu1 }
 0x469   : > { %v1492_v36 = vadd.f32 %v10138_v41, %v1491_v22  ;;  %v1724_v37 = vadd.f32 %v10140_v28, %v1723_v50  ;;  %2107 = vrot.lane.b32.xlu0 %v10156_v21, %s9056_s27 }
 0x46a   : > { %v10214_v49 = vpack.c.bf16 %v1500_v9, %v1497_v62  ;;  %v10216_v26 = vpack.c.bf16 %v1732_v24, %v1729_v17 }
 0x46b   : > { %v10218_v46 = vpack.c.bf16 %v1492_v36, %v1489_v34  ;;  %v10220_v58 = vpack.c.bf16 %v1724_v37, %v1721_v35 }
 0x46c   : > { %1837 = vst.msk [vmem:[#allocation3 + $0x28] sm:$0xff] %vm1831_vm0, %v10214_v49  ;;  %1869 = vst.msk [vmem:[#allocation4 + $0x28] sm:$0xff] %vm1831_vm0, %v10216_v26  ;;  %2174 = vrot.lane.b32.xlu1 %v10150_v51, %s9057_s29 }
 0x46d   : > { %1836 = vst.msk [vmem:[#allocation3 + $0x20] sm:$0xff] %vm1831_vm0, %v10218_v46  ;;  %1868 = vst.msk [vmem:[#allocation4 + $0x20] sm:$0xff] %vm1831_vm0, %v10220_v58  ;;  %2172 = vrot.lane.b32.xlu0 %v10154_v47, %s9057_s29  ;;  %v7373_v40 = vpop.f32.mrb[12].mxu0  ;;  %v7421_v16 = vpop.f32.mrb[12].mxu1 }
 0x46e   : > { %v1504_v25 = vpop.f32.mrb[13].mxu0  ;;  %v1736_v39 = vpop.f32.mrb[13].mxu1  ;;  %v1513_v11 = vadd.f32 %v7373_v40, %v10138_v41  ;;  %v1745_v48 = vadd.f32 %v7421_v16, %v10140_v28 }
 0x46f   : > { %v7374_v43 = vpop.f32.mrb[14].mxu0  ;;  %v7422_v63 = vpop.f32.mrb[14].mxu1  ;;  %v1505_v10 = vadd.f32 %v10138_v41, %v1504_v25  ;;  %v1737_v13 = vadd.f32 %v10140_v28, %v1736_v39 }
 0x470   : > { %v1516_v44 = vadd.f32 %v7374_v43, %v10138_v41  ;;  %v1748_v19 = vadd.f32 %v7422_v63, %v10140_v28  ;;  %2239 = vrot.lane.b32.xlu1 %v10152_v53, %s9057_s29  ;;  %v1507_v56 = vpop.f32.mrb[15].mxu0  ;;  %v1739_v45 = vpop.f32.mrb[15].mxu1 }
 0x471   : > { %v1508_v27 = vadd.f32 %v10138_v41, %v1507_v56  ;;  %v1740_v18 = vadd.f32 %v10140_v28, %v1739_v45  ;;  %2237 = vrot.lane.b32.xlu0 %v10156_v21, %s9057_s29 }
 0x472   : > { %v10246_v32 = vpack.c.bf16 %v1516_v44, %v1513_v11  ;;  %v10248_v52 = vpack.c.bf16 %v1748_v19, %v1745_v48 }
 0x473   : > { %v10250_v51 = vpack.c.bf16 %v1508_v27, %v1505_v10  ;;  %v10252_v53 = vpack.c.bf16 %v1740_v18, %v1737_v13 }
 0x474   : > { %1839 = vst.msk [vmem:[#allocation3 + $0x38] sm:$0xff] %vm1831_vm0, %v10246_v32  ;;  %1871 = vst.msk [vmem:[#allocation4 + $0x38] sm:$0xff] %vm1831_vm0, %v10248_v52  ;;  %1902 = vrot.lane.b32.xlu1 %v10182_v38, %s9055_s8 }
 0x475   : > { %1838 = vst.msk [vmem:[#allocation3 + $0x30] sm:$0xff] %vm1831_vm0, %v10250_v51  ;;  %1870 = vst.msk [vmem:[#allocation4 + $0x30] sm:$0xff] %vm1831_vm0, %v10252_v53  ;;  %1981 = vrot.lane.b32.xlu0 %v10188_v33, %s9055_s8  ;;  %v7377_v47 = vpop.f32.mrb[16].mxu0  ;;  %v7425_v21 = vpop.f32.mrb[16].mxu1 }
 0x476   : > { %v1520_v57 = vpop.f32.mrb[17].mxu0  ;;  %v1752_v29 = vpop.f32.mrb[17].mxu1  ;;  %v1529_v6 = vadd.f32 %v7377_v47, %v10138_v41  ;;  %v1761_v59 = vadd.f32 %v7425_v21, %v10140_v28 }
 0x477   : > { %v7378_v12 = vpop.f32.mrb[18].mxu0  ;;  %v7426_v60 = vpop.f32.mrb[18].mxu1  ;;  %v1521_v8 = vadd.f32 %v10138_v41, %v1520_v57  ;;  %v1753_v23 = vadd.f32 %v10140_v28, %v1752_v29 }
 0x478   : > { %v1532_v20 = vadd.f32 %v7378_v12, %v10138_v41  ;;  %v1764_v54 = vadd.f32 %v7426_v60, %v10140_v28  ;;  %1983 = vrot.lane.b32.xlu1 %v10184_v3, %s9055_s8  ;;  %v1523_v0 = vpop.f32.mrb[19].mxu0  ;;  %v1755_v61 = vpop.f32.mrb[19].mxu1 }
 0x479   : > { %v1524_v1 = vadd.f32 %v10138_v41, %v1523_v0  ;;  %v1756_v15 = vadd.f32 %v10140_v28, %v1755_v61  ;;  %2046 = vrot.lane.b32.xlu0 %v10186_v4, %s9056_s27 }
 0x47a   : > { %v10278_v2 = vpack.c.bf16 %v1532_v20, %v1529_v6  ;;  %v10280_v30 = vpack.c.bf16 %v1764_v54, %v1761_v59 }
 0x47b   : > { %v10282_v55 = vpack.c.bf16 %v1524_v1, %v1521_v8  ;;  %v10284_v31 = vpack.c.bf16 %v1756_v15, %v1753_v23 }
 0x47c   : > { %1841 = vst.msk [vmem:[#allocation3 + $0x48] sm:$0xff] %vm1831_vm0, %v10278_v2  ;;  %1873 = vst.msk [vmem:[#allocation4 + $0x48] sm:$0xff] %vm1831_vm0, %v10280_v30  ;;  %2048 = vrot.lane.b32.xlu1 %v10182_v38, %s9056_s27 }
 0x47d   : > { %1840 = vst.msk [vmem:[#allocation3 + $0x40] sm:$0xff] %vm1831_vm0, %v10282_v55  ;;  %1872 = vst.msk [vmem:[#allocation4 + $0x40] sm:$0xff] %vm1831_vm0, %v10284_v31  ;;  %2111 = vrot.lane.b32.xlu0 %v10188_v33, %s9056_s27  ;;  %v7381_v42 = vpop.f32.mrb[20].mxu0  ;;  %v7429_v5 = vpop.f32.mrb[20].mxu1 }
 0x47e   : > { %v1536_v14 = vpop.f32.mrb[21].mxu0  ;;  %v1768_v7 = vpop.f32.mrb[21].mxu1  ;;  %v1545_v9 = vadd.f32 %v7381_v42, %v10138_v41  ;;  %v1777_v24 = vadd.f32 %v7429_v5, %v10140_v28 }
 0x47f   : > { %v7382_v62 = vpop.f32.mrb[22].mxu0  ;;  %v7430_v17 = vpop.f32.mrb[22].mxu1  ;;  %v1537_v36 = vadd.f32 %v10138_v41, %v1536_v14  ;;  %v1769_v37 = vadd.f32 %v10140_v28, %v1768_v7 }
 0x480   : > { %v1548_v22 = vadd.f32 %v7382_v62, %v10138_v41  ;;  %v1780_v50 = vadd.f32 %v7430_v17, %v10140_v28  ;;  %2113 = vrot.lane.b32.xlu1 %v10184_v3, %s9056_s27  ;;  %v1539_v34 = vpop.f32.mrb[23].mxu0  ;;  %v1771_v35 = vpop.f32.mrb[23].mxu1 }
 0x481   : > { %v1540_v40 = vadd.f32 %v10138_v41, %v1539_v34  ;;  %v1772_v16 = vadd.f32 %v10140_v28, %v1771_v35  ;;  %2176 = vrot.lane.b32.xlu0 %v10186_v4, %s9057_s29 }
 0x482   : > { %v10310_v25 = vpack.c.bf16 %v1548_v22, %v1545_v9  ;;  %v10312_v39 = vpack.c.bf16 %v1780_v50, %v1777_v24 }
 0x483   : > { %v10314_v43 = vpack.c.bf16 %v1540_v40, %v1537_v36  ;;  %v10316_v63 = vpack.c.bf16 %v1772_v16, %v1769_v37 }
 0x484   : > { %1843 = vst.msk [vmem:[#allocation3 + $0x58] sm:$0xff] %vm1831_vm0, %v10310_v25  ;;  %1875 = vst.msk [vmem:[#allocation4 + $0x58] sm:$0xff] %vm1831_vm0, %v10312_v39  ;;  %2178 = vrot.lane.b32.xlu1 %v10182_v38, %s9057_s29 }
 0x485   : > { %1842 = vst.msk [vmem:[#allocation3 + $0x50] sm:$0xff] %vm1831_vm0, %v10314_v43  ;;  %1874 = vst.msk [vmem:[#allocation4 + $0x50] sm:$0xff] %vm1831_vm0, %v10316_v63  ;;  %2241 = vrot.lane.b32.xlu0 %v10188_v33, %s9057_s29  ;;  %v7385_v11 = vpop.f32.mrb[24].mxu0  ;;  %v7433_v48 = vpop.f32.mrb[24].mxu1 }
 0x486   : > { %v1552_v44 = vpop.f32.mrb[25].mxu0  ;;  %v1784_v19 = vpop.f32.mrb[25].mxu1  ;;  %v1561_v10 = vadd.f32 %v7385_v11, %v10138_v41  ;;  %v1793_v13 = vadd.f32 %v7433_v48, %v10140_v28 }
 0x487   : > { %v7386_v56 = vpop.f32.mrb[26].mxu0  ;;  %v7434_v45 = vpop.f32.mrb[26].mxu1  ;;  %v1553_v33 = vadd.f32 %v10138_v41, %v1552_v44  ;;  %v1785_v21 = vadd.f32 %v10140_v28, %v1784_v19 }
 0x488   : > { %v1564_v38 = vadd.f32 %v7386_v56, %v10138_v41  ;;  %v1796_v27 = vadd.f32 %v7434_v45, %v10140_v28  ;;  %2243 = vrot.lane.b32.xlu1 %v10184_v3, %s9057_s29  ;;  %v1555_v18 = vpop.f32.mrb[27].mxu0  ;;  %v1787_v47 = vpop.f32.mrb[27].mxu1 }
 0x489   : > { %v1556_v57 = vadd.f32 %v10138_v41, %v1555_v18  ;;  %v1788_v29 = vadd.f32 %v10140_v28, %v1787_v47  ;;  %1904 = vrot.lane.b32.xlu0 %v10218_v46, %s9055_s8 }
 0x48a   : > { %v10342_v12 = vpack.c.bf16 %v1564_v38, %v1561_v10  ;;  %v10344_v60 = vpack.c.bf16 %v1796_v27, %v1793_v13 }
 0x48b   : > { %v10346_v6 = vpack.c.bf16 %v1556_v57, %v1553_v33  ;;  %v10348_v3 = vpack.c.bf16 %v1788_v29, %v1785_v21 }
 0x48c   : > { %1845 = vst.msk [vmem:[#allocation3 + $0x68] sm:$0xff] %vm1831_vm0, %v10342_v12  ;;  %1877 = vst.msk [vmem:[#allocation4 + $0x68] sm:$0xff] %vm1831_vm0, %v10344_v60  ;;  %1900 = vrot.lane.b32.xlu1 %v10186_v4, %s9055_s8 }
 0x48d   : > { %1844 = vst.msk [vmem:[#allocation3 + $0x60] sm:$0xff] %vm1831_vm0, %v10346_v6  ;;  %1876 = vst.msk [vmem:[#allocation4 + $0x60] sm:$0xff] %vm1831_vm0, %v10348_v3  ;;  %1985 = vrot.lane.b32.xlu0 %v10220_v58, %s9055_s8  ;;  %v7389_v59 = vpop.f32.mrb[28].mxu0  ;;  %v7437_v20 = vpop.f32.mrb[28].mxu1 }
 0x48e   : > { %v1568_v54 = vpop.f32.mrb[29].mxu0  ;;  %v1800_v0 = vpop.f32.mrb[29].mxu1  ;;  %v1577_v23 = vadd.f32 %v7389_v59, %v10138_v41  ;;  %v1809_v1 = vadd.f32 %v7437_v20, %v10140_v28 }
 0x48f   : > { %v7390_v61 = vpop.f32.mrb[30].mxu0  ;;  %v7438_v8 = vpop.f32.mrb[30].mxu1  ;;  %v1569_v14 = vadd.f32 %v10138_v41, %v1568_v54  ;;  %v1801_v7 = vadd.f32 %v10140_v28, %v1800_v0 }
 0x490   : > { %v1580_v4 = vadd.f32 %v7390_v61, %v10138_v41  ;;  %v1812_v15 = vadd.f32 %v7438_v8, %v10140_v28  ;;  %1906 = vrot.lane.b32.xlu1 %v10214_v49, %s9055_s8  ;;  %v1571_v42 = vpop.f32.mrb[31].mxu0  ;;  %v1803_v5 = vpop.f32.mrb[31].mxu1 }
 0x491   : > { %v1572_v62 = vadd.f32 %v10138_v41, %v1571_v42  ;;  %v1804_v17 = vadd.f32 %v10140_v28, %v1803_v5  ;;  %2050 = vrot.lane.b32.xlu0 %v10218_v46, %s9056_s27 }
 0x492   : > { %v10374_v9 = vpack.c.bf16 %v1580_v4, %v1577_v23  ;;  %v10376_v24 = vpack.c.bf16 %v1812_v15, %v1809_v1 }
 0x493   : > { %v10378_v22 = vpack.c.bf16 %v1572_v62, %v1569_v14  ;;  %v10380_v50 = vpack.c.bf16 %v1804_v17, %v1801_v7 }
 0x494   : > { %1847 = vst.msk [vmem:[#allocation3 + $0x78] sm:$0xff] %vm1831_vm0, %v10374_v9  ;;  %1879 = vst.msk [vmem:[#allocation4 + $0x78] sm:$0xff] %vm1831_vm0, %v10376_v24  ;;  %1987 = vrot.lane.b32.xlu1 %v10216_v26, %s9055_s8 }
 0x495   : > { %1846 = vst.msk [vmem:[#allocation3 + $0x70] sm:$0xff] %vm1831_vm0, %v10378_v22  ;;  %1878 = vst.msk [vmem:[#allocation4 + $0x70] sm:$0xff] %vm1831_vm0, %v10380_v50  ;;  %2115 = vrot.lane.b32.xlu0 %v10220_v58, %s9056_s27 }
 0x498   : > { %2052 = vrot.lane.b32.xlu1 %v10214_v49, %s9056_s27 }
 0x499   : > { %2180 = vrot.lane.b32.xlu0 %v10218_v46, %s9057_s29 }
 0x49c   : > { %2117 = vrot.lane.b32.xlu1 %v10216_v26, %s9056_s27 }
 0x49d   : > { %2245 = vrot.lane.b32.xlu0 %v10220_v58, %s9057_s29 }
 0x4a0   : > { %2182 = vrot.lane.b32.xlu1 %v10214_v49, %s9057_s29 }
 0x4a1   : > { %1908 = vrot.lane.b32.xlu0 %v10250_v51, %s9055_s8 }
 0x4a4   : > { %2247 = vrot.lane.b32.xlu1 %v10216_v26, %s9057_s29 }
 0x4a5   : > { %1989 = vrot.lane.b32.xlu0 %v10252_v53, %s9055_s8 }
 0x4a8   : > { %1910 = vrot.lane.b32.xlu1 %v10246_v32, %s9055_s8 }
 0x4a9   : > { %2054 = vrot.lane.b32.xlu0 %v10250_v51, %s9056_s27 }
 0x4ac   : > { %1991 = vrot.lane.b32.xlu1 %v10248_v52, %s9055_s8 }
 0x4ad   : > { %2119 = vrot.lane.b32.xlu0 %v10252_v53, %s9056_s27 }
 0x4b0   : > { %2056 = vrot.lane.b32.xlu1 %v10246_v32, %s9056_s27 }
 0x4b1   : > { %2184 = vrot.lane.b32.xlu0 %v10250_v51, %s9057_s29 }
 0x4b4   : > { %2121 = vrot.lane.b32.xlu1 %v10248_v52, %s9056_s27 }
 0x4b5   : > { %2249 = vrot.lane.b32.xlu0 %v10252_v53, %s9057_s29 }
 0x4b8   : > { %2186 = vrot.lane.b32.xlu1 %v10246_v32, %s9057_s29 }
 0x4b9   : > { %1912 = vrot.lane.b32.xlu0 %v10282_v55, %s9055_s8 }
 0x4bc   : > { %2251 = vrot.lane.b32.xlu1 %v10248_v52, %s9057_s29 }
 0x4bd   : > { %1993 = vrot.lane.b32.xlu0 %v10284_v31, %s9055_s8 }
 0x4c0   : > { %1914 = vrot.lane.b32.xlu1 %v10278_v2, %s9055_s8 }
 0x4c1   : > { %2058 = vrot.lane.b32.xlu0 %v10282_v55, %s9056_s27 }
 0x4c4   : > { %1995 = vrot.lane.b32.xlu1 %v10280_v30, %s9055_s8 }
 0x4c5   : > { %2123 = vrot.lane.b32.xlu0 %v10284_v31, %s9056_s27 }
 0x4c8   : > { %2060 = vrot.lane.b32.xlu1 %v10278_v2, %s9056_s27 }
 0x4c9   : > { %2188 = vrot.lane.b32.xlu0 %v10282_v55, %s9057_s29 }
 0x4cc   : > { %2125 = vrot.lane.b32.xlu1 %v10280_v30, %s9056_s27 }
 0x4cd   : > { %2253 = vrot.lane.b32.xlu0 %v10284_v31, %s9057_s29 }
 0x4ce   : > { %v1899_v41 = vpop.permute.xlu1 %1898 }
 0x4cf   : > { %1946 = vst.msk [vmem:[#allocation3 + $0x88] sm:$0xff] %vm1831_vm0, %v1899_v41  ;;  %v1897_v28 = vpop.permute.xlu0 %1896 }
 0x4d0   : > { %1945 = vst.msk [vmem:[#allocation3 + $0x80] sm:$0xff] %vm1831_vm0, %v1897_v28  ;;  %2190 = vrot.lane.b32.xlu1 %v10278_v2, %s9057_s29 }
 0x4d1   : > { %1916 = vrot.lane.b32.xlu0 %v10314_v43, %s9055_s8 }
 0x4d2   : > { %v1980_v49 = vpop.permute.xlu1 %1979 }
 0x4d3   : > { %2027 = vst.msk [vmem:[#allocation4 + $0x88] sm:$0xff] %vm1831_vm0, %v1980_v49  ;;  %v1978_v26 = vpop.permute.xlu0 %1977 }
 0x4d4   : > { %2026 = vst.msk [vmem:[#allocation4 + $0x80] sm:$0xff] %vm1831_vm0, %v1978_v26  ;;  %2255 = vrot.lane.b32.xlu1 %v10280_v30, %s9057_s29 }
 0x4d5   : > { %1997 = vrot.lane.b32.xlu0 %v10316_v63, %s9055_s8 }
 0x4d6   : > { %v2045_v46 = vpop.permute.xlu1 %2044 }
 0x4d7   : > { %2092 = vst.msk [vmem:[#allocation3 + $0x108] sm:$0xff] %vm1831_vm0, %v2045_v46  ;;  %v2043_v58 = vpop.permute.xlu0 %2042 }
 0x4d8   : > { %2091 = vst.msk [vmem:[#allocation3 + $0x100] sm:$0xff] %vm1831_vm0, %v2043_v58  ;;  %1918 = vrot.lane.b32.xlu1 %v10310_v25, %s9055_s8 }
 0x4d9   : > { %2062 = vrot.lane.b32.xlu0 %v10314_v43, %s9056_s27 }
 0x4da   : > { %v2110_v32 = vpop.permute.xlu1 %2109 }
 0x4db   : > { %2157 = vst.msk [vmem:[#allocation4 + $0x108] sm:$0xff] %vm1831_vm0, %v2110_v32  ;;  %v2108_v52 = vpop.permute.xlu0 %2107 }
 0x4dc   : > { %2156 = vst.msk [vmem:[#allocation4 + $0x100] sm:$0xff] %vm1831_vm0, %v2108_v52  ;;  %1999 = vrot.lane.b32.xlu1 %v10312_v39, %s9055_s8 }
 0x4dd   : > { %2127 = vrot.lane.b32.xlu0 %v10316_v63, %s9056_s27 }
 0x4de   : > { %v2175_v51 = vpop.permute.xlu1 %2174 }
 0x4df   : > { %2222 = vst.msk [vmem:[#allocation3 + $0x188] sm:$0xff] %vm1831_vm0, %v2175_v51  ;;  %v2173_v53 = vpop.permute.xlu0 %2172 }
 0x4e0   : > { %2221 = vst.msk [vmem:[#allocation3 + $0x180] sm:$0xff] %vm1831_vm0, %v2173_v53  ;;  %2064 = vrot.lane.b32.xlu1 %v10310_v25, %s9056_s27 }
 0x4e1   : > { %2192 = vrot.lane.b32.xlu0 %v10314_v43, %s9057_s29 }
 0x4e2   : > { %v2240_v2 = vpop.permute.xlu1 %2239 }
 0x4e3   : > { %2287 = vst.msk [vmem:[#allocation4 + $0x188] sm:$0xff] %vm1831_vm0, %v2240_v2  ;;  %v2238_v30 = vpop.permute.xlu0 %2237 }
 0x4e4   : > { %2286 = vst.msk [vmem:[#allocation4 + $0x180] sm:$0xff] %vm1831_vm0, %v2238_v30  ;;  %2129 = vrot.lane.b32.xlu1 %v10312_v39, %s9056_s27 }
 0x4e5   : > { %2257 = vrot.lane.b32.xlu0 %v10316_v63, %s9057_s29 }
 0x4e6   : > { %v1903_v55 = vpop.permute.xlu1 %1902 }
 0x4e7   : > { %1948 = vst.msk [vmem:[#allocation3 + $0x98] sm:$0xff] %vm1831_vm0, %v1903_v55  ;;  %v1982_v31 = vpop.permute.xlu0 %1981 }
 0x4e8   : > { %2028 = vst.msk [vmem:[#allocation4 + $0x90] sm:$0xff] %vm1831_vm0, %v1982_v31  ;;  %2194 = vrot.lane.b32.xlu1 %v10310_v25, %s9057_s29 }
 0x4e9   : > { %1920 = vrot.lane.b32.xlu0 %v10346_v6, %s9055_s8 }
 0x4ea   : > { %v1984_v34 = vpop.permute.xlu1 %1983 }
 0x4eb   : > { %2029 = vst.msk [vmem:[#allocation4 + $0x98] sm:$0xff] %vm1831_vm0, %v1984_v34  ;;  %v2047_v35 = vpop.permute.xlu0 %2046 }
 0x4ec   : > { %2093 = vst.msk [vmem:[#allocation3 + $0x110] sm:$0xff] %vm1831_vm0, %v2047_v35  ;;  %2259 = vrot.lane.b32.xlu1 %v10312_v39, %s9057_s29 }
 0x4ed   : > { %2001 = vrot.lane.b32.xlu0 %v10348_v3, %s9055_s8 }
 0x4ee   : > { %v2049_v36 = vpop.permute.xlu1 %2048 }
 0x4ef   : > { %2094 = vst.msk [vmem:[#allocation3 + $0x118] sm:$0xff] %vm1831_vm0, %v2049_v36  ;;  %v2112_v37 = vpop.permute.xlu0 %2111 }
 0x4f0   : > { %2158 = vst.msk [vmem:[#allocation4 + $0x110] sm:$0xff] %vm1831_vm0, %v2112_v37  ;;  %1922 = vrot.lane.b32.xlu1 %v10342_v12, %s9055_s8 }
 0x4f1   : > { %2066 = vrot.lane.b32.xlu0 %v10346_v6, %s9056_s27 }
 0x4f2   : > { %v2114_v40 = vpop.permute.xlu1 %2113 }
 0x4f3   : > { %2159 = vst.msk [vmem:[#allocation4 + $0x118] sm:$0xff] %vm1831_vm0, %v2114_v40  ;;  %v2177_v16 = vpop.permute.xlu0 %2176 }
 0x4f4   : > { %2223 = vst.msk [vmem:[#allocation3 + $0x190] sm:$0xff] %vm1831_vm0, %v2177_v16  ;;  %2003 = vrot.lane.b32.xlu1 %v10344_v60, %s9055_s8 }
 0x4f5   : > { %2131 = vrot.lane.b32.xlu0 %v10348_v3, %s9056_s27 }
 0x4f6   : > { %v2179_v25 = vpop.permute.xlu1 %2178 }
 0x4f7   : > { %2224 = vst.msk [vmem:[#allocation3 + $0x198] sm:$0xff] %vm1831_vm0, %v2179_v25  ;;  %v2242_v39 = vpop.permute.xlu0 %2241 }
 0x4f8   : > { %2288 = vst.msk [vmem:[#allocation4 + $0x190] sm:$0xff] %vm1831_vm0, %v2242_v39  ;;  %2068 = vrot.lane.b32.xlu1 %v10342_v12, %s9056_s27 }
 0x4f9   : > { %2196 = vrot.lane.b32.xlu0 %v10346_v6, %s9057_s29 }
 0x4fa   : > { %v2244_v43 = vpop.permute.xlu1 %2243 }
 0x4fb   : > { %2289 = vst.msk [vmem:[#allocation4 + $0x198] sm:$0xff] %vm1831_vm0, %v2244_v43  ;;  %v1905_v63 = vpop.permute.xlu0 %1904 }
 0x4fc   : > { %1949 = vst.msk [vmem:[#allocation3 + $0xa0] sm:$0xff] %vm1831_vm0, %v1905_v63  ;;  %2133 = vrot.lane.b32.xlu1 %v10344_v60, %s9056_s27 }
 0x4fd   : > { %2261 = vrot.lane.b32.xlu0 %v10348_v3, %s9057_s29 }
 0x4fe   : > { %v1901_v11 = vpop.permute.xlu1 %1900 }
 0x4ff   : > { %1947 = vst.msk [vmem:[#allocation3 + $0x90] sm:$0xff] %vm1831_vm0, %v1901_v11  ;;  %v1986_v48 = vpop.permute.xlu0 %1985 }
 0x500   : > { %2030 = vst.msk [vmem:[#allocation4 + $0xa0] sm:$0xff] %vm1831_vm0, %v1986_v48  ;;  %2198 = vrot.lane.b32.xlu1 %v10342_v12, %s9057_s29 }
 0x501   : > { %1924 = vrot.lane.b32.xlu0 %v10378_v22, %s9055_s8 }
 0x502   : > { %v1907_v44 = vpop.permute.xlu1 %1906 }
 0x503   : > { %1950 = vst.msk [vmem:[#allocation3 + $0xa8] sm:$0xff] %vm1831_vm0, %v1907_v44  ;;  %v2051_v19 = vpop.permute.xlu0 %2050 }
 0x504   : > { %2095 = vst.msk [vmem:[#allocation3 + $0x120] sm:$0xff] %vm1831_vm0, %v2051_v19  ;;  %2263 = vrot.lane.b32.xlu1 %v10344_v60, %s9057_s29 }
 0x505   : > { %2005 = vrot.lane.b32.xlu0 %v10380_v50, %s9055_s8 }
 0x506   : > { %v1988_v56 = vpop.permute.xlu1 %1987 }
 0x507   : > { %2031 = vst.msk [vmem:[#allocation4 + $0xa8] sm:$0xff] %vm1831_vm0, %v1988_v56  ;;  %v2116_v45 = vpop.permute.xlu0 %2115 }
 0x508   : > { %2160 = vst.msk [vmem:[#allocation4 + $0x120] sm:$0xff] %vm1831_vm0, %v2116_v45  ;;  %1926 = vrot.lane.b32.xlu1 %v10374_v9, %s9055_s8 }
 0x509   : > { %2070 = vrot.lane.b32.xlu0 %v10378_v22, %s9056_s27 }
 0x50a   : > { %v2053_v10 = vpop.permute.xlu1 %2052 }
 0x50b   : > { %2096 = vst.msk [vmem:[#allocation3 + $0x128] sm:$0xff] %vm1831_vm0, %v2053_v10  ;;  %v2181_v13 = vpop.permute.xlu0 %2180 }
 0x50c   : > { %2225 = vst.msk [vmem:[#allocation3 + $0x1a0] sm:$0xff] %vm1831_vm0, %v2181_v13  ;;  %2007 = vrot.lane.b32.xlu1 %v10376_v24, %s9055_s8 }
 0x50d   : > { %2135 = vrot.lane.b32.xlu0 %v10380_v50, %s9056_s27 }
 0x50e   : > { %v2118_v38 = vpop.permute.xlu1 %2117 }
 0x50f   : > { %2161 = vst.msk [vmem:[#allocation4 + $0x128] sm:$0xff] %vm1831_vm0, %v2118_v38  ;;  %v2246_v27 = vpop.permute.xlu0 %2245 }
 0x510   : > { %2290 = vst.msk [vmem:[#allocation4 + $0x1a0] sm:$0xff] %vm1831_vm0, %v2246_v27  ;;  %2072 = vrot.lane.b32.xlu1 %v10374_v9, %s9056_s27 }
 0x511   : > { %2200 = vrot.lane.b32.xlu0 %v10378_v22, %s9057_s29 }
 0x512   : > { %v2183_v18 = vpop.permute.xlu1 %2182 }
 0x513   : > { %2226 = vst.msk [vmem:[#allocation3 + $0x1a8] sm:$0xff] %vm1831_vm0, %v2183_v18  ;;  %v1909_v47 = vpop.permute.xlu0 %1908 }
 0x514   : > { %1951 = vst.msk [vmem:[#allocation3 + $0xb0] sm:$0xff] %vm1831_vm0, %v1909_v47  ;;  %2137 = vrot.lane.b32.xlu1 %v10376_v24, %s9056_s27 }
 0x515   : > { %2265 = vrot.lane.b32.xlu0 %v10380_v50, %s9057_s29 }
 0x516   : > { %v2248_v33 = vpop.permute.xlu1 %2247 }
 0x517   : > { %2291 = vst.msk [vmem:[#allocation4 + $0x1a8] sm:$0xff] %vm1831_vm0, %v2248_v33  ;;  %v1990_v21 = vpop.permute.xlu0 %1989 }
 0x518   : > { %2032 = vst.msk [vmem:[#allocation4 + $0xb0] sm:$0xff] %vm1831_vm0, %v1990_v21  ;;  %2202 = vrot.lane.b32.xlu1 %v10374_v9, %s9057_s29 }
 0x51a   : > { %v1911_v57 = vpop.permute.xlu1 %1910 }
 0x51b   : > { %1952 = vst.msk [vmem:[#allocation3 + $0xb8] sm:$0xff] %vm1831_vm0, %v1911_v57  ;;  %v2055_v29 = vpop.permute.xlu0 %2054 }
 0x51c   : > { %2097 = vst.msk [vmem:[#allocation3 + $0x130] sm:$0xff] %vm1831_vm0, %v2055_v29  ;;  %2267 = vrot.lane.b32.xlu1 %v10376_v24, %s9057_s29 }
 0x51e   : > { %v1992_v12 = vpop.permute.xlu1 %1991 }
 0x51f   : > { %2033 = vst.msk [vmem:[#allocation4 + $0xb8] sm:$0xff] %vm1831_vm0, %v1992_v12  ;;  %v2120_v60 = vpop.permute.xlu0 %2119 }
 0x520   : > { %2162 = vst.msk [vmem:[#allocation4 + $0x130] sm:$0xff] %vm1831_vm0, %v2120_v60 }
 0x522   : > { %v2057_v6 = vpop.permute.xlu1 %2056 }
 0x523   : > { %2098 = vst.msk [vmem:[#allocation3 + $0x138] sm:$0xff] %vm1831_vm0, %v2057_v6  ;;  %v2185_v3 = vpop.permute.xlu0 %2184 }
 0x524   : > { %2227 = vst.msk [vmem:[#allocation3 + $0x1b0] sm:$0xff] %vm1831_vm0, %v2185_v3 }
 0x526   : > { %v2122_v59 = vpop.permute.xlu1 %2121 }
 0x527   : > { %2163 = vst.msk [vmem:[#allocation4 + $0x138] sm:$0xff] %vm1831_vm0, %v2122_v59  ;;  %v2250_v20 = vpop.permute.xlu0 %2249 }
 0x528   : > { %2292 = vst.msk [vmem:[#allocation4 + $0x1b0] sm:$0xff] %vm1831_vm0, %v2250_v20 }
 0x52a   : > { %v2187_v54 = vpop.permute.xlu1 %2186 }
 0x52b   : > { %2228 = vst.msk [vmem:[#allocation3 + $0x1b8] sm:$0xff] %vm1831_vm0, %v2187_v54  ;;  %v1913_v0 = vpop.permute.xlu0 %1912 }
 0x52c   : > { %1953 = vst.msk [vmem:[#allocation3 + $0xc0] sm:$0xff] %vm1831_vm0, %v1913_v0 }
 0x52e   : > { %v2252_v61 = vpop.permute.xlu1 %2251 }
 0x52f   : > { %2293 = vst.msk [vmem:[#allocation4 + $0x1b8] sm:$0xff] %vm1831_vm0, %v2252_v61  ;;  %v1994_v8 = vpop.permute.xlu0 %1993 }
 0x530   : > { %2034 = vst.msk [vmem:[#allocation4 + $0xc0] sm:$0xff] %vm1831_vm0, %v1994_v8 }
 0x532   : > { %v1915_v23 = vpop.permute.xlu1 %1914 }
 0x533   : > { %1954 = vst.msk [vmem:[#allocation3 + $0xc8] sm:$0xff] %vm1831_vm0, %v1915_v23  ;;  %v2059_v1 = vpop.permute.xlu0 %2058 }
 0x534   : > { %2099 = vst.msk [vmem:[#allocation3 + $0x140] sm:$0xff] %vm1831_vm0, %v2059_v1 }
 0x536   : > { %v1996_v4 = vpop.permute.xlu1 %1995 }
 0x537   : > { %2035 = vst.msk [vmem:[#allocation4 + $0xc8] sm:$0xff] %vm1831_vm0, %v1996_v4  ;;  %v2124_v15 = vpop.permute.xlu0 %2123 }
 0x538   : > { %2164 = vst.msk [vmem:[#allocation4 + $0x140] sm:$0xff] %vm1831_vm0, %v2124_v15 }
 0x53a   : > { %v2061_v42 = vpop.permute.xlu1 %2060 }
 0x53b   : > { %2100 = vst.msk [vmem:[#allocation3 + $0x148] sm:$0xff] %vm1831_vm0, %v2061_v42  ;;  %v2189_v5 = vpop.permute.xlu0 %2188 }
 0x53c   : > { %2229 = vst.msk [vmem:[#allocation3 + $0x1c0] sm:$0xff] %vm1831_vm0, %v2189_v5 }
 0x53e   : > { %v2126_v14 = vpop.permute.xlu1 %2125 }
 0x53f   : > { %2165 = vst.msk [vmem:[#allocation4 + $0x148] sm:$0xff] %vm1831_vm0, %v2126_v14  ;;  %v2254_v7 = vpop.permute.xlu0 %2253 }
 0x540   : > { %2294 = vst.msk [vmem:[#allocation4 + $0x1c0] sm:$0xff] %vm1831_vm0, %v2254_v7 }
 0x542   : > { %v2191_v62 = vpop.permute.xlu1 %2190 }
 0x543   : > { %2230 = vst.msk [vmem:[#allocation3 + $0x1c8] sm:$0xff] %vm1831_vm0, %v2191_v62  ;;  %v1917_v17 = vpop.permute.xlu0 %1916 }
 0x544   : > { %1955 = vst.msk [vmem:[#allocation3 + $0xd0] sm:$0xff] %vm1831_vm0, %v1917_v17 }
 0x546   : > { %v2256_v9 = vpop.permute.xlu1 %2255 }
 0x547   : > { %2295 = vst.msk [vmem:[#allocation4 + $0x1c8] sm:$0xff] %vm1831_vm0, %v2256_v9  ;;  %v1998_v24 = vpop.permute.xlu0 %1997 }
 0x548   : > { %2036 = vst.msk [vmem:[#allocation4 + $0xd0] sm:$0xff] %vm1831_vm0, %v1998_v24 }
 0x54a   : > { %v1919_v22 = vpop.permute.xlu1 %1918 }
 0x54b   : > { %1956 = vst.msk [vmem:[#allocation3 + $0xd8] sm:$0xff] %vm1831_vm0, %v1919_v22  ;;  %v2063_v50 = vpop.permute.xlu0 %2062 }
 0x54c   : > { %2101 = vst.msk [vmem:[#allocation3 + $0x150] sm:$0xff] %vm1831_vm0, %v2063_v50 }
 0x54e   : > { %v2000_v41 = vpop.permute.xlu1 %1999 }
 0x54f   : > { %2037 = vst.msk [vmem:[#allocation4 + $0xd8] sm:$0xff] %vm1831_vm0, %v2000_v41  ;;  %v2128_v28 = vpop.permute.xlu0 %2127 }
 0x550   : > { %2166 = vst.msk [vmem:[#allocation4 + $0x150] sm:$0xff] %vm1831_vm0, %v2128_v28 }
 0x552   : > { %v2065_v49 = vpop.permute.xlu1 %2064 }
 0x553   : > { %2102 = vst.msk [vmem:[#allocation3 + $0x158] sm:$0xff] %vm1831_vm0, %v2065_v49  ;;  %v2193_v26 = vpop.permute.xlu0 %2192 }
 0x554   : > { %2231 = vst.msk [vmem:[#allocation3 + $0x1d0] sm:$0xff] %vm1831_vm0, %v2193_v26 }
 0x556   : > { %v2130_v46 = vpop.permute.xlu1 %2129 }
 0x557   : > { %2167 = vst.msk [vmem:[#allocation4 + $0x158] sm:$0xff] %vm1831_vm0, %v2130_v46  ;;  %v2258_v58 = vpop.permute.xlu0 %2257 }
 0x558   : > { %2296 = vst.msk [vmem:[#allocation4 + $0x1d0] sm:$0xff] %vm1831_vm0, %v2258_v58 }
 0x55a   : > { %v2195_v32 = vpop.permute.xlu1 %2194 }
 0x55b   : > { %2232 = vst.msk [vmem:[#allocation3 + $0x1d8] sm:$0xff] %vm1831_vm0, %v2195_v32  ;;  %v1921_v52 = vpop.permute.xlu0 %1920 }
 0x55c   : > { %1957 = vst.msk [vmem:[#allocation3 + $0xe0] sm:$0xff] %vm1831_vm0, %v1921_v52 }
 0x55e   : > { %v2260_v51 = vpop.permute.xlu1 %2259 }
 0x55f   : > { %2297 = vst.msk [vmem:[#allocation4 + $0x1d8] sm:$0xff] %vm1831_vm0, %v2260_v51  ;;  %v2002_v53 = vpop.permute.xlu0 %2001 }
 0x560   : > { %2038 = vst.msk [vmem:[#allocation4 + $0xe0] sm:$0xff] %vm1831_vm0, %v2002_v53 }
 0x562   : > { %v1923_v2 = vpop.permute.xlu1 %1922 }
 0x563   : > { %1958 = vst.msk [vmem:[#allocation3 + $0xe8] sm:$0xff] %vm1831_vm0, %v1923_v2  ;;  %v2067_v30 = vpop.permute.xlu0 %2066 }
 0x564   : > { %2103 = vst.msk [vmem:[#allocation3 + $0x160] sm:$0xff] %vm1831_vm0, %v2067_v30 }
 0x566   : > { %v2004_v55 = vpop.permute.xlu1 %2003 }
 0x567   : > { %2039 = vst.msk [vmem:[#allocation4 + $0xe8] sm:$0xff] %vm1831_vm0, %v2004_v55  ;;  %v2132_v31 = vpop.permute.xlu0 %2131 }
 0x568   : > { %2168 = vst.msk [vmem:[#allocation4 + $0x160] sm:$0xff] %vm1831_vm0, %v2132_v31 }
 0x56a   : > { %v2069_v34 = vpop.permute.xlu1 %2068 }
 0x56b   : > { %2104 = vst.msk [vmem:[#allocation3 + $0x168] sm:$0xff] %vm1831_vm0, %v2069_v34  ;;  %v2197_v35 = vpop.permute.xlu0 %2196 }
 0x56c   : > { %2233 = vst.msk [vmem:[#allocation3 + $0x1e0] sm:$0xff] %vm1831_vm0, %v2197_v35 }
 0x56e   : > { %v2134_v36 = vpop.permute.xlu1 %2133 }
 0x56f   : > { %2169 = vst.msk [vmem:[#allocation4 + $0x168] sm:$0xff] %vm1831_vm0, %v2134_v36  ;;  %v2262_v37 = vpop.permute.xlu0 %2261 }
 0x570   : > { %2298 = vst.msk [vmem:[#allocation4 + $0x1e0] sm:$0xff] %vm1831_vm0, %v2262_v37 }
 0x572   : > { %v2199_v40 = vpop.permute.xlu1 %2198 }
 0x573   : > { %2234 = vst.msk [vmem:[#allocation3 + $0x1e8] sm:$0xff] %vm1831_vm0, %v2199_v40  ;;  %v1925_v16 = vpop.permute.xlu0 %1924 }
 0x574   : > { %1959 = vst.msk [vmem:[#allocation3 + $0xf0] sm:$0xff] %vm1831_vm0, %v1925_v16 }
 0x576   : > { %v2264_v25 = vpop.permute.xlu1 %2263 }
 0x577   : > { %2299 = vst.msk [vmem:[#allocation4 + $0x1e8] sm:$0xff] %vm1831_vm0, %v2264_v25  ;;  %v2006_v39 = vpop.permute.xlu0 %2005 }
 0x578   : > { %2040 = vst.msk [vmem:[#allocation4 + $0xf0] sm:$0xff] %vm1831_vm0, %v2006_v39 }
 0x57a   : > { %v1927_v43 = vpop.permute.xlu1 %1926 }
 0x57b   : > { %1960 = vst.msk [vmem:[#allocation3 + $0xf8] sm:$0xff] %vm1831_vm0, %v1927_v43  ;;  %v2071_v63 = vpop.permute.xlu0 %2070 }
 0x57c   : > { %2105 = vst.msk [vmem:[#allocation3 + $0x170] sm:$0xff] %vm1831_vm0, %v2071_v63 }
 0x57e   : > { %v2008_v11 = vpop.permute.xlu1 %2007 }
 0x57f   : > { %2041 = vst.msk [vmem:[#allocation4 + $0xf8] sm:$0xff] %vm1831_vm0, %v2008_v11  ;;  %v2136_v48 = vpop.permute.xlu0 %2135 }
 0x580   : > { %2170 = vst.msk [vmem:[#allocation4 + $0x170] sm:$0xff] %vm1831_vm0, %v2136_v48 }
 0x582   : > { %v2073_v44 = vpop.permute.xlu1 %2072 }
 0x583   : > { %2106 = vst.msk [vmem:[#allocation3 + $0x178] sm:$0xff] %vm1831_vm0, %v2073_v44  ;;  %v2201_v19 = vpop.permute.xlu0 %2200 }
 0x584   : > { %2235 = vst.msk [vmem:[#allocation3 + $0x1f0] sm:$0xff] %vm1831_vm0, %v2201_v19 }
 0x586   : > { %v2138_v56 = vpop.permute.xlu1 %2137 }
 0x587   : > { %2171 = vst.msk [vmem:[#allocation4 + $0x178] sm:$0xff] %vm1831_vm0, %v2138_v56  ;;  %v2266_v45 = vpop.permute.xlu0 %2265 }
 0x588   : > { %2300 = vst.msk [vmem:[#allocation4 + $0x1f0] sm:$0xff] %vm1831_vm0, %v2266_v45 }
 0x58a   : > { %v2203_v10 = vpop.permute.xlu1 %2202 }
 0x58b   : > { %2236 = vst.msk [vmem:[#allocation3 + $0x1f8] sm:$0xff] %vm1831_vm0, %v2203_v10 }
 0x58e   : > { %v2268_v13 = vpop.permute.xlu1 %2267 }
 0x58f   : > { %2301 = vst.msk [vmem:[#allocation4 + $0x1f8] sm:$0xff] %vm1831_vm0, %v2268_v13 }
 0x590 PF: > { %v7908_v38 = vld [vmem:[#allocation13] sm:$0xff]   ;;  %s13062_s20 = sld [smem:[#allocation56_spill]]  ;;  %v7909_v27 = vld [vmem:[#allocation13 + $0x8] sm:$0xff]   ;;  %v7910_v18 = vld [vmem:[#allocation13 + $0x10] sm:$0xff]   ;;  %vm2520_vm1 = vcmask 261120   ;;  %s9058_s28 = smov 96  }
 0x591   : > { %7439 = vmatprep.subr.bf16.mxu0 %v7908_v38  ;;  %v7911_v47 = vld [vmem:[#allocation13 + $0x18] sm:$0xff]   ;;  %v7912_v29 = vld [vmem:[#allocation13 + $0x20] sm:$0xff]   ;;  %v7913_v20 = vld [vmem:[#allocation13 + $0x28] sm:$0xff]   ;;  %s9059_s1 = smov 32   ;;  %s9060_s9 = smov 64   ;;  %vm5156_vm2 = vcmask 523520  }
 0x592   : > { %7440 = vmatpush3.bf16.msra.mxu0 %v7908_v38  ;;  %v2676_v12 = vld [vmem:[#allocation3 + $0x40] sm:$0xff]  ;;  %v2677_v3 = vld [vmem:[#allocation3 + $0x48] sm:$0xff]  ;;  %v7914_v54 = vld [vmem:[#allocation13 + $0x30] sm:$0xff]   ;;  %vm5237_vm3 = vcmask 785920   ;;  %vm5318_vm4 = vcmask 1048320   ;;  %s13382_s23 = sld [smem:[#allocation57_spill]] }
 0x593   : > { %7441 = vmatprep.subr.bf16.mxu0 %v7909_v27  ;;  %v2668_v60 = vld [vmem:[#allocation3] sm:$0xff]  ;;  %7503 = vmatprep.subr.msk.bf16.mxu1 %vm2520_vm1, %v2676_v12  ;;  %v2669_v59 = vld [vmem:[#allocation3 + $0x8] sm:$0xff]  ;;  %v2678_v61 = vld [vmem:[#allocation3 + $0x50] sm:$0xff]  ;;  %s6328_s29 = sshll.u32 %s9745_s4, 4  ;;  %p13385_p9 = scmp.ne.s32.totalorder %s13049_s30, 0  ;;  %s12708_s29 = int_to_ptr.vmem [resolvable:$true] %s6328_s29 }
 0x594   : > { %v2757_v6 = vsel %vm2520_vm1, %v2668_v60, 0  ;;  %v2760_v0 = vsel %vm2520_vm1, %v2669_v59, 0  ;;  %v7915_v8 = vld [vmem:[#allocation13 + $0x38] sm:$0xff]   ;;  %v2670_v23 = vld [vmem:[#allocation3 + $0x10] sm:$0xff]  ;;  %v2681_v2 = vld [vmem:[#allocation3 + $0x68] sm:$0xff] }
 0x595   : > { %6880 = vmatpush3.bf16.xpose.msra.mxu1 %v2757_v6  ;;  %v2671_v1 = vld [vmem:[#allocation3 + $0x18] sm:$0xff]  ;;  %v2763_v14 = vsel %vm2520_vm1, %v2670_v23, 0  ;;  %v2680_v28 = vld [vmem:[#allocation3 + $0x60] sm:$0xff]  ;;  %v2673_v31 = vld [vmem:[#allocation3 + $0x28] sm:$0xff] }
 0x596   : > { %s6716_s22 = sshll.u32 %s13062_s20, 7  ;;  %7442 = vmatpush3.bf16.msra.mxu0 %v7909_v27  ;;  %7504 = vmatprep.subr.msk.bf16.mxu1 %vm2520_vm1, %v2677_v3  ;;  %v2679_v7 = vld [vmem:[#allocation3 + $0x58] sm:$0xff]  ;;  %v2766_v62 = vsel %vm2520_vm1, %v2671_v1, 0  ;;  %v2672_v46 = vld [vmem:[#allocation3 + $0x20] sm:$0xff]  ;;  %v2772_v36 = vsel %vm2520_vm1, %v2673_v31, 0  ;;  %v2682_v40 = vld [vmem:[#allocation3 + $0x70] sm:$0xff] }
 0x597   : > { %7443 = vmatprep.subr.bf16.mxu0 %v7910_v18  ;;  %s10623_s6 = scalar_lea.vmem [#allocation2], %s6716_s22  ;;  %v2769_v53 = vsel %vm2520_vm1, %v2672_v46, 0  ;;  %v2674_v16 = vld [vmem:[#allocation3 + $0x30] sm:$0xff]  ;;  %v2683_v39 = vld [vmem:[#allocation3 + $0x78] sm:$0xff]  ;;  %v2692_v11 = vld [vmem:[#allocation3 + $0xc0] sm:$0xff]  ;;  %s6804_s0 = sshll.u32 %s13062_s20, 4 }
 0x598   : > { %v2304_v33 = vld [vmem:[%s10623_s6] sm:$0xff]  ;;  %v2305_v21 = vld [vmem:[%s10623_s6 + $0x8] sm:$0xff]  ;;  %v2306_v4 = vld [vmem:[%s10623_s6 + $0x10] sm:$0xff]  ;;  %v2775_v25 = vsel %vm2520_vm1, %v2674_v16, 0  ;;  %s6805_s16 = sshll.u32 %s13382_s23, 5 }
 0x599   : > { %v2320_v57 = vpack.c.bf16 %v2305_v21, %v2304_v33  ;;  %v2307_v15 = vld [vmem:[%s10623_s6 + $0x18] sm:$0xff]  ;;  %v2308_v42 = vld [vmem:[%s10623_s6 + $0x20] sm:$0xff]  ;;  %v2309_v5 = vld [vmem:[%s10623_s6 + $0x28] sm:$0xff]  ;;  %s6325_s8 = sadd.s32 %s6805_s16, %s6804_s0  ;;  %s6308_s0 = scalar_lea.sflag [#allocation9], %s9741_s25 }
 0x59a   : > { %7444 = vmatpush3.bf16.msra.mxu0 %v7910_v18  ;;  %v2321_v17 = vpack.c.bf16 %v2307_v15, %v2306_v4  ;;  %v2322_v9 = vpack.c.bf16 %v2309_v5, %v2308_v42  ;;  %v2310_v24 = vld [vmem:[%s10623_s6 + $0x30] sm:$0xff]  ;;  %v2311_v22 = vld [vmem:[%s10623_s6 + $0x38] sm:$0xff]  ;;  %v2312_v50 = vld [vmem:[%s10623_s6 + $0x40] sm:$0xff]  ;;  %s6806_s27 = sshll.u32 %s6325_s8, 7  ;;  %s8874_s16 = scalar_lea.vmem %s12708_s29, 2048 }
 0x59b   : > { %7455 = vmatprep.mubr.bf16.mxu0 %v2320_v57  ;;  %7445 = vmatprep.subr.bf16.mxu0 %v7911_v47  ;;  %v2313_v41 = vld [vmem:[%s10623_s6 + $0x48] sm:$0xff]  ;;  %v2323_v49 = vpack.c.bf16 %v2311_v22, %v2310_v24  ;;  %v2314_v58 = vld [vmem:[%s10623_s6 + $0x50] sm:$0xff]  ;;  %v2315_v32 = vld [vmem:[%s10623_s6 + $0x58] sm:$0xff]  ;;  %p8875_p8 = scmp.ne.s32.totalorder %s12708_s29, %s8874_s16  ;;  %s9062_s8 = smov [#allocation34]  }
 0x59c   : > { %v2324_v26 = vpack.c.bf16 %v2313_v41, %v2312_v50  ;;  %v2316_v52 = vld [vmem:[%s10623_s6 + $0x60] sm:$0xff]  ;;  %v2317_v51 = vld [vmem:[%s10623_s6 + $0x68] sm:$0xff]  ;;  %v2325_v30 = vpack.c.bf16 %v2315_v32, %v2314_v58  ;;  %v2318_v34 = vld [vmem:[%s10623_s6 + $0x70] sm:$0xff]  ;;  %s8878_s10 = sshll.u32 %s9062_s8, 4  ;;  %s8879_s10 = int_to_ptr.vmem [resolvable:$false] %s8878_s10 }
 0x59d   : > { %6882 = vmatpush3.bf16.xpose.msra.mxu1 %v2760_v0  ;;  %v2326_v55 = vpack.c.bf16 %v2317_v51, %v2316_v52  ;;  %v2319_v35 = vld [vmem:[%s10623_s6 + $0x78] sm:$0xff]  ;;  %v2684_v48 = vld [vmem:[#allocation3 + $0x80] sm:$0xff]  ;;  %v2693_v19 = vld [vmem:[#allocation3 + $0xc8] sm:$0xff]  ;;  %p8876_p12 = pnand %p8875_p8, %p13385_p9  ;;  %p8881_p7 = scmp.lt.s32.totalorder %s12708_s29, %s8879_s10 }
 0x59e   : > { %7446 = vmatpush3.bf16.msra.mxu0 %v7911_v47  ;;  %7505 = vmatprep.subr.msk.bf16.mxu1 %vm2520_vm1, %v2678_v61  ;;  %v2327_v37 = vpack.c.bf16 %v2319_v35, %v2318_v34  ;;  %v2675_v43 = vld [vmem:[#allocation3 + $0x38] sm:$0xff]  ;;  %v2942_v44 = vsel %vm2520_vm1, %v2684_v48, 0  ;;  %v2685_v56 = vld [vmem:[#allocation3 + $0x88] sm:$0xff]  ;;  %v2694_v10 = vld [vmem:[#allocation3 + $0xd0] sm:$0xff] }
 0x59f   : > { %7447 = vmatprep.subr.bf16.mxu0 %v7912_v29  ;;  %v2778_v63 = vsel %vm2520_vm1, %v2675_v43, 0  ;;  %v2945_v45 = vsel %vm2520_vm1, %v2685_v56, 0  ;;  %v2708_v13 = vld [vmem:[#allocation3 + $0x140] sm:$0xff]  ;;  %v2686_v38 = vld [vmem:[#allocation3 + $0x90] sm:$0xff]  ;;  %v2695_v18 = vld [vmem:[#allocation3 + $0xd8] sm:$0xff]  ;;  %p8877_p4 = pneg %p8876_p12 }
 0x5a0   : > { %v2948_v27 = vsel %vm2520_vm1, %v2686_v38, 0  ;;  %v2687_v47 = vld [vmem:[#allocation3 + $0x98] sm:$0xff]  ;;  %v2696_v21 = vld [vmem:[#allocation3 + $0xe0] sm:$0xff]  ;;  %v2697_v12 = vld [vmem:[#allocation3 + $0xe8] sm:$0xff] }
 0x5a1   : > { %v2951_v33 = vsel %vm2520_vm1, %v2687_v47, 0  ;;  %v2688_v57 = vld [vmem:[#allocation3 + $0xa0] sm:$0xff]  ;;  %v2689_v60 = vld [vmem:[#allocation3 + $0xa8] sm:$0xff]  ;;  %v2698_v3 = vld [vmem:[#allocation3 + $0xf0] sm:$0xff] }
 0x5a2   : > { %7448 = vmatpush3.bf16.msra.mxu0 %v7912_v29  ;;  %v2954_v29 = vsel %vm2520_vm1, %v2688_v57, 0  ;;  %v2957_v6 = vsel %vm2520_vm1, %v2689_v60, 0  ;;  %v2690_v59 = vld [vmem:[#allocation3 + $0xb0] sm:$0xff]  ;;  %v2691_v0 = vld [vmem:[#allocation3 + $0xb8] sm:$0xff]  ;;  %v10672_v61 = vld [vmem:[#allocation15] ss:$0 sm:$0xff] }
 0x5a3   : > { %7449 = vmatprep.subr.bf16.mxu0 %v7913_v20  ;;  %v2700_v31 = vld [vmem:[#allocation3 + $0x100] sm:$0xff]  ;;  %v2701_v38 = vld [vmem:[#allocation3 + $0x108] sm:$0xff]  ;;  %v2710_v60 = vld [vmem:[#allocation3 + $0x150] sm:$0xff] }
 0x5a4   : > { %v3130_v57 = vsel %vm2520_vm1, %v2701_v38, 0 }
 0x5a5   : > { %6884 = vmatpush3.bf16.xpose.msra.mxu1 %v2763_v14 }
 0x5a6   : > { %7450 = vmatpush3.bf16.msra.mxu0 %v7913_v20  ;;  %7506 = vmatprep.subr.msk.bf16.mxu1 %vm2520_vm1, %v2679_v7  ;;  %v2960_v20 = vsel %vm2520_vm1, %v2690_v59, 0 }
 0x5a7   : > { %7451 = vmatprep.subr.bf16.mxu0 %v7914_v54 }
 0x5aa   : > { %7452 = vmatpush3.bf16.msra.mxu0 %v7914_v54  ;;  %v2699_v54 = vld [vmem:[#allocation3 + $0xf8] sm:$0xff] }
 0x5ab   : > { %7453 = vmatprep.subr.bf16.mxu0 %v7915_v8 }
 0x5ad   : > { %6886 = vmatpush3.bf16.xpose.msra.mxu1 %v2766_v62 }
 0x5ae   : > { %7454 = vmatpush3.bf16.msra.mxu0 %v7915_v8  ;;  %7507 = vmatprep.subr.msk.bf16.mxu1 %vm2520_vm1, %v2680_v28  ;;  %v2963_v8 = vsel %vm2520_vm1, %v2691_v0, 0 }
 0x5af   : > { %7511 = vmatprep.subr.msk.bf16.mxu0 %vm2520_vm1, %v2692_v11 }
 0x5b1   : > { %7456 = vmatmul.mubr.bf16.vlgmr.msra.gmra.mrb[0].mxu0 %v2321_v17 }
 0x5b2   : > { %7459 = vmatprep.mubr.bf16.mxu0 %v2322_v9  ;;  %v2724_v9 = vld [vmem:[#allocation3 + $0x1c0] sm:$0xff] }
 0x5b5   : > { %6888 = vmatpush3.bf16.xpose.msra.mxu1 %v2769_v53 }
 0x5b6   : > { %7508 = vmatprep.subr.msk.bf16.mxu1 %vm2520_vm1, %v2681_v2 }
 0x5b7   : > { %6912 = vmatpush3.bf16.xpose.msra.mxu0 %v2942_v44 }
 0x5b8   : > { %7512 = vmatprep.subr.msk.bf16.mxu0 %vm2520_vm1, %v2693_v19 }
 0x5b9   : > { %7460 = vmatmul.mubr.bf16.gmra.mrb[4].mxu0 %v2323_v49 }
 0x5ba   : > { %7463 = vmatprep.mubr.bf16.mxu0 %v2324_v26 }
 0x5bd   : > { %6890 = vmatpush3.bf16.xpose.msra.mxu1 %v2772_v36 }
 0x5be   : > { %7509 = vmatprep.subr.msk.bf16.mxu1 %vm2520_vm1, %v2682_v40 }
 0x5bf   : > { %6914 = vmatpush3.bf16.xpose.msra.mxu0 %v2945_v45 }
 0x5c0   : > { %7513 = vmatprep.subr.msk.bf16.mxu0 %vm2520_vm1, %v2694_v10 }
 0x5c1   : > { %7464 = vmatmul.mubr.bf16.gmra.mrb[8].mxu0 %v2325_v30 }
 0x5c2   : > { %7467 = vmatprep.mubr.bf16.mxu0 %v2326_v55 }
 0x5c5   : > { %6892 = vmatpush3.bf16.xpose.msra.mxu1 %v2775_v25  ;;  %v3127_v25 = vsel %vm2520_vm1, %v2700_v31, 0 }
 0x5c6   : > { %7510 = vmatprep.subr.msk.bf16.mxu1 %vm2520_vm1, %v2683_v39 }
 0x5c7   : > { %6916 = vmatpush3.bf16.xpose.msra.mxu0 %v2948_v27 }
 0x5c8   : > { %7514 = vmatprep.subr.msk.bf16.mxu0 %vm2520_vm1, %v2695_v18 }
 0x5c9   : > { %7468 = vmatmul.mubr.bf16.gmra.mrb[12].mxu0 %v2327_v37 }
 0x5cd   : > { %6894 = vmatpush3.bf16.xpose.msra.mxu1 %v2778_v63  ;;  %v2709_v63 = vld [vmem:[#allocation3 + $0x148] sm:$0xff] }
 0x5ce   : > { %7519 = vmatprep.subr.msk.bf16.mxu1 %vm2520_vm1, %v2708_v13 }
 0x5cf   : > { %6918 = vmatpush3.bf16.xpose.msra.mxu0 %v2951_v33 }
 0x5d0   : > { %7515 = vmatprep.subr.msk.bf16.mxu0 %vm2520_vm1, %v2696_v21 }
 0x5d7   : > { %6920 = vmatpush3.bf16.xpose.msra.mxu0 %v2954_v29 }
 0x5d8   : > { %7516 = vmatprep.subr.msk.bf16.mxu0 %vm2520_vm1, %v2697_v12 }
 0x5df   : > { %6922 = vmatpush3.bf16.xpose.msra.mxu0 %v2957_v6 }
 0x5e0   : > { %7517 = vmatprep.subr.msk.bf16.mxu0 %vm2520_vm1, %v2698_v3 }
 0x5e7   : > { %6924 = vmatpush3.bf16.xpose.msra.mxu0 %v2960_v20 }
 0x5e8   : > { %7518 = vmatprep.subr.msk.bf16.mxu0 %vm2520_vm1, %v2699_v54 }
 0x5ef   : > { %6926 = vmatpush3.bf16.xpose.msra.mxu0 %v2963_v8 }
 0x5f0   : > { %7527 = vmatprep.subr.msk.bf16.mxu0 %vm2520_vm1, %v2724_v9  ;;  %v2704_v9 = vld [vmem:[#allocation3 + $0x120] sm:$0xff] }
 0x684   : > { %v7457_v23 = vpop.f32.mrb[0].mxu0 }
 0x685   : > { %v2442_v1 = vadd.f32 %v7457_v23, %v10672_v61  ;;  %v2433_v4 = vpop.f32.mrb[1].mxu0 }
 0x686   : > { %v2434_v15 = vadd.f32 %v10672_v61, %v2433_v4  ;;  %v7458_v42 = vpop.f32.mrb[2].mxu0 }
 0x687   : > { %v2445_v5 = vadd.f32 %v7458_v42, %v10672_v61  ;;  %v2436_v14 = vpop.f32.mrb[3].mxu0  ;;  %v2498_v62 = vmul.f32 0.17677669, %v2442_v1  ;;  %v2702_v1 = vld [vmem:[#allocation3 + $0x110] sm:$0xff] }
 0x688   : > { %v2437_v7 = vadd.f32 %v10672_v61, %v2436_v14  ;;  %v2496_v24 = vmul.f32 0.17677669, %v2434_v15  ;;  %v3133_v42 = vsel %vm2520_vm1, %v2702_v1, 0  ;;  %v2703_v14 = vld [vmem:[#allocation3 + $0x118] sm:$0xff] }
 0x689   : > { %v2499_v17 = vmul.f32 0.17677669, %v2445_v5 }
 0x68a   : > { %v2497_v22 = vmul.f32 0.17677669, %v2437_v7  ;;  %v3136_v7 = vsel %vm2520_vm1, %v2703_v14, 0  ;;  %v2730_v14 = vld [vmem:[#allocation3 + $0x1f0] sm:$0xff] }
 0x68b   : > { %v10681_v50 = vpack.c.bf16 %v2499_v17, %v2498_v62  ;;  %v2712_v62 = vld [vmem:[#allocation3 + $0x160] sm:$0xff] }
 0x68c   : > { %v10683_v41 = vpack.c.bf16 %v2497_v22, %v2496_v24  ;;  %v7461_v28 = vpop.f32.mrb[4].mxu0  ;;  %v3139_v24 = vsel %vm2520_vm1, %v2704_v9, 0  ;;  %v2713_v22 = vld [vmem:[#allocation3 + $0x168] sm:$0xff]  ;;  %v2722_v9 = vld [vmem:[#allocation3 + $0x1b0] sm:$0xff] }
 0x68d   : > { %2522 = vst.msk [vmem:[#allocation5 + $0x8] sm:$0xff] %vm2520_vm1, %v10681_v50  ;;  %v2458_v49 = vadd.f32 %v7461_v28, %v10672_v61  ;;  %v2449_v26 = vpop.f32.mrb[5].mxu0 }
 0x68e   : > { %2521 = vst.msk [vmem:[#allocation5] sm:$0xff] %vm2520_vm1, %v10683_v41  ;;  %v2450_v46 = vadd.f32 %v10672_v61, %v2449_v26  ;;  %v7462_v58 = vpop.f32.mrb[6].mxu0  ;;  %2537 = vrot.lane.b32.xlu0 %v10683_v41, %s9058_s28 }
 0x68f   : > { %v2461_v32 = vadd.f32 %v7462_v58, %v10672_v61  ;;  %v2452_v52 = vpop.f32.mrb[7].mxu0  ;;  %v2502_v53 = vmul.f32 0.17677669, %v2458_v49  ;;  %v2714_v49 = vld [vmem:[#allocation3 + $0x170] sm:$0xff] }
 0x690   : > { %v2453_v51 = vadd.f32 %v10672_v61, %v2452_v52  ;;  %v2500_v30 = vmul.f32 0.17677669, %v2450_v46  ;;  %v2706_v46 = vld [vmem:[#allocation3 + $0x130] sm:$0xff] }
 0x691   : > { %v2503_v2 = vmul.f32 0.17677669, %v2461_v32  ;;  %v3145_v58 = vsel %vm2520_vm1, %v2706_v46, 0  ;;  %v2715_v32 = vld [vmem:[#allocation3 + $0x178] sm:$0xff] }
 0x692   : > { %v2501_v55 = vmul.f32 0.17677669, %v2453_v51  ;;  %2539 = vrot.lane.b32.xlu0 %v10681_v50, %s9058_s28  ;;  %v2707_v51 = vld [vmem:[#allocation3 + $0x138] sm:$0xff] }
 0x693   : > { %v10697_v34 = vpack.c.bf16 %v2503_v2, %v2502_v53  ;;  %v3148_v53 = vsel %vm2520_vm1, %v2707_v51, 0 }
 0x694   : > { %v10699_v35 = vpack.c.bf16 %v2501_v55, %v2500_v30  ;;  %v7465_v36 = vpop.f32.mrb[8].mxu0  ;;  %v2637_v44 = vld [vmem:[#allocation5 + $0x8] sm:$0xff]  ;;  %v2716_v55 = vld [vmem:[#allocation3 + $0x180] sm:$0xff] }
 0x695   : > { %2524 = vst.msk [vmem:[#allocation5 + $0x18] sm:$0xff] %vm2520_vm1, %v10697_v34  ;;  %v2474_v37 = vadd.f32 %v7465_v36, %v10672_v61  ;;  %v2465_v40 = vpop.f32.mrb[9].mxu0  ;;  %v2636_v16 = vld [vmem:[#allocation5] sm:$0xff]  ;;  %v2725_v36 = vld [vmem:[#allocation3 + $0x1c8] sm:$0xff] }
 0x696   : > { %2523 = vst.msk [vmem:[#allocation5 + $0x10] sm:$0xff] %vm2520_vm1, %v10699_v35  ;;  %v2466_v39 = vadd.f32 %v10672_v61, %v2465_v40  ;;  %v7466_v43 = vpop.f32.mrb[10].mxu0  ;;  %2541 = vrot.lane.b32.xlu1 %v10699_v35, %s9058_s28  ;;  %6895 = vmatprep.mubr.msk.bf16.mxu1 %vm2520_vm1, %v2636_v16 }
 0x697   : > { %v2477_v11 = vadd.f32 %v7466_v43, %v10672_v61  ;;  %v2468_v48 = vpop.f32.mrb[11].mxu0  ;;  %6896 = vmatmul.mubr.msk.bf16.vlgmr.msra.gmra.mrb[0].mxu1 %vm2520_vm1, %v2636_v16  ;;  %v2506_v56 = vmul.f32 0.17677669, %v2474_v37  ;;  %v2717_v16 = vld [vmem:[#allocation3 + $0x188] sm:$0xff] }
 0x698   : > { %v2469_v19 = vadd.f32 %v10672_v61, %v2468_v48  ;;  %6897 = vmatprep.mubr.msk.bf16.mxu1 %vm2520_vm1, %v2637_v44  ;;  %6944 = vmatpush3.bf16.xpose.msra.mxu1 %v3127_v25  ;;  %v2504_v10 = vmul.f32 0.17677669, %v2466_v39  ;;  %v3315_v43 = vsel %vm2520_vm1, %v2717_v16, 0  ;;  %v2718_v48 = vld [vmem:[#allocation3 + $0x190] sm:$0xff] }
 0x699   : > { %v2507_v45 = vmul.f32 0.17677669, %v2477_v11  ;;  %7520 = vmatprep.subr.msk.bf16.mxu1 %vm2520_vm1, %v2709_v63  ;;  %v2726_v63 = vld [vmem:[#allocation3 + $0x1d0] sm:$0xff] }
 0x69a   : > { %v2505_v13 = vmul.f32 0.17677669, %v2469_v19  ;;  %2543 = vrot.lane.b32.xlu1 %v10697_v34, %s9058_s28 }
 0x69b   : > { %v10718_v27 = vpack.c.bf16 %v2507_v45, %v2506_v56  ;;  %v3318_v56 = vsel %vm2520_vm1, %v2718_v48, 0  ;;  %v2727_v45 = vld [vmem:[#allocation3 + $0x1d8] sm:$0xff] }
 0x69c   : > { %v10720_v18 = vpack.c.bf16 %v2505_v13, %v2504_v10  ;;  %v7469_v47 = vpop.f32.mrb[12].mxu0  ;;  %v2639_v5 = vld [vmem:[#allocation5 + $0x18] sm:$0xff] }
 0x69d   : > { %2526 = vst.msk [vmem:[#allocation5 + $0x28] sm:$0xff] %vm2520_vm1, %v10718_v27  ;;  %v2490_v33 = vadd.f32 %v7469_v47, %v10672_v61  ;;  %v2481_v21 = vpop.f32.mrb[13].mxu0  ;;  %v2638_v59 = vld [vmem:[#allocation5 + $0x10] sm:$0xff] }
 0x69e   : > { %2525 = vst.msk [vmem:[#allocation5 + $0x20] sm:$0xff] %vm2520_vm1, %v10720_v18  ;;  %v2482_v29 = vadd.f32 %v10672_v61, %v2481_v21  ;;  %v7470_v12 = vpop.f32.mrb[14].mxu0  ;;  %2547 = vrot.lane.b32.xlu1 %v10718_v27, %s9058_s28  ;;  %2545 = vrot.lane.b32.xlu0 %v10720_v18, %s9058_s28  ;;  %v2728_v21 = vld [vmem:[#allocation3 + $0x1e0] sm:$0xff] }
 0x69f   : > { %v2493_v6 = vadd.f32 %v7470_v12, %v10672_v61  ;;  %v2484_v3 = vpop.f32.mrb[15].mxu0  ;;  %6898 = vmatmul.mubr.msk.bf16.gmra.mrb[4].mxu1 %vm2520_vm1, %v2637_v44  ;;  %v2510_v54 = vmul.f32 0.17677669, %v2490_v33 }
 0x6a0   : > { %v2485_v20 = vadd.f32 %v10672_v61, %v2484_v3  ;;  %6899 = vmatprep.mubr.msk.bf16.mxu1 %vm2520_vm1, %v2638_v59  ;;  %6946 = vmatpush3.bf16.xpose.msra.mxu1 %v3130_v57  ;;  %v2508_v8 = vmul.f32 0.17677669, %v2482_v29  ;;  %v2711_v61 = vld [vmem:[#allocation3 + $0x158] sm:$0xff] }
 0x6a1   : > { %v2511_v0 = vmul.f32 0.17677669, %v2493_v6  ;;  %7521 = vmatprep.subr.msk.bf16.mxu1 %vm2520_vm1, %v2710_v60  ;;  %v2720_v6 = vld [vmem:[#allocation3 + $0x1a0] sm:$0xff] }
 0x6a2   : > { %v2509_v23 = vmul.f32 0.17677669, %v2485_v20 }
 0x6a3   : > { %v2519_v4 = vpack.c.bf16 %v2511_v0, %v2510_v54  ;;  %v3324_v54 = vsel %vm2520_vm1, %v2720_v6, 0  ;;  %v2729_v0 = vld [vmem:[#allocation3 + $0x1e8] sm:$0xff] }
 0x6a4   : > { %v2518_v15 = vpack.c.bf16 %v2509_v23, %v2508_v8 }
 0x6a5   : > { %2528 = vst.msk [vmem:[#allocation5 + $0x38] sm:$0xff] %vm2520_vm1, %v2519_v4  ;;  %2551 = vrot.lane.b32.xlu1 %v2519_v4, %s9058_s28  ;;  %v2640_v17 = vld [vmem:[#allocation5 + $0x20] sm:$0xff] }
 0x6a6   : > { %2527 = vst.msk [vmem:[#allocation5 + $0x30] sm:$0xff] %vm2520_vm1, %v2518_v15  ;;  %2549 = vrot.lane.b32.xlu0 %v2518_v15, %s9058_s28 }
 0x6a7   : > { %6900 = vmatmul.mubr.msk.bf16.gmra.mrb[8].mxu1 %vm2520_vm1, %v2638_v59 }
 0x6a8   : > { %6901 = vmatprep.mubr.msk.bf16.mxu1 %vm2520_vm1, %v2639_v5  ;;  %6948 = vmatpush3.bf16.xpose.msra.mxu1 %v3133_v42 }
 0x6a9   : > { %2603 = vrot.lane.b32.xlu1 %v10683_v41, %s9059_s1  ;;  %7522 = vmatprep.subr.msk.bf16.mxu1 %vm2520_vm1, %v2711_v61 }
 0x6aa   : > { %2570 = vrot.lane.b32.xlu0 %v10683_v41, %s9060_s9  ;;  %v2705_v41 = vld [vmem:[#allocation3 + $0x128] sm:$0xff] }
 0x6ab   : > { %v3142_v28 = vsel %vm2520_vm1, %v2705_v41, 0  ;;  %v3330_v41 = vsel %vm2520_vm1, %v2722_v9, 0 }
 0x6ac   : > { %v2643_v52 = vld [vmem:[#allocation5 + $0x38] sm:$0xff] }
 0x6ad   : > { %2605 = vrot.lane.b32.xlu1 %v10681_v50, %s9059_s1  ;;  %v2642_v26 = vld [vmem:[#allocation5 + $0x30] sm:$0xff] }
 0x6ae   : > { %2572 = vrot.lane.b32.xlu0 %v10681_v50, %s9060_s9  ;;  %v2641_v50 = vld [vmem:[#allocation5 + $0x28] sm:$0xff] }
 0x6af   : > { %6902 = vmatmul.mubr.msk.bf16.gmra.mrb[12].mxu1 %vm2520_vm1, %v2639_v5 }
 0x6b0   : > { %6903 = vmatprep.mubr.msk.bf16.mxu1 %vm2520_vm1, %v2640_v17  ;;  %6950 = vmatpush3.bf16.xpose.msra.mxu1 %v3136_v7 }
 0x6b1   : > { %2607 = vrot.lane.b32.xlu1 %v10699_v35, %s9059_s1  ;;  %7523 = vmatprep.subr.msk.bf16.mxu1 %vm2520_vm1, %v2712_v62 }
 0x6b2   : > { %2574 = vrot.lane.b32.xlu0 %v10699_v35, %s9060_s9  ;;  %v3312_v35 = vsel %vm2520_vm1, %v2716_v55, 0 }
 0x6b5   : > { %2609 = vrot.lane.b32.xlu1 %v10697_v34, %s9059_s1 }
 0x6b6   : > { %2576 = vrot.lane.b32.xlu0 %v10697_v34, %s9060_s9 }
 0x6b7   : > { %6904 = vmatmul.mubr.msk.bf16.gmra.mrb[16].mxu1 %vm2520_vm1, %v2640_v17 }
 0x6b8   : > { %6905 = vmatprep.mubr.msk.bf16.mxu1 %vm2520_vm1, %v2641_v50  ;;  %6952 = vmatpush3.bf16.xpose.msra.mxu1 %v3139_v24 }
 0x6b9   : > { %2611 = vrot.lane.b32.xlu1 %v10720_v18, %s9059_s1  ;;  %7524 = vmatprep.subr.msk.bf16.mxu1 %vm2520_vm1, %v2713_v22 }
 0x6ba   : > { %2578 = vrot.lane.b32.xlu0 %v10720_v18, %s9060_s9 }
 0x6bd   : > { %2613 = vrot.lane.b32.xlu1 %v10718_v27, %s9059_s1 }
 0x6be   : > { %2580 = vrot.lane.b32.xlu0 %v10718_v27, %s9060_s9  ;;  %v2719_v27 = vld [vmem:[#allocation3 + $0x198] sm:$0xff] }
 0x6bf   : > { %6906 = vmatmul.mubr.msk.bf16.gmra.mrb[20].mxu1 %vm2520_vm1, %v2641_v50  ;;  %v3321_v33 = vsel %vm2520_vm1, %v2719_v27, 0 }
 0x6c0   : > { %6907 = vmatprep.mubr.msk.bf16.mxu1 %vm2520_vm1, %v2642_v26  ;;  %6954 = vmatpush3.bf16.xpose.msra.mxu1 %v3142_v28  ;;  %v2731_v28 = vld [vmem:[#allocation3 + $0x1f8] sm:$0xff] }
 0x6c1   : > { %2615 = vrot.lane.b32.xlu1 %v2518_v15, %s9059_s1  ;;  %7525 = vmatprep.subr.msk.bf16.mxu1 %vm2520_vm1, %v2714_v49 }
 0x6c2   : > { %2582 = vrot.lane.b32.xlu0 %v2518_v15, %s9060_s9 }
 0x6c5   : > { %2617 = vrot.lane.b32.xlu1 %v2519_v4, %s9059_s1 }
 0x6c6   : > { %2584 = vrot.lane.b32.xlu0 %v2519_v4, %s9060_s9  ;;  %v2721_v4 = vld [vmem:[#allocation3 + $0x1a8] sm:$0xff] }
 0x6c7   : > { %6908 = vmatmul.mubr.msk.bf16.gmra.mrb[24].mxu1 %vm2520_vm1, %v2642_v26  ;;  %v3327_v5 = vsel %vm2520_vm1, %v2721_v4, 0  ;;  %v2723_v26 = vld [vmem:[#allocation3 + $0x1b8] sm:$0xff] }
 0x6c8   : > { %6909 = vmatprep.mubr.msk.bf16.mxu1 %vm2520_vm1, %v2643_v52  ;;  %6956 = vmatpush3.bf16.xpose.msra.mxu1 %v3145_v58  ;;  %v3333_v58 = vsel %vm2520_vm1, %v2723_v26, 0 }
 0x6c9   : > { %7526 = vmatprep.subr.msk.bf16.mxu1 %vm2520_vm1, %v2715_v32 }
 0x6cf   : > { %6910 = vmatmul.mubr.msk.bf16.gmra.mrb[28].mxu1 %vm2520_vm1, %v2643_v52 }
 0x6d0   : > { %6958 = vmatpush3.bf16.xpose.msra.mxu1 %v3148_v53 }
 0x700   : > { %v2538_v2 = vpop.permute.xlu0 %2537 }
 0x701   : > { %2562 = vst.msk [vmem:[#allocation5 + $0x40] sm:$0xff] %vm2520_vm1, %v2538_v2 }
 0x704   : > { %v2540_v30 = vpop.permute.xlu0 %2539 }
 0x705   : > { %2563 = vst.msk [vmem:[#allocation5 + $0x48] sm:$0xff] %vm2520_vm1, %v2540_v30 }
 0x708   : > { %v2542_v31 = vpop.permute.xlu1 %2541  ;;  %v2644_v34 = vld [vmem:[#allocation5 + $0x40] sm:$0xff] }
 0x709   : > { %2564 = vst.msk [vmem:[#allocation5 + $0x50] sm:$0xff] %vm2520_vm1, %v2542_v31  ;;  %6927 = vmatprep.mubr.msk.bf16.mxu0 %vm2520_vm1, %v2644_v34 }
 0x70a   : > { %6928 = vmatmul.mubr.msk.bf16.vlgmr.msra.gmra.mrb[16].mxu0 %vm2520_vm1, %v2644_v34 }
 0x70b   : > { %6976 = vmatpush3.bf16.xpose.msra.mxu0 %v3312_v35 }
 0x70c   : > { %v2544_v37 = vpop.permute.xlu1 %2543  ;;  %v2645_v40 = vld [vmem:[#allocation5 + $0x48] sm:$0xff]  ;;  %7528 = vmatprep.subr.msk.bf16.mxu0 %vm2520_vm1, %v2725_v36 }
 0x70d   : > { %2565 = vst.msk [vmem:[#allocation5 + $0x58] sm:$0xff] %vm2520_vm1, %v2544_v37  ;;  %6929 = vmatprep.mubr.msk.bf16.mxu0 %vm2520_vm1, %v2645_v40 }
 0x710   : > { %v2548_v25 = vpop.permute.xlu1 %2547  ;;  %v2546_v39 = vpop.permute.xlu0 %2545  ;;  %v2646_v11 = vld [vmem:[#allocation5 + $0x50] sm:$0xff] }
 0x711   : > { %2567 = vst.msk [vmem:[#allocation5 + $0x68] sm:$0xff] %vm2520_vm1, %v2548_v25  ;;  %2566 = vst.msk [vmem:[#allocation5 + $0x60] sm:$0xff] %vm2520_vm1, %v2546_v39 }
 0x712   : > { %6930 = vmatmul.mubr.msk.bf16.gmra.mrb[20].mxu0 %vm2520_vm1, %v2645_v40 }
 0x713   : > { %6931 = vmatprep.mubr.msk.bf16.mxu0 %vm2520_vm1, %v2646_v11  ;;  %6978 = vmatpush3.bf16.xpose.msra.mxu0 %v3315_v43 }
 0x714   : > { %7529 = vmatprep.subr.msk.bf16.mxu0 %vm2520_vm1, %v2726_v63  ;;  %v2647_v10 = vld [vmem:[#allocation5 + $0x58] sm:$0xff] }
 0x717   : > { %v2552_v44 = vpop.permute.xlu1 %2551 }
 0x718   : > { %2569 = vst.msk [vmem:[#allocation5 + $0x78] sm:$0xff] %vm2520_vm1, %v2552_v44  ;;  %v2550_v19 = vpop.permute.xlu0 %2549  ;;  %v2648_v57 = vld [vmem:[#allocation5 + $0x60] sm:$0xff]  ;;  %v2649_v8 = vld [vmem:[#allocation5 + $0x68] sm:$0xff] }
 0x719   : > { %2568 = vst.msk [vmem:[#allocation5 + $0x70] sm:$0xff] %vm2520_vm1, %v2550_v19 }
 0x71a   : > { %6932 = vmatmul.mubr.msk.bf16.gmra.mrb[24].mxu0 %vm2520_vm1, %v2646_v11 }
 0x71b   : > { %v2604_v13 = vpop.permute.xlu1 %2603  ;;  %6933 = vmatprep.mubr.msk.bf16.mxu0 %vm2520_vm1, %v2647_v10  ;;  %6980 = vmatpush3.bf16.xpose.msra.mxu0 %v3318_v56 }
 0x71c   : > { %2628 = vst.msk [vmem:[#allocation5 + $0xc0] sm:$0xff] %vm2520_vm1, %v2604_v13  ;;  %v2571_v38 = vpop.permute.xlu0 %2570  ;;  %7530 = vmatprep.subr.msk.bf16.mxu0 %vm2520_vm1, %v2727_v45 }
 0x71d   : > { %2595 = vst.msk [vmem:[#allocation5 + $0x80] sm:$0xff] %vm2520_vm1, %v2571_v38 }
 0x71f   : > { %v2606_v18 = vpop.permute.xlu1 %2605  ;;  %v2651_v49 = vld [vmem:[#allocation5 + $0x78] sm:$0xff] }
 0x720   : > { %2629 = vst.msk [vmem:[#allocation5 + $0xc8] sm:$0xff] %vm2520_vm1, %v2606_v18  ;;  %v2573_v47 = vpop.permute.xlu0 %2572  ;;  %v2650_v7 = vld [vmem:[#allocation5 + $0x70] sm:$0xff] }
 0x721   : > { %2596 = vst.msk [vmem:[#allocation5 + $0x88] sm:$0xff] %vm2520_vm1, %v2573_v47 }
 0x722   : > { %6934 = vmatmul.mubr.msk.bf16.gmra.mrb[28].mxu0 %vm2520_vm1, %v2647_v10 }
 0x723   : > { %v2608_v29 = vpop.permute.xlu1 %2607  ;;  %6935 = vmatprep.mubr.msk.bf16.mxu0 %vm2520_vm1, %v2648_v57  ;;  %6982 = vmatpush3.bf16.xpose.msra.mxu0 %v3321_v33  ;;  %v2660_v32 = vld [vmem:[#allocation5 + $0xc0] sm:$0xff] }
 0x724   : > { %2630 = vst.msk [vmem:[#allocation5 + $0xd0] sm:$0xff] %vm2520_vm1, %v2608_v29  ;;  %v2575_v12 = vpop.permute.xlu0 %2574  ;;  %v2652_v60 = vld [vmem:[#allocation5 + $0x80] sm:$0xff]  ;;  %7531 = vmatprep.subr.msk.bf16.mxu0 %vm2520_vm1, %v2728_v21 }
 0x725   : > { %2597 = vst.msk [vmem:[#allocation5 + $0x90] sm:$0xff] %vm2520_vm1, %v2575_v12  ;;  %6959 = vmatprep.mubr.msk.bf16.mxu1 %vm2520_vm1, %v2652_v60 }
 0x726   : > { %6960 = vmatmul.mubr.msk.bf16.vlgmr.msra.gmra.mrb[32].mxu1 %vm2520_vm1, %v2652_v60 }
 0x727   : > { %v2610_v3 = vpop.permute.xlu1 %2609  ;;  %v2661_v51 = vld [vmem:[#allocation5 + $0xc8] sm:$0xff] }
 0x728   : > { %2631 = vst.msk [vmem:[#allocation5 + $0xd8] sm:$0xff] %vm2520_vm1, %v2610_v3  ;;  %v2577_v59 = vpop.permute.xlu0 %2576  ;;  %v2653_v20 = vld [vmem:[#allocation5 + $0x88] sm:$0xff] }
 0x729   : > { %2598 = vst.msk [vmem:[#allocation5 + $0x98] sm:$0xff] %vm2520_vm1, %v2577_v59  ;;  %6961 = vmatprep.mubr.msk.bf16.mxu1 %vm2520_vm1, %v2653_v20 }
 0x72a   : > { %6936 = vmatmul.mubr.msk.bf16.gmra.mrb[32].mxu0 %vm2520_vm1, %v2648_v57 }
 0x72b   : > { %v2612_v23 = vpop.permute.xlu1 %2611  ;;  %6937 = vmatprep.mubr.msk.bf16.mxu0 %vm2520_vm1, %v2649_v8  ;;  %6984 = vmatpush3.bf16.xpose.msra.mxu0 %v3324_v54  ;;  %v2662_v2 = vld [vmem:[#allocation5 + $0xd0] sm:$0xff] }
 0x72c   : > { %2632 = vst.msk [vmem:[#allocation5 + $0xe0] sm:$0xff] %vm2520_vm1, %v2612_v23  ;;  %v2579_v1 = vpop.permute.xlu0 %2578  ;;  %7532 = vmatprep.subr.msk.bf16.mxu0 %vm2520_vm1, %v2729_v0  ;;  %v2654_v15 = vld [vmem:[#allocation5 + $0x90] sm:$0xff] }
 0x72d   : > { %2599 = vst.msk [vmem:[#allocation5 + $0xa0] sm:$0xff] %vm2520_vm1, %v2579_v1 }
 0x72e   : > { %6962 = vmatmul.mubr.msk.bf16.gmra.mrb[36].mxu1 %vm2520_vm1, %v2653_v20 }
 0x72f   : > { %v2614_v42 = vpop.permute.xlu1 %2613  ;;  %6963 = vmatprep.mubr.msk.bf16.mxu1 %vm2520_vm1, %v2654_v15  ;;  %v2663_v55 = vld [vmem:[#allocation5 + $0xd8] sm:$0xff] }
 0x730   : > { %2633 = vst.msk [vmem:[#allocation5 + $0xe8] sm:$0xff] %vm2520_vm1, %v2614_v42  ;;  %v2581_v61 = vpop.permute.xlu0 %2580  ;;  %v2655_v24 = vld [vmem:[#allocation5 + $0x98] sm:$0xff] }
 0x731   : > { %2600 = vst.msk [vmem:[#allocation5 + $0xa8] sm:$0xff] %vm2520_vm1, %v2581_v61 }
 0x732   : > { %6938 = vmatmul.mubr.msk.bf16.gmra.mrb[36].mxu0 %vm2520_vm1, %v2649_v8 }
 0x733   : > { %v2616_v62 = vpop.permute.xlu1 %2615  ;;  %6939 = vmatprep.mubr.msk.bf16.mxu0 %vm2520_vm1, %v2650_v7  ;;  %6986 = vmatpush3.bf16.xpose.msra.mxu0 %v3327_v5  ;;  %v2664_v31 = vld [vmem:[#allocation5 + $0xe0] sm:$0xff] }
 0x734   : > { %2634 = vst.msk [vmem:[#allocation5 + $0xf0] sm:$0xff] %vm2520_vm1, %v2616_v62  ;;  %v2583_v17 = vpop.permute.xlu0 %2582  ;;  %7533 = vmatprep.subr.msk.bf16.mxu0 %vm2520_vm1, %v2730_v14  ;;  %v2656_v46 = vld [vmem:[#allocation5 + $0xa0] sm:$0xff] }
 0x735   : > { %2601 = vst.msk [vmem:[#allocation5 + $0xb0] sm:$0xff] %vm2520_vm1, %v2583_v17 }
 0x736   : > { %6964 = vmatmul.mubr.msk.bf16.gmra.mrb[40].mxu1 %vm2520_vm1, %v2654_v15 }
 0x737   : > { %v2618_v22 = vpop.permute.xlu1 %2617  ;;  %6965 = vmatprep.mubr.msk.bf16.mxu1 %vm2520_vm1, %v2655_v24  ;;  %v2665_v35 = vld [vmem:[#allocation5 + $0xe8] sm:$0xff] }
 0x738   : > { %2635 = vst.msk [vmem:[#allocation5 + $0xf8] sm:$0xff] %vm2520_vm1, %v2618_v22  ;;  %v2585_v50 = vpop.permute.xlu0 %2584  ;;  %v2657_v52 = vld [vmem:[#allocation5 + $0xa8] sm:$0xff] }
 0x739   : > { %2602 = vst.msk [vmem:[#allocation5 + $0xb8] sm:$0xff] %vm2520_vm1, %v2585_v50 }
 0x73a   : > { %6940 = vmatmul.mubr.msk.bf16.gmra.mrb[40].mxu0 %vm2520_vm1, %v2650_v7 }
 0x73b   : > { %6941 = vmatprep.mubr.msk.bf16.mxu0 %vm2520_vm1, %v2651_v49  ;;  %6988 = vmatpush3.bf16.xpose.msra.mxu0 %v3330_v41  ;;  %v2666_v43 = vld [vmem:[#allocation5 + $0xf0] sm:$0xff] }
 0x73c   : > { %7534 = vmatprep.subr.msk.bf16.mxu0 %vm2520_vm1, %v2731_v28  ;;  %v2658_v53 = vld [vmem:[#allocation5 + $0xb0] sm:$0xff] }
 0x73e   : > { %6966 = vmatmul.mubr.msk.bf16.gmra.mrb[44].mxu1 %vm2520_vm1, %v2655_v24 }
 0x73f   : > { %6967 = vmatprep.mubr.msk.bf16.mxu1 %vm2520_vm1, %v2656_v46  ;;  %v2667_v45 = vld [vmem:[#allocation5 + $0xf8] sm:$0xff] }
 0x740   : > { %v2659_v30 = vld [vmem:[#allocation5 + $0xb8] sm:$0xff] }
 0x742   : > { %6942 = vmatmul.mubr.msk.bf16.gmra.mrb[44].mxu0 %vm2520_vm1, %v2651_v49 }
 0x743   : > { %6990 = vmatpush3.bf16.xpose.msra.mxu0 %v3333_v58  ;;  %6991 = vmatprep.mubr.msk.bf16.mxu0 %vm2520_vm1, %v2660_v32 }
 0x746   : > { %6968 = vmatmul.mubr.msk.bf16.gmra.mrb[48].mxu1 %vm2520_vm1, %v2656_v46 }
 0x747   : > { %6969 = vmatprep.mubr.msk.bf16.mxu1 %vm2520_vm1, %v2657_v52 }
 0x74a   : > { %6992 = vmatmul.mubr.msk.bf16.vlgmr.msra.gmra.mrb[48].mxu0 %vm2520_vm1, %v2660_v32 }
 0x74b   : > { %6993 = vmatprep.mubr.msk.bf16.mxu0 %vm2520_vm1, %v2661_v51 }
 0x74e   : > { %6970 = vmatmul.mubr.msk.bf16.gmra.mrb[52].mxu1 %vm2520_vm1, %v2657_v52 }
 0x74f   : > { %6971 = vmatprep.mubr.msk.bf16.mxu1 %vm2520_vm1, %v2658_v53 }
 0x752   : > { %6994 = vmatmul.mubr.msk.bf16.gmra.mrb[52].mxu0 %vm2520_vm1, %v2661_v51 }
 0x753   : > { %6995 = vmatprep.mubr.msk.bf16.mxu0 %vm2520_vm1, %v2662_v2 }
 0x756   : > { %6972 = vmatmul.mubr.msk.bf16.gmra.mrb[56].mxu1 %vm2520_vm1, %v2658_v53 }
 0x757   : > { %6973 = vmatprep.mubr.msk.bf16.mxu1 %vm2520_vm1, %v2659_v30 }
 0x75a   : > { %6996 = vmatmul.mubr.msk.bf16.gmra.mrb[56].mxu0 %vm2520_vm1, %v2662_v2 }
 0x75b   : > { %6997 = vmatprep.mubr.msk.bf16.mxu0 %vm2520_vm1, %v2663_v55 }
 0x75e   : > { %6974 = vmatmul.mubr.msk.bf16.gmra.mrb[60].mxu1 %vm2520_vm1, %v2659_v30 }
 0x762   : > { %6998 = vmatmul.mubr.msk.bf16.gmra.mrb[60].mxu0 %vm2520_vm1, %v2663_v55 }
 0x763   : > { %6999 = vmatprep.mubr.msk.bf16.mxu0 %vm2520_vm1, %v2664_v31 }
 0x76a   : > { %v10872_v34 = vpop.f32.mrb[0].mxu1  ;;  %7000 = vmatmul.mubr.msk.bf16.gmra.mrb[64].mxu0 %vm2520_vm1, %v2664_v31 }
 0x76b   : > { %v10875_v36 = vpop.f32.mrb[1].mxu1  ;;  %7001 = vmatprep.mubr.msk.bf16.mxu0 %vm2520_vm1, %v2665_v35 }
 0x76c   : > { %v10878_v37 = vpop.f32.mrb[2].mxu1  ;;  %v3472_v40 = vmax.f32 %v10872_v34, %v10875_v36 }
 0x76d   : > { %v10882_v16 = vpop.f32.mrb[3].mxu1 }
 0x76e   : > { %3473 = vmax.xlane.f32.xlu0 %v3472_v40  ;;  %v3475_v25 = vmax.f32 %v10878_v37, %v10882_v16 }
 0x770   : > { %3476 = vmax.xlane.f32.xlu1 %v3475_v25 }
 0x772   : > { %v10886_v39 = vpop.f32.mrb[4].mxu1  ;;  %7002 = vmatmul.mubr.msk.bf16.gmra.mrb[68].mxu0 %vm2520_vm1, %v2665_v35 }
 0x773   : > { %v10889_v63 = vpop.f32.mrb[5].mxu1  ;;  %7003 = vmatprep.mubr.msk.bf16.mxu0 %vm2520_vm1, %v2666_v43 }
 0x774   : > { %v10892_v11 = vpop.f32.mrb[6].mxu1  ;;  %v3478_v48 = vmax.f32 %v10886_v39, %v10889_v63 }
 0x775   : > { %v10896_v44 = vpop.f32.mrb[7].mxu1 }
 0x776   : > { %3479 = vmax.xlane.f32.xlu1 %v3478_v48  ;;  %v3481_v19 = vmax.f32 %v10892_v11, %v10896_v44 }
 0x778   : > { %3482 = vmax.xlane.f32.xlu0 %v3481_v19 }
 0x77a   : > { %v10900_v56 = vpop.f32.mrb[8].mxu1  ;;  %7004 = vmatmul.mubr.msk.bf16.gmra.mrb[72].mxu0 %vm2520_vm1, %v2666_v43 }
 0x77b   : > { %v10903_v10 = vpop.f32.mrb[9].mxu1  ;;  %7005 = vmatprep.mubr.msk.bf16.mxu0 %vm2520_vm1, %v2667_v45 }
 0x77c   : > { %v10906_v13 = vpop.f32.mrb[10].mxu1  ;;  %v3484_v38 = vmax.f32 %v10900_v56, %v10903_v10 }
 0x77d   : > { %v10910_v27 = vpop.f32.mrb[11].mxu1 }
 0x77e   : > { %3485 = vmax.xlane.f32.xlu1 %v3484_v38  ;;  %v3487_v18 = vmax.f32 %v10906_v13, %v10910_v27 }
 0x780   : > { %3488 = vmax.xlane.f32.xlu0 %v3487_v18 }
 0x782   : > { %v10914_v47 = vpop.f32.mrb[12].mxu1  ;;  %7006 = vmatmul.mubr.msk.bf16.gmra.mrb[76].mxu0 %vm2520_vm1, %v2667_v45 }
 0x783   : > { %v10917_v33 = vpop.f32.mrb[13].mxu1 }
 0x784   : > { %v10919_v21 = vpop.f32.mrb[14].mxu1  ;;  %v3490_v57 = vmax.f32 %v10914_v47, %v10917_v33 }
 0x785   : > { %v10923_v29 = vpop.f32.mrb[15].mxu1 }
 0x786   : > { %3491 = vmax.xlane.f32.xlu1 %v3490_v57  ;;  %v3493_v12 = vmax.f32 %v10919_v21, %v10923_v29 }
 0x788   : > { %3494 = vmax.xlane.f32.xlu0 %v3493_v12 }
 0x78a   : > { %v10927_v60 = vpop.f32.mrb[16].mxu1 }
 0x78b   : > { %v10929_v6 = vpop.f32.mrb[17].mxu1 }
 0x78c   : > { %v10931_v3 = vpop.f32.mrb[18].mxu1  ;;  %v3496_v59 = vmax.f32 %v10927_v60, %v10929_v6 }
 0x78d   : > { %v10935_v20 = vpop.f32.mrb[19].mxu1 }
 0x78e   : > { %3497 = vmax.xlane.f32.xlu1 %v3496_v59  ;;  %v3499_v54 = vmax.f32 %v10931_v3, %v10935_v20 }
 0x790   : > { %3500 = vmax.xlane.f32.xlu0 %v3499_v54 }
 0x792   : > { %v10939_v0 = vpop.f32.mrb[20].mxu1 }
 0x793   : > { %v10941_v8 = vpop.f32.mrb[21].mxu1 }
 0x794   : > { %v10943_v23 = vpop.f32.mrb[22].mxu1  ;;  %v3502_v1 = vmax.f32 %v10939_v0, %v10941_v8 }
 0x795   : > { %v10947_v4 = vpop.f32.mrb[23].mxu1 }
 0x796   : > { %3503 = vmax.xlane.f32.xlu1 %v3502_v1  ;;  %v3505_v15 = vmax.f32 %v10943_v23, %v10947_v4 }
 0x798   : > { %3506 = vmax.xlane.f32.xlu0 %v3505_v15 }
 0x79a   : > { %v10951_v42 = vpop.f32.mrb[24].mxu1 }
 0x79b   : > { %13063 = vst [vmem:[#allocation61_spill] sm:$0xff] %v10951_v42  ;;  %v10953_v61 = vpop.f32.mrb[25].mxu1 }
 0x79c   : > { %13064 = vst [vmem:[#allocation62_spill] sm:$0xff] %v10953_v61  ;;  %v10955_v5 = vpop.f32.mrb[26].mxu1  ;;  %v3508_v14 = vmax.f32 %v10951_v42, %v10953_v61 }
 0x79d   : > { %13065 = vst [vmem:[#allocation63_spill] sm:$0xff] %v10955_v5  ;;  %v10959_v7 = vpop.f32.mrb[27].mxu1 }
 0x79e   : > { %13066 = vst [vmem:[#allocation64_spill] sm:$0xff] %v10959_v7  ;;  %3509 = vmax.xlane.f32.xlu1 %v3508_v14  ;;  %v3511_v62 = vmax.f32 %v10955_v5, %v10959_v7 }
 0x7a0   : > { %3512 = vmax.xlane.f32.xlu0 %v3511_v62 }
 0x7a2   : > { %v10963_v17 = vpop.f32.mrb[28].mxu1 }
 0x7a3   : > { %13067 = vst [vmem:[#allocation65_spill] sm:$0xff] %v10963_v17  ;;  %v10965_v9 = vpop.f32.mrb[29].mxu1 }
 0x7a4   : > { %13068 = vst [vmem:[#allocation66_spill] sm:$0xff] %v10965_v9  ;;  %v10967_v24 = vpop.f32.mrb[30].mxu1  ;;  %v3514_v22 = vmax.f32 %v10963_v17, %v10965_v9 }
 0x7a5   : > { %13069 = vst [vmem:[#allocation67_spill] sm:$0xff] %v10967_v24  ;;  %v10971_v50 = vpop.f32.mrb[31].mxu1 }
 0x7a6   : > { %13070 = vst [vmem:[#allocation68_spill] sm:$0xff] %v10971_v50  ;;  %3515 = vmax.xlane.f32.xlu1 %v3514_v22  ;;  %v3517_v41 = vmax.f32 %v10967_v24, %v10971_v50 }
 0x7a8   : > { %3518 = vmax.xlane.f32.xlu0 %v3517_v41 }
 0x7dd   : > { %v10975_v28 = vpop.f32.mrb[16].mxu0 }
 0x7de   : > { %v10977_v49 = vpop.f32.mrb[17].mxu0 }
 0x7df   : > { %v10979_v26 = vpop.f32.mrb[18].mxu0  ;;  %v3520_v46 = vmax.f32 %v10975_v28, %v10977_v49 }
 0x7e0   : > { %v10983_v58 = vpop.f32.mrb[19].mxu0 }
 0x7e1   : > { %3521 = vmax.xlane.f32.xlu0 %v3520_v46  ;;  %v3523_v32 = vmax.f32 %v10979_v26, %v10983_v58 }
 0x7e5   : > { %v10987_v52 = vpop.f32.mrb[20].mxu0  ;;  %3524 = vmax.xlane.f32.xlu0 %v3523_v32 }
 0x7e6   : > { %v10989_v51 = vpop.f32.mrb[21].mxu0 }
 0x7e7   : > { %v10991_v53 = vpop.f32.mrb[22].mxu0  ;;  %v3526_v2 = vmax.f32 %v10987_v52, %v10989_v51 }
 0x7e8   : > { %v10995_v30 = vpop.f32.mrb[23].mxu0 }
 0x7e9   : > { %v3529_v55 = vmax.f32 %v10991_v53, %v10995_v30 }
 0x7ed   : > { %v10999_v31 = vpop.f32.mrb[24].mxu0 }
 0x7ee   : > { %v11001_v35 = vpop.f32.mrb[25].mxu0 }
 0x7ef   : > { %v11003_v40 = vpop.f32.mrb[26].mxu0  ;;  %v3532_v25 = vmax.f32 %v10999_v31, %v11001_v35 }
 0x7f0   : > { %v11007_v43 = vpop.f32.mrb[27].mxu0 }
 0x7f1   : > { %v3535_v48 = vmax.f32 %v11003_v40, %v11007_v43 }
 0x7f5   : > { %v11011_v19 = vpop.f32.mrb[28].mxu0 }
 0x7f6   : > { %v11013_v45 = vpop.f32.mrb[29].mxu0 }
 0x7f7   : > { %v11015_v38 = vpop.f32.mrb[30].mxu0  ;;  %v3538_v18 = vmax.f32 %v11011_v19, %v11013_v45 }
 0x7f8   : > { %v11019_v57 = vpop.f32.mrb[31].mxu0 }
 0x7f9   : > { %13071 = vst [vmem:[#allocation69_spill] sm:$0xff] %v11019_v57  ;;  %v11021_v12 = vpop.f32.mrb[32].mxu1  ;;  %v3541_v59 = vmax.f32 %v11015_v38, %v11019_v57 }
 0x7fa   : > { %13072 = vst [vmem:[#allocation70_spill] sm:$0xff] %v11021_v12  ;;  %v11025_v54 = vpop.f32.mrb[33].mxu1 }
 0x7fb   : > { %13073 = vst [vmem:[#allocation71_spill] sm:$0xff] %v11025_v54  ;;  %v11027_v1 = vpop.f32.mrb[34].mxu1  ;;  %v3568_v15 = vmax.f32 %v11021_v12, %v11025_v54 }
 0x7fc   : > { %13074 = vst [vmem:[#allocation72_spill] sm:$0xff] %v11027_v1  ;;  %v11031_v14 = vpop.f32.mrb[35].mxu1 }
 0x7fd   : > { %13075 = vst [vmem:[#allocation73_spill] sm:$0xff] %v11031_v14  ;;  %v11033_v62 = vpop.f32.mrb[32].mxu0  ;;  %3569 = vmax.xlane.f32.xlu1 %v3568_v15  ;;  %v3571_v22 = vmax.f32 %v11027_v1, %v11031_v14  ;;  %v3477_v5 = vpop.xlane.xlu1 %3476 }
 0x7fe   : > { %13076 = vst [vmem:[#allocation74_spill] sm:$0xff] %v11033_v62  ;;  %v11037_v41 = vpop.f32.mrb[33].mxu0 }
 0x7ff   : > { %13077 = vst [vmem:[#allocation75_spill] sm:$0xff] %v11037_v41  ;;  %v11039_v46 = vpop.f32.mrb[34].mxu0  ;;  %3572 = vmax.xlane.f32.xlu0 %v3571_v22  ;;  %v3544_v32 = vmax.f32 %v11033_v62, %v11037_v41 }
 0x800   : > { %v11043_v50 = vpop.f32.mrb[35].mxu0 }
 0x801   : > { %13078 = vst [vmem:[#allocation76_spill] sm:$0xff] %v11043_v50  ;;  %3527 = vmax.xlane.f32.xlu1 %v3526_v2  ;;  %v11045_v54 = vpop.f32.mrb[36].mxu1 }
 0x802   : > { %13079 = vst [vmem:[#allocation77_spill] sm:$0xff] %v11045_v54  ;;  %v11049_v15 = vpop.f32.mrb[37].mxu1 }
 0x803   : > { %13080 = vst [vmem:[#allocation78_spill] sm:$0xff] %v11049_v15  ;;  %3530 = vmax.xlane.f32.xlu0 %v3529_v55  ;;  %v11051_v14 = vpop.f32.mrb[38].mxu1  ;;  %v3574_v1 = vmax.f32 %v11045_v54, %v11049_v15  ;;  %v3474_v55 = vpop.xlane.xlu0 %3473 }
 0x804   : > { %13081 = vst [vmem:[#allocation79_spill] sm:$0xff] %v11051_v14  ;;  %v11055_v22 = vpop.f32.mrb[39].mxu1 }
 0x805   : > { %13082 = vst [vmem:[#allocation80_spill] sm:$0xff] %v11055_v22  ;;  %v11057_v24 = vpop.f32.mrb[36].mxu0  ;;  %3575 = vmax.xlane.f32.xlu1 %v3574_v1  ;;  %v3577_v2 = vmax.f32 %v11051_v14, %v11055_v22 }
 0x806   : > { %13083 = vst [vmem:[#allocation81_spill] sm:$0xff] %v11057_v24  ;;  %v11061_v9 = vpop.f32.mrb[37].mxu0 }
 0x807   : > { %13084 = vst [vmem:[#allocation82_spill] sm:$0xff] %v11061_v9  ;;  %v11063_v17 = vpop.f32.mrb[38].mxu0  ;;  %3578 = vmax.xlane.f32.xlu0 %v3577_v2 }
 0x808   : > { %13085 = vst [vmem:[#allocation83_spill] sm:$0xff] %v11063_v17  ;;  %v11067_v12 = vpop.f32.mrb[39].mxu0 }
 0x809   : > { %13086 = vst [vmem:[#allocation84_spill] sm:$0xff] %v11067_v12  ;;  %3533 = vmax.xlane.f32.xlu1 %v3532_v25  ;;  %v11069_v15 = vpop.f32.mrb[40].mxu1 }
 0x80a   : > { %13087 = vst [vmem:[#allocation85_spill] sm:$0xff] %v11069_v15  ;;  %v11073_v1 = vpop.f32.mrb[41].mxu1 }
 0x80b   : > { %13088 = vst [vmem:[#allocation86_spill] sm:$0xff] %v11073_v1  ;;  %3536 = vmax.xlane.f32.xlu0 %v3535_v48  ;;  %v11075_v22 = vpop.f32.mrb[42].mxu1  ;;  %v3580_v14 = vmax.f32 %v11069_v15, %v11073_v1  ;;  %v3664_v1 = vsub.f32 %v10872_v34, %v3474_v55  ;;  %v3667_v34 = vsub.f32 %v10882_v16, %v3477_v5 }
 0x80c   : > { %13089 = vst [vmem:[#allocation87_spill] sm:$0xff] %v11075_v22  ;;  %v11079_v2 = vpop.f32.mrb[43].mxu1 }
 0x80d   : > { %13090 = vst [vmem:[#allocation88_spill] sm:$0xff] %v11079_v2  ;;  %v11081_v7 = vpop.f32.mrb[40].mxu0  ;;  %3581 = vmax.xlane.f32.xlu1 %v3580_v14  ;;  %v3583_v25 = vmax.f32 %v11075_v22, %v11079_v2  ;;  %v3665_v2 = vsub.f32 %v10875_v36, %v3474_v55  ;;  %v3792_v42 = vmul.f32 1.442695, %v3664_v1  ;;  %v3798_v16 = vmul.f32 1.442695, %v3667_v34 }
 0x80e   : > { %v11085_v41 = vpop.f32.mrb[41].mxu0 }
 0x80f   : > { %v11087_v54 = vpop.f32.mrb[42].mxu0  ;;  %3584 = vmax.xlane.f32.xlu0 %v3583_v25  ;;  %v3666_v25 = vsub.f32 %v10878_v37, %v3477_v5  ;;  %v3794_v55 = vmul.f32 1.442695, %v3665_v2  ;;  %7964 = vpow2.f32 %v3792_v42  ;;  %v3480_v2 = vpop.xlane.xlu1 %3479 }
 0x810   : > { %v11091_v62 = vpop.f32.mrb[43].mxu0 }
 0x811   : > { %13091 = vst [vmem:[#allocation89_spill] sm:$0xff] %v11091_v62  ;;  %3539 = vmax.xlane.f32.xlu1 %v3538_v18  ;;  %v11094_v15 = vpop.f32.mrb[44].mxu1  ;;  %v3796_v37 = vmul.f32 1.442695, %v3666_v25  ;;  %7966 = vpow2.f32 %v3794_v55  ;;  %v13100_v25 = vmax.f32 %v11039_v46, %v11043_v50 }
 0x812   : > { %13092 = vst [vmem:[#allocation90_spill] sm:$0xff] %v11094_v15  ;;  %v11099_v22 = vpop.f32.mrb[45].mxu1 }
 0x813   : > { %13093 = vst [vmem:[#allocation91_spill] sm:$0xff] %v11099_v22  ;;  %3542 = vmax.xlane.f32.xlu0 %v3541_v59  ;;  %v11102_v61 = vpop.f32.mrb[46].mxu1  ;;  %v3586_v48 = vmax.f32 %v11094_v15, %v11099_v22  ;;  %7968 = vpow2.f32 %v3796_v37  ;;  %v3669_v22 = vsub.f32 %v10889_v63, %v3480_v2 }
 0x814   : > { %13094 = vst [vmem:[#allocation92_spill] sm:$0xff] %v11102_v61  ;;  %v11107_v18 = vpop.f32.mrb[47].mxu1  ;;  %7970 = vpow2.f32 %v3798_v16 }
 0x815   : > { %13095 = vst [vmem:[#allocation93_spill] sm:$0xff] %v11107_v18  ;;  %v11109_v57 = vpop.f32.mrb[44].mxu0  ;;  %3587 = vmax.xlane.f32.xlu1 %v3586_v48  ;;  %v3589_v36 = vmax.f32 %v11102_v61, %v11107_v18  ;;  %v3668_v48 = vsub.f32 %v10886_v39, %v3480_v2  ;;  %v3802_v2 = vmul.f32 1.442695, %v3669_v22 }
 0x816   : > { %13096 = vst [vmem:[#allocation94_spill] sm:$0xff] %v11109_v57  ;;  %v11113_v14 = vpop.f32.mrb[45].mxu0 }
 0x817   : > { %13097 = vst [vmem:[#allocation95_spill] sm:$0xff] %v11113_v14  ;;  %v11115_v59 = vpop.f32.mrb[46].mxu0  ;;  %3590 = vmax.xlane.f32.xlu0 %v3589_v36 }
 0x818   : > { %v11119_v5 = vpop.f32.mrb[47].mxu0 }
 0x819   : > { %3545 = vmax.xlane.f32.xlu1 %v3544_v32  ;;  %v11121_v1 = vpop.f32.mrb[48].mxu1  ;;  %v3483_v32 = vpop.xlane.xlu0 %3482 }
 0x81a   : > { %13098 = vst [vmem:[#allocation96_spill] sm:$0xff] %v11121_v1  ;;  %v11125_v18 = vpop.f32.mrb[49].mxu1  ;;  %v3670_v61 = vsub.f32 %v10892_v11, %v3483_v32  ;;  %v3671_v39 = vsub.f32 %v10896_v44, %v3483_v32  ;;  %v13107_v44 = vmax.f32 %v11063_v17, %v11067_v12 }
 0x81b   : > { %13099 = vst [vmem:[#allocation97_spill] sm:$0xff] %v11125_v18  ;;  %3548 = vmax.xlane.f32.xlu0 %v13100_v25  ;;  %v11130_v36 = vpop.f32.mrb[50].mxu1  ;;  %v3592_v42 = vmax.f32 %v11121_v1, %v11125_v18  ;;  %v11161_v1 = vpop.eup %7964 }
 0x81c   : > { %13101 = vst [vmem:[#allocation98_spill] sm:$0xff] %v11130_v36  ;;  %v11134_v34 = vpop.f32.mrb[51].mxu1  ;;  %13106 = vst [vmem:[#allocation102_spill] sm:$0xff] %v11161_v1  ;;  %v3804_v16 = vmul.f32 1.442695, %v3670_v61 }
 0x81d   : > { %13102 = vst [vmem:[#allocation99_spill] sm:$0xff] %v11134_v34  ;;  %v11137_v55 = vpop.f32.mrb[48].mxu0  ;;  %3593 = vmax.xlane.f32.xlu1 %v3592_v42  ;;  %v3595_v37 = vmax.f32 %v11130_v36, %v11134_v34  ;;  %v3800_v42 = vmul.f32 1.442695, %v3668_v48  ;;  %v13103_v34 = vmax.f32 %v11057_v24, %v11061_v9  ;;  %v3486_v36 = vpop.xlane.xlu1 %3485  ;;  %v3806_v9 = vmul.f32 1.442695, %v3671_v39 }
 0x81e   : > { %v11142_v25 = vpop.f32.mrb[49].mxu0  ;;  %v3489_v11 = vpop.xlane.xlu0 %3488  ;;  %v3672_v61 = vsub.f32 %v10900_v56, %v3486_v36 }
 0x81f   : > { %v11145_v15 = vpop.f32.mrb[50].mxu0  ;;  %3596 = vmax.xlane.f32.xlu0 %v3595_v37  ;;  %7972 = vpow2.f32 %v3800_v42 }
 0x820   : > { %v11150_v18 = vpop.f32.mrb[51].mxu0  ;;  %7974 = vpow2.f32 %v3802_v2 }
 0x821   : > { %3551 = vmax.xlane.f32.xlu1 %v13103_v34  ;;  %v11155_v63 = vpop.f32.mrb[52].mxu1  ;;  %v11170_v34 = vpop.eup %7966  ;;  %7976 = vpow2.f32 %v3804_v16  ;;  %v4633_v16 = vld [vmem:[#allocation4 + $0x48] sm:$0xff] }
 0x822   : > { %13104 = vst [vmem:[#allocation100_spill] sm:$0xff] %v11155_v63  ;;  %v11159_v37 = vpop.f32.mrb[53].mxu1  ;;  %13109 = vst [vmem:[#allocation104_spill] sm:$0xff] %v11170_v34  ;;  %v11174_v24 = vpop.eup %7968  ;;  %v4048_v56 = vadd.f32 %v11170_v34, %v11161_v1  ;;  %7978 = vpow2.f32 %v3806_v9 }
 0x823   : > { %13105 = vst [vmem:[#allocation101_spill] sm:$0xff] %v11159_v37  ;;  %3554 = vmax.xlane.f32.xlu0 %v13107_v44  ;;  %v11166_v48 = vpop.f32.mrb[54].mxu1  ;;  %v3598_v32 = vmax.f32 %v11155_v63, %v11159_v37  ;;  %13111 = vst [vmem:[#allocation106_spill] sm:$0xff] %v11174_v24  ;;  %v11181_v12 = vpop.eup %7970  ;;  %v3673_v37 = vsub.f32 %v10903_v10, %v3486_v36  ;;  %v3674_v63 = vsub.f32 %v10906_v13, %v3489_v11 }
 0x824   : > { %13108 = vst [vmem:[#allocation103_spill] sm:$0xff] %v11166_v48  ;;  %v11172_v22 = vpop.f32.mrb[55].mxu1  ;;  %13113 = vst [vmem:[#allocation108_spill] sm:$0xff] %v11181_v12  ;;  %v3808_v10 = vmul.f32 1.442695, %v3672_v61  ;;  %v4051_v13 = vadd.f32 %v11181_v12, %v11174_v24 }
 0x825   : > { %13110 = vst [vmem:[#allocation105_spill] sm:$0xff] %v11172_v22  ;;  %v11177_v50 = vpop.f32.mrb[52].mxu0  ;;  %3599 = vmax.xlane.f32.xlu1 %v3598_v32  ;;  %v3601_v44 = vmax.f32 %v11166_v48, %v11172_v22  ;;  %v3675_v32 = vsub.f32 %v10910_v27, %v3489_v11  ;;  %v4632_v48 = vld [vmem:[#allocation4 + $0x40] sm:$0xff]  ;;  %v3812_v42 = vmul.f32 1.442695, %v3674_v63 }
 0x826   : > { %13112 = vst [vmem:[#allocation107_spill] sm:$0xff] %v11177_v50  ;;  %v11184_v39 = vpop.f32.mrb[53].mxu0  ;;  %7007 = vmatprep.subr.bf16.mxu1 %v4632_v48  ;;  %v4624_v11 = vld [vmem:[#allocation4] sm:$0xff]  ;;  %7980 = vpow2.f32 %v3808_v10  ;;  %v13126_v10 = vmax.f32 %v11087_v54, %v11091_v62 }
 0x827   : > { %13114 = vst [vmem:[#allocation109_spill] sm:$0xff] %v11184_v39  ;;  %v11187_v17 = vpop.f32.mrb[54].mxu0  ;;  %3602 = vmax.xlane.f32.xlu0 %v3601_v44  ;;  %v3810_v44 = vmul.f32 1.442695, %v3673_v37  ;;  %v3814_v61 = vmul.f32 1.442695, %v3675_v32  ;;  %7008 = vmatpush3.bf16.msra.mxu1 %v4624_v11  ;;  %v13122_v37 = vmax.f32 %v11081_v7, %v11085_v41 }
 0x828   : > { %13115 = vst [vmem:[#allocation110_spill] sm:$0xff] %v11187_v17  ;;  %v11194_v2 = vpop.f32.mrb[55].mxu0  ;;  %7009 = vmatprep.subr.bf16.mxu1 %v4633_v16  ;;  %v4634_v16 = vld [vmem:[#allocation4 + $0x50] sm:$0xff] }
 0x829   : > { %13116 = vst [vmem:[#allocation111_spill] sm:$0xff] %v11194_v2  ;;  %4049 = vadd.xlane.f32.xlu1 %v4048_v56  ;;  %v11196_v36 = vpop.f32.mrb[56].mxu1  ;;  %7982 = vpow2.f32 %v3810_v44  ;;  %v11219_v48 = vpop.eup %7972 }
 0x82a   : > { %13117 = vst [vmem:[#allocation112_spill] sm:$0xff] %v11196_v36  ;;  %v11202_v22 = vpop.f32.mrb[57].mxu1  ;;  %13124 = vst [vmem:[#allocation118_spill] sm:$0xff] %v11219_v48  ;;  %7984 = vpow2.f32 %v3812_v42 }
 0x82b   : > { %13118 = vst [vmem:[#allocation113_spill] sm:$0xff] %v11202_v22  ;;  %4052 = vadd.xlane.f32.xlu0 %v4051_v13  ;;  %v11204_v9 = vpop.f32.mrb[58].mxu1  ;;  %v3604_v27 = vmax.f32 %v11196_v36, %v11202_v22  ;;  %v11228_v22 = vpop.eup %7974  ;;  %7986 = vpow2.f32 %v3814_v61 }
 0x82c   : > { %13119 = vst [vmem:[#allocation114_spill] sm:$0xff] %v11204_v9  ;;  %v11208_v56 = vpop.f32.mrb[59].mxu1  ;;  %13127 = vst [vmem:[#allocation120_spill] sm:$0xff] %v11228_v22  ;;  %v4054_v61 = vadd.f32 %v11228_v22, %v11219_v48  ;;  %v4635_v48 = vld [vmem:[#allocation4 + $0x58] sm:$0xff] }
 0x82d   : > { %13120 = vst [vmem:[#allocation115_spill] sm:$0xff] %v11208_v56  ;;  %v11210_v12 = vpop.f32.mrb[56].mxu0  ;;  %3557 = vmax.xlane.f32.xlu1 %v13122_v37  ;;  %v3607_v63 = vmax.f32 %v11204_v9, %v11208_v56  ;;  %v4625_v37 = vld [vmem:[#allocation4 + $0x8] sm:$0xff]  ;;  %v11232_v56 = vpop.eup %7976 }
 0x82e   : > { %13121 = vst [vmem:[#allocation116_spill] sm:$0xff] %v11210_v12  ;;  %v11217_v13 = vpop.f32.mrb[57].mxu0  ;;  %7010 = vmatpush3.bf16.msra.mxu1 %v4625_v37  ;;  %13129 = vst [vmem:[#allocation122_spill] sm:$0xff] %v11232_v56 }
 0x82f   : > { %13123 = vst [vmem:[#allocation117_spill] sm:$0xff] %v11217_v13  ;;  %v11221_v32 = vpop.f32.mrb[58].mxu0  ;;  %3560 = vmax.xlane.f32.xlu0 %v13126_v10  ;;  %v11238_v10 = vpop.eup %7978  ;;  %7011 = vmatprep.subr.bf16.mxu1 %v4634_v16 }
 0x830   : > { %13125 = vst [vmem:[#allocation119_spill] sm:$0xff] %v11221_v32  ;;  %v11230_v44 = vpop.f32.mrb[59].mxu0  ;;  %13130 = vst [vmem:[#allocation123_spill] sm:$0xff] %v11238_v10  ;;  %v11258_v22 = vpop.eup %7980 }
 0x831   : > { %13128 = vst [vmem:[#allocation121_spill] sm:$0xff] %v11230_v44  ;;  %3605 = vmax.xlane.f32.xlu1 %v3604_v27  ;;  %v11234_v42 = vpop.f32.mrb[60].mxu1  ;;  %v4626_v27 = vld [vmem:[#allocation4 + $0x10] sm:$0xff]  ;;  %13133 = vst [vmem:[#allocation126_spill] sm:$0xff] %v11258_v22 }
 0x832   : > { %v11240_v36 = vpop.f32.mrb[61].mxu1  ;;  %7012 = vmatpush3.bf16.msra.mxu1 %v4626_v27  ;;  %v4627_v27 = vld [vmem:[#allocation4 + $0x18] sm:$0xff] }
 0x833   : > { %3608 = vmax.xlane.f32.xlu0 %v3607_v63  ;;  %v11242_v11 = vpop.f32.mrb[62].mxu1  ;;  %v4057_v63 = vadd.f32 %v11238_v10, %v11232_v56  ;;  %7013 = vmatprep.subr.bf16.mxu1 %v4635_v48  ;;  %v11264_v9 = vpop.eup %7982  ;;  %v13138_v56 = vmax.f32 %v11109_v57, %v11113_v14  ;;  %v13140_v48 = vmax.f32 %v11115_v59, %v11119_v5 }
 0x834   : > { %v11248_v24 = vpop.f32.mrb[63].mxu1  ;;  %13135 = vst [vmem:[#allocation128_spill] sm:$0xff] %v11264_v9 }
 0x835   : > { %v11252_v34 = vpop.f32.mrb[60].mxu0  ;;  %4055 = vadd.xlane.f32.xlu1 %v4054_v61  ;;  %v11268_v61 = vpop.eup %7984 }
 0x836   : > { %13131 = vst [vmem:[#allocation124_spill] sm:$0xff] %v11252_v34  ;;  %v11256_v1 = vpop.f32.mrb[61].mxu0  ;;  %7014 = vmatpush3.bf16.msra.mxu1 %v4627_v27  ;;  %13137 = vst [vmem:[#allocation130_spill] sm:$0xff] %v11268_v61 }
 0x837   : > { %13132 = vst [vmem:[#allocation125_spill] sm:$0xff] %v11256_v1  ;;  %v11260_v37 = vpop.f32.mrb[62].mxu0  ;;  %4058 = vadd.xlane.f32.xlu0 %v4057_v63  ;;  %v3634_v16 = vmax.f32 %v11252_v34, %v11256_v1  ;;  %v11275_v63 = vpop.eup %7986  ;;  %v4060_v1 = vadd.f32 %v11264_v9, %v11258_v22  ;;  %v4636_v34 = vld [vmem:[#allocation4 + $0x60] sm:$0xff]  ;;  %v4637_v22 = vld [vmem:[#allocation4 + $0x68] sm:$0xff]  ;;  %v13154_v9 = vmax.f32 %v11221_v32, %v11230_v44 }
 0x838   : > { %13134 = vst [vmem:[#allocation127_spill] sm:$0xff] %v11260_v37  ;;  %v11266_v62 = vpop.f32.mrb[63].mxu0  ;;  %13139 = vst [vmem:[#allocation131_spill] sm:$0xff] %v11275_v63  ;;  %v4063_v14 = vadd.f32 %v11275_v63, %v11268_v61  ;;  %7015 = vmatprep.subr.bf16.mxu1 %v4636_v34  ;;  %v4629_v61 = vld [vmem:[#allocation4 + $0x28] sm:$0xff] }
 0x839   : > { %13136 = vst [vmem:[#allocation129_spill] sm:$0xff] %v11266_v62  ;;  %3563 = vmax.xlane.f32.xlu1 %v13138_v56  ;;  %v3637_v10 = vmax.f32 %v11260_v37, %v11266_v62  ;;  %v4628_v56 = vld [vmem:[#allocation4 + $0x20] sm:$0xff] }
 0x83a   : > { %7016 = vmatpush3.bf16.msra.mxu1 %v4628_v56  ;;  %v13146_v56 = vmax.f32 %v11145_v15, %v11150_v18 }
 0x83b   : > { %3566 = vmax.xlane.f32.xlu0 %v13140_v48  ;;  %7017 = vmatprep.subr.bf16.mxu1 %v4637_v22  ;;  %v13151_v22 = vmax.f32 %v11187_v17, %v11194_v2 }
 0x83d   : > { %v11282_v27 = vpop.f32.mrb[64].mxu0  ;;  %4061 = vadd.xlane.f32.xlu1 %v4060_v1  ;;  %v13145_v1 = vmax.f32 %v11137_v55, %v11142_v25 }
 0x83e   : > { %13141 = vst [vmem:[#allocation132_spill] sm:$0xff] %v11282_v27  ;;  %v11286_v57 = vpop.f32.mrb[65].mxu0  ;;  %7018 = vmatpush3.bf16.msra.mxu1 %v4629_v61 }
 0x83f   : > { %13142 = vst [vmem:[#allocation133_spill] sm:$0xff] %v11286_v57  ;;  %v11288_v62 = vpop.f32.mrb[66].mxu0  ;;  %4064 = vadd.xlane.f32.xlu0 %v4063_v14  ;;  %v3640_v48 = vmax.f32 %v11282_v27, %v11286_v57  ;;  %v4638_v14 = vld [vmem:[#allocation4 + $0x70] sm:$0xff]  ;;  %v13148_v57 = vmax.f32 %v11177_v50, %v11184_v39 }
 0x840   : > { %13143 = vst [vmem:[#allocation134_spill] sm:$0xff] %v11288_v62  ;;  %v11292_v37 = vpop.f32.mrb[67].mxu0  ;;  %7019 = vmatprep.subr.bf16.mxu1 %v4638_v14  ;;  %v4630_v27 = vld [vmem:[#allocation4 + $0x30] sm:$0xff] }
 0x841   : > { %13144 = vst [vmem:[#allocation135_spill] sm:$0xff] %v11292_v37  ;;  %3617 = vmax.xlane.f32.xlu1 %v13145_v1  ;;  %v3643_v34 = vmax.f32 %v11288_v62, %v11292_v37  ;;  %v4639_v62 = vld [vmem:[#allocation4 + $0x78] sm:$0xff] }
 0x842   : > { %7020 = vmatpush3.bf16.msra.mxu1 %v4630_v27  ;;  %v4631_v27 = vld [vmem:[#allocation4 + $0x38] sm:$0xff] }
 0x843   : > { %3620 = vmax.xlane.f32.xlu0 %v13146_v56  ;;  %7021 = vmatprep.subr.bf16.mxu1 %v4639_v62 }
 0x845   : > { %v11302_v63 = vpop.f32.mrb[68].mxu0  ;;  %3623 = vmax.xlane.f32.xlu1 %v13148_v57  ;;  %v13153_v57 = vmax.f32 %v11210_v12, %v11217_v13 }
 0x846   : > { %13147 = vst [vmem:[#allocation136_spill] sm:$0xff] %v11302_v63  ;;  %v11307_v1 = vpop.f32.mrb[69].mxu0  ;;  %7022 = vmatpush3.bf16.msra.mxu1 %v4631_v27 }
 0x847   : > { %13149 = vst [vmem:[#allocation137_spill] sm:$0xff] %v11307_v1  ;;  %v11309_v37 = vpop.f32.mrb[70].mxu0  ;;  %3626 = vmax.xlane.f32.xlu0 %v13151_v22  ;;  %v3646_v61 = vmax.f32 %v11302_v63, %v11307_v1 }
 0x848   : > { %13150 = vst [vmem:[#allocation138_spill] sm:$0xff] %v11309_v37  ;;  %v11316_v56 = vpop.f32.mrb[71].mxu0 }
 0x849   : > { %13152 = vst [vmem:[#allocation139_spill] sm:$0xff] %v11316_v56  ;;  %3629 = vmax.xlane.f32.xlu1 %v13153_v57  ;;  %v3649_v14 = vmax.f32 %v11309_v37, %v11316_v56 }
 0x84b   : > { %3632 = vmax.xlane.f32.xlu0 %v13154_v9 }
 0x84d   : > { %v11326_v22 = vpop.f32.mrb[72].mxu0  ;;  %3635 = vmax.xlane.f32.xlu1 %v3634_v16 }
 0x84e   : > { %13155 = vst [vmem:[#allocation140_spill] sm:$0xff] %v11326_v22  ;;  %v11328_v1 = vpop.f32.mrb[73].mxu0 }
 0x84f   : > { %13156 = vst [vmem:[#allocation141_spill] sm:$0xff] %v11328_v1  ;;  %v11330_v63 = vpop.f32.mrb[74].mxu0  ;;  %3638 = vmax.xlane.f32.xlu0 %v3637_v10  ;;  %v3652_v57 = vmax.f32 %v11326_v22, %v11328_v1  ;;  %v3495_v1 = vpop.xlane.xlu0 %3494 }
 0x850   : > { %13157 = vst [vmem:[#allocation142_spill] sm:$0xff] %v11330_v63  ;;  %v11334_v13 = vpop.f32.mrb[75].mxu0  ;;  %v3679_v17 = vsub.f32 %v10923_v29, %v3495_v1 }
 0x851   : > { %13158 = vst [vmem:[#allocation143_spill] sm:$0xff] %v11334_v13  ;;  %3641 = vmax.xlane.f32.xlu1 %v3640_v48  ;;  %v3655_v62 = vmax.f32 %v11330_v63, %v11334_v13  ;;  %v3492_v63 = vpop.xlane.xlu1 %3491 }
 0x852   : > { %v3676_v16 = vsub.f32 %v10914_v47, %v3492_v63 }
 0x853   : > { %3644 = vmax.xlane.f32.xlu0 %v3643_v34  ;;  %v11350_v34 = vpop.xlane.xlu0 %3500 }
 0x854   : > { %v3816_v48 = vmul.f32 1.442695, %v3676_v16 }
 0x855   : > { %v11338_v27 = vpop.f32.mrb[76].mxu0  ;;  %3647 = vmax.xlane.f32.xlu1 %v3646_v61 }
 0x856   : > { %v11340_v9 = vpop.f32.mrb[77].mxu0 }
 0x857   : > { %v11344_v56 = vpop.f32.mrb[78].mxu0  ;;  %3650 = vmax.xlane.f32.xlu0 %v3649_v14  ;;  %v11352_v13 = vpop.xlane.xlu0 %3506  ;;  %v3677_v14 = vsub.f32 %v10917_v33, %v3492_v63 }
 0x858   : > { %v11346_v10 = vpop.f32.mrb[79].mxu0 }
 0x859   : > { %3653 = vmax.xlane.f32.xlu1 %v3652_v57  ;;  %v3818_v2 = vmul.f32 1.442695, %v3677_v14  ;;  %v4640_v14 = vld [vmem:[#allocation4 + $0x80] sm:$0xff] }
 0x85b   : > { %3656 = vmax.xlane.f32.xlu0 %v3655_v62  ;;  %v11354_v61 = vpop.xlane.xlu0 %3512  ;;  %v3678_v62 = vsub.f32 %v10919_v21, %v3495_v1  ;;  %v3498_v21 = vpop.xlane.xlu1 %3497 }
 0x85d   : > { %v3820_v33 = vmul.f32 1.442695, %v3678_v62  ;;  %v4649_v62 = vld [vmem:[#allocation4 + $0xc8] sm:$0xff] }
 0x85f   : > { %v11356_v22 = vpop.xlane.xlu0 %3518 }
 0x86e   : > { %v3522_v37 = vpop.xlane.xlu0 %3521 }
 0x86f   : > { %v3696_v44 = vsub.f32 %v10975_v28, %v3522_v37  ;;  %v3697_v57 = vsub.f32 %v10977_v49, %v3522_v37  ;;  %v3822_v49 = vmul.f32 1.442695, %v3679_v17 }
 0x871   : > { %v3856_v32 = vmul.f32 1.442695, %v3696_v44  ;;  %v3858_v12 = vmul.f32 1.442695, %v3697_v57 }
 0x872   : > { %v3525_v39 = vpop.xlane.xlu0 %3524 }
 0x873   : > { %7988 = vpow2.f32 %v3856_v32  ;;  %v3698_v50 = vsub.f32 %v10979_v26, %v3525_v39  ;;  %v3699_v47 = vsub.f32 %v10983_v58, %v3525_v39  ;;  %v11370_v32 = vpop.xlane.xlu1 %3503 }
 0x874   : > { %7990 = vpow2.f32 %v3858_v12 }
 0x875   : > { %7992 = vpow2.f32 %v3816_v48  ;;  %v3860_v28 = vmul.f32 1.442695, %v3698_v50  ;;  %v3862_v63 = vmul.f32 1.442695, %v3699_v47 }
 0x876   : > { %7994 = vpow2.f32 %v3818_v2  ;;  %v4648_v2 = vld [vmem:[#allocation4 + $0xc0] sm:$0xff] }
 0x877   : > { %7996 = vpow2.f32 %v3860_v28  ;;  %v11382_v39 = vpop.xlane.xlu1 %3509  ;;  %7071 = vmatprep.subr.bf16.mxu0 %v4648_v2 }
 0x878   : > { %7998 = vpow2.f32 %v3862_v63  ;;  %7072 = vmatpush3.bf16.msra.mxu0 %v4640_v14  ;;  %v4650_v63 = vld [vmem:[#allocation4 + $0xd0] sm:$0xff] }
 0x879   : > { %8000 = vpow2.f32 %v3820_v33  ;;  %7073 = vmatprep.subr.bf16.mxu0 %v4649_v62  ;;  %v4641_v33 = vld [vmem:[#allocation4 + $0x88] sm:$0xff] }
 0x87a   : > { %8002 = vpow2.f32 %v3822_v49 }
 0x87b   : > { %v11392_v57 = vpop.xlane.xlu1 %3515 }
 0x87c   : > { %7074 = vmatpush3.bf16.msra.mxu0 %v4641_v33  ;;  %v3681_v33 = vsub.f32 %v10929_v6, %v3498_v21 }
 0x87d   : > { %v11366_v44 = vpop.eup %7988  ;;  %7075 = vmatprep.subr.bf16.mxu0 %v4650_v63 }
 0x87e   : > { %v11368_v29 = vpop.eup %7990 }
 0x87f   : > { %v11372_v26 = vpop.eup %7992  ;;  %v4096_v58 = vadd.f32 %v11368_v29, %v11366_v44 }
 0x880   : > { %13159 = vst [vmem:[#allocation144_spill] sm:$0xff] %v11372_v26  ;;  %v11376_v50 = vpop.eup %7994 }
 0x881   : > { %v11378_v12 = vpop.eup %7996  ;;  %4097 = vadd.xlane.f32.xlu1 %v4096_v58  ;;  %v4066_v1 = vadd.f32 %v11376_v50, %v11372_v26  ;;  %v4642_v58 = vld [vmem:[#allocation4 + $0x90] sm:$0xff]  ;;  %v4651_v26 = vld [vmem:[#allocation4 + $0xd8] sm:$0xff] }
 0x882   : > { %13160 = vst [vmem:[#allocation145_spill] sm:$0xff] %v11378_v12  ;;  %v11380_v17 = vpop.eup %7998  ;;  %7076 = vmatpush3.bf16.msra.mxu0 %v4642_v58 }
 0x883   : > { %13161 = vst [vmem:[#allocation146_spill] sm:$0xff] %v11380_v17  ;;  %v11384_v37 = vpop.eup %8000  ;;  %v4099_v16 = vadd.f32 %v11380_v17, %v11378_v12  ;;  %7077 = vmatprep.subr.bf16.mxu0 %v4651_v26  ;;  %v4644_v26 = vld [vmem:[#allocation4 + $0xa0] sm:$0xff] }
 0x884   : > { %13162 = vst [vmem:[#allocation147_spill] sm:$0xff] %v11384_v37  ;;  %v11390_v48 = vpop.eup %8002 }
 0x885   : > { %13163 = vst [vmem:[#allocation148_spill] sm:$0xff] %v11390_v48  ;;  %4067 = vadd.xlane.f32.xlu1 %v4066_v1  ;;  %4100 = vadd.xlane.f32.xlu0 %v4099_v16  ;;  %v4069_v47 = vadd.f32 %v11390_v48, %v11384_v37  ;;  %v3680_v37 = vsub.f32 %v10927_v60, %v3498_v21 }
 0x887   : > { %v3824_v60 = vmul.f32 1.442695, %v3680_v37 }
 0x889   : > { %4070 = vadd.xlane.f32.xlu0 %v4069_v47 }
 0x88a   : > { %v11396_v28 = vpop.xlane.xlu1 %3569 }
 0x88c   : > { %v11398_v49 = vpop.xlane.xlu0 %3572 }
 0x88e   : > { %v3528_v2 = vpop.xlane.xlu1 %3527 }
 0x88f   : > { %v3700_v1 = vsub.f32 %v10987_v52, %v3528_v2  ;;  %v3701_v16 = vsub.f32 %v10989_v51, %v3528_v2  ;;  %v4643_v51 = vld [vmem:[#allocation4 + $0x98] sm:$0xff]  ;;  %v4652_v2 = vld [vmem:[#allocation4 + $0xe0] sm:$0xff] }
 0x890   : > { %v3531_v14 = vpop.xlane.xlu0 %3530  ;;  %7078 = vmatpush3.bf16.msra.mxu0 %v4643_v51 }
 0x891   : > { %v3864_v62 = vmul.f32 1.442695, %v3700_v1  ;;  %v3702_v47 = vsub.f32 %v10991_v53, %v3531_v14  ;;  %v3703_v48 = vsub.f32 %v10995_v30, %v3531_v14  ;;  %v3866_v63 = vmul.f32 1.442695, %v3701_v16  ;;  %7079 = vmatprep.subr.bf16.mxu0 %v4652_v2 }
 0x892   : > { %v11406_v17 = vpop.xlane.xlu1 %3575  ;;  %v3826_v53 = vmul.f32 1.442695, %v3681_v33  ;;  %v3682_v30 = vsub.f32 %v10931_v3, %v11350_v34  ;;  %v3686_v2 = vsub.f32 %v10943_v23, %v11352_v13  ;;  %v13165_v23 = vld [vmem:[#allocation61_spill] sm:$0xff] }
 0x893   : > { %8004 = vpow2.f32 %v3864_v62  ;;  %v3868_v12 = vmul.f32 1.442695, %v3702_v47  ;;  %v3870_v58 = vmul.f32 1.442695, %v3703_v48  ;;  %v3683_v48 = vsub.f32 %v10935_v20, %v11350_v34  ;;  %v4653_v34 = vld [vmem:[#allocation4 + $0xe8] sm:$0xff] }
 0x894   : > { %8006 = vpow2.f32 %v3866_v63  ;;  %v11408_v52 = vpop.xlane.xlu0 %3578  ;;  %7080 = vmatpush3.bf16.msra.mxu0 %v4644_v26  ;;  %v3828_v3 = vmul.f32 1.442695, %v3682_v30  ;;  %v4646_v26 = vld [vmem:[#allocation4 + $0xb0] sm:$0xff] }
 0x895   : > { %8008 = vpow2.f32 %v3868_v12  ;;  %v3830_v33 = vmul.f32 1.442695, %v3683_v48  ;;  %7081 = vmatprep.subr.bf16.mxu0 %v4653_v34 }
 0x896   : > { %8010 = vpow2.f32 %v3870_v58  ;;  %v3534_v6 = vpop.xlane.xlu1 %3533 }
 0x897   : > { %v3704_v21 = vsub.f32 %v10999_v31, %v3534_v6  ;;  %v3705_v1 = vsub.f32 %v11001_v35, %v3534_v6  ;;  %8012 = vpow2.f32 %v3824_v60  ;;  %v3684_v31 = vsub.f32 %v10939_v0, %v11370_v32  ;;  %v4654_v6 = vld [vmem:[#allocation4 + $0xf0] sm:$0xff] }
 0x898   : > { %v3537_v16 = vpop.xlane.xlu0 %3536  ;;  %8014 = vpow2.f32 %v3826_v53  ;;  %v3685_v53 = vsub.f32 %v10941_v8, %v11370_v32  ;;  %v3687_v8 = vsub.f32 %v10947_v4, %v11352_v13  ;;  %v4647_v4 = vld [vmem:[#allocation4 + $0xb8] sm:$0xff] }
 0x899   : > { %v3872_v12 = vmul.f32 1.442695, %v3704_v21  ;;  %v3706_v37 = vsub.f32 %v11003_v40, %v3537_v16  ;;  %v3707_v14 = vsub.f32 %v11007_v43, %v3537_v16  ;;  %v3874_v62 = vmul.f32 1.442695, %v3705_v1  ;;  %v4645_v40 = vld [vmem:[#allocation4 + $0xa8] sm:$0xff] }
 0x89a   : > { %v11420_v47 = vpop.xlane.xlu1 %3581  ;;  %7082 = vmatpush3.bf16.msra.mxu0 %v4645_v40  ;;  %v3832_v0 = vmul.f32 1.442695, %v3684_v31 }
 0x89b   : > { %8016 = vpow2.f32 %v3872_v12  ;;  %v3876_v20 = vmul.f32 1.442695, %v3706_v37  ;;  %v3878_v35 = vmul.f32 1.442695, %v3707_v14  ;;  %7083 = vmatprep.subr.bf16.mxu0 %v4654_v6  ;;  %v13164_v12 = vld [vmem:[#allocation69_spill] sm:$0xff] }
 0x89c   : > { %8018 = vpow2.f32 %v3874_v62  ;;  %v11422_v63 = vpop.xlane.xlu0 %3584  ;;  %v4655_v14 = vld [vmem:[#allocation4 + $0xf8] sm:$0xff] }
 0x89d   : > { %v11424_v43 = vpop.eup %8004  ;;  %8020 = vpow2.f32 %v3876_v20 }
 0x89e   : > { %v11426_v58 = vpop.eup %8006  ;;  %8022 = vpow2.f32 %v3878_v35  ;;  %v3540_v51 = vpop.xlane.xlu1 %3539  ;;  %7084 = vmatpush3.bf16.msra.mxu0 %v4646_v26  ;;  %v13171_v26 = vld [vmem:[#allocation74_spill] sm:$0xff] }
 0x89f   : > { %v11428_v60 = vpop.eup %8008  ;;  %8024 = vpow2.f32 %v3828_v3  ;;  %v3708_v30 = vsub.f32 %v11011_v19, %v3540_v51  ;;  %v3709_v48 = vsub.f32 %v11013_v45, %v3540_v51  ;;  %v4102_v16 = vadd.f32 %v11426_v58, %v11424_v43  ;;  %7085 = vmatprep.subr.bf16.mxu0 %v4655_v14 }
 0x8a0   : > { %v11433_v21 = vpop.eup %8010  ;;  %8026 = vpow2.f32 %v3830_v33  ;;  %v3543_v1 = vpop.xlane.xlu0 %3542  ;;  %v3688_v45 = vsub.f32 %v13165_v23, %v11382_v39  ;;  %v3836_v33 = vmul.f32 1.442695, %v3686_v2  ;;  %v3838_v51 = vmul.f32 1.442695, %v3687_v8  ;;  %v13170_v2 = vld [vmem:[#allocation62_spill] sm:$0xff] }
 0x8a1   : > { %v3880_v32 = vmul.f32 1.442695, %v3708_v30  ;;  %v3710_v19 = vsub.f32 %v11015_v38, %v3543_v1  ;;  %v3711_v37 = vsub.f32 %v13164_v12, %v3543_v1  ;;  %8028 = vpow2.f32 %v3832_v0  ;;  %4103 = vadd.xlane.f32.xlu1 %v4102_v16  ;;  %v11450_v13 = vpop.eup %8012 }
 0x8a2   : > { %v3882_v3 = vmul.f32 1.442695, %v3709_v48  ;;  %v11446_v31 = vpop.xlane.xlu1 %3587  ;;  %v4105_v62 = vadd.f32 %v11433_v21, %v11428_v60  ;;  %v3834_v38 = vmul.f32 1.442695, %v3685_v53  ;;  %v11452_v34 = vpop.eup %8014  ;;  %7086 = vmatpush3.bf16.msra.mxu0 %v4647_v4  ;;  %v3840_v6 = vmul.f32 1.442695, %v3688_v45 }
 0x8a3   : > { %8030 = vpow2.f32 %v3880_v32  ;;  %v3884_v20 = vmul.f32 1.442695, %v3710_v19  ;;  %v3886_v35 = vmul.f32 1.442695, %v3711_v37  ;;  %v13168_v53 = vmax.f32 %v11234_v42, %v11240_v36  ;;  %v13173_v19 = vld [vmem:[#allocation63_spill] sm:$0xff] }
 0x8a4   : > { %8032 = vpow2.f32 %v3882_v3  ;;  %4106 = vadd.xlane.f32.xlu0 %v4105_v62  ;;  %v11454_v40 = vpop.xlane.xlu0 %3590  ;;  %v3689_v16 = vsub.f32 %v13170_v2, %v11382_v39  ;;  %v3690_v12 = vsub.f32 %v13173_v19, %v11354_v61  ;;  %v13174_v37 = vld [vmem:[#allocation75_spill] sm:$0xff]  ;;  %v13175_v23 = vmax.f32 %v11242_v11, %v11248_v24 }
 0x8a5   : > { %v11456_v0 = vpop.eup %8016  ;;  %8034 = vpow2.f32 %v3884_v20  ;;  %3611 = vmax.xlane.f32.xlu1 %v13168_v53 }
 0x8a6   : > { %13166 = vst [vmem:[#allocation69_spill] sm:$0xff] %v11456_v0  ;;  %v11458_v30 = vpop.eup %8018  ;;  %8036 = vpow2.f32 %v3886_v35  ;;  %v3546_v48 = vpop.xlane.xlu1 %3545  ;;  %v3842_v19 = vmul.f32 1.442695, %v3689_v16  ;;  %v13183_v16 = vmax.f32 %v11338_v27, %v11340_v9 }
 0x8a7   : > { %13167 = vst [vmem:[#allocation61_spill] sm:$0xff] %v11458_v30  ;;  %v11463_v1 = vpop.eup %8020  ;;  %8038 = vpow2.f32 %v3834_v38  ;;  %v3712_v32 = vsub.f32 %v13171_v26, %v3546_v48  ;;  %v3713_v14 = vsub.f32 %v13174_v37, %v3546_v48  ;;  %v4108_v3 = vadd.f32 %v11458_v30, %v11456_v0  ;;  %v13177_v38 = vld [vmem:[#allocation76_spill] sm:$0xff] }
 0x8a8   : > { %13169 = vst [vmem:[#allocation149_spill] sm:$0xff] %v11463_v1  ;;  %v11468_v8 = vpop.eup %8022  ;;  %8040 = vpow2.f32 %v3836_v33  ;;  %3614 = vmax.xlane.f32.xlu0 %v13175_v23  ;;  %v3549_v45 = vpop.xlane.xlu0 %3548  ;;  %v13179_v33 = vld [vmem:[#allocation64_spill] sm:$0xff]  ;;  %v3844_v37 = vmul.f32 1.442695, %v3690_v12  ;;  %v13184_v12 = vld [vmem:[#allocation65_spill] sm:$0xff] }
 0x8a9   : > { %13172 = vst [vmem:[#allocation62_spill] sm:$0xff] %v11468_v8  ;;  %v11478_v62 = vpop.eup %8024  ;;  %8042 = vpow2.f32 %v3838_v51  ;;  %v3888_v39 = vmul.f32 1.442695, %v3712_v32  ;;  %v3714_v4 = vsub.f32 %v11039_v46, %v3549_v45  ;;  %v3715_v20 = vsub.f32 %v13177_v38, %v3549_v45  ;;  %4109 = vadd.xlane.f32.xlu1 %v4108_v3  ;;  %v13191_v0 = vld [vmem:[#allocation84_spill] sm:$0xff] }
 0x8aa   : > { %13176 = vst [vmem:[#allocation74_spill] sm:$0xff] %v11478_v62  ;;  %v11482_v35 = vpop.eup %8026  ;;  %8044 = vpow2.f32 %v3840_v6  ;;  %v3691_v53 = vsub.f32 %v13179_v33, %v11354_v61  ;;  %v3890_v48 = vmul.f32 1.442695, %v3713_v14  ;;  %v11486_v2 = vpop.xlane.xlu1 %3593  ;;  %v4111_v26 = vadd.f32 %v11468_v8, %v11463_v1  ;;  %v13186_v33 = vld [vmem:[#allocation66_spill] sm:$0xff] }
 0x8ab   : > { %13178 = vst [vmem:[#allocation63_spill] sm:$0xff] %v11482_v35  ;;  %8046 = vpow2.f32 %v3888_v39  ;;  %v3892_v51 = vmul.f32 1.442695, %v3714_v4  ;;  %v3894_v32 = vmul.f32 1.442695, %v3715_v20  ;;  %v11490_v46 = vpop.eup %8028  ;;  %v3692_v39 = vsub.f32 %v13184_v12, %v11392_v57  ;;  %v13185_v4 = vld [vmem:[#allocation81_spill] sm:$0xff] }
 0x8ac   : > { %13180 = vst [vmem:[#allocation75_spill] sm:$0xff] %v11490_v46  ;;  %8048 = vpow2.f32 %v3890_v48  ;;  %4112 = vadd.xlane.f32.xlu0 %v4111_v26  ;;  %v11492_v6 = vpop.xlane.xlu0 %3596  ;;  %v3846_v14 = vmul.f32 1.442695, %v3691_v53  ;;  %v3693_v53 = vsub.f32 %v13186_v33, %v11392_v57  ;;  %v13187_v48 = vld [vmem:[#allocation82_spill] sm:$0xff]  ;;  %v13189_v12 = vld [vmem:[#allocation67_spill] sm:$0xff] }
 0x8ad   : > { %v11494_v23 = vpop.eup %8030  ;;  %8050 = vpow2.f32 %v3892_v51  ;;  %3659 = vmax.xlane.f32.xlu1 %v13183_v16  ;;  %v13188_v51 = vmax.f32 %v11344_v56, %v11346_v10 }
 0x8ae   : > { %13181 = vst [vmem:[#allocation76_spill] sm:$0xff] %v11494_v23  ;;  %v11496_v61 = vpop.eup %8032  ;;  %8052 = vpow2.f32 %v3894_v32  ;;  %v3552_v45 = vpop.xlane.xlu1 %3551 }
 0x8af   : > { %13182 = vst [vmem:[#allocation64_spill] sm:$0xff] %v11496_v61  ;;  %v11501_v3 = vpop.eup %8034  ;;  %8054 = vpow2.f32 %v3842_v19  ;;  %v3716_v38 = vsub.f32 %v13185_v4, %v3552_v45  ;;  %v3717_v26 = vsub.f32 %v13187_v48, %v3552_v45  ;;  %v4114_v19 = vadd.f32 %v11496_v61, %v11494_v23  ;;  %v13193_v45 = vld [vmem:[#allocation68_spill] sm:$0xff] }
 0x8b0   : > { %v11506_v20 = vpop.eup %8036  ;;  %8056 = vpow2.f32 %v3844_v37  ;;  %3662 = vmax.xlane.f32.xlu0 %v13188_v51  ;;  %v3555_v32 = vpop.xlane.xlu0 %3554  ;;  %v3694_v4 = vsub.f32 %v13189_v12, %v11356_v22  ;;  %v13190_v37 = vld [vmem:[#allocation83_spill] sm:$0xff]  ;;  %v3695_v48 = vsub.f32 %v13193_v45, %v11356_v22  ;;  %v4072_v22 = vadd.f32 %v11452_v34, %v11450_v13 }
 0x8b1   : > { %v11516_v16 = vpop.eup %8038  ;;  %v3896_v1 = vmul.f32 1.442695, %v3716_v38  ;;  %v3718_v8 = vsub.f32 %v13190_v37, %v3555_v32  ;;  %v3719_v57 = vsub.f32 %v13191_v0, %v3555_v32  ;;  %8058 = vpow2.f32 %v3846_v14  ;;  %4115 = vadd.xlane.f32.xlu1 %v4114_v19 }
 0x8b2   : > { %v11522_v33 = vpop.eup %8040  ;;  %v3898_v51 = vmul.f32 1.442695, %v3717_v26  ;;  %v11526_v30 = vpop.xlane.xlu1 %3599  ;;  %v4117_v23 = vadd.f32 %v11506_v20, %v11501_v3  ;;  %v3848_v38 = vmul.f32 1.442695, %v3692_v39  ;;  %v3850_v32 = vmul.f32 1.442695, %v3693_v53 }
 0x8b3   : > { %13192 = vst [vmem:[#allocation65_spill] sm:$0xff] %v11522_v33  ;;  %v11530_v61 = vpop.eup %8042  ;;  %8060 = vpow2.f32 %v3896_v1  ;;  %v3900_v12 = vmul.f32 1.442695, %v3718_v8  ;;  %v3902_v37 = vmul.f32 1.442695, %v3719_v57  ;;  %v13198_v1 = vld [vmem:[#allocation70_spill] sm:$0xff] }
 0x8b4   : > { %13194 = vst [vmem:[#allocation81_spill] sm:$0xff] %v11530_v61  ;;  %v11532_v0 = vpop.eup %8044  ;;  %8062 = vpow2.f32 %v3898_v51  ;;  %4118 = vadd.xlane.f32.xlu0 %v4117_v23  ;;  %v11534_v14 = vpop.xlane.xlu0 %3602  ;;  %v3852_v19 = vmul.f32 1.442695, %v3694_v4  ;;  %v3854_v39 = vmul.f32 1.442695, %v3695_v48  ;;  %v3728_v8 = vsub.f32 %v13198_v1, %v11396_v28 }
 0x8b5   : > { %13195 = vst [vmem:[#allocation66_spill] sm:$0xff] %v11532_v0  ;;  %v11538_v26 = vpop.eup %8046  ;;  %8064 = vpow2.f32 %v3900_v12  ;;  %4073 = vadd.xlane.f32.xlu1 %v4072_v22  ;;  %v4075_v23 = vadd.f32 %v11482_v35, %v11478_v62  ;;  %v13203_v62 = vld [vmem:[#allocation71_spill] sm:$0xff] }
 0x8b6   : > { %13196 = vst [vmem:[#allocation82_spill] sm:$0xff] %v11538_v26  ;;  %v11540_v45 = vpop.eup %8048  ;;  %8066 = vpow2.f32 %v3902_v37  ;;  %v4050_v53 = vpop.xlane.xlu1 %4049  ;;  %v3920_v1 = vmul.f32 1.442695, %v3728_v8  ;;  %v4078_v8 = vadd.f32 %v11516_v16, %v11490_v46 }
 0x8b7   : > { %13197 = vst [vmem:[#allocation67_spill] sm:$0xff] %v11540_v45  ;;  %v11546_v57 = vpop.eup %8050  ;;  %8068 = vpow2.f32 %v3848_v38  ;;  %v4120_v51 = vadd.f32 %v11540_v45, %v11538_v26  ;;  %v3729_v26 = vsub.f32 %v13203_v62, %v11396_v28 }
 0x8b8   : > { %13199 = vst [vmem:[#allocation83_spill] sm:$0xff] %v11546_v57  ;;  %v11550_v4 = vpop.eup %8052  ;;  %8070 = vpow2.f32 %v3850_v32  ;;  %4076 = vadd.xlane.f32.xlu0 %v4075_v23  ;;  %v4053_v48 = vpop.xlane.xlu0 %4052 }
 0x8b9   : > { %13200 = vst [vmem:[#allocation84_spill] sm:$0xff] %v11550_v4  ;;  %v11552_v12 = vpop.eup %8054  ;;  %8072 = vpow2.f32 %v3852_v19  ;;  %v4123_v37 = vadd.f32 %v11550_v4, %v11546_v57  ;;  %4121 = vadd.xlane.f32.xlu1 %v4120_v51  ;;  %v13204_v19 = vld [vmem:[#allocation72_spill] sm:$0xff]  ;;  %v13205_v57 = vld [vmem:[#allocation73_spill] sm:$0xff] }
 0x8ba   : > { %13201 = vst [vmem:[#allocation68_spill] sm:$0xff] %v11552_v12  ;;  %v11556_v22 = vpop.eup %8056  ;;  %8074 = vpow2.f32 %v3854_v39  ;;  %v3558_v38 = vpop.xlane.xlu1 %3557  ;;  %v3730_v35 = vsub.f32 %v13204_v19, %v11398_v49  ;;  %v3731_v4 = vsub.f32 %v13205_v57, %v11398_v49  ;;  %v13209_v19 = vld [vmem:[#allocation77_spill] sm:$0xff] }
 0x8bb   : > { %13202 = vst [vmem:[#allocation70_spill] sm:$0xff] %v11556_v22  ;;  %8076 = vrcp.f32 %v4050_v53  ;;  %v3720_v32 = vsub.f32 %v11081_v7, %v3558_v38  ;;  %v3721_v23 = vsub.f32 %v11085_v41, %v3558_v38  ;;  %v11562_v45 = vpop.eup %8058  ;;  %v13207_v53 = vld [vmem:[#allocation89_spill] sm:$0xff]  ;;  %v3732_v49 = vsub.f32 %v13209_v19, %v11406_v17 }
 0x8bc   : > { %8078 = vrcp.f32 %v4053_v48  ;;  %4124 = vadd.xlane.f32.xlu0 %v4123_v37  ;;  %v3561_v39 = vpop.xlane.xlu0 %3560  ;;  %v4081_v48 = vadd.f32 %v11530_v61, %v11522_v33  ;;  %v3926_v19 = vmul.f32 1.442695, %v3731_v4 }
 0x8bd   : > { %v11570_v28 = vpop.eup %8060  ;;  %v3904_v62 = vmul.f32 1.442695, %v3720_v32  ;;  %v3906_v7 = vmul.f32 1.442695, %v3721_v23  ;;  %v3722_v41 = vsub.f32 %v11087_v54, %v3561_v39  ;;  %v3723_v51 = vsub.f32 %v13207_v53, %v3561_v39  ;;  %4079 = vadd.xlane.f32.xlu1 %v4078_v8 }
 0x8be   : > { %13206 = vst [vmem:[#allocation71_spill] sm:$0xff] %v11570_v28  ;;  %v11574_v38 = vpop.eup %8062  ;;  %8080 = vpow2.f32 %v3920_v1  ;;  %v11578_v57 = vpop.xlane.xlu1 %3605  ;;  %v3922_v32 = vmul.f32 1.442695, %v3729_v26  ;;  %v3924_v39 = vmul.f32 1.442695, %v3730_v35  ;;  %v13214_v26 = vld [vmem:[#allocation78_spill] sm:$0xff] }
 0x8bf   : > { %13208 = vst [vmem:[#allocation72_spill] sm:$0xff] %v11574_v38  ;;  %v11582_v37 = vpop.eup %8064  ;;  %8082 = vpow2.f32 %v3904_v62  ;;  %v3908_v23 = vmul.f32 1.442695, %v3722_v41  ;;  %v3910_v54 = vmul.f32 1.442695, %v3723_v51  ;;  %v4126_v8 = vadd.f32 %v11574_v38, %v11570_v28 }
 0x8c0   : > { %13210 = vst [vmem:[#allocation73_spill] sm:$0xff] %v11582_v37  ;;  %v11584_v46 = vpop.eup %8066  ;;  %8084 = vpow2.f32 %v3906_v7  ;;  %4082 = vadd.xlane.f32.xlu0 %v4081_v48  ;;  %v11586_v1 = vpop.xlane.xlu0 %3608  ;;  %v3733_v62 = vsub.f32 %v13214_v26, %v11406_v17  ;;  %v3928_v41 = vmul.f32 1.442695, %v3732_v49  ;;  %v4087_v49 = vadd.f32 %v11562_v45, %v11556_v22  ;;  %v13217_v26 = vld [vmem:[#allocation102_spill] sm:$0xff] }
 0x8c1   : > { %13211 = vst [vmem:[#allocation89_spill] sm:$0xff] %v11584_v46  ;;  %v11590_v53 = vpop.eup %8068  ;;  %8086 = vpow2.f32 %v3908_v23  ;;  %4127 = vadd.xlane.f32.xlu1 %v4126_v8  ;;  %v4129_v7 = vadd.f32 %v11584_v46, %v11582_v37  ;;  %v4084_v23 = vadd.f32 %v11552_v12, %v11532_v0  ;;  %v13219_v46 = vld [vmem:[#allocation106_spill] sm:$0xff] }
 0x8c2   : > { %13212 = vst [vmem:[#allocation77_spill] sm:$0xff] %v11590_v53  ;;  %v11592_v33 = vpop.eup %8070  ;;  %8088 = vpow2.f32 %v3910_v54  ;;  %v4056_v35 = vpop.xlane.xlu1 %4055  ;;  %v3930_v8 = vmul.f32 1.442695, %v3733_v62  ;;  %v13220_v0 = vld [vmem:[#allocation94_spill] sm:$0xff]  ;;  %v13223_v62 = vld [vmem:[#allocation108_spill] sm:$0xff] }
 0x8c3   : > { %13213 = vst [vmem:[#allocation150_spill] sm:$0xff] %v11592_v33  ;;  %v11598_v51 = vpop.eup %8072  ;;  %8090 = vpow2.f32 %v3922_v32 }
 0x8c4   : > { %13215 = vst [vmem:[#allocation78_spill] sm:$0xff] %v11598_v51  ;;  %v11600_v48 = vpop.eup %8074  ;;  %8092 = vpow2.f32 %v3924_v39  ;;  %4130 = vadd.xlane.f32.xlu0 %v4129_v7  ;;  %v4059_v4 = vpop.xlane.xlu0 %4058  ;;  %v13218_v7 = vld [vmem:[#allocation104_spill] sm:$0xff] }
 0x8c5   : > { %13216 = vst [vmem:[#allocation151_spill] sm:$0xff] %v11600_v48  ;;  %v8077_v17 = vpop.eup %8076  ;;  %8094 = vpow2.f32 %v3926_v19  ;;  %4085 = vadd.xlane.f32.xlu1 %v4084_v23  ;;  %v13221_v19 = vld [vmem:[#allocation95_spill] sm:$0xff] }
 0x8c6   : > { %v8079_v54 = vpop.eup %8078  ;;  %8096 = vpow2.f32 %v3928_v41  ;;  %v4304_v32 = vmul.f32 %v8077_v17, %v13217_v26  ;;  %v3564_v39 = vpop.xlane.xlu1 %3563  ;;  %v4305_v37 = vmul.f32 %v8077_v17, %v13218_v7  ;;  %v13225_v7 = vld [vmem:[#allocation79_spill] sm:$0xff] }
 0x8c7   : > { %v4306_v28 = vmul.f32 %v8079_v54, %v13219_v46  ;;  %8098 = vrcp.f32 %v4056_v35  ;;  %v3724_v12 = vsub.f32 %v13220_v0, %v3564_v39  ;;  %v3725_v38 = vsub.f32 %v13221_v19, %v3564_v39 }
 0x8c8   : > { %v11611_v61 = vpop.eup %8080  ;;  %4432 = vst [vmem:[%s9747_s3] sm:$0xff] %v4304_v32  ;;  %8100 = vrcp.f32 %v4059_v4  ;;  %4088 = vadd.xlane.f32.xlu0 %v4087_v49  ;;  %v4307_v41 = vmul.f32 %v8079_v54, %v13223_v62  ;;  %4433 = vst [vmem:[%s9747_s3 + $0x8] sm:$0xff] %v4305_v37  ;;  %v3567_v23 = vpop.xlane.xlu0 %3566  ;;  %v3734_v4 = vsub.f32 %v13225_v7, %v11408_v52 }
 0x8c9   : > { %13222 = vst [vmem:[#allocation102_spill] sm:$0xff] %v11611_v61  ;;  %v11616_v26 = vpop.eup %8082  ;;  %4434 = vst [vmem:[%s9747_s3 + $0x10] sm:$0xff] %v4306_v28  ;;  %v3912_v17 = vmul.f32 1.442695, %v3724_v12  ;;  %v3914_v46 = vmul.f32 1.442695, %v3725_v38  ;;  %v3726_v35 = vsub.f32 %v11115_v59, %v3567_v23  ;;  %v3727_v0 = vsub.f32 %v11119_v5, %v3567_v23 }
 0x8ca   : > { %13224 = vst [vmem:[#allocation104_spill] sm:$0xff] %v11616_v26  ;;  %v11621_v39 = vpop.eup %8084  ;;  %8102 = vpow2.f32 %v3930_v8  ;;  %4435 = vst [vmem:[%s9747_s3 + $0x18] sm:$0xff] %v4307_v41  ;;  %v4561_v49 = vpack.c.bf16 %v4307_v41, %v4305_v37  ;;  %v4560_v54 = vpack.c.bf16 %v4306_v28, %v4304_v32  ;;  %v4062_v19 = vpop.xlane.xlu1 %4061  ;;  %v13228_v5 = vld [vmem:[#allocation80_spill] sm:$0xff]  ;;  %v3932_v32 = vmul.f32 1.442695, %v3734_v4  ;;  %v13231_v41 = vld [vmem:[#allocation85_spill] sm:$0xff] }
 0x8cb   : > { %v11626_v62 = vpop.eup %8086  ;;  %8104 = vpow2.f32 %v3912_v17  ;;  %v3916_v22 = vmul.f32 1.442695, %v3726_v35  ;;  %v3918_v12 = vmul.f32 1.442695, %v3727_v0  ;;  %v4132_v59 = vadd.f32 %v11621_v39, %v11616_v26  ;;  %v13233_v4 = vld [vmem:[#allocation86_spill] sm:$0xff] }
 0x8cc   : > { %13226 = vst [vmem:[#allocation106_spill] sm:$0xff] %v11626_v62  ;;  %v11630_v38 = vpop.eup %8088  ;;  %v3735_v8 = vsub.f32 %v13228_v5, %v11408_v52  ;;  %8106 = vpow2.f32 %v3914_v46  ;;  %4720 = vmatprep.mubr.bf16.mxu1 %v4561_v49  ;;  %v4065_v23 = vpop.xlane.xlu0 %4064  ;;  %v3736_v17 = vsub.f32 %v13231_v41, %v11420_v47  ;;  %v4090_v0 = vadd.f32 %v11592_v33, %v11590_v53  ;;  %v13235_v53 = vld [vmem:[#allocation118_spill] sm:$0xff] }
 0x8cd   : > { %13227 = vst [vmem:[#allocation94_spill] sm:$0xff] %v11630_v38  ;;  %v11634_v7 = vpop.eup %8090  ;;  %8108 = vpow2.f32 %v3916_v22  ;;  %4721 = vmatmul.mubr.bf16.vlgmr.msra.gmra.mrb[64].mxu1 %v4560_v54  ;;  %4133 = vadd.xlane.f32.xlu1 %v4132_v59  ;;  %v4135_v28 = vadd.f32 %v11630_v38, %v11626_v62  ;;  %v3737_v59 = vsub.f32 %v13233_v4, %v11420_v47 }
 0x8ce   : > { %13229 = vst [vmem:[#allocation95_spill] sm:$0xff] %v11634_v7  ;;  %v11638_v37 = vpop.eup %8092  ;;  %8110 = vpow2.f32 %v3918_v12  ;;  %v3618_v35 = vpop.xlane.xlu1 %3617  ;;  %v3934_v54 = vmul.f32 1.442695, %v3735_v8  ;;  %v4093_v5 = vadd.f32 %v11600_v48, %v11598_v51 }
 0x8cf   : > { %13230 = vst [vmem:[#allocation108_spill] sm:$0xff] %v11638_v37  ;;  %v11642_v52 = vpop.eup %8094  ;;  %8112 = vrcp.f32 %v4062_v19  ;;  %v3760_v46 = vsub.f32 %v11137_v55, %v3618_v35  ;;  %v3761_v22 = vsub.f32 %v11142_v25, %v3618_v35  ;;  %4136 = vadd.xlane.f32.xlu0 %v4135_v28  ;;  %v4664_v19 = vld [vmem:[#allocation4 + $0x140] sm:$0xff]  ;;  %v3936_v35 = vmul.f32 1.442695, %v3736_v17 }
 0x8d0   : > { %13232 = vst [vmem:[#allocation79_spill] sm:$0xff] %v11642_v52  ;;  %v11648_v49 = vpop.eup %8096  ;;  %8114 = vrcp.f32 %v4065_v23  ;;  %v3621_v12 = vpop.xlane.xlu0 %3620  ;;  %7135 = vmatprep.subr.bf16.mxu1 %v4664_v19  ;;  %v13234_v23 = vld [vmem:[#allocation120_spill] sm:$0xff]  ;;  %v13239_v19 = vld [vmem:[#allocation122_spill] sm:$0xff] }
 0x8d1   : > { %v8099_v41 = vpop.eup %8098  ;;  %v3984_v55 = vmul.f32 1.442695, %v3760_v46  ;;  %v3986_v62 = vmul.f32 1.442695, %v3761_v22  ;;  %v3762_v25 = vsub.f32 %v11145_v15, %v3621_v12  ;;  %v3763_v28 = vsub.f32 %v11150_v18, %v3621_v12  ;;  %4091 = vadd.xlane.f32.xlu1 %v4090_v0  ;;  %v13236_v22 = vld [vmem:[#allocation107_spill] sm:$0xff]  ;;  %v13237_v18 = vld [vmem:[#allocation109_spill] sm:$0xff] }
 0x8d2   : > { %v8101_v8 = vpop.eup %8100  ;;  %8116 = vpow2.f32 %v3932_v32  ;;  %v3624_v47 = vpop.xlane.xlu1 %3623  ;;  %v4309_v4 = vmul.f32 %v8099_v41, %v13234_v23  ;;  %v4308_v51 = vmul.f32 %v8099_v41, %v13235_v53  ;;  %v13238_v12 = vld [vmem:[#allocation123_spill] sm:$0xff] }
 0x8d3   : > { %8118 = vpow2.f32 %v3984_v55  ;;  %v3988_v48 = vmul.f32 1.442695, %v3762_v25  ;;  %v3990_v46 = vmul.f32 1.442695, %v3763_v28  ;;  %v3764_v33 = vsub.f32 %v13236_v22, %v3624_v47  ;;  %4094 = vadd.xlane.f32.xlu0 %v4093_v5  ;;  %v4656_v53 = vld [vmem:[#allocation4 + $0x100] sm:$0xff] }
 0x8d4   : > { %v11659_v15 = vpop.eup %8102  ;;  %8120 = vpow2.f32 %v3986_v62  ;;  %v3765_v0 = vsub.f32 %v13237_v18, %v3624_v47  ;;  %v4311_v32 = vmul.f32 %v8101_v8, %v13238_v12  ;;  %4437 = vst [vmem:[%s9747_s3 + $0x28] sm:$0xff] %v4309_v4  ;;  %v3627_v17 = vpop.xlane.xlu0 %3626  ;;  %v4310_v23 = vmul.f32 %v8101_v8, %v13239_v19  ;;  %4436 = vst [vmem:[%s9747_s3 + $0x20] sm:$0xff] %v4308_v51  ;;  %v13240_v5 = vld [vmem:[#allocation110_spill] sm:$0xff]  ;;  %v13241_v28 = vld [vmem:[#allocation111_spill] sm:$0xff] }
 0x8d5   : > { %v11666_v41 = vpop.eup %8104  ;;  %v3938_v55 = vmul.f32 1.442695, %v3737_v59  ;;  %8122 = vpow2.f32 %v3988_v48  ;;  %v3766_v25 = vsub.f32 %v13240_v5, %v3627_v17  ;;  %v3767_v62 = vsub.f32 %v13241_v28, %v3627_v17  ;;  %7136 = vmatpush3.bf16.msra.mxu1 %v4656_v53  ;;  %v13243_v19 = vld [vmem:[#allocation87_spill] sm:$0xff]  ;;  %v13245_v53 = vld [vmem:[#allocation116_spill] sm:$0xff] }
 0x8d6   : > { %v11670_v47 = vpop.eup %8106  ;;  %8124 = vpow2.f32 %v3990_v46  ;;  %v3992_v22 = vmul.f32 1.442695, %v3764_v33  ;;  %4439 = vst [vmem:[%s9747_s3 + $0x38] sm:$0xff] %v4311_v32  ;;  %v4563_v18 = vpack.c.bf16 %v4311_v32, %v4309_v4  ;;  %4438 = vst [vmem:[%s9747_s3 + $0x30] sm:$0xff] %v4310_v23  ;;  %v4562_v12 = vpack.c.bf16 %v4310_v23, %v4308_v51  ;;  %v3630_v38 = vpop.xlane.xlu1 %3629  ;;  %v4665_v5 = vld [vmem:[#allocation4 + $0x148] sm:$0xff] }
 0x8d7   : > { %v11674_v8 = vpop.eup %8108  ;;  %8126 = vpow2.f32 %v3934_v54  ;;  %v3738_v59 = vsub.f32 %v13243_v19, %v11422_v63  ;;  %v3994_v48 = vmul.f32 1.442695, %v3765_v0  ;;  %v3996_v17 = vmul.f32 1.442695, %v3766_v25  ;;  %7137 = vmatprep.subr.bf16.mxu1 %v4665_v5  ;;  %v13244_v51 = vld [vmem:[#allocation88_spill] sm:$0xff]  ;;  %v13247_v19 = vld [vmem:[#allocation117_spill] sm:$0xff] }
 0x8d8   : > { %13242 = vst [vmem:[#allocation80_spill] sm:$0xff] %v11674_v8  ;;  %v11678_v26 = vpop.eup %8110  ;;  %8128 = vpow2.f32 %v3936_v35  ;;  %4728 = vmatprep.mubr.bf16.mxu1 %v4563_v18  ;;  %v4138_v33 = vadd.f32 %v11670_v47, %v11666_v41  ;;  %v3739_v54 = vsub.f32 %v13244_v51, %v11422_v63  ;;  %v3998_v46 = vmul.f32 1.442695, %v3767_v62  ;;  %v3633_v32 = vpop.xlane.xlu0 %3632  ;;  %v4657_v0 = vld [vmem:[#allocation4 + $0x108] sm:$0xff] }
 0x8d9   : > { %v8113_v4 = vpop.eup %8112  ;;  %8130 = vpow2.f32 %v3938_v55  ;;  %4729 = vmatmul.mubr.bf16.gmra.mrb[68].mxu1 %v4562_v12  ;;  %v3768_v35 = vsub.f32 %v13245_v53, %v3630_v38  ;;  %v4141_v25 = vadd.f32 %v11678_v26, %v11674_v8  ;;  %v13246_v28 = vld [vmem:[#allocation128_spill] sm:$0xff]  ;;  %v3940_v55 = vmul.f32 1.442695, %v3738_v59  ;;  %v13251_v53 = vld [vmem:[#allocation126_spill] sm:$0xff] }
 0x8da   : > { %v8115_v23 = vpop.eup %8114  ;;  %8132 = vpow2.f32 %v3992_v22  ;;  %4139 = vadd.xlane.f32.xlu1 %v4138_v33  ;;  %v4313_v18 = vmul.f32 %v8113_v4, %v13246_v28  ;;  %7138 = vmatpush3.bf16.msra.mxu1 %v4657_v0  ;;  %v3769_v63 = vsub.f32 %v13247_v19, %v3630_v38  ;;  %v4144_v62 = vadd.f32 %v11634_v7, %v11611_v61  ;;  %v13249_v22 = vld [vmem:[#allocation119_spill] sm:$0xff]  ;;  %v13252_v38 = vld [vmem:[#allocation121_spill] sm:$0xff] }
 0x8db   : > { %8134 = vpow2.f32 %v3994_v48  ;;  %v3770_v5 = vsub.f32 %v13249_v22, %v3633_v32  ;;  %4142 = vadd.xlane.f32.xlu0 %v4141_v25  ;;  %v13250_v33 = vld [vmem:[#allocation131_spill] sm:$0xff]  ;;  %v4312_v0 = vmul.f32 %v8113_v4, %v13251_v53  ;;  %v3942_v48 = vmul.f32 1.442695, %v3739_v54  ;;  %v13254_v4 = vld [vmem:[#allocation130_spill] sm:$0xff] }
 0x8dc   : > { %v11691_v12 = vpop.eup %8116  ;;  %8136 = vpow2.f32 %v3996_v17  ;;  %v4315_v51 = vmul.f32 %v8115_v23, %v13250_v33  ;;  %4441 = vst [vmem:[%s9747_s3 + $0x48] sm:$0xff] %v4313_v18  ;;  %v3771_v28 = vsub.f32 %v13252_v38, %v3633_v32  ;;  %v4147_v19 = vadd.f32 %v11642_v52, %v11638_v37  ;;  %v13253_v17 = vld [vmem:[#allocation90_spill] sm:$0xff]  ;;  %v3636_v52 = vpop.xlane.xlu1 %3635  ;;  %v4666_v37 = vld [vmem:[#allocation4 + $0x150] sm:$0xff] }
 0x8dd   : > { %13248 = vst [vmem:[#allocation85_spill] sm:$0xff] %v11691_v12  ;;  %v11697_v59 = vpop.eup %8118  ;;  %8138 = vpow2.f32 %v3998_v46  ;;  %v3740_v25 = vsub.f32 %v13253_v17, %v11446_v31  ;;  %v4000_v22 = vmul.f32 1.442695, %v3768_v35  ;;  %v4314_v53 = vmul.f32 %v8115_v23, %v13254_v4  ;;  %4440 = vst [vmem:[%s9747_s3 + $0x40] sm:$0xff] %v4312_v0  ;;  %v13255_v46 = vld [vmem:[#allocation91_spill] sm:$0xff]  ;;  %v13257_v35 = vld [vmem:[#allocation92_spill] sm:$0xff]  ;;  %7139 = vmatprep.subr.bf16.mxu1 %v4666_v37 }
 0x8de   : > { %v11702_v7 = vpop.eup %8120  ;;  %4443 = vst [vmem:[%s9747_s3 + $0x58] sm:$0xff] %v4315_v51  ;;  %v4565_v33 = vpack.c.bf16 %v4315_v51, %v4313_v18  ;;  %4145 = vadd.xlane.f32.xlu1 %v4144_v62  ;;  %8140 = vpow2.f32 %v3940_v55  ;;  %v3741_v32 = vsub.f32 %v13255_v46, %v11446_v31  ;;  %v4002_v38 = vmul.f32 1.442695, %v3769_v63  ;;  %v13259_v31 = vld [vmem:[#allocation93_spill] sm:$0xff]  ;;  %v3639_v51 = vpop.xlane.xlu0 %3638 }
 0x8df   : > { %v11709_v54 = vpop.eup %8122  ;;  %v3742_v17 = vsub.f32 %v13257_v35, %v11454_v40  ;;  %v4004_v8 = vmul.f32 1.442695, %v3770_v5  ;;  %4442 = vst [vmem:[%s9747_s3 + $0x50] sm:$0xff] %v4314_v53  ;;  %v4564_v18 = vpack.c.bf16 %v4314_v53, %v4312_v0  ;;  %4148 = vadd.xlane.f32.xlu0 %v4147_v19  ;;  %v4192_v23 = vadd.f32 %v11702_v7, %v11697_v59  ;;  %v4658_v4 = vld [vmem:[#allocation4 + $0x110] sm:$0xff] }
 0x8e0   : > { %v11713_v61 = vpop.eup %8124  ;;  %4736 = vmatprep.mubr.bf16.mxu1 %v4565_v33  ;;  %8142 = vpow2.f32 %v3942_v48  ;;  %v3743_v63 = vsub.f32 %v13259_v31, %v11454_v40  ;;  %v4006_v62 = vmul.f32 1.442695, %v3771_v28  ;;  %v3944_v5 = vmul.f32 1.442695, %v3740_v25  ;;  %v13260_v33 = vld [vmem:[#allocation124_spill] sm:$0xff]  ;;  %v13261_v40 = vld [vmem:[#allocation125_spill] sm:$0xff]  ;;  %7140 = vmatpush3.bf16.msra.mxu1 %v4658_v4 }
 0x8e1   : > { %13256 = vst [vmem:[#allocation86_spill] sm:$0xff] %v11713_v61  ;;  %v11720_v55 = vpop.eup %8126  ;;  %8144 = vpow2.f32 %v4000_v22  ;;  %v3772_v0 = vsub.f32 %v13260_v33, %v3636_v52  ;;  %4737 = vmatmul.mubr.bf16.gmra.mrb[72].mxu1 %v4564_v18  ;;  %v4195_v19 = vadd.f32 %v11713_v61, %v11709_v54  ;;  %v3946_v48 = vmul.f32 1.442695, %v3741_v32  ;;  %v13263_v25 = vld [vmem:[#allocation127_spill] sm:$0xff]  ;;  %v13265_v33 = vld [vmem:[#allocation129_spill] sm:$0xff] }
 0x8e2   : > { %13258 = vst [vmem:[#allocation120_spill] sm:$0xff] %v11720_v55  ;;  %v11724_v46 = vpop.eup %8128  ;;  %4193 = vadd.xlane.f32.xlu1 %v4192_v23  ;;  %8146 = vpow2.f32 %v4002_v38  ;;  %v3773_v28 = vsub.f32 %v13261_v40, %v3636_v52  ;;  %v3948_v35 = vmul.f32 1.442695, %v3742_v17  ;;  %v3774_v22 = vsub.f32 %v13263_v25, %v3639_v51  ;;  %v4680_v38 = vld [vmem:[#allocation4 + $0x1c0] sm:$0xff]  ;;  %v13266_v52 = vld [vmem:[#allocation96_spill] sm:$0xff]  ;;  %v3642_v40 = vpop.xlane.xlu1 %3641 }
 0x8e3   : > { %v11729_v53 = vpop.eup %8130  ;;  %8148 = vpow2.f32 %v4004_v8  ;;  %4196 = vadd.xlane.f32.xlu0 %v4195_v19  ;;  %v4150_v18 = vadd.f32 %v11659_v15, %v11648_v49  ;;  %v3950_v31 = vmul.f32 1.442695, %v3743_v63  ;;  %v3775_v32 = vsub.f32 %v13265_v33, %v3639_v51  ;;  %7199 = vmatprep.subr.bf16.mxu0 %v4680_v38  ;;  %v13267_v63 = vld [vmem:[#allocation97_spill] sm:$0xff] }
 0x8e4   : > { %v11732_v37 = vpop.eup %8132  ;;  %8150 = vpow2.f32 %v4006_v62  ;;  %v3744_v17 = vsub.f32 %v13266_v52, %v11486_v2  ;;  %v4008_v8 = vmul.f32 1.442695, %v3772_v0  ;;  %v4153_v4 = vadd.f32 %v11720_v55, %v11691_v12  ;;  %v4659_v52 = vld [vmem:[#allocation4 + $0x118] sm:$0xff] }
 0x8e5   : > { %13262 = vst [vmem:[#allocation118_spill] sm:$0xff] %v11732_v37  ;;  %v11737_v23 = vpop.eup %8134  ;;  %8152 = vpow2.f32 %v3944_v5  ;;  %v3745_v62 = vsub.f32 %v13267_v63, %v11486_v2  ;;  %v4010_v51 = vmul.f32 1.442695, %v3773_v28  ;;  %v13268_v5 = vld [vmem:[#allocation98_spill] sm:$0xff]  ;;  %v4012_v33 = vmul.f32 1.442695, %v3774_v22  ;;  %v3645_v28 = vpop.xlane.xlu0 %3644 }
 0x8e6   : > { %13264 = vst [vmem:[#allocation107_spill] sm:$0xff] %v11737_v23  ;;  %v11740_v61 = vpop.eup %8136  ;;  %4151 = vadd.xlane.f32.xlu1 %v4150_v18  ;;  %8154 = vpow2.f32 %v3946_v48  ;;  %v3746_v25 = vsub.f32 %v13268_v5, %v11492_v6  ;;  %v4198_v0 = vadd.f32 %v11737_v23, %v11732_v37  ;;  %v4667_v18 = vld [vmem:[#allocation4 + $0x158] sm:$0xff]  ;;  %v13270_v48 = vld [vmem:[#allocation99_spill] sm:$0xff]  ;;  %v4014_v2 = vmul.f32 1.442695, %v3775_v32  ;;  %v13271_v63 = vld [vmem:[#allocation132_spill] sm:$0xff] }
 0x8e7   : > { %v11746_v19 = vpop.eup %8138  ;;  %8156 = vpow2.f32 %v3948_v35  ;;  %4154 = vadd.xlane.f32.xlu0 %v4153_v4  ;;  %v3747_v12 = vsub.f32 %v13270_v48, %v11492_v6  ;;  %7141 = vmatprep.subr.bf16.mxu1 %v4667_v18  ;;  %v3952_v35 = vmul.f32 1.442695, %v3744_v17  ;;  %v3776_v5 = vsub.f32 %v13271_v63, %v3642_v40  ;;  %v13275_v32 = vld [vmem:[#allocation134_spill] sm:$0xff] }
 0x8e8   : > { %v11754_v38 = vpop.eup %8140  ;;  %8158 = vpow2.f32 %v3950_v31  ;;  %v4201_v22 = vadd.f32 %v11746_v19, %v11740_v61  ;;  %7142 = vmatpush3.bf16.msra.mxu1 %v4659_v52  ;;  %v3954_v37 = vmul.f32 1.442695, %v3745_v62  ;;  %v13273_v31 = vld [vmem:[#allocation133_spill] sm:$0xff]  ;;  %v3956_v6 = vmul.f32 1.442695, %v3746_v25  ;;  %v13277_v52 = vld [vmem:[#allocation135_spill] sm:$0xff] }
 0x8e9   : > { %13269 = vst [vmem:[#allocation109_spill] sm:$0xff] %v11754_v38  ;;  %8160 = vpow2.f32 %v4008_v8  ;;  %v3777_v23 = vsub.f32 %v13273_v31, %v3642_v40  ;;  %v3778_v17 = vsub.f32 %v13275_v32, %v3645_v28  ;;  %v4156_v8 = vadd.f32 %v11729_v53, %v11724_v46  ;;  %v3648_v31 = vpop.xlane.xlu1 %3647 }
 0x8ea   : > { %4199 = vadd.xlane.f32.xlu1 %v4198_v0  ;;  %v11761_v4 = vpop.eup %8142  ;;  %8162 = vpow2.f32 %v4010_v51  ;;  %v3958_v18 = vmul.f32 1.442695, %v3747_v12  ;;  %v3779_v48 = vsub.f32 %v13277_v52, %v3645_v28  ;;  %v13279_v51 = vld [vmem:[#allocation100_spill] sm:$0xff]  ;;  %v4016_v25 = vmul.f32 1.442695, %v3776_v5 }
 0x8eb   : > { %13272 = vst [vmem:[#allocation123_spill] sm:$0xff] %v11761_v4  ;;  %v11764_v55 = vpop.eup %8144  ;;  %8164 = vpow2.f32 %v4012_v33  ;;  %4202 = vadd.xlane.f32.xlu0 %v4201_v22  ;;  %v3748_v40 = vsub.f32 %v13279_v51, %v11526_v30  ;;  %v4159_v33 = vadd.f32 %v11761_v4, %v11754_v38  ;;  %v13281_v22 = vld [vmem:[#allocation101_spill] sm:$0xff]  ;;  %v4020_v52 = vmul.f32 1.442695, %v3778_v17  ;;  %v13285_v4 = vld [vmem:[#allocation136_spill] sm:$0xff] }
 0x8ec   : > { %13274 = vst [vmem:[#allocation122_spill] sm:$0xff] %v11764_v55  ;;  %v11769_v0 = vpop.eup %8146  ;;  %8166 = vpow2.f32 %v4014_v2  ;;  %v3749_v12 = vsub.f32 %v13281_v22, %v11526_v30  ;;  %v4018_v2 = vmul.f32 1.442695, %v3777_v23  ;;  %v4022_v30 = vmul.f32 1.442695, %v3779_v48  ;;  %v3651_v23 = vpop.xlane.xlu0 %3650  ;;  %v4668_v22 = vld [vmem:[#allocation4 + $0x160] sm:$0xff] }
 0x8ed   : > { %13276 = vst [vmem:[#allocation110_spill] sm:$0xff] %v11769_v0  ;;  %v11772_v62 = vpop.eup %8148  ;;  %8168 = vpow2.f32 %v3952_v35  ;;  %v13282_v35 = vld [vmem:[#allocation103_spill] sm:$0xff]  ;;  %v4204_v5 = vadd.f32 %v11769_v0, %v11764_v55  ;;  %7143 = vmatprep.subr.bf16.mxu1 %v4668_v22 }
 0x8ee   : > { %13278 = vst [vmem:[#allocation111_spill] sm:$0xff] %v11772_v62  ;;  %4157 = vadd.xlane.f32.xlu1 %v4156_v8  ;;  %v11778_v63 = vpop.eup %8150  ;;  %8170 = vpow2.f32 %v3954_v37  ;;  %v3750_v32 = vsub.f32 %v13282_v35, %v11534_v14  ;;  %v13283_v37 = vld [vmem:[#allocation105_spill] sm:$0xff]  ;;  %v3780_v35 = vsub.f32 %v13285_v4, %v3648_v31 }
 0x8ef   : > { %13280 = vst [vmem:[#allocation87_spill] sm:$0xff] %v11778_v63  ;;  %v11782_v28 = vpop.eup %8152  ;;  %8172 = vpow2.f32 %v3956_v6  ;;  %4160 = vadd.xlane.f32.xlu0 %v4159_v33  ;;  %v3751_v51 = vsub.f32 %v13283_v37, %v11534_v14  ;;  %v3960_v6 = vmul.f32 1.442695, %v3748_v40  ;;  %v4207_v17 = vadd.f32 %v11778_v63, %v11772_v62  ;;  %v4660_v33 = vld [vmem:[#allocation4 + $0x120] sm:$0xff]  ;;  %v13287_v14 = vld [vmem:[#allocation137_spill] sm:$0xff] }
 0x8f0   : > { %v11788_v8 = vpop.eup %8154  ;;  %8174 = vpow2.f32 %v3958_v18  ;;  %v3962_v18 = vmul.f32 1.442695, %v3749_v12  ;;  %v3781_v48 = vsub.f32 %v13287_v14, %v3648_v31  ;;  %7144 = vmatpush3.bf16.msra.mxu1 %v4660_v33  ;;  %v3964_v0 = vmul.f32 1.442695, %v3750_v32  ;;  %v13289_v40 = vld [vmem:[#allocation138_spill] sm:$0xff]  ;;  %v13291_v62 = vld [vmem:[#allocation139_spill] sm:$0xff] }
 0x8f1   : > { %v11792_v38 = vpop.eup %8156  ;;  %8176 = vpow2.f32 %v4016_v25  ;;  %v3782_v25 = vsub.f32 %v13289_v40, %v3651_v23  ;;  %v4162_v4 = vadd.f32 %v11788_v8, %v11782_v28  ;;  %v3966_v22 = vmul.f32 1.442695, %v3751_v51  ;;  %v13293_v31 = vld [vmem:[#allocation112_spill] sm:$0xff]  ;;  %v13295_v51 = vld [vmem:[#allocation113_spill] sm:$0xff] }
 0x8f2   : > { %13284 = vst [vmem:[#allocation88_spill] sm:$0xff] %v11792_v38  ;;  %4205 = vadd.xlane.f32.xlu1 %v4204_v5  ;;  %v11797_v55 = vpop.eup %8158  ;;  %8178 = vpow2.f32 %v4018_v2  ;;  %v3783_v12 = vsub.f32 %v13291_v62, %v3651_v23  ;;  %v4669_v2 = vld [vmem:[#allocation4 + $0x168] sm:$0xff]  ;;  %v3752_v32 = vsub.f32 %v13293_v31, %v11578_v57  ;;  %v3753_v62 = vsub.f32 %v13295_v51, %v11578_v57  ;;  %v3654_v23 = vpop.xlane.xlu1 %3653 }
 0x8f3   : > { %13286 = vst [vmem:[#allocation116_spill] sm:$0xff] %v11797_v55  ;;  %v11800_v37 = vpop.eup %8160  ;;  %8180 = vpow2.f32 %v4020_v52  ;;  %4208 = vadd.xlane.f32.xlu0 %v4207_v17  ;;  %v4024_v52 = vmul.f32 1.442695, %v3780_v35  ;;  %v4165_v17 = vadd.f32 %v11797_v55, %v11792_v38  ;;  %7145 = vmatprep.subr.bf16.mxu1 %v4669_v2  ;;  %v4661_v33 = vld [vmem:[#allocation4 + $0x128] sm:$0xff]  ;;  %v13296_v35 = vld [vmem:[#allocation114_spill] sm:$0xff]  ;;  %v3657_v51 = vpop.xlane.xlu0 %3656 }
 0x8f4   : > { %13288 = vst [vmem:[#allocation128_spill] sm:$0xff] %v11800_v37  ;;  %v11805_v5 = vpop.eup %8162  ;;  %8182 = vpow2.f32 %v4022_v30  ;;  %v4026_v30 = vmul.f32 1.442695, %v3781_v48  ;;  %7146 = vmatpush3.bf16.msra.mxu1 %v4661_v33  ;;  %v3754_v40 = vsub.f32 %v13296_v35, %v11586_v1  ;;  %v4030_v48 = vmul.f32 1.442695, %v3783_v12  ;;  %v4670_v33 = vld [vmem:[#allocation4 + $0x170] sm:$0xff] }
 0x8f5   : > { %13290 = vst [vmem:[#allocation117_spill] sm:$0xff] %v11805_v5  ;;  %v11808_v63 = vpop.eup %8164  ;;  %8184 = vpow2.f32 %v3960_v6  ;;  %v4210_v2 = vadd.f32 %v11805_v5, %v11800_v37  ;;  %v13298_v55 = vld [vmem:[#allocation140_spill] sm:$0xff]  ;;  %7147 = vmatprep.subr.bf16.mxu1 %v4670_v33 }
 0x8f6   : > { %13292 = vst [vmem:[#allocation119_spill] sm:$0xff] %v11808_v63  ;;  %4163 = vadd.xlane.f32.xlu1 %v4162_v4  ;;  %v11814_v14 = vpop.eup %8166  ;;  %8186 = vpow2.f32 %v3962_v18  ;;  %v4028_v4 = vmul.f32 1.442695, %v3782_v25  ;;  %v13297_v18 = vld [vmem:[#allocation115_spill] sm:$0xff]  ;;  %v3784_v35 = vsub.f32 %v13298_v55, %v3654_v23  ;;  %v3972_v5 = vmul.f32 1.442695, %v3754_v40 }
 0x8f7   : > { %13294 = vst [vmem:[#allocation131_spill] sm:$0xff] %v11814_v14  ;;  %v11818_v6 = vpop.eup %8168  ;;  %8188 = vpow2.f32 %v3964_v0  ;;  %4166 = vadd.xlane.f32.xlu0 %v4165_v17  ;;  %v3755_v57 = vsub.f32 %v13297_v18, %v11586_v1  ;;  %v3968_v0 = vmul.f32 1.442695, %v3752_v32  ;;  %v4213_v25 = vadd.f32 %v11814_v14, %v11808_v63  ;;  %v4662_v17 = vld [vmem:[#allocation4 + $0x130] sm:$0xff]  ;;  %v13300_v32 = vld [vmem:[#allocation142_spill] sm:$0xff]  ;;  %v13301_v63 = vld [vmem:[#allocation143_spill] sm:$0xff] }
 0x8f8   : > { %v11824_v31 = vpop.eup %8170  ;;  %8190 = vpow2.f32 %v3966_v22  ;;  %v3970_v22 = vmul.f32 1.442695, %v3753_v62  ;;  %v13299_v1 = vld [vmem:[#allocation141_spill] sm:$0xff]  ;;  %7148 = vmatpush3.bf16.msra.mxu1 %v4662_v17  ;;  %v3787_v62 = vsub.f32 %v13301_v63, %v3657_v51 }
 0x8f9   : > { %v11828_v38 = vpop.eup %8172  ;;  %8192 = vpow2.f32 %v4024_v52  ;;  %v3785_v12 = vsub.f32 %v13299_v1, %v3654_v23  ;;  %v3786_v52 = vsub.f32 %v13300_v32, %v3657_v51  ;;  %v4168_v55 = vadd.f32 %v11824_v31, %v11818_v6 }
 0x8fa   : > { %4211 = vadd.xlane.f32.xlu1 %v4210_v2  ;;  %v11833_v37 = vpop.eup %8174  ;;  %8194 = vpow2.f32 %v4026_v30  ;;  %v3974_v33 = vmul.f32 1.442695, %v3755_v57  ;;  %v4671_v30 = vld [vmem:[#allocation4 + $0x178] sm:$0xff]  ;;  %v4032_v23 = vmul.f32 1.442695, %v3784_v35 }
 0x8fb   : > { %v11836_v18 = vpop.eup %8176  ;;  %8196 = vpow2.f32 %v4028_v4  ;;  %4214 = vadd.xlane.f32.xlu0 %v4213_v25  ;;  %v4171_v40 = vadd.f32 %v11833_v37, %v11828_v38  ;;  %7149 = vmatprep.subr.bf16.mxu1 %v4671_v30  ;;  %v4663_v4 = vld [vmem:[#allocation4 + $0x138] sm:$0xff]  ;;  %v4034_v17 = vmul.f32 1.442695, %v3785_v12  ;;  %v4036_v63 = vmul.f32 1.442695, %v3786_v52 }
 0x8fc   : > { %v11841_v2 = vpop.eup %8178  ;;  %8198 = vpow2.f32 %v4030_v48  ;;  %7150 = vmatpush3.bf16.msra.mxu1 %v4663_v4 }
 0x8fd   : > { %v11844_v14 = vpop.eup %8180  ;;  %8200 = vpow2.f32 %v3968_v0  ;;  %v4216_v48 = vadd.f32 %v11841_v2, %v11836_v18  ;;  %v4038_v0 = vmul.f32 1.442695, %v3787_v62 }
 0x8fe   : > { %4169 = vadd.xlane.f32.xlu1 %v4168_v55  ;;  %v11848_v25 = vpop.eup %8182  ;;  %8202 = vpow2.f32 %v3970_v22 }
 0x8ff   : > { %v11850_v57 = vpop.eup %8184  ;;  %8204 = vpow2.f32 %v3972_v5  ;;  %4172 = vadd.xlane.f32.xlu0 %v4171_v40  ;;  %v4219_v22 = vadd.f32 %v11848_v25, %v11844_v14 }
 0x900   : > { %v11854_v51 = vpop.eup %8186  ;;  %8206 = vpow2.f32 %v3974_v33 }
 0x901   : > { %v11856_v35 = vpop.eup %8188  ;;  %8208 = vpow2.f32 %v4032_v23  ;;  %v4174_v12 = vadd.f32 %v11854_v51, %v11850_v57 }
 0x902   : > { %4217 = vadd.xlane.f32.xlu1 %v4216_v48  ;;  %v11860_v1 = vpop.eup %8190  ;;  %8210 = vpow2.f32 %v4034_v17 }
 0x903   : > { %v11862_v5 = vpop.eup %8192  ;;  %8212 = vpow2.f32 %v4036_v63  ;;  %4220 = vadd.xlane.f32.xlu0 %v4219_v22  ;;  %v4177_v55 = vadd.f32 %v11860_v1, %v11856_v35 }
 0x904   : > { %13302 = vst [vmem:[#allocation126_spill] sm:$0xff] %v11862_v5  ;;  %v11866_v32 = vpop.eup %8194  ;;  %8214 = vpow2.f32 %v4038_v0 }
 0x905   : > { %13303 = vst [vmem:[#allocation121_spill] sm:$0xff] %v11866_v32  ;;  %v11868_v52 = vpop.eup %8196  ;;  %v4222_v30 = vadd.f32 %v11866_v32, %v11862_v5  ;;  %v13318_v5 = vld [vmem:[#allocation147_spill] sm:$0xff] }
 0x906   : > { %13304 = vst [vmem:[#allocation90_spill] sm:$0xff] %v11868_v52  ;;  %4175 = vadd.xlane.f32.xlu1 %v4174_v12  ;;  %v11872_v33 = vpop.eup %8198 }
 0x907   : > { %13305 = vst [vmem:[#allocation130_spill] sm:$0xff] %v11872_v33  ;;  %v11874_v62 = vpop.eup %8200  ;;  %4178 = vadd.xlane.f32.xlu0 %v4177_v55  ;;  %v4225_v4 = vadd.f32 %v11872_v33, %v11868_v52 }
 0x908   : > { %13306 = vst [vmem:[#allocation91_spill] sm:$0xff] %v11874_v62  ;;  %v11878_v23 = vpop.eup %8202 }
 0x909   : > { %13307 = vst [vmem:[#allocation92_spill] sm:$0xff] %v11878_v23  ;;  %v11880_v40 = vpop.eup %8204  ;;  %v4180_v48 = vadd.f32 %v11878_v23, %v11874_v62 }
 0x90a   : > { %13308 = vst [vmem:[#allocation93_spill] sm:$0xff] %v11880_v40  ;;  %4223 = vadd.xlane.f32.xlu1 %v4222_v30  ;;  %v11884_v17 = vpop.eup %8206 }
 0x90b   : > { %13309 = vst [vmem:[#allocation124_spill] sm:$0xff] %v11884_v17  ;;  %v11886_v63 = vpop.eup %8208  ;;  %4226 = vadd.xlane.f32.xlu0 %v4225_v4  ;;  %v4183_v55 = vadd.f32 %v11884_v17, %v11880_v40  ;;  %v13316_v40 = vld [vmem:[#allocation146_spill] sm:$0xff] }
 0x90c   : > { %13310 = vst [vmem:[#allocation125_spill] sm:$0xff] %v11886_v63  ;;  %v11890_v0 = vpop.eup %8210 }
 0x90d   : > { %13311 = vst [vmem:[#allocation127_spill] sm:$0xff] %v11890_v0  ;;  %v11892_v22 = vpop.eup %8212  ;;  %v4228_v4 = vadd.f32 %v11890_v0, %v11886_v63 }
 0x90e   : > { %13312 = vst [vmem:[#allocation129_spill] sm:$0xff] %v11892_v22  ;;  %4181 = vadd.xlane.f32.xlu1 %v4180_v48  ;;  %v4098_v12 = vpop.xlane.xlu1 %4097  ;;  %v11896_v30 = vpop.eup %8214 }
 0x90f   : > { %13313 = vst [vmem:[#allocation96_spill] sm:$0xff] %v11896_v30  ;;  %8216 = vrcp.f32 %v4098_v12  ;;  %4184 = vadd.xlane.f32.xlu0 %v4183_v55  ;;  %v4231_v52 = vadd.f32 %v11896_v30, %v11892_v22 }
 0x912   : > { %4229 = vadd.xlane.f32.xlu1 %v4228_v4  ;;  %v4068_v62 = vpop.xlane.xlu1 %4067  ;;  %v4101_v23 = vpop.xlane.xlu0 %4100 }
 0x913   : > { %8218 = vrcp.f32 %v4068_v62  ;;  %4232 = vadd.xlane.f32.xlu0 %v4231_v52  ;;  %v13314_v62 = vld [vmem:[#allocation144_spill] sm:$0xff] }
 0x914   : > { %8220 = vrcp.f32 %v4101_v23  ;;  %v13315_v23 = vld [vmem:[#allocation145_spill] sm:$0xff] }
 0x916   : > { %v4071_v48 = vpop.xlane.xlu0 %4070 }
 0x917   : > { %8222 = vrcp.f32 %v4071_v48 }
 0x919   : > { %v8217_v12 = vpop.eup %8216 }
 0x91a   : > { %v4336_v55 = vmul.f32 %v8217_v12, %v11366_v44  ;;  %v4337_v63 = vmul.f32 %v8217_v12, %v11368_v29  ;;  %v13317_v12 = vld [vmem:[#allocation148_spill] sm:$0xff] }
 0x91c   : > { %4464 = vst [vmem:[%s9747_s3 + $0x100] sm:$0xff] %v4336_v55  ;;  %4465 = vst [vmem:[%s9747_s3 + $0x108] sm:$0xff] %v4337_v63 }
 0x91d   : > { %v8219_v4 = vpop.eup %8218 }
 0x91e   : > { %v8221_v0 = vpop.eup %8220  ;;  %v4317_v22 = vmul.f32 %v8219_v4, %v11376_v50  ;;  %v4316_v30 = vmul.f32 %v8219_v4, %v13314_v62  ;;  %v4672_v50 = vld [vmem:[#allocation4 + $0x180] sm:$0xff]  ;;  %v4681_v4 = vld [vmem:[#allocation4 + $0x1c8] sm:$0xff] }
 0x91f   : > { %v4338_v52 = vmul.f32 %v8221_v0, %v13315_v23  ;;  %v4339_v17 = vmul.f32 %v8221_v0, %v13316_v40  ;;  %v4673_v0 = vld [vmem:[#allocation4 + $0x188] sm:$0xff]  ;;  %v4682_v23 = vld [vmem:[#allocation4 + $0x1d0] sm:$0xff] }
 0x920   : > { %4445 = vst [vmem:[%s9747_s3 + $0x68] sm:$0xff] %v4317_v22  ;;  %4444 = vst [vmem:[%s9747_s3 + $0x60] sm:$0xff] %v4316_v30 }
 0x921   : > { %v8223_v48 = vpop.eup %8222  ;;  %4466 = vst [vmem:[%s9747_s3 + $0x110] sm:$0xff] %v4338_v52  ;;  %4467 = vst [vmem:[%s9747_s3 + $0x118] sm:$0xff] %v4339_v17  ;;  %v4577_v44 = vpack.c.bf16 %v4339_v17, %v4337_v63  ;;  %v4576_v29 = vpack.c.bf16 %v4338_v52, %v4336_v55  ;;  %v4674_v17 = vld [vmem:[#allocation4 + $0x190] sm:$0xff]  ;;  %v4683_v63 = vld [vmem:[#allocation4 + $0x1d8] sm:$0xff] }
 0x922   : > { %v4319_v33 = vmul.f32 %v8223_v48, %v13317_v12  ;;  %v4318_v32 = vmul.f32 %v8223_v48, %v13318_v5  ;;  %v4675_v5 = vld [vmem:[#allocation4 + $0x198] sm:$0xff]  ;;  %v4684_v52 = vld [vmem:[#allocation4 + $0x1e0] sm:$0xff] }
 0x923   : > { %4817 = vmatprep.mubr.bf16.mxu0 %v4577_v44 }
 0x924   : > { %4818 = vmatmul.mubr.bf16.vlgmr.msra.gmra.mrb[80].mxu0 %v4576_v29  ;;  %4447 = vst [vmem:[%s9747_s3 + $0x78] sm:$0xff] %v4319_v33  ;;  %v4567_v62 = vpack.c.bf16 %v4319_v33, %v4317_v22  ;;  %4446 = vst [vmem:[%s9747_s3 + $0x70] sm:$0xff] %v4318_v32  ;;  %v4566_v40 = vpack.c.bf16 %v4318_v32, %v4316_v30  ;;  %v4676_v32 = vld [vmem:[#allocation4 + $0x1a0] sm:$0xff]  ;;  %v4685_v22 = vld [vmem:[#allocation4 + $0x1e8] sm:$0xff] }
 0x925   : > { %7200 = vmatpush3.bf16.msra.mxu0 %v4672_v50 }
 0x926   : > { %4744 = vmatprep.mubr.bf16.mxu1 %v4567_v62  ;;  %7201 = vmatprep.subr.bf16.mxu0 %v4681_v4 }
 0x927   : > { %4745 = vmatmul.mubr.bf16.gmra.mrb[76].mxu1 %v4566_v40  ;;  %v4677_v40 = vld [vmem:[#allocation4 + $0x1a8] sm:$0xff] }
 0x929   : > { %7202 = vmatpush3.bf16.msra.mxu0 %v4673_v0 }
 0x92a   : > { %7203 = vmatprep.subr.bf16.mxu0 %v4682_v23  ;;  %v4686_v23 = vld [vmem:[#allocation4 + $0x1f0] sm:$0xff] }
 0x92d   : > { %7204 = vmatpush3.bf16.msra.mxu0 %v4674_v17 }
 0x92e   : > { %7205 = vmatprep.subr.bf16.mxu0 %v4683_v63  ;;  %v4104_v55 = vpop.xlane.xlu1 %4103 }
 0x92f   : > { %8224 = vrcp.f32 %v4104_v55 }
 0x931   : > { %v4107_v48 = vpop.xlane.xlu0 %4106  ;;  %7206 = vmatpush3.bf16.msra.mxu0 %v4675_v5 }
 0x932   : > { %8226 = vrcp.f32 %v4107_v48  ;;  %7207 = vmatprep.subr.bf16.mxu0 %v4684_v52  ;;  %v3612_v33 = vpop.xlane.xlu1 %3611  ;;  %v4687_v52 = vld [vmem:[#allocation4 + $0x1f8] sm:$0xff] }
 0x933   : > { %v3756_v30 = vsub.f32 %v11234_v42, %v3612_v33  ;;  %v3757_v44 = vsub.f32 %v11240_v36, %v3612_v33  ;;  %v4678_v36 = vld [vmem:[#allocation4 + $0x1b0] sm:$0xff] }
 0x935   : > { %v3615_v29 = vpop.xlane.xlu0 %3614  ;;  %7208 = vmatpush3.bf16.msra.mxu0 %v4676_v32  ;;  %v3976_v12 = vmul.f32 1.442695, %v3756_v30  ;;  %v3978_v50 = vmul.f32 1.442695, %v3757_v44 }
 0x936   : > { %v3758_v4 = vsub.f32 %v11242_v11, %v3615_v29  ;;  %v3759_v62 = vsub.f32 %v11248_v24, %v3615_v29  ;;  %7209 = vmatprep.subr.bf16.mxu0 %v4685_v22  ;;  %v4110_v0 = vpop.xlane.xlu1 %4109 }
 0x937   : > { %8228 = vpow2.f32 %v3976_v12 }
 0x938   : > { %v3980_v17 = vmul.f32 1.442695, %v3758_v4  ;;  %v3982_v63 = vmul.f32 1.442695, %v3759_v62  ;;  %8230 = vpow2.f32 %v3978_v50 }
 0x939   : > { %v4113_v5 = vpop.xlane.xlu0 %4112  ;;  %7210 = vmatpush3.bf16.msra.mxu0 %v4677_v40  ;;  %v8225_v42 = vpop.eup %8224 }
 0x93a   : > { %8232 = vpow2.f32 %v3980_v17  ;;  %7211 = vmatprep.subr.bf16.mxu0 %v4686_v23  ;;  %v3660_v11 = vpop.xlane.xlu1 %3659  ;;  %v4341_v24 = vmul.f32 %v8225_v42, %v11426_v58  ;;  %v4340_v55 = vmul.f32 %v8225_v42, %v11424_v43 }
 0x93b   : > { %8234 = vpow2.f32 %v3982_v63  ;;  %v3788_v32 = vsub.f32 %v11338_v27, %v3660_v11  ;;  %v3789_v33 = vsub.f32 %v11340_v9, %v3660_v11  ;;  %v4679_v27 = vld [vmem:[#allocation4 + $0x1b8] sm:$0xff] }
 0x93c   : > { %v8227_v48 = vpop.eup %8226  ;;  %8236 = vrcp.f32 %v4110_v0  ;;  %4469 = vst [vmem:[%s9747_s3 + $0x128] sm:$0xff] %v4341_v24  ;;  %4468 = vst [vmem:[%s9747_s3 + $0x120] sm:$0xff] %v4340_v55 }
 0x93d   : > { %8238 = vrcp.f32 %v4113_v5  ;;  %v3663_v22 = vpop.xlane.xlu0 %3662  ;;  %v4343_v30 = vmul.f32 %v8227_v48, %v11433_v21  ;;  %v4342_v44 = vmul.f32 %v8227_v48, %v11428_v60  ;;  %7212 = vmatpush3.bf16.msra.mxu0 %v4678_v36  ;;  %v4040_v58 = vmul.f32 1.442695, %v3788_v32  ;;  %v13321_v32 = vld [vmem:[#allocation62_spill] sm:$0xff] }
 0x93e   : > { %v4042_v43 = vmul.f32 1.442695, %v3789_v33  ;;  %v3790_v29 = vsub.f32 %v11344_v56, %v3663_v22  ;;  %v3791_v12 = vsub.f32 %v11346_v10, %v3663_v22  ;;  %7213 = vmatprep.subr.bf16.mxu0 %v4687_v52  ;;  %v4116_v50 = vpop.xlane.xlu1 %4115  ;;  %v13320_v52 = vld [vmem:[#allocation69_spill] sm:$0xff] }
 0x93f   : > { %4471 = vst [vmem:[%s9747_s3 + $0x138] sm:$0xff] %v4343_v30  ;;  %v4579_v9 = vpack.c.bf16 %v4343_v30, %v4341_v24  ;;  %4470 = vst [vmem:[%s9747_s3 + $0x130] sm:$0xff] %v4342_v44  ;;  %v4578_v4 = vpack.c.bf16 %v4342_v44, %v4340_v55  ;;  %8240 = vpow2.f32 %v4040_v58  ;;  %v13319_v24 = vld [vmem:[#allocation61_spill] sm:$0xff] }
 0x940   : > { %v4044_v21 = vmul.f32 1.442695, %v3790_v29  ;;  %v4046_v62 = vmul.f32 1.442695, %v3791_v12  ;;  %8242 = vpow2.f32 %v4042_v43  ;;  %v13322_v22 = vld [vmem:[#allocation149_spill] sm:$0xff] }
 0x941   : > { %4825 = vmatprep.mubr.bf16.mxu0 %v4579_v9  ;;  %v4119_v60 = vpop.xlane.xlu0 %4118  ;;  %7214 = vmatpush3.bf16.msra.mxu0 %v4679_v27  ;;  %v11934_v40 = vpop.eup %8228 }
 0x942   : > { %8244 = vpow2.f32 %v4044_v21  ;;  %4826 = vmatmul.mubr.bf16.gmra.mrb[84].mxu0 %v4578_v4  ;;  %v11936_v56 = vpop.eup %8230  ;;  %v4074_v10 = vpop.xlane.xlu1 %4073 }
 0x943   : > { %8246 = vpow2.f32 %v4046_v62  ;;  %v4186_v23 = vadd.f32 %v11936_v56, %v11934_v40 }
 0x944   : > { %v11938_v0 = vpop.eup %8232  ;;  %8248 = vrcp.f32 %v4116_v50 }
 0x945   : > { %v11942_v17 = vpop.eup %8234  ;;  %8250 = vrcp.f32 %v4119_v60  ;;  %v4077_v63 = vpop.xlane.xlu0 %4076  ;;  %4187 = vadd.xlane.f32.xlu1 %v4186_v23 }
 0x946   : > { %v8237_v5 = vpop.eup %8236  ;;  %8252 = vrcp.f32 %v4074_v10  ;;  %v4189_v42 = vadd.f32 %v11942_v17, %v11938_v0  ;;  %v4122_v11 = vpop.xlane.xlu1 %4121 }
 0x947   : > { %v8239_v36 = vpop.eup %8238  ;;  %8254 = vrcp.f32 %v4077_v63  ;;  %v4345_v55 = vmul.f32 %v8237_v5, %v13319_v24  ;;  %v4344_v48 = vmul.f32 %v8237_v5, %v13320_v52  ;;  %v13323_v63 = vld [vmem:[#allocation64_spill] sm:$0xff] }
 0x948   : > { %8256 = vrcp.f32 %v4122_v11  ;;  %4190 = vadd.xlane.f32.xlu0 %v4189_v42  ;;  %v4347_v33 = vmul.f32 %v8239_v36, %v13321_v32  ;;  %v4346_v30 = vmul.f32 %v8239_v36, %v13322_v22  ;;  %v13324_v42 = vld [vmem:[#allocation76_spill] sm:$0xff] }
 0x949   : > { %4473 = vst [vmem:[%s9747_s3 + $0x148] sm:$0xff] %v4345_v55  ;;  %v4125_v44 = vpop.xlane.xlu0 %4124  ;;  %4472 = vst [vmem:[%s9747_s3 + $0x140] sm:$0xff] %v4344_v48  ;;  %v11952_v58 = vpop.eup %8240 }
 0x94a   : > { %4475 = vst [vmem:[%s9747_s3 + $0x158] sm:$0xff] %v4347_v33  ;;  %v4581_v43 = vpack.c.bf16 %v4347_v33, %v4345_v55  ;;  %8258 = vrcp.f32 %v4125_v44  ;;  %4474 = vst [vmem:[%s9747_s3 + $0x150] sm:$0xff] %v4346_v30  ;;  %v4580_v29 = vpack.c.bf16 %v4346_v30, %v4344_v48  ;;  %v11956_v12 = vpop.eup %8242  ;;  %v4080_v27 = vpop.xlane.xlu1 %4079  ;;  %v13325_v44 = vld [vmem:[#allocation63_spill] sm:$0xff] }
 0x94b   : > { %8260 = vrcp.f32 %v4080_v27  ;;  %v4234_v9 = vadd.f32 %v11956_v12, %v11952_v58 }
 0x94c   : > { %v11958_v50 = vpop.eup %8244  ;;  %4833 = vmatprep.mubr.bf16.mxu0 %v4581_v43 }
 0x94d   : > { %v11962_v4 = vpop.eup %8246  ;;  %4834 = vmatmul.mubr.bf16.gmra.mrb[88].mxu0 %v4580_v29  ;;  %v4083_v21 = vpop.xlane.xlu0 %4082  ;;  %4235 = vadd.xlane.f32.xlu1 %v4234_v9  ;;  %v13326_v29 = vld [vmem:[#allocation74_spill] sm:$0xff] }
 0x94e   : > { %v8249_v62 = vpop.eup %8248  ;;  %8262 = vrcp.f32 %v4083_v21  ;;  %v4237_v60 = vadd.f32 %v11962_v4, %v11958_v50  ;;  %v4128_v23 = vpop.xlane.xlu1 %4127 }
 0x94f   : > { %v8251_v10 = vpop.eup %8250  ;;  %v4349_v5 = vmul.f32 %v8249_v62, %v13323_v63  ;;  %v4348_v36 = vmul.f32 %v8249_v62, %v13324_v42  ;;  %8264 = vrcp.f32 %v4128_v23  ;;  %v13329_v63 = vld [vmem:[#allocation84_spill] sm:$0xff]  ;;  %v13330_v42 = vld [vmem:[#allocation83_spill] sm:$0xff] }
 0x950   : > { %v8253_v11 = vpop.eup %8252  ;;  %4238 = vadd.xlane.f32.xlu0 %v4237_v60  ;;  %v4351_v24 = vmul.f32 %v8251_v10, %v11506_v20  ;;  %v4350_v55 = vmul.f32 %v8251_v10, %v11501_v3 }
 0x951   : > { %v8255_v52 = vpop.eup %8254  ;;  %4477 = vst [vmem:[%s9747_s3 + $0x168] sm:$0xff] %v4349_v5  ;;  %v4131_v48 = vpop.xlane.xlu0 %4130  ;;  %4476 = vst [vmem:[%s9747_s3 + $0x160] sm:$0xff] %v4348_v36  ;;  %v4321_v32 = vmul.f32 %v8253_v11, %v11452_v34  ;;  %v4320_v33 = vmul.f32 %v8253_v11, %v11450_v13  ;;  %v13327_v34 = vld [vmem:[#allocation67_spill] sm:$0xff]  ;;  %v13328_v13 = vld [vmem:[#allocation82_spill] sm:$0xff] }
 0x952   : > { %v8257_v22 = vpop.eup %8256  ;;  %4479 = vst [vmem:[%s9747_s3 + $0x178] sm:$0xff] %v4351_v24  ;;  %v4583_v30 = vpack.c.bf16 %v4351_v24, %v4349_v5  ;;  %8266 = vrcp.f32 %v4131_v48  ;;  %4478 = vst [vmem:[%s9747_s3 + $0x170] sm:$0xff] %v4350_v55  ;;  %v4582_v20 = vpack.c.bf16 %v4350_v55, %v4348_v36  ;;  %v4323_v43 = vmul.f32 %v8255_v52, %v13325_v44  ;;  %v4086_v3 = vpop.xlane.xlu1 %4085 }
 0x953   : > { %4449 = vst [vmem:[%s9747_s3 + $0x88] sm:$0xff] %v4321_v32  ;;  %v4322_v27 = vmul.f32 %v8255_v52, %v13326_v29  ;;  %4448 = vst [vmem:[%s9747_s3 + $0x80] sm:$0xff] %v4320_v33  ;;  %v4353_v9 = vmul.f32 %v8257_v22, %v13327_v34  ;;  %v4352_v21 = vmul.f32 %v8257_v22, %v13328_v13  ;;  %8268 = vrcp.f32 %v4086_v3  ;;  %v13331_v52 = vld [vmem:[#allocation75_spill] sm:$0xff]  ;;  %v13332_v22 = vld [vmem:[#allocation81_spill] sm:$0xff] }
 0x954   : > { %v8259_v62 = vpop.eup %8258  ;;  %4841 = vmatprep.mubr.bf16.mxu0 %v4583_v30  ;;  %4451 = vst [vmem:[%s9747_s3 + $0x98] sm:$0xff] %v4323_v43  ;;  %v4569_v60 = vpack.c.bf16 %v4323_v43, %v4321_v32 }
 0x955   : > { %4842 = vmatmul.mubr.bf16.gmra.mrb[92].mxu0 %v4582_v20  ;;  %v4089_v10 = vpop.xlane.xlu0 %4088  ;;  %4450 = vst [vmem:[%s9747_s3 + $0x90] sm:$0xff] %v4322_v27  ;;  %v4568_v23 = vpack.c.bf16 %v4322_v27, %v4320_v33  ;;  %v4355_v5 = vmul.f32 %v8259_v62, %v13329_v63  ;;  %4481 = vst [vmem:[%s9747_s3 + $0x188] sm:$0xff] %v4353_v9  ;;  %v4354_v36 = vmul.f32 %v8259_v62, %v13330_v42  ;;  %v8261_v11 = vpop.eup %8260  ;;  %v13333_v20 = vld [vmem:[#allocation65_spill] sm:$0xff]  ;;  %v13334_v27 = vld [vmem:[#allocation72_spill] sm:$0xff] }
 0x956   : > { %4480 = vst [vmem:[%s9747_s3 + $0x180] sm:$0xff] %v4352_v21  ;;  %4752 = vmatprep.mubr.bf16.mxu1 %v4569_v60  ;;  %8270 = vrcp.f32 %v4089_v10  ;;  %v4325_v55 = vmul.f32 %v8261_v11, %v11516_v16  ;;  %v4324_v48 = vmul.f32 %v8261_v11, %v13331_v52  ;;  %v13336_v60 = vld [vmem:[#allocation89_spill] sm:$0xff]  ;;  %v13338_v11 = vld [vmem:[#allocation68_spill] sm:$0xff] }
 0x957   : > { %4753 = vmatmul.mubr.bf16.gmra.mrb[80].mxu1 %v4568_v23  ;;  %4483 = vst [vmem:[%s9747_s3 + $0x198] sm:$0xff] %v4355_v5  ;;  %v4585_v24 = vpack.c.bf16 %v4355_v5, %v4353_v9  ;;  %4482 = vst [vmem:[%s9747_s3 + $0x190] sm:$0xff] %v4354_v36  ;;  %v4584_v33 = vpack.c.bf16 %v4354_v36, %v4352_v21  ;;  %v13335_v21 = vld [vmem:[#allocation71_spill] sm:$0xff]  ;;  %v13337_v23 = vld [vmem:[#allocation73_spill] sm:$0xff] }
 0x958   : > { %v8263_v32 = vpop.eup %8262  ;;  %4453 = vst [vmem:[%s9747_s3 + $0xa8] sm:$0xff] %v4325_v55  ;;  %4452 = vst [vmem:[%s9747_s3 + $0xa0] sm:$0xff] %v4324_v48 }
 0x959   : > { %4849 = vmatprep.mubr.bf16.mxu0 %v4585_v24  ;;  %v4327_v30 = vmul.f32 %v8263_v32, %v13332_v22  ;;  %v4326_v44 = vmul.f32 %v8263_v32, %v13333_v20  ;;  %v8265_v43 = vpop.eup %8264 }
 0x95a   : > { %v4134_v3 = vpop.xlane.xlu1 %4133  ;;  %v4357_v34 = vmul.f32 %v8265_v43, %v13334_v27  ;;  %v4356_v62 = vmul.f32 %v8265_v43, %v13335_v21  ;;  %v13343_v21 = vld [vmem:[#allocation106_spill] sm:$0xff] }
 0x95b   : > { %8272 = vrcp.f32 %v4134_v3  ;;  %4455 = vst [vmem:[%s9747_s3 + $0xb8] sm:$0xff] %v4327_v30  ;;  %v4571_v29 = vpack.c.bf16 %v4327_v30, %v4325_v55  ;;  %4454 = vst [vmem:[%s9747_s3 + $0xb0] sm:$0xff] %v4326_v44  ;;  %v4570_v16 = vpack.c.bf16 %v4326_v44, %v4324_v48  ;;  %v13339_v48 = vld [vmem:[#allocation66_spill] sm:$0xff] }
 0x95c   : > { %v8267_v9 = vpop.eup %8266  ;;  %v4137_v13 = vpop.xlane.xlu0 %4136  ;;  %4485 = vst [vmem:[%s9747_s3 + $0x1a8] sm:$0xff] %v4357_v34  ;;  %4484 = vst [vmem:[%s9747_s3 + $0x1a0] sm:$0xff] %v4356_v62  ;;  %v13340_v30 = vld [vmem:[#allocation70_spill] sm:$0xff] }
 0x95d   : > { %4850 = vmatmul.mubr.bf16.gmra.mrb[96].mxu0 %v4584_v33  ;;  %4760 = vmatprep.mubr.bf16.mxu1 %v4571_v29  ;;  %8274 = vrcp.f32 %v4137_v13  ;;  %v4359_v10 = vmul.f32 %v8267_v9, %v13336_v60  ;;  %v4358_v63 = vmul.f32 %v8267_v9, %v13337_v23  ;;  %v8269_v5 = vpop.eup %8268  ;;  %v13342_v9 = vld [vmem:[#allocation94_spill] sm:$0xff] }
 0x95e   : > { %v4092_v42 = vpop.xlane.xlu1 %4091  ;;  %v4329_v24 = vmul.f32 %v8269_v5, %v13338_v11  ;;  %v4328_v32 = vmul.f32 %v8269_v5, %v13339_v48  ;;  %v13345_v11 = vld [vmem:[#allocation77_spill] sm:$0xff]  ;;  %v13347_v48 = vld [vmem:[#allocation78_spill] sm:$0xff] }
 0x95f   : > { %4761 = vmatmul.mubr.bf16.gmra.mrb[84].mxu1 %v4570_v16  ;;  %8276 = vrcp.f32 %v4092_v42  ;;  %4487 = vst [vmem:[%s9747_s3 + $0x1b8] sm:$0xff] %v4359_v10  ;;  %v4587_v36 = vpack.c.bf16 %v4359_v10, %v4357_v34  ;;  %4486 = vst [vmem:[%s9747_s3 + $0x1b0] sm:$0xff] %v4358_v63  ;;  %v4586_v33 = vpack.c.bf16 %v4358_v63, %v4356_v62  ;;  %v13341_v16 = vld [vmem:[#allocation104_spill] sm:$0xff]  ;;  %v13344_v63 = vld [vmem:[#allocation150_spill] sm:$0xff] }
 0x960   : > { %v8271_v55 = vpop.eup %8270  ;;  %v4095_v52 = vpop.xlane.xlu0 %4094  ;;  %4457 = vst [vmem:[%s9747_s3 + $0xc8] sm:$0xff] %v4329_v24  ;;  %4456 = vst [vmem:[%s9747_s3 + $0xc0] sm:$0xff] %v4328_v32 }
 0x961   : > { %4857 = vmatprep.mubr.bf16.mxu0 %v4587_v36  ;;  %8278 = vrcp.f32 %v4095_v52  ;;  %v4331_v22 = vmul.f32 %v8271_v55, %v11562_v45  ;;  %v4330_v20 = vmul.f32 %v8271_v55, %v13340_v30  ;;  %v13346_v55 = vld [vmem:[#allocation151_spill] sm:$0xff] }
 0x963   : > { %4459 = vst [vmem:[%s9747_s3 + $0xd8] sm:$0xff] %v4331_v22  ;;  %v4573_v44 = vpack.c.bf16 %v4331_v22, %v4329_v24  ;;  %4458 = vst [vmem:[%s9747_s3 + $0xd0] sm:$0xff] %v4330_v20  ;;  %v4572_v43 = vpack.c.bf16 %v4330_v20, %v4328_v32 }
 0x965   : > { %v8273_v3 = vpop.eup %8272  ;;  %4858 = vmatmul.mubr.bf16.gmra.mrb[100].mxu0 %v4586_v33  ;;  %4768 = vmatprep.mubr.bf16.mxu1 %v4573_v44 }
 0x966   : > { %v4361_v29 = vmul.f32 %v8273_v3, %v11621_v39  ;;  %v4360_v27 = vmul.f32 %v8273_v3, %v13341_v16 }
 0x967   : > { %v8275_v45 = vpop.eup %8274  ;;  %4769 = vmatmul.mubr.bf16.gmra.mrb[88].mxu1 %v4572_v43  ;;  %v4140_v34 = vpop.xlane.xlu1 %4139 }
 0x968   : > { %8280 = vrcp.f32 %v4140_v34  ;;  %v4363_v13 = vmul.f32 %v8275_v45, %v13342_v9  ;;  %4489 = vst [vmem:[%s9747_s3 + $0x1c8] sm:$0xff] %v4361_v29  ;;  %v4362_v62 = vmul.f32 %v8275_v45, %v13343_v21  ;;  %4488 = vst [vmem:[%s9747_s3 + $0x1c0] sm:$0xff] %v4360_v27  ;;  %v4143_v10 = vpop.xlane.xlu0 %4142  ;;  %v13348_v9 = vld [vmem:[#allocation80_spill] sm:$0xff] }
 0x969   : > { %v8277_v60 = vpop.eup %8276  ;;  %8282 = vrcp.f32 %v4143_v10 }
 0x96a   : > { %4491 = vst [vmem:[%s9747_s3 + $0x1d8] sm:$0xff] %v4363_v13  ;;  %v4589_v23 = vpack.c.bf16 %v4363_v13, %v4361_v29  ;;  %4490 = vst [vmem:[%s9747_s3 + $0x1d0] sm:$0xff] %v4362_v62  ;;  %v4588_v39 = vpack.c.bf16 %v4362_v62, %v4360_v27  ;;  %v4333_v5 = vmul.f32 %v8277_v60, %v13344_v63  ;;  %v13349_v62 = vld [vmem:[#allocation102_spill] sm:$0xff] }
 0x96b   : > { %v8279_v42 = vpop.eup %8278  ;;  %v4146_v36 = vpop.xlane.xlu1 %4145  ;;  %v4332_v24 = vmul.f32 %v8277_v60, %v13345_v11 }
 0x96c   : > { %8284 = vrcp.f32 %v4146_v36  ;;  %4865 = vmatprep.mubr.bf16.mxu0 %v4589_v23  ;;  %v4335_v52 = vmul.f32 %v8279_v42, %v13346_v55  ;;  %4461 = vst [vmem:[%s9747_s3 + $0xe8] sm:$0xff] %v4333_v5  ;;  %v4334_v32 = vmul.f32 %v8279_v42, %v13347_v48  ;;  %v4149_v33 = vpop.xlane.xlu0 %4148  ;;  %v13350_v23 = vld [vmem:[#allocation95_spill] sm:$0xff] }
 0x96d   : > { %4866 = vmatmul.mubr.bf16.gmra.mrb[104].mxu0 %v4588_v39  ;;  %4460 = vst [vmem:[%s9747_s3 + $0xe0] sm:$0xff] %v4332_v24  ;;  %8286 = vrcp.f32 %v4149_v33  ;;  %v13352_v36 = vld [vmem:[#allocation79_spill] sm:$0xff] }
 0x96e   : > { %4463 = vst [vmem:[%s9747_s3 + $0xf8] sm:$0xff] %v4335_v52  ;;  %v4575_v22 = vpack.c.bf16 %v4335_v52, %v4333_v5  ;;  %4462 = vst [vmem:[%s9747_s3 + $0xf0] sm:$0xff] %v4334_v32  ;;  %v4574_v30 = vpack.c.bf16 %v4334_v32, %v4332_v24 }
 0x96f   : > { %v4194_v20 = vpop.xlane.xlu1 %4193 }
 0x970   : > { %8288 = vrcp.f32 %v4194_v20  ;;  %4776 = vmatprep.mubr.bf16.mxu1 %v4575_v22  ;;  %v4197_v44 = vpop.xlane.xlu0 %4196 }
 0x971   : > { %4777 = vmatmul.mubr.bf16.gmra.mrb[92].mxu1 %v4574_v30  ;;  %8290 = vrcp.f32 %v4197_v44  ;;  %v13353_v44 = vld [vmem:[#allocation86_spill] sm:$0xff] }
 0x972   : > { %v8281_v43 = vpop.eup %8280 }
 0x973   : > { %v4152_v3 = vpop.xlane.xlu1 %4151  ;;  %v4365_v29 = vmul.f32 %v8281_v43, %v11670_v47  ;;  %v4364_v16 = vmul.f32 %v8281_v43, %v11666_v41  ;;  %v8283_v27 = vpop.eup %8282 }
 0x974   : > { %8292 = vrcp.f32 %v4152_v3  ;;  %v4155_v45 = vpop.xlane.xlu0 %4154  ;;  %v4367_v34 = vmul.f32 %v8283_v27, %v11678_v26  ;;  %v4366_v13 = vmul.f32 %v8283_v27, %v13348_v9  ;;  %v13351_v26 = vld [vmem:[#allocation108_spill] sm:$0xff] }
 0x975   : > { %4493 = vst [vmem:[%s9747_s3 + $0x1e8] sm:$0xff] %v4365_v29  ;;  %4492 = vst [vmem:[%s9747_s3 + $0x1e0] sm:$0xff] %v4364_v16  ;;  %8294 = vrcp.f32 %v4155_v45 }
 0x976   : > { %v8285_v21 = vpop.eup %8284  ;;  %4495 = vst [vmem:[%s9747_s3 + $0x1f8] sm:$0xff] %v4367_v34  ;;  %v4591_v47 = vpack.c.bf16 %v4367_v34, %v4365_v29  ;;  %4494 = vst [vmem:[%s9747_s3 + $0x1f0] sm:$0xff] %v4366_v13  ;;  %v4590_v41 = vpack.c.bf16 %v4366_v13, %v4364_v16  ;;  %v13354_v34 = vld [vmem:[#allocation120_spill] sm:$0xff]  ;;  %v13355_v13 = vld [vmem:[#allocation85_spill] sm:$0xff] }
 0x977   : > { %v4368_v60 = vmul.f32 %v8285_v21, %v13349_v62  ;;  %v4200_v10 = vpop.xlane.xlu1 %4199  ;;  %v4369_v39 = vmul.f32 %v8285_v21, %v13350_v23  ;;  %v8287_v63 = vpop.eup %8286 }
 0x978   : > { %8296 = vrcp.f32 %v4200_v10  ;;  %v4370_v5 = vmul.f32 %v8287_v63, %v13351_v26  ;;  %4873 = vmatprep.mubr.bf16.mxu0 %v4591_v47  ;;  %v4203_v42 = vpop.xlane.xlu0 %4202  ;;  %v4371_v11 = vmul.f32 %v8287_v63, %v13352_v36  ;;  %v13356_v10 = vld [vmem:[#allocation107_spill] sm:$0xff] }
 0x979   : > { %4496 = vst [vmem:[%s9747_s3 + $0x200] sm:$0xff] %v4368_v60  ;;  %4497 = vst [vmem:[%s9747_s3 + $0x208] sm:$0xff] %v4369_v39  ;;  %8298 = vrcp.f32 %v4203_v42  ;;  %4874 = vmatmul.mubr.bf16.gmra.mrb[108].mxu0 %v4590_v41  ;;  %v13357_v41 = vld [vmem:[#allocation118_spill] sm:$0xff] }
 0x97a   : > { %v8289_v24 = vpop.eup %8288  ;;  %4498 = vst [vmem:[%s9747_s3 + $0x210] sm:$0xff] %v4370_v5  ;;  %4499 = vst [vmem:[%s9747_s3 + $0x218] sm:$0xff] %v4371_v11  ;;  %v4593_v48 = vpack.c.bf16 %v4371_v11, %v4369_v39  ;;  %v4592_v32 = vpack.c.bf16 %v4370_v5, %v4368_v60 }
 0x97b   : > { %v4400_v55 = vmul.f32 %v8289_v24, %v11697_v59  ;;  %v4158_v52 = vpop.xlane.xlu1 %4157  ;;  %v4401_v33 = vmul.f32 %v8289_v24, %v11702_v7  ;;  %v8291_v22 = vpop.eup %8290 }
 0x97c   : > { %8300 = vrcp.f32 %v4158_v52  ;;  %v4402_v30 = vmul.f32 %v8291_v22, %v11709_v54  ;;  %4914 = vmatprep.mubr.bf16.mxu1 %v4593_v48  ;;  %v4161_v20 = vpop.xlane.xlu0 %4160  ;;  %v4403_v43 = vmul.f32 %v8291_v22, %v13353_v44  ;;  %v13358_v48 = vld [vmem:[#allocation123_spill] sm:$0xff]  ;;  %v13360_v44 = vld [vmem:[#allocation110_spill] sm:$0xff] }
 0x97d   : > { %4528 = vst [vmem:[%s9747_s3 + $0x300] sm:$0xff] %v4400_v55  ;;  %4529 = vst [vmem:[%s9747_s3 + $0x308] sm:$0xff] %v4401_v33  ;;  %8302 = vrcp.f32 %v4161_v20  ;;  %4915 = vmatmul.mubr.bf16.vlgmr.msra.gmra.mrb[96].mxu1 %v4592_v32 }
 0x97e   : > { %v8293_v59 = vpop.eup %8292  ;;  %4530 = vst [vmem:[%s9747_s3 + $0x310] sm:$0xff] %v4402_v30  ;;  %4531 = vst [vmem:[%s9747_s3 + $0x318] sm:$0xff] %v4403_v43  ;;  %v4609_v29 = vpack.c.bf16 %v4403_v43, %v4401_v33  ;;  %v4608_v7 = vpack.c.bf16 %v4402_v30, %v4400_v55  ;;  %v13359_v33 = vld [vmem:[#allocation109_spill] sm:$0xff] }
 0x97f   : > { %v4206_v3 = vpop.xlane.xlu1 %4205  ;;  %v4373_v16 = vmul.f32 %v8293_v59, %v11659_v15  ;;  %v4372_v54 = vmul.f32 %v8293_v59, %v11648_v49  ;;  %v8295_v27 = vpop.eup %8294  ;;  %v13361_v59 = vld [vmem:[#allocation122_spill] sm:$0xff] }
 0x980   : > { %8304 = vrcp.f32 %v4206_v3  ;;  %5011 = vmatprep.mubr.bf16.mxu0 %v4609_v29  ;;  %v4209_v45 = vpop.xlane.xlu0 %4208  ;;  %v4375_v9 = vmul.f32 %v8295_v27, %v13354_v34  ;;  %v4374_v21 = vmul.f32 %v8295_v27, %v13355_v13  ;;  %v13363_v27 = vld [vmem:[#allocation111_spill] sm:$0xff] }
 0x981   : > { %4501 = vst [vmem:[%s9747_s3 + $0x228] sm:$0xff] %v4373_v16  ;;  %4500 = vst [vmem:[%s9747_s3 + $0x220] sm:$0xff] %v4372_v54  ;;  %8306 = vrcp.f32 %v4209_v45  ;;  %5012 = vmatmul.mubr.bf16.vlgmr.msra.gmra.mrb[112].mxu0 %v4608_v7 }
 0x982   : > { %v8297_v62 = vpop.eup %8296  ;;  %4503 = vst [vmem:[%s9747_s3 + $0x238] sm:$0xff] %v4375_v9  ;;  %v4595_v15 = vpack.c.bf16 %v4375_v9, %v4373_v16  ;;  %4502 = vst [vmem:[%s9747_s3 + $0x230] sm:$0xff] %v4374_v21  ;;  %v4594_v49 = vpack.c.bf16 %v4374_v21, %v4372_v54  ;;  %v13362_v16 = vld [vmem:[#allocation87_spill] sm:$0xff] }
 0x983   : > { %v4164_v60 = vpop.xlane.xlu1 %4163  ;;  %v4405_v47 = vmul.f32 %v8297_v62, %v13356_v10  ;;  %v4404_v23 = vmul.f32 %v8297_v62, %v13357_v41  ;;  %v8299_v39 = vpop.eup %8298  ;;  %v13364_v10 = vld [vmem:[#allocation116_spill] sm:$0xff] }
 0x984   : > { %8308 = vrcp.f32 %v4164_v60  ;;  %4922 = vmatprep.mubr.bf16.mxu1 %v4595_v15  ;;  %v4167_v63 = vpop.xlane.xlu0 %4166  ;;  %v4407_v26 = vmul.f32 %v8299_v39, %v11746_v19  ;;  %v4406_v5 = vmul.f32 %v8299_v39, %v11740_v61  ;;  %v13365_v41 = vld [vmem:[#allocation88_spill] sm:$0xff] }
 0x985   : > { %4533 = vst [vmem:[%s9747_s3 + $0x328] sm:$0xff] %v4405_v47  ;;  %4532 = vst [vmem:[%s9747_s3 + $0x320] sm:$0xff] %v4404_v23  ;;  %8310 = vrcp.f32 %v4167_v63  ;;  %4923 = vmatmul.mubr.bf16.gmra.mrb[100].mxu1 %v4594_v49 }
 0x986   : > { %v8301_v42 = vpop.eup %8300  ;;  %4535 = vst [vmem:[%s9747_s3 + $0x338] sm:$0xff] %v4407_v26  ;;  %v4611_v11 = vpack.c.bf16 %v4407_v26, %v4405_v47  ;;  %4534 = vst [vmem:[%s9747_s3 + $0x330] sm:$0xff] %v4406_v5  ;;  %v4610_v24 = vpack.c.bf16 %v4406_v5, %v4404_v23  ;;  %v13366_v26 = vld [vmem:[#allocation117_spill] sm:$0xff] }
 0x987   : > { %v4212_v36 = vpop.xlane.xlu1 %4211  ;;  %v4377_v55 = vmul.f32 %v8301_v42, %v11729_v53  ;;  %v4376_v19 = vmul.f32 %v8301_v42, %v11724_v46  ;;  %v8303_v52 = vpop.eup %8302  ;;  %v13367_v42 = vld [vmem:[#allocation128_spill] sm:$0xff] }
 0x988   : > { %8312 = vrcp.f32 %v4212_v36  ;;  %5019 = vmatprep.mubr.bf16.mxu0 %v4611_v11  ;;  %v4215_v61 = vpop.xlane.xlu0 %4214  ;;  %v4379_v32 = vmul.f32 %v8303_v52, %v13358_v48  ;;  %v4378_v22 = vmul.f32 %v8303_v52, %v13359_v33  ;;  %v13369_v52 = vld [vmem:[#allocation119_spill] sm:$0xff] }
 0x989   : > { %4505 = vst [vmem:[%s9747_s3 + $0x248] sm:$0xff] %v4377_v55  ;;  %4504 = vst [vmem:[%s9747_s3 + $0x240] sm:$0xff] %v4376_v19  ;;  %8314 = vrcp.f32 %v4215_v61  ;;  %5020 = vmatmul.mubr.bf16.gmra.mrb[116].mxu0 %v4610_v24 }
 0x98a   : > { %v8305_v30 = vpop.eup %8304  ;;  %4507 = vst [vmem:[%s9747_s3 + $0x258] sm:$0xff] %v4379_v32  ;;  %v4597_v53 = vpack.c.bf16 %v4379_v32, %v4377_v55  ;;  %4506 = vst [vmem:[%s9747_s3 + $0x250] sm:$0xff] %v4378_v22  ;;  %v4596_v46 = vpack.c.bf16 %v4378_v22, %v4376_v19  ;;  %v13368_v55 = vld [vmem:[#allocation131_spill] sm:$0xff] }
 0x98b   : > { %v4170_v20 = vpop.xlane.xlu1 %4169  ;;  %v4409_v43 = vmul.f32 %v8305_v30, %v13360_v44  ;;  %v4408_v3 = vmul.f32 %v8305_v30, %v13361_v59  ;;  %v8307_v29 = vpop.eup %8306 }
 0x98c   : > { %8316 = vrcp.f32 %v4170_v20  ;;  %4930 = vmatprep.mubr.bf16.mxu1 %v4597_v53  ;;  %v4173_v7 = vpop.xlane.xlu0 %4172  ;;  %v4411_v54 = vmul.f32 %v8307_v29, %v13362_v16  ;;  %v4410_v45 = vmul.f32 %v8307_v29, %v13363_v27 }
 0x98d   : > { %4537 = vst [vmem:[%s9747_s3 + $0x348] sm:$0xff] %v4409_v43  ;;  %4536 = vst [vmem:[%s9747_s3 + $0x340] sm:$0xff] %v4408_v3  ;;  %8318 = vrcp.f32 %v4173_v7  ;;  %4931 = vmatmul.mubr.bf16.gmra.mrb[104].mxu1 %v4596_v46 }
 0x98e   : > { %v8309_v34 = vpop.eup %8308  ;;  %4539 = vst [vmem:[%s9747_s3 + $0x358] sm:$0xff] %v4411_v54  ;;  %v4613_v13 = vpack.c.bf16 %v4411_v54, %v4409_v43  ;;  %4538 = vst [vmem:[%s9747_s3 + $0x350] sm:$0xff] %v4410_v45  ;;  %v4612_v21 = vpack.c.bf16 %v4410_v45, %v4408_v3 }
 0x98f   : > { %v4218_v9 = vpop.xlane.xlu1 %4217  ;;  %v4381_v62 = vmul.f32 %v8309_v34, %v11788_v8  ;;  %v4380_v60 = vmul.f32 %v8309_v34, %v11782_v28  ;;  %v8311_v15 = vpop.eup %8310 }
 0x990   : > { %8320 = vrcp.f32 %v4218_v9  ;;  %5027 = vmatprep.mubr.bf16.mxu0 %v4613_v13  ;;  %v4221_v49 = vpop.xlane.xlu0 %4220  ;;  %v4383_v47 = vmul.f32 %v8311_v15, %v13364_v10  ;;  %v4382_v23 = vmul.f32 %v8311_v15, %v13365_v41  ;;  %v13370_v41 = vld [vmem:[#allocation121_spill] sm:$0xff] }
 0x991   : > { %4509 = vst [vmem:[%s9747_s3 + $0x268] sm:$0xff] %v4381_v62  ;;  %4508 = vst [vmem:[%s9747_s3 + $0x260] sm:$0xff] %v4380_v60  ;;  %8322 = vrcp.f32 %v4221_v49  ;;  %5028 = vmatmul.mubr.bf16.gmra.mrb[120].mxu0 %v4612_v21 }
 0x992   : > { %v8313_v39 = vpop.eup %8312  ;;  %4511 = vst [vmem:[%s9747_s3 + $0x278] sm:$0xff] %v4383_v47  ;;  %v4599_v8 = vpack.c.bf16 %v4383_v47, %v4381_v62  ;;  %4510 = vst [vmem:[%s9747_s3 + $0x270] sm:$0xff] %v4382_v23  ;;  %v4598_v28 = vpack.c.bf16 %v4382_v23, %v4380_v60  ;;  %v13371_v23 = vld [vmem:[#allocation126_spill] sm:$0xff] }
 0x993   : > { %v4176_v63 = vpop.xlane.xlu1 %4175  ;;  %v4413_v5 = vmul.f32 %v8313_v39, %v13366_v26  ;;  %v4412_v36 = vmul.f32 %v8313_v39, %v13367_v42  ;;  %v8315_v11 = vpop.eup %8314  ;;  %v13373_v26 = vld [vmem:[#allocation90_spill] sm:$0xff] }
 0x994   : > { %8324 = vrcp.f32 %v4176_v63  ;;  %4938 = vmatprep.mubr.bf16.mxu1 %v4599_v8  ;;  %v4179_v24 = vpop.xlane.xlu0 %4178  ;;  %v4415_v19 = vmul.f32 %v8315_v11, %v13368_v55  ;;  %v4414_v61 = vmul.f32 %v8315_v11, %v13369_v52  ;;  %v13372_v8 = vld [vmem:[#allocation130_spill] sm:$0xff] }
 0x995   : > { %4541 = vst [vmem:[%s9747_s3 + $0x368] sm:$0xff] %v4413_v5  ;;  %4540 = vst [vmem:[%s9747_s3 + $0x360] sm:$0xff] %v4412_v36  ;;  %8326 = vrcp.f32 %v4179_v24  ;;  %4939 = vmatmul.mubr.bf16.gmra.mrb[108].mxu1 %v4598_v28  ;;  %v13374_v24 = vld [vmem:[#allocation92_spill] sm:$0xff] }
 0x996   : > { %v8317_v48 = vpop.eup %8316  ;;  %4543 = vst [vmem:[%s9747_s3 + $0x378] sm:$0xff] %v4415_v19  ;;  %v4615_v33 = vpack.c.bf16 %v4415_v19, %v4413_v5  ;;  %4542 = vst [vmem:[%s9747_s3 + $0x370] sm:$0xff] %v4414_v61  ;;  %v4614_v22 = vpack.c.bf16 %v4414_v61, %v4412_v36  ;;  %v13375_v19 = vld [vmem:[#allocation91_spill] sm:$0xff] }
 0x997   : > { %v4224_v32 = vpop.xlane.xlu1 %4223  ;;  %v4385_v30 = vmul.f32 %v8317_v48, %v11824_v31  ;;  %v4384_v20 = vmul.f32 %v8317_v48, %v11818_v6  ;;  %v8319_v53 = vpop.eup %8318  ;;  %v13376_v48 = vld [vmem:[#allocation124_spill] sm:$0xff] }
 0x998   : > { %8328 = vrcp.f32 %v4224_v32  ;;  %5035 = vmatprep.mubr.bf16.mxu0 %v4615_v33  ;;  %v4227_v46 = vpop.xlane.xlu0 %4226  ;;  %v4387_v44 = vmul.f32 %v8319_v53, %v11833_v37  ;;  %v4386_v43 = vmul.f32 %v8319_v53, %v11828_v38  ;;  %v13377_v33 = vld [vmem:[#allocation93_spill] sm:$0xff] }
 0x999   : > { %4513 = vst [vmem:[%s9747_s3 + $0x288] sm:$0xff] %v4385_v30  ;;  %4512 = vst [vmem:[%s9747_s3 + $0x280] sm:$0xff] %v4384_v20  ;;  %8330 = vrcp.f32 %v4227_v46  ;;  %5036 = vmatmul.mubr.bf16.gmra.mrb[124].mxu0 %v4614_v22  ;;  %v13378_v46 = vld [vmem:[#allocation127_spill] sm:$0xff] }
 0x99a   : > { %v8321_v59 = vpop.eup %8320  ;;  %4515 = vst [vmem:[%s9747_s3 + $0x298] sm:$0xff] %v4387_v44  ;;  %v4601_v31 = vpack.c.bf16 %v4387_v44, %v4385_v30  ;;  %4514 = vst [vmem:[%s9747_s3 + $0x290] sm:$0xff] %v4386_v43  ;;  %v4600_v6 = vpack.c.bf16 %v4386_v43, %v4384_v20  ;;  %v13379_v43 = vld [vmem:[#allocation125_spill] sm:$0xff] }
 0x99b   : > { %v4182_v3 = vpop.xlane.xlu1 %4181  ;;  %v4417_v29 = vmul.f32 %v8321_v59, %v11841_v2  ;;  %v4416_v37 = vmul.f32 %v8321_v59, %v11836_v18  ;;  %v8323_v7 = vpop.eup %8322 }
 0x99c   : > { %8332 = vrcp.f32 %v4182_v3  ;;  %4946 = vmatprep.mubr.bf16.mxu1 %v4601_v31  ;;  %v4185_v38 = vpop.xlane.xlu0 %4184  ;;  %v4419_v16 = vmul.f32 %v8323_v7, %v11848_v25  ;;  %v4418_v54 = vmul.f32 %v8323_v7, %v11844_v14  ;;  %v13381_v7 = vld [vmem:[#allocation129_spill] sm:$0xff] }
 0x99d   : > { %4545 = vst [vmem:[%s9747_s3 + $0x388] sm:$0xff] %v4417_v29  ;;  %4544 = vst [vmem:[%s9747_s3 + $0x380] sm:$0xff] %v4416_v37  ;;  %8334 = vrcp.f32 %v4185_v38  ;;  %4947 = vmatmul.mubr.bf16.gmra.mrb[112].mxu1 %v4600_v6 }
 0x99e   : > { %v8325_v27 = vpop.eup %8324  ;;  %4547 = vst [vmem:[%s9747_s3 + $0x398] sm:$0xff] %v4419_v16  ;;  %v4617_v2 = vpack.c.bf16 %v4419_v16, %v4417_v29  ;;  %4546 = vst [vmem:[%s9747_s3 + $0x390] sm:$0xff] %v4418_v54  ;;  %v4616_v18 = vpack.c.bf16 %v4418_v54, %v4416_v37  ;;  %v13380_v29 = vld [vmem:[#allocation96_spill] sm:$0xff] }
 0x99f   : > { %v4230_v45 = vpop.xlane.xlu1 %4229  ;;  %v4389_v34 = vmul.f32 %v8325_v27, %v11854_v51  ;;  %v4388_v9 = vmul.f32 %v8325_v27, %v11850_v57  ;;  %v8327_v13 = vpop.eup %8326 }
 0x9a0   : > { %v7023_v25 = vpop.f32.mrb[64].mxu1  ;;  %8336 = vrcp.f32 %v4230_v45  ;;  %5043 = vmatprep.mubr.bf16.mxu0 %v4617_v2  ;;  %v4233_v21 = vpop.xlane.xlu0 %4232  ;;  %v4391_v62 = vmul.f32 %v8327_v13, %v11860_v1  ;;  %v4390_v60 = vmul.f32 %v8327_v13, %v11856_v35 }
 0x9a1   : > { %v7024_v14 = vpop.f32.mrb[65].mxu1  ;;  %4517 = vst [vmem:[%s9747_s3 + $0x2a8] sm:$0xff] %v4389_v34  ;;  %4516 = vst [vmem:[%s9747_s3 + $0x2a0] sm:$0xff] %v4388_v9  ;;  %8338 = vrcp.f32 %v4233_v21  ;;  %5044 = vmatmul.mubr.bf16.gmra.mrb[128].mxu0 %v4616_v18 }
 0x9a2   : > { %v8329_v15 = vpop.eup %8328  ;;  %v7025_v49 = vadd.f32 %v7024_v14, %v7023_v25  ;;  %v7026_v51 = vpop.f32.mrb[66].mxu1  ;;  %4519 = vst [vmem:[%s9747_s3 + $0x2b8] sm:$0xff] %v4391_v62  ;;  %v4603_v10 = vpack.c.bf16 %v4391_v62, %v4389_v34  ;;  %4518 = vst [vmem:[%s9747_s3 + $0x2b0] sm:$0xff] %v4390_v60  ;;  %v4602_v47 = vpack.c.bf16 %v4390_v60, %v4388_v9 }
 0x9a3   : > { %v7027_v57 = vpop.f32.mrb[67].mxu1  ;;  %v4421_v1 = vmul.f32 %v8329_v15, %v13370_v41  ;;  %v4420_v39 = vmul.f32 %v8329_v15, %v13371_v23  ;;  %v8331_v35 = vpop.eup %8330 }
 0x9a4   : > { %5076 = vst.msk [vmem:[#allocation6] sm:$0xff] %vm2520_vm1, %v7025_v49  ;;  %v7028_v63 = vadd.f32 %v7027_v57, %v7026_v51  ;;  %4954 = vmatprep.mubr.bf16.mxu1 %v4603_v10  ;;  %v4423_v28 = vmul.f32 %v8331_v35, %v13372_v8  ;;  %v4422_v5 = vmul.f32 %v8331_v35, %v13373_v26 }
 0x9a5   : > { %4549 = vst [vmem:[%s9747_s3 + $0x3a8] sm:$0xff] %v4421_v1  ;;  %4548 = vst [vmem:[%s9747_s3 + $0x3a0] sm:$0xff] %v4420_v39  ;;  %4955 = vmatmul.mubr.bf16.gmra.mrb[116].mxu1 %v4602_v47 }
 0x9a6   : > { %v8333_v42 = vpop.eup %8332  ;;  %5077 = vst.msk [vmem:[#allocation6 + $0x8] sm:$0xff] %vm2520_vm1, %v7028_v63  ;;  %4551 = vst [vmem:[%s9747_s3 + $0x3b8] sm:$0xff] %v4423_v28  ;;  %v4619_v36 = vpack.c.bf16 %v4423_v28, %v4421_v1  ;;  %v4618_v11 = vpack.c.bf16 %v4422_v5, %v4420_v39 }
 0x9a7   : > { %4550 = vst [vmem:[%s9747_s3 + $0x3b0] sm:$0xff] %v4422_v5  ;;  %v4393_v55 = vmul.f32 %v8333_v42, %v13374_v24  ;;  %v4392_v52 = vmul.f32 %v8333_v42, %v13375_v19  ;;  %v8335_v61 = vpop.eup %8334 }
 0x9a8   : > { %5051 = vmatprep.mubr.bf16.mxu0 %v4619_v36  ;;  %v4395_v32 = vmul.f32 %v8335_v61, %v13376_v48  ;;  %v4394_v22 = vmul.f32 %v8335_v61, %v13377_v33 }
 0x9a9   : > { %4521 = vst [vmem:[%s9747_s3 + $0x2c8] sm:$0xff] %v4393_v55  ;;  %4520 = vst [vmem:[%s9747_s3 + $0x2c0] sm:$0xff] %v4392_v52  ;;  %5052 = vmatmul.mubr.bf16.gmra.mrb[132].mxu0 %v4618_v11 }
 0x9aa   : > { %v8337_v30 = vpop.eup %8336  ;;  %4523 = vst [vmem:[%s9747_s3 + $0x2d8] sm:$0xff] %v4395_v32  ;;  %v4605_v20 = vpack.c.bf16 %v4395_v32, %v4393_v55  ;;  %4522 = vst [vmem:[%s9747_s3 + $0x2d0] sm:$0xff] %v4394_v22  ;;  %v4604_v53 = vpack.c.bf16 %v4394_v22, %v4392_v52 }
 0x9ab   : > { %v4425_v44 = vmul.f32 %v8337_v30, %v13378_v46  ;;  %v4424_v59 = vmul.f32 %v8337_v30, %v13379_v43  ;;  %v8339_v3 = vpop.eup %8338 }
 0x9ac   : > { %v7029_v31 = vpop.f32.mrb[68].mxu1  ;;  %4962 = vmatprep.mubr.bf16.mxu1 %v4605_v20  ;;  %v4427_v37 = vmul.f32 %v8339_v3, %v13380_v29  ;;  %v4426_v38 = vmul.f32 %v8339_v3, %v13381_v7 }
 0x9ad   : > { %v7030_v6 = vpop.f32.mrb[69].mxu1  ;;  %4553 = vst [vmem:[%s9747_s3 + $0x3c8] sm:$0xff] %v4425_v44  ;;  %4552 = vst [vmem:[%s9747_s3 + $0x3c0] sm:$0xff] %v4424_v59  ;;  %4963 = vmatmul.mubr.bf16.gmra.mrb[120].mxu1 %v4604_v53 }
 0x9ae   : > { %v7031_v16 = vadd.f32 %v7030_v6, %v7029_v31  ;;  %v7032_v54 = vpop.f32.mrb[70].mxu1  ;;  %4555 = vst [vmem:[%s9747_s3 + $0x3d8] sm:$0xff] %v4427_v37  ;;  %v4621_v45 = vpack.c.bf16 %v4427_v37, %v4425_v44  ;;  %4554 = vst [vmem:[%s9747_s3 + $0x3d0] sm:$0xff] %v4426_v38  ;;  %v4620_v2 = vpack.c.bf16 %v4426_v38, %v4424_v59 }
 0x9af   : > { %v7033_v27 = vpop.f32.mrb[71].mxu1 }
 0x9b0   : > { %5078 = vst.msk [vmem:[#allocation6 + $0x10] sm:$0xff] %vm2520_vm1, %v7031_v16  ;;  %v7034_v18 = vadd.f32 %v7033_v27, %v7032_v54  ;;  %5059 = vmatprep.mubr.bf16.mxu0 %v4621_v45 }
 0x9b1   : > { %5060 = vmatmul.mubr.bf16.gmra.mrb[136].mxu0 %v4620_v2 }
 0x9b2   : > { %5079 = vst.msk [vmem:[#allocation6 + $0x18] sm:$0xff] %vm2520_vm1, %v7034_v18 }
 0x9b4   : > { %v7035_v34 = vpop.f32.mrb[72].mxu1 }
 0x9b5   : > { %v7036_v9 = vpop.f32.mrb[73].mxu1 }
 0x9b6   : > { %v7037_v13 = vadd.f32 %v7036_v9, %v7035_v34  ;;  %v7038_v25 = vpop.f32.mrb[74].mxu1 }
 0x9b7   : > { %v7039_v14 = vpop.f32.mrb[75].mxu1 }
 0x9b8   : > { %5080 = vst.msk [vmem:[#allocation6 + $0x20] sm:$0xff] %vm2520_vm1, %v7037_v13  ;;  %v7040_v21 = vadd.f32 %v7039_v14, %v7038_v25 }
 0x9ba   : > { %5081 = vst.msk [vmem:[#allocation6 + $0x28] sm:$0xff] %vm2520_vm1, %v7040_v21 }
 0x9d2   : > { %v4188_v62 = vpop.xlane.xlu1 %4187 }
 0x9d3   : > { %8340 = vrcp.f32 %v4188_v62 }
 0x9d5   : > { %v4191_v60 = vpop.xlane.xlu0 %4190 }
 0x9d6   : > { %8342 = vrcp.f32 %v4191_v60 }
 0x9da   : > { %v4236_v15 = vpop.xlane.xlu1 %4235 }
 0x9db   : > { %8344 = vrcp.f32 %v4236_v15 }
 0x9dd   : > { %v4239_v49 = vpop.xlane.xlu0 %4238  ;;  %v8341_v51 = vpop.eup %8340 }
 0x9de   : > { %8346 = vrcp.f32 %v4239_v49  ;;  %v4397_v57 = vmul.f32 %v8341_v51, %v11936_v56  ;;  %v4396_v10 = vmul.f32 %v8341_v51, %v11934_v40 }
 0x9e0   : > { %v8343_v47 = vpop.eup %8342  ;;  %4525 = vst [vmem:[%s9747_s3 + $0x2e8] sm:$0xff] %v4397_v57  ;;  %4524 = vst [vmem:[%s9747_s3 + $0x2e0] sm:$0xff] %v4396_v10 }
 0x9e1   : > { %v4399_v41 = vmul.f32 %v8343_v47, %v11942_v17  ;;  %v4398_v1 = vmul.f32 %v8343_v47, %v11938_v0 }
 0x9e3   : > { %4527 = vst [vmem:[%s9747_s3 + $0x2f8] sm:$0xff] %v4399_v41  ;;  %v4607_v23 = vpack.c.bf16 %v4399_v41, %v4397_v57  ;;  %4526 = vst [vmem:[%s9747_s3 + $0x2f0] sm:$0xff] %v4398_v1  ;;  %v4606_v39 = vpack.c.bf16 %v4398_v1, %v4396_v10 }
 0x9e5   : > { %4970 = vmatprep.mubr.bf16.mxu1 %v4607_v23  ;;  %v8345_v35 = vpop.eup %8344 }
 0x9e6   : > { %4971 = vmatmul.mubr.bf16.gmra.mrb[124].mxu1 %v4606_v39  ;;  %v4429_v40 = vmul.f32 %v8345_v35, %v11956_v12  ;;  %v4428_v56 = vmul.f32 %v8345_v35, %v11952_v58 }
 0x9e8   : > { %v8347_v63 = vpop.eup %8346  ;;  %4557 = vst [vmem:[%s9747_s3 + $0x3e8] sm:$0xff] %v4429_v40  ;;  %4556 = vst [vmem:[%s9747_s3 + $0x3e0] sm:$0xff] %v4428_v56 }
 0x9e9   : > { %v4431_v17 = vmul.f32 %v8347_v63, %v11962_v4  ;;  %v4430_v0 = vmul.f32 %v8347_v63, %v11958_v50 }
 0x9eb   : > { %4559 = vst [vmem:[%s9747_s3 + $0x3f8] sm:$0xff] %v4431_v17  ;;  %v4623_v8 = vpack.c.bf16 %v4431_v17, %v4429_v40  ;;  %4558 = vst [vmem:[%s9747_s3 + $0x3f0] sm:$0xff] %v4430_v0  ;;  %v4622_v28 = vpack.c.bf16 %v4430_v0, %v4428_v56 }
 0x9ed   : > { %5067 = vmatprep.mubr.bf16.mxu0 %v4623_v8 }
 0x9ee   : > { %5068 = vmatmul.mubr.bf16.gmra.mrb[140].mxu0 %v4622_v28 }
 0x9f7   : > { %v7087_v26 = vpop.f32.mrb[80].mxu0 }
 0x9f8   : > { %v7088_v5 = vpop.f32.mrb[81].mxu0 }
 0x9f9   : > { %v7089_v42 = vadd.f32 %v7088_v5, %v7087_v26  ;;  %v7090_v36 = vpop.f32.mrb[82].mxu0 }
 0x9fa   : > { %v7091_v12 = vpop.f32.mrb[83].mxu0  ;;  %v7041_v11 = vpop.f32.mrb[76].mxu1 }
 0x9fb   : > { %v12172_v58 = vadd.f32 %v7091_v12, %v7090_v36  ;;  %5108 = vrot.lane.b32.xlu1 %v7089_v42, %s9059_s1  ;;  %v7042_v4 = vpop.f32.mrb[77].mxu1 }
 0x9fc   : > { %v7043_v24 = vadd.f32 %v7042_v4, %v7041_v11  ;;  %v7044_v50 = vpop.f32.mrb[78].mxu1 }
 0x9fd   : > { %v7045_v55 = vpop.f32.mrb[79].mxu1 }
 0x9fe   : > { %5082 = vst.msk [vmem:[#allocation6 + $0x30] sm:$0xff] %vm2520_vm1, %v7043_v24  ;;  %v7046_v19 = vadd.f32 %v7045_v55, %v7044_v50 }
 0xa00   : > { %5083 = vst.msk [vmem:[#allocation6 + $0x38] sm:$0xff] %vm2520_vm1, %v7046_v19 }
 0xa15   : > { %v7093_v52 = vpop.f32.mrb[84].mxu0 }
 0xa16   : > { %v7094_v61 = vpop.f32.mrb[85].mxu0 }
 0xa17   : > { %v12177_v48 = vadd.f32 %v7094_v61, %v7093_v52  ;;  %v7096_v32 = vpop.f32.mrb[86].mxu0 }
 0xa18   : > { %v7097_v33 = vpop.f32.mrb[87].mxu0 }
 0xa19   : > { %v12179_v22 = vadd.f32 %v7097_v33, %v7096_v32 }
 0xa20   : > { %v7099_v30 = vpop.f32.mrb[88].mxu0 }
 0xa21   : > { %v7100_v20 = vpop.f32.mrb[89].mxu0 }
 0xa22   : > { %v12181_v53 = vadd.f32 %v7100_v20, %v7099_v30  ;;  %v7102_v46 = vpop.f32.mrb[90].mxu0  ;;  %v7916_v20 = vld [vmem:[#allocation22] sm:$0xff]  }
 0xa23   : > { %v7103_v44 = vpop.f32.mrb[91].mxu0  ;;  %7471 = vmatprep.subr.bf16.mxu1 %v7916_v20 }
 0xa24   : > { %v12183_v43 = vadd.f32 %v7103_v44, %v7102_v46  ;;  %7472 = vmatpush3.bf16.msra.mxu1 %v7916_v20 }
 0xa28   : > { %v7105_v59 = vpop.f32.mrb[92].mxu0 }
 0xa29   : > { %v7106_v3 = vpop.f32.mrb[93].mxu0 }
 0xa2a   : > { %v12185_v31 = vadd.f32 %v7106_v3, %v7105_v59  ;;  %v7108_v6 = vpop.f32.mrb[94].mxu0  ;;  %v7047_v29 = vpop.f32.mrb[80].mxu1 }
 0xa2b   : > { %v7109_v37 = vpop.f32.mrb[95].mxu0  ;;  %v7048_v7 = vpop.f32.mrb[81].mxu1 }
 0xa2c   : > { %v12187_v38 = vadd.f32 %v7109_v37, %v7108_v6  ;;  %v7049_v16 = vadd.f32 %v7048_v7, %v7047_v29  ;;  %v7050_v54 = vpop.f32.mrb[82].mxu1 }
 0xa2d   : > { %v7051_v27 = vpop.f32.mrb[83].mxu1 }
 0xa2e   : > { %5084 = vst.msk [vmem:[#allocation6 + $0x40] sm:$0xff] %vm2520_vm1, %v7049_v16  ;;  %v7052_v45 = vadd.f32 %v7051_v27, %v7050_v54 }
 0xa30   : > { %5085 = vst.msk [vmem:[#allocation6 + $0x48] sm:$0xff] %vm2520_vm1, %v7052_v45  ;;  %v7111_v2 = vpop.f32.mrb[96].mxu0 }
 0xa31   : > { %v7112_v18 = vpop.f32.mrb[97].mxu0 }
 0xa32   : > { %v12191_v34 = vadd.f32 %v7112_v18, %v7111_v2  ;;  %v7114_v9 = vpop.f32.mrb[98].mxu0  ;;  %v7053_v13 = vpop.f32.mrb[84].mxu1  ;;  %v7917_v2 = vld [vmem:[#allocation22 + $0x8] sm:$0xff]  }
 0xa33   : > { %v7115_v25 = vpop.f32.mrb[99].mxu0  ;;  %v7054_v14 = vpop.f32.mrb[85].mxu1  ;;  %7473 = vmatprep.subr.bf16.mxu1 %v7917_v2 }
 0xa34   : > { %v12193_v21 = vadd.f32 %v7115_v25, %v7114_v9  ;;  %v7055_v62 = vadd.f32 %v7054_v14, %v7053_v13  ;;  %v7056_v60 = vpop.f32.mrb[86].mxu1  ;;  %7474 = vmatpush3.bf16.msra.mxu1 %v7917_v2 }
 0xa35   : > { %v7057_v15 = vpop.f32.mrb[87].mxu1 }
 0xa36   : > { %5086 = vst.msk [vmem:[#allocation6 + $0x50] sm:$0xff] %vm2520_vm1, %v7055_v62  ;;  %v7058_v49 = vadd.f32 %v7057_v15, %v7056_v60 }
 0xa38   : > { %5087 = vst.msk [vmem:[#allocation6 + $0x58] sm:$0xff] %vm2520_vm1, %v7058_v49  ;;  %v7117_v51 = vpop.f32.mrb[100].mxu0 }
 0xa39   : > { %v7118_v57 = vpop.f32.mrb[101].mxu0 }
 0xa3a   : > { %v12197_v10 = vadd.f32 %v7118_v57, %v7117_v51  ;;  %v7120_v47 = vpop.f32.mrb[102].mxu0  ;;  %v7059_v41 = vpop.f32.mrb[88].mxu1  ;;  %v7918_v57 = vld [vmem:[#allocation22 + $0x10] sm:$0xff]  }
 0xa3b   : > { %v7121_v1 = vpop.f32.mrb[103].mxu0  ;;  %v7060_v23 = vpop.f32.mrb[89].mxu1  ;;  %7475 = vmatprep.subr.bf16.mxu1 %v7918_v57 }
 0xa3c   : > { %v12199_v39 = vadd.f32 %v7121_v1, %v7120_v47  ;;  %v7061_v35 = vadd.f32 %v7060_v23, %v7059_v41  ;;  %v7062_v40 = vpop.f32.mrb[90].mxu1  ;;  %7476 = vmatpush3.bf16.msra.mxu1 %v7918_v57 }
 0xa3d   : > { %v7063_v56 = vpop.f32.mrb[91].mxu1 }
 0xa3e   : > { %5088 = vst.msk [vmem:[#allocation6 + $0x60] sm:$0xff] %vm2520_vm1, %v7061_v35  ;;  %v7064_v63 = vadd.f32 %v7063_v56, %v7062_v40 }
 0xa40   : > { %5089 = vst.msk [vmem:[#allocation6 + $0x68] sm:$0xff] %vm2520_vm1, %v7064_v63  ;;  %v7123_v17 = vpop.f32.mrb[104].mxu0 }
 0xa41   : > { %v7124_v0 = vpop.f32.mrb[105].mxu0 }
 0xa42   : > { %v12203_v8 = vadd.f32 %v7124_v0, %v7123_v17  ;;  %v7126_v28 = vpop.f32.mrb[106].mxu0 }
 0xa43   : > { %v7127_v26 = vpop.f32.mrb[107].mxu0 }
 0xa44   : > { %v12205_v5 = vadd.f32 %v7127_v26, %v7126_v28  ;;  %v7065_v42 = vpop.f32.mrb[92].mxu1  ;;  %v7919_v28 = vld [vmem:[#allocation22 + $0x18] sm:$0xff]  }
 0xa45   : > { %v7066_v36 = vpop.f32.mrb[93].mxu1  ;;  %7477 = vmatprep.subr.bf16.mxu1 %v7919_v28 }
 0xa46   : > { %v7067_v12 = vadd.f32 %v7066_v36, %v7065_v42  ;;  %v7068_v11 = vpop.f32.mrb[94].mxu1  ;;  %7478 = vmatpush3.bf16.msra.mxu1 %v7919_v28  ;;  %v7926_v28 = vld [vmem:[#allocation25 + $0x4] ss:$8 sps:$4 sm:$0xff]  }
 0xa47   : > { %v7069_v4 = vpop.f32.mrb[95].mxu1  ;;  %5659 = vmatprep.subr.bf16.mxu0 %v7926_v28 }
 0xa48   : > { %5090 = vst.msk [vmem:[#allocation6 + $0x70] sm:$0xff] %vm2520_vm1, %v7067_v12  ;;  %v7070_v24 = vadd.f32 %v7069_v4, %v7068_v11 }
 0xa4a   : > { %5091 = vst.msk [vmem:[#allocation6 + $0x78] sm:$0xff] %vm2520_vm1, %v7070_v24 }
 0xa4c   : > { %v7129_v50 = vpop.f32.mrb[108].mxu0 }
 0xa4d   : > { %v7130_v55 = vpop.f32.mrb[109].mxu0 }
 0xa4e   : > { %v12209_v19 = vadd.f32 %v7130_v55, %v7129_v50  ;;  %v7132_v52 = vpop.f32.mrb[110].mxu0  ;;  %v7920_v55 = vld [vmem:[#allocation22 + $0x20] sm:$0xff]  }
 0xa4f   : > { %v7133_v61 = vpop.f32.mrb[111].mxu0  ;;  %7479 = vmatprep.subr.bf16.mxu1 %v7920_v55 }
 0xa50   : > { %v12211_v32 = vadd.f32 %v7133_v61, %v7132_v52  ;;  %v7151_v33 = vpop.f32.mrb[96].mxu1  ;;  %7480 = vmatpush3.bf16.msra.mxu1 %v7920_v55 }
 0xa51   : > { %v7152_v30 = vpop.f32.mrb[97].mxu1 }
 0xa52   : > { %v7153_v46 = vadd.f32 %v7152_v30, %v7151_v33  ;;  %v7154_v44 = vpop.f32.mrb[98].mxu1 }
 0xa53   : > { %v7155_v59 = vpop.f32.mrb[99].mxu1 }
 0xa54   : > { %v7156_v3 = vadd.f32 %v7155_v59, %v7154_v44  ;;  %5189 = vrot.lane.b32.xlu0 %v7153_v46, %s9060_s9  ;;  %v7215_v6 = vpop.f32.mrb[112].mxu0  ;;  %v7921_v44 = vld [vmem:[#allocation22 + $0x28] sm:$0xff]  }
 0xa55   : > { %v7216_v29 = vpop.f32.mrb[113].mxu0  ;;  %7481 = vmatprep.subr.bf16.mxu1 %v7921_v44 }
 0xa56   : > { %v12214_v37 = vadd.f32 %v7216_v29, %v7215_v6  ;;  %5191 = vrot.lane.b32.xlu1 %v7156_v3, %s9060_s9  ;;  %v7218_v7 = vpop.f32.mrb[114].mxu0  ;;  %7482 = vmatpush3.bf16.msra.mxu1 %v7921_v44 }
 0xa57   : > { %v7219_v16 = vpop.f32.mrb[115].mxu0 }
 0xa58   : > { %v12217_v54 = vadd.f32 %v7219_v16, %v7218_v7  ;;  %5110 = vrot.lane.b32.xlu0 %v12172_v58, %s9059_s1  ;;  %v7157_v27 = vpop.f32.mrb[100].mxu1  ;;  %v7922_v7 = vld [vmem:[#allocation22 + $0x30] sm:$0xff]  }
 0xa59   : > { %v7158_v45 = vpop.f32.mrb[101].mxu1  ;;  %7483 = vmatprep.subr.bf16.mxu1 %v7922_v7 }
 0xa5a   : > { %v7159_v18 = vadd.f32 %v7158_v45, %v7157_v27  ;;  %5112 = vrot.lane.b32.xlu1 %v12177_v48, %s9059_s1  ;;  %v7160_v9 = vpop.f32.mrb[102].mxu1  ;;  %7484 = vmatpush3.bf16.msra.mxu1 %v7922_v7 }
 0xa5b   : > { %v7161_v13 = vpop.f32.mrb[103].mxu1 }
 0xa5c   : > { %v7162_v25 = vadd.f32 %v7161_v13, %v7160_v9  ;;  %5193 = vrot.lane.b32.xlu0 %v7159_v18, %s9060_s9  ;;  %v7221_v14 = vpop.f32.mrb[116].mxu0  ;;  %v7923_v9 = vld [vmem:[#allocation22 + $0x38] sm:$0xff]  }
 0xa5d   : > { %v7222_v62 = vpop.f32.mrb[117].mxu0  ;;  %7485 = vmatprep.subr.bf16.mxu1 %v7923_v9 }
 0xa5e   : > { %v12224_v60 = vadd.f32 %v7222_v62, %v7221_v14  ;;  %5114 = vrot.lane.b32.xlu1 %v12179_v22, %s9059_s1  ;;  %v7224_v58 = vpop.f32.mrb[118].mxu0  ;;  %7486 = vmatpush3.bf16.msra.mxu1 %v7923_v9 }
 0xa5f   : > { %v7225_v15 = vpop.f32.mrb[119].mxu0 }
 0xa60   : > { %v12228_v49 = vadd.f32 %v7225_v15, %v7224_v58  ;;  %5116 = vrot.lane.b32.xlu0 %v12181_v53, %s9059_s1  ;;  %v7163_v48 = vpop.f32.mrb[104].mxu1 }
 0xa61   : > { %v7164_v51 = vpop.f32.mrb[105].mxu1 }
 0xa62   : > { %v7165_v47 = vadd.f32 %v7164_v51, %v7163_v48  ;;  %5195 = vrot.lane.b32.xlu1 %v7162_v25, %s9060_s9  ;;  %v7166_v41 = vpop.f32.mrb[106].mxu1 }
 0xa63   : > { %v7167_v1 = vpop.f32.mrb[107].mxu1 }
 0xa64   : > { %v7168_v23 = vadd.f32 %v7167_v1, %v7166_v41  ;;  %5197 = vrot.lane.b32.xlu0 %v7165_v47, %s9060_s9  ;;  %v7227_v22 = vpop.f32.mrb[120].mxu0 }
 0xa65   : > { %v7228_v35 = vpop.f32.mrb[121].mxu0 }
 0xa66   : > { %v12234_v40 = vadd.f32 %v7228_v35, %v7227_v22  ;;  %5118 = vrot.lane.b32.xlu1 %v12183_v43, %s9059_s1  ;;  %v7230_v53 = vpop.f32.mrb[122].mxu0 }
 0xa67   : > { %v7231_v56 = vpop.f32.mrb[123].mxu0 }
 0xa68   : > { %v12238_v63 = vadd.f32 %v7231_v56, %v7230_v53  ;;  %5120 = vrot.lane.b32.xlu0 %v12185_v31, %s9059_s1  ;;  %v7169_v17 = vpop.f32.mrb[108].mxu1 }
 0xa69   : > { %v7170_v0 = vpop.f32.mrb[109].mxu1 }
 0xa6a   : > { %v7171_v26 = vadd.f32 %v7170_v0, %v7169_v17  ;;  %5199 = vrot.lane.b32.xlu1 %v7168_v23, %s9060_s9  ;;  %v7172_v42 = vpop.f32.mrb[110].mxu1  ;;  %v7924_v0 = vld [vmem:[#allocation25] ss:$8 sps:$4 sm:$0xff]  }
 0xa6b   : > { %v7173_v36 = vpop.f32.mrb[111].mxu1  ;;  %5660 = vmatpush1.bf16.msra.mxu0 %v7924_v0 }
 0xa6c   : > { %v7174_v12 = vadd.f32 %v7173_v36, %v7172_v42  ;;  %5201 = vrot.lane.b32.xlu0 %v7171_v26, %s9060_s9  ;;  %v7233_v43 = vpop.f32.mrb[124].mxu0  ;;  %v7929_v42 = vld [vmem:[#allocation25 + $0x14] ss:$8 sps:$4 sm:$0xff]  }
 0xa6d   : > { %v5109_v11 = vpop.permute.xlu1 %5108  ;;  %v7234_v4 = vpop.f32.mrb[125].mxu0  ;;  %5661 = vmatprep.subr.bf16.mxu0 %v7929_v42 }
 0xa6e   : > { %5157 = vst.msk [vmem:[#allocation6] sm:$0xff] %vm5156_vm2, %v5109_v11  ;;  %v12245_v31 = vadd.f32 %v7234_v4, %v7233_v43  ;;  %5122 = vrot.lane.b32.xlu1 %v12187_v38, %s9059_s1  ;;  %v7236_v24 = vpop.f32.mrb[126].mxu0  ;;  %v7932_v11 = vld [vmem:[#allocation25 + $0x24] ss:$8 sps:$4 sm:$0xff]  }
 0xa6f   : > { %v7237_v50 = vpop.f32.mrb[127].mxu0 }
 0xa70   : > { %v12249_v52 = vadd.f32 %v7237_v50, %v7236_v24  ;;  %5124 = vrot.lane.b32.xlu0 %v12191_v34, %s9059_s1  ;;  %v7175_v61 = vpop.f32.mrb[112].mxu1  ;;  %v7935_v24 = vld [vmem:[#allocation25 + $0x34] ss:$8 sps:$4 sm:$0xff]  }
 0xa71   : > { %v7176_v33 = vpop.f32.mrb[113].mxu1 }
 0xa72   : > { %v7177_v30 = vadd.f32 %v7176_v33, %v7175_v61  ;;  %5203 = vrot.lane.b32.xlu1 %v7174_v12, %s9060_s9  ;;  %v7178_v20 = vpop.f32.mrb[114].mxu1  ;;  %v7927_v12 = vld [vmem:[#allocation25 + $0x10] ss:$8 sps:$4 sm:$0xff]   ;;  %v7938_v61 = vld [vmem:[#allocation25 + $0x44] ss:$8 sps:$4 sm:$0xff]  }
 0xa73   : > { %v7179_v46 = vpop.f32.mrb[115].mxu1  ;;  %5662 = vmatpush1.bf16.msra.mxu0 %v7927_v12 }
 0xa74   : > { %v7180_v59 = vadd.f32 %v7179_v46, %v7178_v20  ;;  %5128 = vrot.lane.b32.xlu0 %v12197_v10, %s9059_s1  ;;  %v7239_v38 = vpop.f32.mrb[128].mxu0  ;;  %5663 = vmatprep.subr.bf16.mxu0 %v7932_v11  ;;  %v7936_v20 = vld [vmem:[#allocation25 + $0x40] ss:$8 sps:$4 sm:$0xff]   ;;  %v7941_v46 = vld [vmem:[#allocation25 + $0x54] ss:$8 sps:$4 sm:$0xff]  }
 0xa75   : > { %v7240_v3 = vpop.f32.mrb[129].mxu0 }
 0xa76   : > { %v7241_v6 = vadd.f32 %v7240_v3, %v7239_v38  ;;  %5126 = vrot.lane.b32.xlu1 %v12193_v21, %s9059_s1  ;;  %v7242_v34 = vpop.f32.mrb[130].mxu0  ;;  %v7939_v38 = vld [vmem:[#allocation25 + $0x50] ss:$8 sps:$4 sm:$0xff]  }
 0xa77   : > { %v7243_v29 = vpop.f32.mrb[131].mxu0 }
 0xa78   : > { %v7244_v16 = vadd.f32 %v7243_v29, %v7242_v34  ;;  %5270 = vrot.lane.b32.xlu0 %v12214_v37, %s9058_s28  ;;  %v7181_v27 = vpop.f32.mrb[116].mxu1 }
 0xa79   : > { %v7182_v45 = vpop.f32.mrb[117].mxu1 }
 0xa7a   : > { %v7183_v2 = vadd.f32 %v7182_v45, %v7181_v27  ;;  %5130 = vrot.lane.b32.xlu1 %v12199_v39, %s9059_s1  ;;  %v7184_v10 = vpop.f32.mrb[118].mxu1 }
 0xa7b   : > { %v7185_v18 = vpop.f32.mrb[119].mxu1 }
 0xa7c   : > { %v7186_v21 = vadd.f32 %v7185_v18, %v7184_v10  ;;  %5274 = vrot.lane.b32.xlu0 %v12224_v60, %s9058_s28  ;;  %v7245_v13 = vpop.f32.mrb[132].mxu0 }
 0xa7d   : > { %v7246_v25 = vpop.f32.mrb[133].mxu0 }
 0xa7e   : > { %v7247_v14 = vadd.f32 %v7246_v25, %v7245_v13  ;;  %5272 = vrot.lane.b32.xlu1 %v12217_v54, %s9058_s28  ;;  %v7248_v37 = vpop.f32.mrb[134].mxu0 }
 0xa7f   : > { %v7249_v62 = vpop.f32.mrb[135].mxu0 }
 0xa80   : > { %v7250_v58 = vadd.f32 %v7249_v62, %v7248_v37  ;;  %5205 = vrot.lane.b32.xlu0 %v7177_v30, %s9060_s9  ;;  %v7187_v39 = vpop.f32.mrb[120].mxu1 }
 0xa81   : > { %v7188_v15 = vpop.f32.mrb[121].mxu1 }
 0xa82   : > { %v7189_v48 = vadd.f32 %v7188_v15, %v7187_v39  ;;  %5276 = vrot.lane.b32.xlu1 %v12228_v49, %s9058_s28  ;;  %v7190_v60 = vpop.f32.mrb[122].mxu1 }
 0xa83   : > { %v7191_v51 = vpop.f32.mrb[123].mxu1 }
 0xa84   : > { %v7192_v57 = vadd.f32 %v7191_v51, %v7190_v60  ;;  %5209 = vrot.lane.b32.xlu0 %v7183_v2, %s9060_s9  ;;  %v7251_v47 = vpop.f32.mrb[136].mxu0 }
 0xa85   : > { %v7252_v41 = vpop.f32.mrb[137].mxu0 }
 0xa86   : > { %v7253_v54 = vadd.f32 %v7252_v41, %v7251_v47  ;;  %5207 = vrot.lane.b32.xlu1 %v7180_v59, %s9060_s9  ;;  %v7254_v1 = vpop.f32.mrb[138].mxu0 }
 0xa87   : > { %v7255_v23 = vpop.f32.mrb[139].mxu0 }
 0xa88   : > { %v7256_v22 = vadd.f32 %v7255_v23, %v7254_v1  ;;  %5278 = vrot.lane.b32.xlu0 %v12234_v40, %s9058_s28 }
 0xa8a   : > { %5211 = vrot.lane.b32.xlu1 %v7186_v21, %s9060_s9 }
 0xa8c   : > { %5282 = vrot.lane.b32.xlu0 %v12245_v31, %s9058_s28  ;;  %v7930_v31 = vld [vmem:[#allocation25 + $0x20] ss:$8 sps:$4 sm:$0xff]  }
 0xa8d   : > { %5664 = vmatpush1.bf16.msra.mxu0 %v7930_v31 }
 0xa8e   : > { %5280 = vrot.lane.b32.xlu1 %v12238_v63, %s9058_s28  ;;  %5665 = vmatprep.subr.bf16.mxu0 %v7935_v24 }
 0xa90   : > { %5132 = vrot.lane.b32.xlu0 %v12203_v8, %s9059_s1 }
 0xa92   : > { %5284 = vrot.lane.b32.xlu1 %v12249_v52, %s9058_s28  ;;  %v7933_v52 = vld [vmem:[#allocation25 + $0x30] ss:$8 sps:$4 sm:$0xff]  }
 0xa93   : > { %5666 = vmatpush1.bf16.msra.mxu0 %v7933_v52 }
 0xa94   : > { %5136 = vrot.lane.b32.xlu0 %v12209_v19, %s9059_s1  ;;  %5667 = vmatprep.subr.bf16.mxu0 %v7938_v61 }
 0xa96   : > { %5134 = vrot.lane.b32.xlu1 %v12205_v5, %s9059_s1 }
 0xa97   : > { %5668 = vmatpush1.bf16.msra.mxu0 %v7936_v20 }
 0xa98   : > { %5286 = vrot.lane.b32.xlu0 %v7241_v6, %s9058_s28  ;;  %5669 = vmatprep.subr.bf16.mxu0 %v7941_v46 }
 0xa9a   : > { %5138 = vrot.lane.b32.xlu1 %v12211_v32, %s9059_s1 }
 0xa9b   : > { %5670 = vmatpush1.bf16.msra.mxu0 %v7939_v38  ;;  %v7942_v38 = vld [vmem:[#allocation25 + $0x60] ss:$8 sps:$4 sm:$0xff]  }
 0xa9c   : > { %5290 = vrot.lane.b32.xlu0 %v7247_v14, %s9058_s28 }
 0xa9e   : > { %5288 = vrot.lane.b32.xlu1 %v7244_v16, %s9058_s28 }
 0xaa0   : > { %5213 = vrot.lane.b32.xlu0 %v7189_v48, %s9060_s9 }
 0xaa2   : > { %5292 = vrot.lane.b32.xlu1 %v7250_v58, %s9058_s28 }
 0xaa6   : > { %5215 = vrot.lane.b32.xlu1 %v7192_v57, %s9060_s9 }
 0xab9   : > { %v7193_v8 = vpop.f32.mrb[124].mxu1 }
 0xaba   : > { %v7194_v19 = vpop.f32.mrb[125].mxu1 }
 0xabb   : > { %v7195_v49 = vadd.f32 %v7194_v19, %v7193_v8  ;;  %v7196_v35 = vpop.f32.mrb[126].mxu1 }
 0xabc   : > { %v7197_v5 = vpop.f32.mrb[127].mxu1 }
 0xabd   : > { %v7198_v40 = vadd.f32 %v7197_v5, %v7196_v35  ;;  %5217 = vrot.lane.b32.xlu0 %v7195_v49, %s9060_s9 }
 0xabf   : > { %5219 = vrot.lane.b32.xlu1 %v7198_v40, %s9060_s9 }
 0xac1   : > { %5294 = vrot.lane.b32.xlu0 %v7253_v54, %s9058_s28  ;;  %v7257_v32 = vpop.f32.mrb[140].mxu0 }
 0xac2   : > { %v7258_v53 = vpop.f32.mrb[141].mxu0 }
 0xac3   : > { %v7259_v56 = vadd.f32 %v7258_v53, %v7257_v32  ;;  %5296 = vrot.lane.b32.xlu1 %v7256_v22, %s9058_s28  ;;  %v7260_v63 = vpop.f32.mrb[142].mxu0 }
 0xac4   : > { %v7261_v17 = vpop.f32.mrb[143].mxu0 }
 0xac5   : > { %v7262_v26 = vadd.f32 %v7261_v17, %v7260_v63  ;;  %5298 = vrot.lane.b32.xlu0 %v7259_v56, %s9058_s28 }
 0xac6   : > { %v5190_v36 = vpop.permute.xlu0 %5189 }
 0xac7   : > { %5300 = vrot.lane.b32.xlu1 %v7262_v26, %s9058_s28  ;;  %5238 = vst.msk [vmem:[#allocation6] sm:$0xff] %vm5237_vm3, %v5190_v36  ;;  %s13383_s28 = sld [smem:[#allocation165_spill]] }
 0xac8   : > { %v5192_v43 = vpop.permute.xlu1 %5191 }
 0xaca   : > { %v5111_v4 = vpop.permute.xlu0 %5110 }
 0xacb   : > { %5158 = vst.msk [vmem:[#allocation6 + $0x8] sm:$0xff] %vm5156_vm2, %v5111_v4 }
 0xacc   : > { %5239 = vst.msk [vmem:[#allocation6 + $0x8] sm:$0xff] %vm5237_vm3, %v5192_v43  ;;  %v5113_v50 = vpop.permute.xlu1 %5112 }
 0xacd   : > { %5159 = vst.msk [vmem:[#allocation6 + $0x10] sm:$0xff] %vm5156_vm2, %v5113_v50  ;;  %s13384_s9 = smov %s13383_s28  ;;  %s12706_s1 = scalar_lea.hbm %s13383_s28, %s6806_s27 }
 0xace   : > { %v5194_v55 = vpop.permute.xlu0 %5193  ;;  %s8880_s27 = scalar_lea.vmem %s8879_s10, 4096 }
 0xacf   : > { %5240 = vst.msk [vmem:[#allocation6 + $0x10] sm:$0xff] %vm5237_vm3, %v5194_v55  ;;  %p8882_p6 = scmp.lt.s32.totalorder %s8880_s27, %s8874_s16 }
 0xad0   : > { %v5115_v33 = vpop.permute.xlu1 %5114 }
 0xad1   : > { %5160 = vst.msk [vmem:[#allocation6 + $0x18] sm:$0xff] %vm5156_vm2, %v5115_v33  ;;  %p8883_p5 = por %p8882_p6, %p8881_p7 }
 0xad2   : > { %v5117_v30 = vpop.permute.xlu0 %5116 }
 0xad3   : > { %5161 = vst.msk [vmem:[#allocation6 + $0x20] sm:$0xff] %vm5156_vm2, %v5117_v30  ;;  %p8884_p11 = pnand %p8883_p5, %p8877_p4 }
 0xad4   : > { %v5196_v44 = vpop.permute.xlu1 %5195 }
 0xad5   : > { %5241 = vst.msk [vmem:[#allocation6 + $0x18] sm:$0xff] %vm5237_vm3, %v5196_v44 }
 0xad6   : > { %v5198_v59 = vpop.permute.xlu0 %5197 }
 0xad7   : > { %5242 = vst.msk [vmem:[#allocation6 + $0x20] sm:$0xff] %vm5237_vm3, %v5198_v59  ;;  %v7944_v59 = vld [vmem:[#allocation25 + $0x64] ss:$8 sps:$4 sm:$0xff]  }
 0xad8   : > { %v5119_v3 = vpop.permute.xlu1 %5118  ;;  %5671 = vmatprep.subr.bf16.mxu0 %v7944_v59 }
 0xad9   : > { %5162 = vst.msk [vmem:[#allocation6 + $0x28] sm:$0xff] %vm5156_vm2, %v5119_v3  ;;  %5672 = vmatpush1.bf16.msra.mxu0 %v7942_v38  ;;  %v7945_v3 = vld [vmem:[#allocation25 + $0x70] ss:$8 sps:$4 sm:$0xff]  }
 0xada   : > { %v5121_v6 = vpop.permute.xlu0 %5120 }
 0xadb   : > { %5163 = vst.msk [vmem:[#allocation6 + $0x30] sm:$0xff] %vm5156_vm2, %v5121_v6  ;;  %v7947_v6 = vld [vmem:[#allocation25 + $0x74] ss:$8 sps:$4 sm:$0xff]  }
 0xadc   : > { %v5200_v34 = vpop.permute.xlu1 %5199  ;;  %5673 = vmatprep.subr.bf16.mxu0 %v7947_v6 }
 0xadd   : > { %5243 = vst.msk [vmem:[#allocation6 + $0x28] sm:$0xff] %vm5237_vm3, %v5200_v34  ;;  %v9061_v34 = vmov 0   ;;  %5674 = vmatpush1.bf16.msra.mxu0 %v7945_v3  ;;  %v8390_v3 = vld [vmem:[%s10623_s6 + $0x58] sm:$0xff] }
 0xade   : > { %v5202_v29 = vpop.permute.xlu0 %5201  ;;  %5691 = vmatprep.mubr.bf16.mxu0 %v9061_v34 }
 0xadf   : > { %5244 = vst.msk [vmem:[#allocation6 + $0x30] sm:$0xff] %vm5237_vm3, %v5202_v29  ;;  %v7948_v29 = vld [vmem:[#allocation28 + $0x40] sm:$0xff]  }
 0xae0   : > { %v5123_v7 = vpop.permute.xlu1 %5122  ;;  %7279 = vmatprep.subr.bf16.mxu1 %v7948_v29  ;;  %v8391_v29 = vld [vmem:[%s10623_s6 + $0x50] sm:$0xff] }
 0xae1   : > { %5164 = vst.msk [vmem:[#allocation6 + $0x38] sm:$0xff] %vm5156_vm2, %v5123_v7  ;;  %v7949_v7 = vld [vmem:[#allocation28] sm:$0xff]  }
 0xae2   : > { %v5125_v16 = vpop.permute.xlu0 %5124 }
 0xae3   : > { %5165 = vst.msk [vmem:[#allocation6 + $0x40] sm:$0xff] %vm5156_vm2, %v5125_v16  ;;  %v7950_v16 = vld [vmem:[#allocation28 + $0x48] sm:$0xff]  }
 0xae4   : > { %v5204_v27 = vpop.permute.xlu1 %5203 }
 0xae5   : > { %5245 = vst.msk [vmem:[#allocation6 + $0x38] sm:$0xff] %vm5237_vm3, %v5204_v27  ;;  %v7951_v27 = vld [vmem:[#allocation28 + $0x8] sm:$0xff]  }
 0xae6   : > { %v5129_v45 = vpop.permute.xlu0 %5128 }
 0xae7   : > { %5167 = vst.msk [vmem:[#allocation6 + $0x50] sm:$0xff] %vm5156_vm2, %v5129_v45  ;;  %v7952_v45 = vld [vmem:[#allocation28 + $0x50] sm:$0xff]  }
 0xae8   : > { %v5127_v2 = vpop.permute.xlu1 %5126 }
 0xae9   : > { %5166 = vst.msk [vmem:[#allocation6 + $0x48] sm:$0xff] %vm5156_vm2, %v5127_v2  ;;  %v7953_v2 = vld [vmem:[#allocation28 + $0x10] sm:$0xff]  }
 0xaea   : > { %v5271_v10 = vpop.permute.xlu0 %5270 }
 0xaeb   : > { %5319 = vst.msk [vmem:[#allocation6] sm:$0xff] %vm5318_vm4, %v5271_v10  ;;  %v7954_v10 = vld [vmem:[#allocation28 + $0x58] sm:$0xff]  }
 0xaec   : > { %v5131_v18 = vpop.permute.xlu1 %5130 }
 0xaed   : > { %5168 = vst.msk [vmem:[#allocation6 + $0x58] sm:$0xff] %vm5156_vm2, %v5131_v18  ;;  %v7955_v18 = vld [vmem:[#allocation28 + $0x18] sm:$0xff]  }
 0xaee   : > { %v5275_v9 = vpop.permute.xlu0 %5274 }
 0xaef   : > { %5321 = vst.msk [vmem:[#allocation6 + $0x10] sm:$0xff] %vm5318_vm4, %v5275_v9  ;;  %v7956_v9 = vld [vmem:[#allocation28 + $0x60] sm:$0xff]  }
 0xaf0   : > { %v5273_v21 = vpop.permute.xlu1 %5272 }
 0xaf1   : > { %5320 = vst.msk [vmem:[#allocation6 + $0x8] sm:$0xff] %vm5318_vm4, %v5273_v21  ;;  %v7957_v21 = vld [vmem:[#allocation28 + $0x20] sm:$0xff]  }
 0xaf2   : > { %v5206_v13 = vpop.permute.xlu0 %5205  ;;  %v5335_v62 = vld [vmem:[#allocation6] sm:$0xff] }
 0xaf3   : > { %5246 = vst.msk [vmem:[#allocation6 + $0x40] sm:$0xff] %vm5237_vm3, %v5206_v13  ;;  %v7958_v13 = vld [vmem:[#allocation28 + $0x68] sm:$0xff]  }
 0xaf4   : > { %v5277_v25 = vpop.permute.xlu1 %5276 }
 0xaf5   : > { %5322 = vst.msk [vmem:[#allocation6 + $0x18] sm:$0xff] %vm5318_vm4, %v5277_v25  ;;  %v12348_v25 = vld [vmem:[#allocation24] ss:$0 sm:$0xff] }
 0xaf6   : > { %v5210_v14 = vpop.permute.xlu0 %5209  ;;  %v5337_v60 = vld [vmem:[#allocation6 + $0x10] sm:$0xff] }
 0xaf7   : > { %5248 = vst.msk [vmem:[#allocation6 + $0x50] sm:$0xff] %vm5237_vm3, %v5210_v14 }
 0xaf8   : > { %v5208_v37 = vpop.permute.xlu1 %5207  ;;  %v5336_v58 = vld [vmem:[#allocation6 + $0x8] sm:$0xff] }
 0xaf9   : > { %5247 = vst.msk [vmem:[#allocation6 + $0x48] sm:$0xff] %vm5237_vm3, %v5208_v37  ;;  %v5351_v39 = vpack.c.bf16 %v5336_v58, %v5335_v62 }
 0xafa   : > { %v5279_v15 = vpop.permute.xlu0 %5278 }
 0xafb   : > { %5323 = vst.msk [vmem:[#allocation6 + $0x20] sm:$0xff] %vm5318_vm4, %v5279_v15  ;;  %7487 = vmatprep.mubr.bf16.mxu1 %v5351_v39 }
 0xafc   : > { %v5212_v48 = vpop.permute.xlu1 %5211  ;;  %v5338_v51 = vld [vmem:[#allocation6 + $0x18] sm:$0xff] }
 0xafd   : > { %5249 = vst.msk [vmem:[#allocation6 + $0x58] sm:$0xff] %vm5237_vm3, %v5212_v48  ;;  %v5352_v57 = vpack.c.bf16 %v5338_v51, %v5337_v60  ;;  %v8380_v48 = vld [vmem:[%s10623_s6] sm:$0xff]  ;;  %v8381_v51 = vld [vmem:[%s10623_s6 + $0x8] sm:$0xff] }
 0xafe   : > { %v5283_v47 = vpop.permute.xlu0 %5282 }
 0xaff   : > { %5325 = vst.msk [vmem:[#allocation6 + $0x30] sm:$0xff] %vm5318_vm4, %v5283_v47  ;;  %7488 = vmatmul.mubr.bf16.vlgmr.msra.gmra.mrb[128].mxu1 %v5352_v57 }
 0xb00   : > { %v5281_v41 = vpop.permute.xlu1 %5280  ;;  %7280 = vmatpush3.bf16.msra.mxu1 %v7949_v7 }
 0xb01   : > { %5324 = vst.msk [vmem:[#allocation6 + $0x28] sm:$0xff] %vm5318_vm4, %v5281_v41  ;;  %7281 = vmatprep.subr.bf16.mxu1 %v7950_v16 }
 0xb02   : > { %v5133_v54 = vpop.permute.xlu0 %5132  ;;  %v5339_v8 = vld [vmem:[#allocation6 + $0x20] sm:$0xff] }
 0xb03   : > { %5169 = vst.msk [vmem:[#allocation6 + $0x60] sm:$0xff] %vm5156_vm2, %v5133_v54 }
 0xb04   : > { %v5285_v1 = vpop.permute.xlu1 %5284  ;;  %7282 = vmatpush3.bf16.msra.mxu1 %v7951_v27 }
 0xb05   : > { %5326 = vst.msk [vmem:[#allocation6 + $0x38] sm:$0xff] %vm5318_vm4, %v5285_v1  ;;  %7283 = vmatprep.subr.bf16.mxu1 %v7952_v45  ;;  %v8382_v1 = vld [vmem:[%s10623_s6 + $0x18] sm:$0xff] }
 0xb06   : > { %v5137_v23 = vpop.permute.xlu0 %5136  ;;  %v5341_v40 = vld [vmem:[#allocation6 + $0x30] sm:$0xff] }
 0xb07   : > { %5171 = vst.msk [vmem:[#allocation6 + $0x70] sm:$0xff] %vm5156_vm2, %v5137_v23 }
 0xb08   : > { %v5135_v22 = vpop.permute.xlu1 %5134  ;;  %v5340_v19 = vld [vmem:[#allocation6 + $0x28] sm:$0xff]  ;;  %7284 = vmatpush3.bf16.msra.mxu1 %v7953_v2 }
 0xb09   : > { %5170 = vst.msk [vmem:[#allocation6 + $0x68] sm:$0xff] %vm5156_vm2, %v5135_v22  ;;  %v5353_v49 = vpack.c.bf16 %v5340_v19, %v5339_v8  ;;  %7285 = vmatprep.subr.bf16.mxu1 %v7954_v10  ;;  %v8383_v22 = vld [vmem:[%s10623_s6 + $0x10] sm:$0xff] }
 0xb0a   : > { %v5287_v35 = vpop.permute.xlu0 %5286 }
 0xb0b   : > { %5327 = vst.msk [vmem:[#allocation6 + $0x40] sm:$0xff] %vm5318_vm4, %v5287_v35  ;;  %7491 = vmatprep.mubr.bf16.mxu1 %v5353_v49 }
 0xb0c   : > { %v5139_v5 = vpop.permute.xlu1 %5138  ;;  %v5342_v32 = vld [vmem:[#allocation6 + $0x38] sm:$0xff]  ;;  %7286 = vmatpush3.bf16.msra.mxu1 %v7955_v18 }
 0xb0d   : > { %5172 = vst.msk [vmem:[#allocation6 + $0x78] sm:$0xff] %vm5156_vm2, %v5139_v5  ;;  %v5354_v53 = vpack.c.bf16 %v5342_v32, %v5341_v40  ;;  %7287 = vmatprep.subr.bf16.mxu1 %v7956_v9 }
 0xb0e   : > { %v5291_v56 = vpop.permute.xlu0 %5290 }
 0xb0f   : > { %5329 = vst.msk [vmem:[#allocation6 + $0x50] sm:$0xff] %vm5318_vm4, %v5291_v56  ;;  %7492 = vmatmul.mubr.bf16.gmra.mrb[132].mxu1 %v5354_v53  ;;  %v8384_v56 = vld [vmem:[%s10623_s6 + $0x20] sm:$0xff] }
 0xb10   : > { %v5289_v63 = vpop.permute.xlu1 %5288  ;;  %7288 = vmatpush3.bf16.msra.mxu1 %v7957_v21  ;;  %v8392_v21 = vld [vmem:[%s10623_s6 + $0x60] sm:$0xff] }
 0xb11   : > { %5328 = vst.msk [vmem:[#allocation6 + $0x48] sm:$0xff] %vm5318_vm4, %v5289_v63  ;;  %7289 = vmatprep.subr.bf16.mxu1 %v7958_v13 }
 0xb12   : > { %v5214_v17 = vpop.permute.xlu0 %5213  ;;  %v5343_v26 = vld [vmem:[#allocation6 + $0x40] sm:$0xff] }
 0xb13   : > { %5250 = vst.msk [vmem:[#allocation6 + $0x60] sm:$0xff] %vm5237_vm3, %v5214_v17  ;;  %v8385_v17 = vld [vmem:[%s10623_s6 + $0x28] sm:$0xff] }
 0xb14   : > { %v5293_v0 = vpop.permute.xlu1 %5292 }
 0xb15   : > { %5330 = vst.msk [vmem:[#allocation6 + $0x58] sm:$0xff] %vm5318_vm4, %v5293_v0 }
 0xb16   : > { %v5345_v12 = vld [vmem:[#allocation6 + $0x50] sm:$0xff] }
 0xb18   : > { %v5216_v28 = vpop.permute.xlu1 %5215  ;;  %v5344_v42 = vld [vmem:[#allocation6 + $0x48] sm:$0xff] }
 0xb19   : > { %5251 = vst.msk [vmem:[#allocation6 + $0x68] sm:$0xff] %vm5237_vm3, %v5216_v28  ;;  %v5355_v36 = vpack.c.bf16 %v5344_v42, %v5343_v26 }
 0xb1b   : > { %7495 = vmatprep.mubr.bf16.mxu1 %v5355_v36  ;;  %v8386_v36 = vld [vmem:[%s10623_s6 + $0x38] sm:$0xff] }
 0xb1c   : > { %v5346_v11 = vld [vmem:[#allocation6 + $0x58] sm:$0xff] }
 0xb1d   : > { %v5356_v43 = vpack.c.bf16 %v5346_v11, %v5345_v12  ;;  %v8387_v11 = vld [vmem:[%s10623_s6 + $0x30] sm:$0xff] }
 0xb1f   : > { %7496 = vmatmul.mubr.bf16.gmra.mrb[136].mxu1 %v5356_v43 }
 0xb2f   : > { %v5218_v4 = vpop.permute.xlu0 %5217 }
 0xb30   : > { %5252 = vst.msk [vmem:[#allocation6 + $0x70] sm:$0xff] %vm5237_vm3, %v5218_v4 }
 0xb31   : > { %v5220_v31 = vpop.permute.xlu1 %5219 }
 0xb32   : > { %5253 = vst.msk [vmem:[#allocation6 + $0x78] sm:$0xff] %vm5237_vm3, %v5220_v31 }
 0xb33   : > { %v5295_v24 = vpop.permute.xlu0 %5294 }
 0xb34   : > { %5331 = vst.msk [vmem:[#allocation6 + $0x60] sm:$0xff] %vm5318_vm4, %v5295_v24 }
 0xb35   : > { %v5297_v50 = vpop.permute.xlu1 %5296 }
 0xb36   : > { %5332 = vst.msk [vmem:[#allocation6 + $0x68] sm:$0xff] %vm5318_vm4, %v5297_v50 }
 0xb37   : > { %v5299_v55 = vpop.permute.xlu0 %5298 }
 0xb38   : > { %5333 = vst.msk [vmem:[#allocation6 + $0x70] sm:$0xff] %vm5318_vm4, %v5299_v55 }
 0xb39   : > { %v5301_v52 = vpop.permute.xlu1 %5300 }
 0xb3a   : > { %5334 = vst.msk [vmem:[#allocation6 + $0x78] sm:$0xff] %vm5318_vm4, %v5301_v52 }
 0xb3b   : > { %v5347_v61 = vld [vmem:[#allocation6 + $0x60] sm:$0xff] }
 0xb3d   : > { %v5348_v33 = vld [vmem:[#allocation6 + $0x68] sm:$0xff] }
 0xb3e   : > { %v5357_v30 = vpack.c.bf16 %v5348_v33, %v5347_v61  ;;  %v8388_v33 = vld [vmem:[%s10623_s6 + $0x40] sm:$0xff] }
 0xb3f   : > { %v5349_v20 = vld [vmem:[#allocation6 + $0x70] sm:$0xff] }
 0xb40   : > { %7499 = vmatprep.mubr.bf16.mxu1 %v5357_v30 }
 0xb41   : > { %v5350_v46 = vld [vmem:[#allocation6 + $0x78] sm:$0xff] }
 0xb42   : > { %v5358_v44 = vpack.c.bf16 %v5350_v46, %v5349_v20  ;;  %v8389_v20 = vld [vmem:[%s10623_s6 + $0x48] sm:$0xff] }
 0xb44   : > { %7500 = vmatmul.mubr.bf16.gmra.mrb[140].mxu1 %v5358_v44 }
 0xbd2   : > { %v7489_v14 = vpop.f32.mrb[128].mxu1 }
 0xbd3   : > { %v5464_v37 = vpop.f32.mrb[129].mxu1  ;;  %v5473_v54 = vadd.f32 %v7489_v14, %v12348_v25  ;;  %v8393_v14 = vld [vmem:[%s10623_s6 + $0x68] sm:$0xff] }
 0xbd4   : > { %v5465_v62 = vadd.f32 %v12348_v25, %v5464_v37  ;;  %v7490_v58 = vpop.f32.mrb[130].mxu1 }
 0xbd5   : > { %v5467_v39 = vpop.f32.mrb[131].mxu1  ;;  %v5476_v47 = vadd.f32 %v7490_v58, %v12348_v25  ;;  %v12367_v8 = vadd.f32 %v8383_v22, %v5473_v54  ;;  %v7959_v54 = vld [vmem:[#allocation28 + $0x28] sm:$0xff]   ;;  %v7961_v22 = vld [vmem:[#allocation28 + $0x30] sm:$0xff]  }
 0xbd6   : > { %v5468_v15 = vadd.f32 %v12348_v25, %v5467_v39  ;;  %v12353_v60 = vadd.f32 %v8380_v48, %v5465_v62  ;;  %7290 = vmatpush3.bf16.msra.mxu1 %v7959_v54 }
 0xbd7   : > { %v12364_v23 = vadd.f32 %v8382_v1, %v5476_v47  ;;  %v7960_v1 = vld [vmem:[#allocation28 + $0x70] sm:$0xff]  }
 0xbd8   : > { %v12356_v57 = vadd.f32 %v8381_v51, %v5468_v15  ;;  %v8394_v15 = vld [vmem:[%s10623_s6 + $0x78] sm:$0xff]  ;;  %v8395_v51 = vld [vmem:[%s10623_s6 + $0x70] sm:$0xff]  ;;  %7291 = vmatprep.subr.bf16.mxu1 %v7960_v1 }
 0xbd9   : > { %v5544_v49 = vpack.c.bf16 %v12364_v23, %v12367_v8 }
 0xbda   : > { %v5543_v41 = vpack.c.bf16 %v12356_v57, %v12353_v60  ;;  %7292 = vmatpush3.bf16.msra.mxu1 %v7961_v22 }
 0xbdc   : > { %5692 = vmatmul.mubr.bf16.vlgmr.msra.gmra.mrb[144].mxu0 %v5543_v41 }
 0xbdd   : > { %5701 = vmatprep.mubr.bf16.mxu0 %v9061_v34 }
 0xbe2   : > { %v7493_v19 = vpop.f32.mrb[132].mxu1 }
 0xbe3   : > { %v5480_v35 = vpop.f32.mrb[133].mxu1  ;;  %v5489_v42 = vadd.f32 %v7493_v19, %v12348_v25  ;;  %v7963_v19 = vld [vmem:[#allocation28 + $0x38] sm:$0xff]  }
 0xbe4   : > { %v5481_v5 = vadd.f32 %v12348_v25, %v5480_v35  ;;  %v7494_v40 = vpop.f32.mrb[134].mxu1  ;;  %5702 = vmatmul.mubr.bf16.gmra.mrb[148].mxu0 %v5544_v49 }
 0xbe5   : > { %v5483_v32 = vpop.f32.mrb[135].mxu1  ;;  %5711 = vmatprep.mubr.bf16.mxu0 %v9061_v34  ;;  %v5492_v28 = vadd.f32 %v7494_v40, %v12348_v25  ;;  %v12389_v43 = vadd.f32 %v8387_v11, %v5489_v42 }
 0xbe6   : > { %v5484_v53 = vadd.f32 %v12348_v25, %v5483_v32  ;;  %v12375_v63 = vadd.f32 %v8384_v56, %v5481_v5  ;;  %v5567_v5 = vld [vmem:[#allocation27] sm:$0x3] }
 0xbe7   : > { %v12386_v12 = vadd.f32 %v8386_v36, %v5492_v28 }
 0xbe8   : > { %v12378_v0 = vadd.f32 %v8385_v17, %v5484_v53 }
 0xbe9   : > { %v5546_v31 = vpack.c.bf16 %v12386_v12, %v12389_v43 }
 0xbea   : > { %v5545_v26 = vpack.c.bf16 %v12378_v0, %v12375_v63 }
 0xbec   : > { %5712 = vmatmul.mubr.bf16.gmra.mrb[152].mxu0 %v5545_v26 }
 0xbed   : > { %5721 = vmatprep.mubr.bf16.mxu0 %v9061_v34 }
 0xbf2   : > { %v7497_v4 = vpop.f32.mrb[136].mxu1 }
 0xbf3   : > { %v5496_v24 = vpop.f32.mrb[137].mxu1  ;;  %v5505_v38 = vadd.f32 %v7497_v4, %v12348_v25 }
 0xbf4   : > { %v5497_v50 = vadd.f32 %v12348_v25, %v5496_v24  ;;  %v7498_v55 = vpop.f32.mrb[138].mxu1  ;;  %5722 = vmatmul.mubr.bf16.gmra.mrb[156].mxu0 %v5546_v31 }
 0xbf5   : > { %v5499_v52 = vpop.f32.mrb[139].mxu1  ;;  %5731 = vmatprep.mubr.bf16.mxu0 %v9061_v34  ;;  %v5508_v44 = vadd.f32 %v7498_v55, %v12348_v25  ;;  %v12411_v7 = vadd.f32 %v8391_v29, %v5505_v38 }
 0xbf6   : > { %v5500_v61 = vadd.f32 %v12348_v25, %v5499_v52  ;;  %v12397_v30 = vadd.f32 %v8388_v33, %v5497_v50 }
 0xbf7   : > { %v12408_v6 = vadd.f32 %v8390_v3, %v5508_v44 }
 0xbf8   : > { %v12400_v46 = vadd.f32 %v8389_v20, %v5500_v61 }
 0xbf9   : > { %v5548_v16 = vpack.c.bf16 %v12408_v6, %v12411_v7 }
 0xbfa   : > { %v5547_v59 = vpack.c.bf16 %v12400_v46, %v12397_v30 }
 0xbfc   : > { %5732 = vmatmul.mubr.bf16.gmra.mrb[160].mxu0 %v5547_v59 }
 0xbfd   : > { %5741 = vmatprep.mubr.bf16.mxu0 %v9061_v34 }
 0xc04   : > { %5742 = vmatmul.mubr.bf16.gmra.mrb[164].mxu0 %v5548_v16 }
 0xc05   : > { %5751 = vmatprep.mubr.bf16.mxu0 %v9061_v34 }
 0xc17   : > { %v7501_v27 = vpop.f32.mrb[140].mxu1 }
 0xc18   : > { %v5512_v45 = vpop.f32.mrb[141].mxu1  ;;  %v5521_v39 = vadd.f32 %v7501_v27, %v12348_v25 }
 0xc19   : > { %v5513_v2 = vadd.f32 %v12348_v25, %v5512_v45  ;;  %v7502_v10 = vpop.f32.mrb[142].mxu1 }
 0xc1a   : > { %v5515_v18 = vpop.f32.mrb[143].mxu1  ;;  %v5524_v62 = vadd.f32 %v7502_v10, %v12348_v25  ;;  %v12433_v47 = vadd.f32 %v8395_v51, %v5521_v39 }
 0xc1b   : > { %v5516_v9 = vadd.f32 %v12348_v25, %v5515_v18  ;;  %v12419_v13 = vadd.f32 %v8392_v21, %v5513_v2  ;;  %v7962_v25 = vld [vmem:[#allocation28 + $0x78] sm:$0xff]  }
 0xc1c   : > { %v12430_v48 = vadd.f32 %v8394_v15, %v5524_v62  ;;  %7293 = vmatprep.subr.bf16.mxu1 %v7962_v25 }
 0xc1d   : > { %v12422_v37 = vadd.f32 %v8393_v14, %v5516_v9  ;;  %7294 = vmatpush3.bf16.msra.mxu1 %v7963_v19 }
 0xc1e   : > { %v5550_v41 = vpack.c.bf16 %v12430_v48, %v12433_v47 }
 0xc1f   : > { %v5549_v58 = vpack.c.bf16 %v12422_v37, %v12419_v13 }
 0xc21   : > { %5752 = vmatmul.mubr.bf16.gmra.mrb[168].mxu0 %v5549_v58 }
 0xc22   : > { %5761 = vmatprep.mubr.bf16.mxu0 %v9061_v34  ;;  %v5569_v34 = vlaneseq }
 0xc24   : > { %v5570_v49 = vshrl.u32 %v5569_v34, 7 }
 0xc26   : > { %v5571_v35 = vsub.s32 0, %v5570_v49  ;;  %v5575_v40 = vsub.s32 1, %v5570_v49 }
 0xc28   : > { %v12437_v32 = vrot.slane %v5567_v5, %v5571_v35  ;;  %v12439_v53 = vrot.slane %v5567_v5, %v5575_v40 }
 0xc29   : > { %5762 = vmatmul.mubr.bf16.gmra.mrb[172].mxu0 %v5550_v41 }
 0xcaf   : > { %v5693_v56 = vpop.f32.mrb[144].mxu0 }
 0xcb0   : > { %v5694_v17 = vadd.f32 %v5693_v56, %v12437_v32  ;;  %v5695_v28 = vpop.f32.mrb[145].mxu0 }
 0xcb1   : > { %v5696_v26 = vadd.f32 %v5695_v28, %v12439_v53  ;;  %v5697_v42 = vpop.f32.mrb[146].mxu0 }
 0xcb2   : > { %v5698_v36 = vadd.f32 %v5697_v42, %v12437_v32  ;;  %v5699_v11 = vpop.f32.mrb[147].mxu0  ;;  %v5772_v31 = vmax.f32 %v5694_v17, 0.0 }
 0xcb3   : > { %v5700_v4 = vadd.f32 %v5699_v11, %v12439_v53  ;;  %v5773_v50 = vmax.f32 %v5696_v26, 0.0 }
 0xcb4   : > { %v5774_v24 = vmax.f32 %v5698_v36, 0.0 }
 0xcb5   : > { %v5775_v55 = vmax.f32 %v5700_v4, 0.0 }
 0xcb6   : > { %v5804_v52 = vpack.c.bf16 %v5774_v24, %v5772_v31 }
 0xcb7   : > { %v5805_v61 = vpack.c.bf16 %v5775_v55, %v5773_v50  ;;  %v5703_v33 = vpop.f32.mrb[148].mxu0 }
 0xcb8   : > { %v5704_v20 = vadd.f32 %v5703_v33, %v12437_v32  ;;  %v5705_v44 = vpop.f32.mrb[149].mxu0 }
 0xcb9   : > { %v5706_v59 = vadd.f32 %v5705_v44, %v12439_v53  ;;  %v5707_v38 = vpop.f32.mrb[150].mxu0  ;;  %5987 = vmatprep.mubr.bf16.mxu1 %v5805_v61 }
 0xcba   : > { %v5708_v3 = vadd.f32 %v5707_v38, %v12437_v32  ;;  %v5709_v29 = vpop.f32.mrb[151].mxu0  ;;  %5988 = vmatmul.mubr.bf16.vlgmr.msra.gmra.mrb[144].mxu1 %v5804_v52  ;;  %v5776_v27 = vmax.f32 %v5704_v20, 0.0 }
 0xcbb   : > { %v5710_v16 = vadd.f32 %v5709_v29, %v12439_v53  ;;  %v5777_v2 = vmax.f32 %v5706_v59, 0.0 }
 0xcbc   : > { %v5778_v45 = vmax.f32 %v5708_v3, 0.0 }
 0xcbd   : > { %v5779_v10 = vmax.f32 %v5710_v16, 0.0 }
 0xcbe   : > { %v5806_v18 = vpack.c.bf16 %v5778_v45, %v5776_v27 }
 0xcbf   : > { %v5807_v9 = vpack.c.bf16 %v5779_v10, %v5777_v2  ;;  %v5713_v21 = vpop.f32.mrb[152].mxu0 }
 0xcc0   : > { %v5714_v14 = vadd.f32 %v5713_v21, %v12437_v32  ;;  %v5715_v62 = vpop.f32.mrb[153].mxu0 }
 0xcc1   : > { %v5716_v58 = vadd.f32 %v5715_v62, %v12439_v53  ;;  %v5717_v39 = vpop.f32.mrb[154].mxu0  ;;  %5995 = vmatprep.mubr.bf16.mxu1 %v5807_v9 }
 0xcc2   : > { %v5718_v15 = vadd.f32 %v5717_v39, %v12437_v32  ;;  %v5719_v51 = vpop.f32.mrb[155].mxu0  ;;  %5996 = vmatmul.mubr.bf16.gmra.mrb[148].mxu1 %v5806_v18  ;;  %v5780_v54 = vmax.f32 %v5714_v14, 0.0 }
 0xcc3   : > { %v5720_v41 = vadd.f32 %v5719_v51, %v12439_v53  ;;  %v5781_v22 = vmax.f32 %v5716_v58, 0.0 }
 0xcc4   : > { %v5782_v1 = vmax.f32 %v5718_v15, 0.0 }
 0xcc5   : > { %v5783_v25 = vmax.f32 %v5720_v41, 0.0 }
 0xcc6   : > { %v5808_v19 = vpack.c.bf16 %v5782_v1, %v5780_v54 }
 0xcc7   : > { %v5809_v34 = vpack.c.bf16 %v5783_v25, %v5781_v22  ;;  %v5723_v49 = vpop.f32.mrb[156].mxu0 }
 0xcc8   : > { %v5724_v35 = vadd.f32 %v5723_v49, %v12437_v32  ;;  %v5725_v5 = vpop.f32.mrb[157].mxu0 }
 0xcc9   : > { %v5726_v40 = vadd.f32 %v5725_v5, %v12439_v53  ;;  %v5727_v56 = vpop.f32.mrb[158].mxu0  ;;  %6003 = vmatprep.mubr.bf16.mxu1 %v5809_v34 }
 0xcca   : > { %v5728_v17 = vadd.f32 %v5727_v56, %v12437_v32  ;;  %v5729_v28 = vpop.f32.mrb[159].mxu0  ;;  %6004 = vmatmul.mubr.bf16.gmra.mrb[152].mxu1 %v5808_v19  ;;  %v5784_v42 = vmax.f32 %v5724_v35, 0.0 }
 0xccb   : > { %v5730_v26 = vadd.f32 %v5729_v28, %v12439_v53  ;;  %v5785_v11 = vmax.f32 %v5726_v40, 0.0 }
 0xccc   : > { %v5786_v36 = vmax.f32 %v5728_v17, 0.0 }
 0xccd   : > { %v5787_v4 = vmax.f32 %v5730_v26, 0.0 }
 0xcce   : > { %v5810_v31 = vpack.c.bf16 %v5786_v36, %v5784_v42 }
 0xccf   : > { %v5811_v24 = vpack.c.bf16 %v5787_v4, %v5785_v11  ;;  %v5733_v50 = vpop.f32.mrb[160].mxu0 }
 0xcd0   : > { %v5734_v55 = vadd.f32 %v5733_v50, %v12437_v32  ;;  %v5735_v52 = vpop.f32.mrb[161].mxu0 }
 0xcd1   : > { %v5736_v61 = vadd.f32 %v5735_v52, %v12439_v53  ;;  %v5737_v33 = vpop.f32.mrb[162].mxu0  ;;  %6011 = vmatprep.mubr.bf16.mxu1 %v5811_v24 }
 0xcd2   : > { %v5738_v20 = vadd.f32 %v5737_v33, %v12437_v32  ;;  %v5739_v44 = vpop.f32.mrb[163].mxu0  ;;  %6012 = vmatmul.mubr.bf16.gmra.mrb[156].mxu1 %v5810_v31  ;;  %v5788_v38 = vmax.f32 %v5734_v55, 0.0 }
 0xcd3   : > { %v5740_v59 = vadd.f32 %v5739_v44, %v12439_v53  ;;  %v5789_v29 = vmax.f32 %v5736_v61, 0.0 }
 0xcd4   : > { %v5790_v3 = vmax.f32 %v5738_v20, 0.0 }
 0xcd5   : > { %v5791_v16 = vmax.f32 %v5740_v59, 0.0 }
 0xcd6   : > { %v5812_v27 = vpack.c.bf16 %v5790_v3, %v5788_v38 }
 0xcd7   : > { %v5813_v45 = vpack.c.bf16 %v5791_v16, %v5789_v29  ;;  %v5743_v2 = vpop.f32.mrb[164].mxu0  ;;  %v12473_v16 = vld [vmem:[#allocation30] ss:$0 sm:$0xff] }
 0xcd8   : > { %v5744_v10 = vadd.f32 %v5743_v2, %v12437_v32  ;;  %v5745_v18 = vpop.f32.mrb[165].mxu0 }
 0xcd9   : > { %v5746_v9 = vadd.f32 %v5745_v18, %v12439_v53  ;;  %v5747_v21 = vpop.f32.mrb[166].mxu0  ;;  %6019 = vmatprep.mubr.bf16.mxu1 %v5813_v45 }
 0xcda   : > { %v5748_v14 = vadd.f32 %v5747_v21, %v12437_v32  ;;  %v5749_v62 = vpop.f32.mrb[167].mxu0  ;;  %6020 = vmatmul.mubr.bf16.gmra.mrb[160].mxu1 %v5812_v27  ;;  %v5792_v39 = vmax.f32 %v5744_v10, 0.0 }
 0xcdb   : > { %v5750_v58 = vadd.f32 %v5749_v62, %v12439_v53  ;;  %v5793_v51 = vmax.f32 %v5746_v9, 0.0 }
 0xcdc   : > { %v5794_v15 = vmax.f32 %v5748_v14, 0.0 }
 0xcdd   : > { %v5795_v41 = vmax.f32 %v5750_v58, 0.0 }
 0xcde   : > { %v5814_v54 = vpack.c.bf16 %v5794_v15, %v5792_v39 }
 0xcdf   : > { %v5815_v1 = vpack.c.bf16 %v5795_v41, %v5793_v51 }
 0xce1   : > { %6027 = vmatprep.mubr.bf16.mxu1 %v5815_v1 }
 0xce2   : > { %6028 = vmatmul.mubr.bf16.gmra.mrb[164].mxu1 %v5814_v54 }
 0xcf4   : > { %v5753_v22 = vpop.f32.mrb[168].mxu0 }
 0xcf5   : > { %v5754_v25 = vadd.f32 %v5753_v22, %v12437_v32  ;;  %v5755_v19 = vpop.f32.mrb[169].mxu0 }
 0xcf6   : > { %v5756_v34 = vadd.f32 %v5755_v19, %v12439_v53  ;;  %v5757_v49 = vpop.f32.mrb[170].mxu0 }
 0xcf7   : > { %v5758_v35 = vadd.f32 %v5757_v49, %v12437_v32  ;;  %v5759_v5 = vpop.f32.mrb[171].mxu0  ;;  %v5796_v56 = vmax.f32 %v5754_v25, 0.0 }
 0xcf8   : > { %v5760_v40 = vadd.f32 %v5759_v5, %v12439_v53  ;;  %v5797_v28 = vmax.f32 %v5756_v34, 0.0 }
 0xcf9   : > { %v5798_v17 = vmax.f32 %v5758_v35, 0.0 }
 0xcfa   : > { %v5799_v26 = vmax.f32 %v5760_v40, 0.0 }
 0xcfb   : > { %v5816_v42 = vpack.c.bf16 %v5798_v17, %v5796_v56 }
 0xcfc   : > { %v5817_v36 = vpack.c.bf16 %v5799_v26, %v5797_v28  ;;  %v5763_v11 = vpop.f32.mrb[172].mxu0 }
 0xcfd   : > { %v5764_v4 = vadd.f32 %v5763_v11, %v12437_v32  ;;  %v5765_v31 = vpop.f32.mrb[173].mxu0 }
 0xcfe   : > { %v5766_v24 = vadd.f32 %v5765_v31, %v12439_v53  ;;  %v5767_v50 = vpop.f32.mrb[174].mxu0  ;;  %6035 = vmatprep.mubr.bf16.mxu1 %v5817_v36 }
 0xcff   : > { %v5768_v55 = vadd.f32 %v5767_v50, %v12437_v32  ;;  %v5769_v52 = vpop.f32.mrb[175].mxu0  ;;  %6036 = vmatmul.mubr.bf16.gmra.mrb[168].mxu1 %v5816_v42  ;;  %v5800_v33 = vmax.f32 %v5764_v4, 0.0 }
 0xd00   : > { %v5770_v61 = vadd.f32 %v5769_v52, %v12439_v53  ;;  %v5801_v44 = vmax.f32 %v5766_v24, 0.0 }
 0xd01   : > { %v5802_v20 = vmax.f32 %v5768_v55, 0.0 }
 0xd02   : > { %v5803_v59 = vmax.f32 %v5770_v61, 0.0 }
 0xd03   : > { %v5818_v38 = vpack.c.bf16 %v5802_v20, %v5800_v33 }
 0xd04   : > { %v5819_v3 = vpack.c.bf16 %v5803_v59, %v5801_v44 }
 0xd06   : > { %6043 = vmatprep.mubr.bf16.mxu1 %v5819_v3 }
 0xd07   : > { %6044 = vmatmul.mubr.bf16.gmra.mrb[172].mxu1 %v5818_v38 }
 0xd8d   : > { %v7295_v29 = vpop.f32.mrb[144].mxu1 }
 0xd8e   : > { %v7296_v27 = vpop.f32.mrb[145].mxu1 }
 0xd8f   : > { %v7297_v45 = vadd.f32 %v7296_v27, %v7295_v29  ;;  %v7298_v2 = vpop.f32.mrb[146].mxu1 }
 0xd90   : > { %v7299_v10 = vpop.f32.mrb[147].mxu1 }
 0xd91   : > { %v5990_v32 = vadd.f32 %v7297_v45, %v12473_v16  ;;  %v7300_v18 = vadd.f32 %v7299_v10, %v7298_v2 }
 0xd93   : > { %v5993_v53 = vadd.f32 %v7300_v18, %v12473_v16  ;;  %v12478_v9 = vadd.f32 %v5990_v32, %v12353_v60 }
 0xd95   : > { %v7301_v21 = vpop.f32.mrb[148].mxu1  ;;  %6068 = vadd.xlane.f32.xlu0 %v12478_v9  ;;  %v12482_v14 = vadd.f32 %v5993_v53, %v12356_v57 }
 0xd96   : > { %v7302_v62 = vpop.f32.mrb[149].mxu1 }
 0xd97   : > { %v7303_v58 = vadd.f32 %v7302_v62, %v7301_v21  ;;  %v7304_v39 = vpop.f32.mrb[150].mxu1  ;;  %6070 = vadd.xlane.f32.xlu1 %v12482_v14 }
 0xd98   : > { %v7305_v15 = vpop.f32.mrb[151].mxu1 }
 0xd99   : > { %v5998_v51 = vadd.f32 %v7303_v58, %v12473_v16  ;;  %v7306_v41 = vadd.f32 %v7305_v15, %v7304_v39 }
 0xd9b   : > { %v6001_v54 = vadd.f32 %v7306_v41, %v12473_v16  ;;  %v12488_v60 = vadd.f32 %v5998_v51, %v12367_v8 }
 0xd9d   : > { %v7307_v1 = vpop.f32.mrb[152].mxu1  ;;  %6072 = vadd.xlane.f32.xlu0 %v12488_v60  ;;  %v12492_v19 = vadd.f32 %v6001_v54, %v12364_v23 }
 0xd9e   : > { %v7308_v22 = vpop.f32.mrb[153].mxu1 }
 0xd9f   : > { %v7309_v57 = vadd.f32 %v7308_v22, %v7307_v1  ;;  %v7310_v25 = vpop.f32.mrb[154].mxu1 }
 0xda0   : > { %v7311_v34 = vpop.f32.mrb[155].mxu1 }
 0xda1   : > { %v6006_v49 = vadd.f32 %v7309_v57, %v12473_v16  ;;  %v7312_v35 = vadd.f32 %v7311_v34, %v7310_v25  ;;  %6074 = vadd.xlane.f32.xlu0 %v12492_v19 }
 0xda3   : > { %v6009_v5 = vadd.f32 %v7312_v35, %v12473_v16  ;;  %v12498_v8 = vadd.f32 %v6006_v49, %v12375_v63 }
 0xda5   : > { %v7313_v40 = vpop.f32.mrb[156].mxu1  ;;  %6076 = vadd.xlane.f32.xlu1 %v12498_v8  ;;  %v12502_v56 = vadd.f32 %v6009_v5, %v12378_v0 }
 0xda6   : > { %v7314_v17 = vpop.f32.mrb[157].mxu1 }
 0xda7   : > { %v7315_v23 = vadd.f32 %v7314_v17, %v7313_v40  ;;  %v7316_v28 = vpop.f32.mrb[158].mxu1  ;;  %6078 = vadd.xlane.f32.xlu0 %v12502_v56 }
 0xda8   : > { %v7317_v26 = vpop.f32.mrb[159].mxu1 }
 0xda9   : > { %v6014_v42 = vadd.f32 %v7315_v23, %v12473_v16  ;;  %v7318_v36 = vadd.f32 %v7317_v26, %v7316_v28 }
 0xdab   : > { %v6017_v11 = vadd.f32 %v7318_v36, %v12473_v16  ;;  %v12508_v63 = vadd.f32 %v6014_v42, %v12389_v43 }
 0xdad   : > { %v7319_v4 = vpop.f32.mrb[160].mxu1  ;;  %6080 = vadd.xlane.f32.xlu1 %v12508_v63  ;;  %v12512_v0 = vadd.f32 %v6017_v11, %v12386_v12 }
 0xdae   : > { %v7320_v31 = vpop.f32.mrb[161].mxu1 }
 0xdaf   : > { %v7321_v24 = vadd.f32 %v7320_v31, %v7319_v4  ;;  %v7322_v50 = vpop.f32.mrb[162].mxu1  ;;  %6082 = vadd.xlane.f32.xlu0 %v12512_v0 }
 0xdb0   : > { %v7323_v55 = vpop.f32.mrb[163].mxu1 }
 0xdb1   : > { %v6022_v52 = vadd.f32 %v7321_v24, %v12473_v16  ;;  %v7324_v61 = vadd.f32 %v7323_v55, %v7322_v50 }
 0xdb3   : > { %v6025_v33 = vadd.f32 %v7324_v61, %v12473_v16  ;;  %v12518_v43 = vadd.f32 %v6022_v52, %v12397_v30 }
 0xdb5   : > { %v7325_v20 = vpop.f32.mrb[164].mxu1  ;;  %6084 = vadd.xlane.f32.xlu1 %v12518_v43  ;;  %v12522_v12 = vadd.f32 %v6025_v33, %v12400_v46 }
 0xdb6   : > { %v7326_v44 = vpop.f32.mrb[165].mxu1 }
 0xdb7   : > { %v7327_v59 = vadd.f32 %v7326_v44, %v7325_v20  ;;  %v7328_v38 = vpop.f32.mrb[166].mxu1  ;;  %6086 = vadd.xlane.f32.xlu0 %v12522_v12 }
 0xdb8   : > { %v7329_v3 = vpop.f32.mrb[167].mxu1 }
 0xdb9   : > { %v6030_v29 = vadd.f32 %v7327_v59, %v12473_v16  ;;  %v7330_v27 = vadd.f32 %v7329_v3, %v7328_v38 }
 0xdbb   : > { %v6033_v45 = vadd.f32 %v7330_v27, %v12473_v16  ;;  %v12528_v30 = vadd.f32 %v6030_v29, %v12411_v7 }
 0xdbd   : > { %6088 = vadd.xlane.f32.xlu1 %v12528_v30  ;;  %v12532_v2 = vadd.f32 %v6033_v45, %v12408_v6 }
 0xdbf   : > { %6090 = vadd.xlane.f32.xlu0 %v12532_v2 }
 0xdd2   : > { %v7331_v46 = vpop.f32.mrb[168].mxu1 }
 0xdd3   : > { %v7332_v10 = vpop.f32.mrb[169].mxu1 }
 0xdd4   : > { %v7333_v32 = vadd.f32 %v7332_v10, %v7331_v46  ;;  %v7334_v18 = vpop.f32.mrb[170].mxu1 }
 0xdd5   : > { %v7335_v53 = vpop.f32.mrb[171].mxu1 }
 0xdd6   : > { %v6038_v21 = vadd.f32 %v7333_v32, %v12473_v16  ;;  %v7336_v62 = vadd.f32 %v7335_v53, %v7334_v18 }
 0xdd8   : > { %v6041_v58 = vadd.f32 %v7336_v62, %v12473_v16  ;;  %v12538_v7 = vadd.f32 %v6038_v21, %v12419_v13 }
 0xdda   : > { %v7337_v39 = vpop.f32.mrb[172].mxu1  ;;  %6092 = vadd.xlane.f32.xlu1 %v12538_v7  ;;  %v12542_v6 = vadd.f32 %v6041_v58, %v12422_v37 }
 0xddb   : > { %v7338_v15 = vpop.f32.mrb[173].mxu1 }
 0xddc   : > { %v7339_v51 = vadd.f32 %v7338_v15, %v7337_v39  ;;  %v7340_v41 = vpop.f32.mrb[174].mxu1  ;;  %6094 = vadd.xlane.f32.xlu0 %v12542_v6 }
 0xddd   : > { %v7341_v54 = vpop.f32.mrb[175].mxu1 }
 0xdde   : > { %v6046_v1 = vadd.f32 %v7339_v51, %v12473_v16  ;;  %v7342_v22 = vadd.f32 %v7341_v54, %v7340_v41 }
 0xde0   : > { %v6049_v57 = vadd.f32 %v7342_v22, %v12473_v16  ;;  %v12548_v13 = vadd.f32 %v6046_v1, %v12433_v47 }
 0xde2   : > { %6096 = vadd.xlane.f32.xlu1 %v12548_v13  ;;  %v12552_v25 = vadd.f32 %v6049_v57, %v12430_v48 }
 0xde4   : > { %6098 = vadd.xlane.f32.xlu0 %v12552_v25 }
 0xe22   : > { %v6069_v37 = vpop.xlane.xlu0 %6068 }
 0xe23   : > { %v6101_v34 = vmul.f32 0.0078125, %v6069_v37 }
 0xe24   : > { %v6071_v49 = vpop.xlane.xlu1 %6070 }
 0xe25   : > { %v12556_v35 = vsub.f32 %v12478_v9, %v6101_v34  ;;  %v6102_v5 = vmul.f32 0.0078125, %v6071_v49 }
 0xe27   : > { %v12559_v40 = vsub.f32 %v12482_v14, %v6102_v5  ;;  %v6133_v47 = vmul.f32 %v12556_v35, %v12556_v35 }
 0xe29   : > { %6149 = vadd.xlane.f32.xlu1 %v6133_v47  ;;  %v6134_v48 = vmul.f32 %v12559_v40, %v12559_v40 }
 0xe2a   : > { %v6073_v16 = vpop.xlane.xlu0 %6072 }
 0xe2b   : > { %v6103_v17 = vmul.f32 0.0078125, %v6073_v16  ;;  %6151 = vadd.xlane.f32.xlu0 %v6134_v48 }
 0xe2d   : > { %v12566_v23 = vsub.f32 %v12488_v60, %v6103_v17 }
 0xe2e   : > { %v6075_v28 = vpop.xlane.xlu0 %6074 }
 0xe2f   : > { %v6104_v9 = vmul.f32 0.0078125, %v6075_v28  ;;  %v6135_v26 = vmul.f32 %v12566_v23, %v12566_v23 }
 0xe31   : > { %v12571_v14 = vsub.f32 %v12492_v19, %v6104_v9  ;;  %6153 = vadd.xlane.f32.xlu1 %v6135_v26 }
 0xe32   : > { %v6077_v42 = vpop.xlane.xlu1 %6076 }
 0xe33   : > { %v6105_v36 = vmul.f32 0.0078125, %v6077_v42  ;;  %v6136_v11 = vmul.f32 %v12571_v14, %v12571_v14 }
 0xe34   : > { %v6079_v4 = vpop.xlane.xlu0 %6078 }
 0xe35   : > { %v12576_v31 = vsub.f32 %v12498_v8, %v6105_v36  ;;  %v6106_v60 = vmul.f32 0.0078125, %v6079_v4  ;;  %6155 = vadd.xlane.f32.xlu0 %v6136_v11  ;;  %v12635_v36 = vld [vmem:[#allocation31] ss:$0 sm:$0xff] }
 0xe37   : > { %v12579_v24 = vsub.f32 %v12502_v56, %v6106_v60  ;;  %v6137_v50 = vmul.f32 %v12576_v31, %v12576_v31 }
 0xe39   : > { %6157 = vadd.xlane.f32.xlu1 %v6137_v50  ;;  %v6138_v19 = vmul.f32 %v12579_v24, %v12579_v24 }
 0xe3a   : > { %v6081_v55 = vpop.xlane.xlu1 %6080 }
 0xe3b   : > { %v6107_v52 = vmul.f32 0.0078125, %v6081_v55  ;;  %6159 = vadd.xlane.f32.xlu0 %v6138_v19  ;;  %v12638_v19 = vld [vmem:[#allocation33] ss:$0 sm:$0xff] }
 0xe3c   : > { %v6083_v61 = vpop.xlane.xlu0 %6082 }
 0xe3d   : > { %v12586_v33 = vsub.f32 %v12508_v63, %v6107_v52  ;;  %v6108_v8 = vmul.f32 0.0078125, %v6083_v61 }
 0xe3f   : > { %v12589_v20 = vsub.f32 %v12512_v0, %v6108_v8  ;;  %v6139_v56 = vmul.f32 %v12586_v33, %v12586_v33 }
 0xe41   : > { %6161 = vadd.xlane.f32.xlu1 %v6139_v56  ;;  %v6140_v44 = vmul.f32 %v12589_v20, %v12589_v20 }
 0xe42   : > { %v6085_v59 = vpop.xlane.xlu1 %6084 }
 0xe43   : > { %v6109_v38 = vmul.f32 0.0078125, %v6085_v59  ;;  %6163 = vadd.xlane.f32.xlu0 %v6140_v44 }
 0xe44   : > { %v6087_v3 = vpop.xlane.xlu0 %6086 }
 0xe45   : > { %v12596_v29 = vsub.f32 %v12518_v43, %v6109_v38  ;;  %v6110_v63 = vmul.f32 0.0078125, %v6087_v3 }
 0xe47   : > { %v12599_v27 = vsub.f32 %v12522_v12, %v6110_v63  ;;  %v6141_v0 = vmul.f32 %v12596_v29, %v12596_v29 }
 0xe49   : > { %6165 = vadd.xlane.f32.xlu1 %v6141_v0  ;;  %v6142_v45 = vmul.f32 %v12599_v27, %v12599_v27 }
 0xe4a   : > { %v6089_v46 = vpop.xlane.xlu1 %6088 }
 0xe4b   : > { %v6111_v10 = vmul.f32 0.0078125, %v6089_v46  ;;  %6167 = vadd.xlane.f32.xlu0 %v6142_v45 }
 0xe4c   : > { %v6091_v32 = vpop.xlane.xlu0 %6090 }
 0xe4d   : > { %v12606_v18 = vsub.f32 %v12528_v30, %v6111_v10  ;;  %v6112_v43 = vmul.f32 0.0078125, %v6091_v32 }
 0xe4f   : > { %v12609_v53 = vsub.f32 %v12532_v2, %v6112_v43  ;;  %v6143_v12 = vmul.f32 %v12606_v18, %v12606_v18 }
 0xe51   : > { %6169 = vadd.xlane.f32.xlu1 %v6143_v12  ;;  %v6144_v21 = vmul.f32 %v12609_v53, %v12609_v53 }
 0xe53   : > { %6171 = vadd.xlane.f32.xlu0 %v6144_v21 }
 0xe67   : > { %v6093_v62 = vpop.xlane.xlu1 %6092 }
 0xe68   : > { %v6113_v58 = vmul.f32 0.0078125, %v6093_v62 }
 0xe69   : > { %v6095_v39 = vpop.xlane.xlu0 %6094 }
 0xe6a   : > { %v12616_v15 = vsub.f32 %v12538_v7, %v6113_v58  ;;  %v6114_v30 = vmul.f32 0.0078125, %v6095_v39 }
 0xe6c   : > { %v12619_v51 = vsub.f32 %v12542_v6, %v6114_v30  ;;  %v6145_v2 = vmul.f32 %v12616_v15, %v12616_v15 }
 0xe6e   : > { %6173 = vadd.xlane.f32.xlu1 %v6145_v2  ;;  %v6146_v41 = vmul.f32 %v12619_v51, %v12619_v51 }
 0xe6f   : > { %v6097_v54 = vpop.xlane.xlu1 %6096 }
 0xe70   : > { %v6115_v1 = vmul.f32 0.0078125, %v6097_v54  ;;  %6175 = vadd.xlane.f32.xlu0 %v6146_v41 }
 0xe71   : > { %v6099_v22 = vpop.xlane.xlu0 %6098 }
 0xe72   : > { %v12626_v57 = vsub.f32 %v12548_v13, %v6115_v1  ;;  %v6116_v7 = vmul.f32 0.0078125, %v6099_v22 }
 0xe74   : > { %v12629_v37 = vsub.f32 %v12552_v25, %v6116_v7  ;;  %v6147_v6 = vmul.f32 %v12626_v57, %v12626_v57 }
 0xe76   : > { %6177 = vadd.xlane.f32.xlu1 %v6147_v6  ;;  %v6148_v34 = vmul.f32 %v12629_v37, %v12629_v37 }
 0xe78   : > { %6179 = vadd.xlane.f32.xlu0 %v6148_v34 }
 0xeb6   : > { %v6150_v49 = vpop.xlane.xlu1 %6149 }
 0xeb7   : > { %v6181_v5 = vmul.f32 0.0078125, %v6150_v49 }
 0xeb8   : > { %v6152_v47 = vpop.xlane.xlu0 %6151 }
 0xeb9   : > { %v6197_v48 = vadd.f32 1e-05, %v6181_v5  ;;  %v6182_v16 = vmul.f32 0.0078125, %v6152_v47 }
 0xebb   : > { %8348 = vrsqrt.f32 %v6197_v48  ;;  %v6198_v13 = vadd.f32 1e-05, %v6182_v16 }
 0xebd   : > { %8350 = vrsqrt.f32 %v6198_v13 }
 0xebe   : > { %v6154_v17 = vpop.xlane.xlu1 %6153 }
 0xebf   : > { %v6183_v28 = vmul.f32 0.0078125, %v6154_v17 }
 0xec1   : > { %v6199_v25 = vadd.f32 1e-05, %v6183_v28 }
 0xec2   : > { %v6156_v9 = vpop.xlane.xlu0 %6155 }
 0xec3   : > { %8352 = vrsqrt.f32 %v6199_v25  ;;  %v6184_v26 = vmul.f32 0.0078125, %v6156_v9 }
 0xec5   : > { %v8349_v42 = vpop.eup %8348  ;;  %v6200_v11 = vadd.f32 1e-05, %v6184_v26 }
 0xec6   : > { %v6229_v4 = vmul.f32 %v8349_v42, %v12556_v35  ;;  %v6158_v60 = vpop.xlane.xlu1 %6157 }
 0xec7   : > { %v8351_v50 = vpop.eup %8350  ;;  %8354 = vrsqrt.f32 %v6200_v11  ;;  %v6185_v55 = vmul.f32 0.0078125, %v6158_v60 }
 0xec8   : > { %v6252_v52 = vmul.f32 %v12635_v36, %v6229_v4  ;;  %v6230_v61 = vmul.f32 %v8351_v50, %v12559_v40  ;;  %v6160_v8 = vpop.xlane.xlu0 %6159 }
 0xec9   : > { %v6201_v56 = vadd.f32 1e-05, %v6185_v55  ;;  %v6186_v44 = vmul.f32 0.0078125, %v6160_v8 }
 0xeca   : > { %v6275_v59 = vadd.f32 %v12638_v19, %v6252_v52  ;;  %v6253_v38 = vmul.f32 %v12635_v36, %v6230_v61 }
 0xecb   : > { %8356 = vrsqrt.f32 %v6201_v56  ;;  %v6202_v35 = vadd.f32 1e-05, %v6186_v44 }
 0xecc   : > { %6291 = vst [vmem:[%s9745_s4] sm:$0xff] %v6275_v59  ;;  %v6276_v3 = vadd.f32 %v12638_v19, %v6253_v38 }
 0xecd   : > { %v8353_v63 = vpop.eup %8352  ;;  %8358 = vrsqrt.f32 %v6202_v35 }
 0xece   : > { %6292 = vst [vmem:[%s9745_s4 + $0x8] sm:$0xff] %v6276_v3  ;;  %v6231_v0 = vmul.f32 %v8353_v63, %v12566_v23  ;;  %v6162_v45 = vpop.xlane.xlu1 %6161 }
 0xecf   : > { %v6187_v40 = vmul.f32 0.0078125, %v6162_v45 }
 0xed0   : > { %v6254_v46 = vmul.f32 %v12635_v36, %v6231_v0  ;;  %v6164_v10 = vpop.xlane.xlu0 %6163 }
 0xed1   : > { %v8355_v32 = vpop.eup %8354  ;;  %v6203_v43 = vadd.f32 1e-05, %v6187_v40  ;;  %v6188_v12 = vmul.f32 0.0078125, %v6164_v10 }
 0xed2   : > { %v6277_v21 = vadd.f32 %v12638_v19, %v6254_v46  ;;  %v6232_v62 = vmul.f32 %v8355_v32, %v12571_v14 }
 0xed3   : > { %8360 = vrsqrt.f32 %v6203_v43  ;;  %v6204_v58 = vadd.f32 1e-05, %v6188_v12 }
 0xed4   : > { %6293 = vst [vmem:[%s9745_s4 + $0x10] sm:$0xff] %v6277_v21  ;;  %v6255_v39 = vmul.f32 %v12635_v36, %v6232_v62 }
 0xed5   : > { %v8357_v30 = vpop.eup %8356  ;;  %8362 = vrsqrt.f32 %v6204_v58 }
 0xed6   : > { %v6278_v23 = vadd.f32 %v12638_v19, %v6255_v39  ;;  %v6233_v2 = vmul.f32 %v8357_v30, %v12576_v31  ;;  %v6166_v41 = vpop.xlane.xlu1 %6165 }
 0xed7   : > { %v8359_v54 = vpop.eup %8358  ;;  %v6189_v1 = vmul.f32 0.0078125, %v6166_v41 }
 0xed8   : > { %6294 = vst [vmem:[%s9745_s4 + $0x18] sm:$0xff] %v6278_v23  ;;  %v6256_v22 = vmul.f32 %v12635_v36, %v6233_v2  ;;  %v6234_v14 = vmul.f32 %v8359_v54, %v12579_v24  ;;  %v6168_v7 = vpop.xlane.xlu0 %6167 }
 0xed9   : > { %v6205_v6 = vadd.f32 1e-05, %v6189_v1  ;;  %v6190_v34 = vmul.f32 0.0078125, %v6168_v7 }
 0xeda   : > { %v6279_v49 = vadd.f32 %v12638_v19, %v6256_v22  ;;  %v6257_v5 = vmul.f32 %v12635_v36, %v6234_v14 }
 0xedb   : > { %8364 = vrsqrt.f32 %v6205_v6  ;;  %v6206_v47 = vadd.f32 1e-05, %v6190_v34 }
 0xedc   : > { %6295 = vst [vmem:[%s9745_s4 + $0x20] sm:$0xff] %v6279_v49  ;;  %v6280_v31 = vadd.f32 %v12638_v19, %v6257_v5 }
 0xedd   : > { %v8361_v48 = vpop.eup %8360  ;;  %8366 = vrsqrt.f32 %v6206_v47 }
 0xede   : > { %6296 = vst [vmem:[%s9745_s4 + $0x28] sm:$0xff] %v6280_v31  ;;  %v6235_v16 = vmul.f32 %v8361_v48, %v12586_v33  ;;  %v6170_v13 = vpop.xlane.xlu1 %6169 }
 0xedf   : > { %v8363_v24 = vpop.eup %8362  ;;  %v6191_v17 = vmul.f32 0.0078125, %v6170_v13 }
 0xee0   : > { %v6258_v28 = vmul.f32 %v12635_v36, %v6235_v16  ;;  %v6236_v25 = vmul.f32 %v8363_v24, %v12589_v20  ;;  %v6172_v9 = vpop.xlane.xlu0 %6171 }
 0xee1   : > { %v6207_v26 = vadd.f32 1e-05, %v6191_v17  ;;  %v6192_v42 = vmul.f32 0.0078125, %v6172_v9 }
 0xee2   : > { %v6281_v11 = vadd.f32 %v12638_v19, %v6258_v28  ;;  %v6259_v4 = vmul.f32 %v12635_v36, %v6236_v25 }
 0xee3   : > { %8368 = vrsqrt.f32 %v6207_v26  ;;  %v6208_v60 = vadd.f32 1e-05, %v6192_v42 }
 0xee4   : > { %6297 = vst [vmem:[%s9745_s4 + $0x30] sm:$0xff] %v6281_v11  ;;  %v6282_v33 = vadd.f32 %v12638_v19, %v6259_v4 }
 0xee5   : > { %v8365_v50 = vpop.eup %8364  ;;  %8370 = vrsqrt.f32 %v6208_v60 }
 0xee6   : > { %6298 = vst [vmem:[%s9745_s4 + $0x38] sm:$0xff] %v6282_v33  ;;  %v6237_v55 = vmul.f32 %v8365_v50, %v12596_v29 }
 0xee7   : > { %v8367_v20 = vpop.eup %8366 }
 0xee8   : > { %v6260_v52 = vmul.f32 %v12635_v36, %v6237_v55  ;;  %v6238_v61 = vmul.f32 %v8367_v20, %v12599_v27 }
 0xeea   : > { %v6283_v8 = vadd.f32 %v12638_v19, %v6260_v52  ;;  %v6261_v56 = vmul.f32 %v12635_v36, %v6238_v61 }
 0xeec   : > { %6299 = vst [vmem:[%s9745_s4 + $0x40] sm:$0xff] %v6283_v8  ;;  %v6284_v44 = vadd.f32 %v12638_v19, %v6261_v56 }
 0xeed   : > { %v8369_v59 = vpop.eup %8368 }
 0xeee   : > { %6300 = vst [vmem:[%s9745_s4 + $0x48] sm:$0xff] %v6284_v44  ;;  %v6239_v38 = vmul.f32 %v8369_v59, %v12606_v18 }
 0xeef   : > { %v8371_v35 = vpop.eup %8370 }
 0xef0   : > { %v6262_v29 = vmul.f32 %v12635_v36, %v6239_v38  ;;  %v6240_v3 = vmul.f32 %v8371_v35, %v12609_v53 }
 0xef2   : > { %v6285_v63 = vadd.f32 %v12638_v19, %v6262_v29  ;;  %v6263_v27 = vmul.f32 %v12635_v36, %v6240_v3 }
 0xef4   : > { %6301 = vst [vmem:[%s9745_s4 + $0x50] sm:$0xff] %v6285_v63  ;;  %v6286_v0 = vadd.f32 %v12638_v19, %v6263_v27 }
 0xef6   : > { %6302 = vst [vmem:[%s9745_s4 + $0x58] sm:$0xff] %v6286_v0 }
 0xefb   : > { %v6174_v45 = vpop.xlane.xlu1 %6173 }
 0xefc   : > { %v6193_v40 = vmul.f32 0.0078125, %v6174_v45 }
 0xefd   : > { %v6176_v46 = vpop.xlane.xlu0 %6175 }
 0xefe   : > { %v6209_v10 = vadd.f32 1e-05, %v6193_v40  ;;  %v6194_v32 = vmul.f32 0.0078125, %v6176_v46 }
 0xf00   : > { %8372 = vrsqrt.f32 %v6209_v10  ;;  %v6210_v18 = vadd.f32 1e-05, %v6194_v32 }
 0xf02   : > { %8374 = vrsqrt.f32 %v6210_v18 }
 0xf03   : > { %v6178_v43 = vpop.xlane.xlu1 %6177 }
 0xf04   : > { %v6195_v53 = vmul.f32 0.0078125, %v6178_v43 }
 0xf05   : > { %v6180_v12 = vpop.xlane.xlu0 %6179 }
 0xf06   : > { %v6211_v21 = vadd.f32 1e-05, %v6195_v53  ;;  %v6196_v62 = vmul.f32 0.0078125, %v6180_v12 }
 0xf08   : > { %8376 = vrsqrt.f32 %v6211_v21  ;;  %v6212_v58 = vadd.f32 1e-05, %v6196_v62 }
 0xf0a   : > { %v8373_v39 = vpop.eup %8372  ;;  %8378 = vrsqrt.f32 %v6212_v58 }
 0xf0b   : > { %v6241_v30 = vmul.f32 %v8373_v39, %v12616_v15 }
 0xf0c   : > { %v8375_v23 = vpop.eup %8374 }
 0xf0d   : > { %v6264_v2 = vmul.f32 %v12635_v36, %v6241_v30  ;;  %v6242_v41 = vmul.f32 %v8375_v23, %v12619_v51 }
 0xf0f   : > { %v6287_v54 = vadd.f32 %v12638_v19, %v6264_v2  ;;  %v6265_v1 = vmul.f32 %v12635_v36, %v6242_v41 }
 0xf11   : > { %6303 = vst [vmem:[%s9745_s4 + $0x60] sm:$0xff] %v6287_v54  ;;  %v6288_v22 = vadd.f32 %v12638_v19, %v6265_v1 }
 0xf12   : > { %v8377_v14 = vpop.eup %8376 }
 0xf13   : > { %6304 = vst [vmem:[%s9745_s4 + $0x68] sm:$0xff] %v6288_v22  ;;  %v6243_v15 = vmul.f32 %v8377_v14, %v12626_v57 }
 0xf14   : > { %v8379_v7 = vpop.eup %8378 }
 0xf15   : > { %v6266_v51 = vmul.f32 %v12635_v36, %v6243_v15  ;;  %v6244_v6 = vmul.f32 %v8379_v7, %v12629_v37 }
 0xf17   : > { %v6289_v34 = vadd.f32 %v12638_v19, %v6266_v51  ;;  %v6267_v49 = vmul.f32 %v12635_v36, %v6244_v6 }
 0xf19   : > { %6305 = vst [vmem:[%s9745_s4 + $0x70] sm:$0xff] %v6289_v34  ;;  %v6290_v57 = vadd.f32 %v12638_v19, %v6267_v49 }
 0xf1b   : > { %6306 = vst [vmem:[%s9745_s4 + $0x78] sm:$0xff] %v6290_v57 }
 0xf1c   : > { %8887 = shalt.err (!%p8884_p11)
}
 0xf1d   : > { %s8888_s4 = scalar_lea.hbm %s12706_s1, 2048  ;;  %s8892_s28 = scalar_lea.hbm %s13384_s9, 8192 }
 0xf1e   : > { %p8889_p1 = scmp.ne.s32.totalorder %s12706_s1, %s8888_s4  ;;  %p8893_p3 = scmp.lt.u32.totalorder %s12706_s1, %s13384_s9 }
 0xf1f   : > { %p8894_p2 = scmp.lt.u32.totalorder %s8892_s28, %s8888_s4  ;;  %p8896_p8 = scmp.lt.u32.totalorder %s8888_s4, %s12706_s1 }
 0xf20   : > { %p8890_p13 = pnand %p8889_p1, %p13385_p9 }
 0xf21   : > { %p8895_p10 = por %p8894_p2, %p8893_p3 }
 0xf22   : > { %p8891_p0 = pneg %p8890_p13 }
 0xf23   : > { %p8897_p12 = por %p8896_p8, %p8895_p10 }
 0xf25   : > { %p8898_p4 = pnand %p8897_p12, %p8891_p0 }
 0xf27   : > { %8901 = shalt.err (!%p8898_p4)
}
 0xf28   : > { %s9063_s16 = smov 128   ;;  %s9064_s27 = smov 8  }
 0xf29   : > { %7601 = dma.vmem_to_hbm [thread:$0]  (%p13385_p9), %s12708_s29, 2048, %s12706_s1, %s6308_s0, %s9063_s16, %s9063_s16, %s9064_s27  }
 0xf2a   : > { %s6313_s22 = scalar_lea.sflag [#allocation36], %s9741_s25 }
 0xf2b   : > { %s6814_s4 = sshll.u32 %s13062_s20, 5  ;;  %s6809_s6 = sshll.u32 %s13382_s23, 8 }
 0xf2c   : > { %s6344_s28 = sadd.s32 %s6814_s4, %s6809_s6  ;;  %s6363_s8 = sshll.u32 %s9747_s3, 4  ;;  %s6364_s8 = int_to_ptr.vmem [resolvable:$true] %s6363_s8 }
 0xf2d   : > { %s6810_s10 = sshll.u32 %s6344_s28, 7  ;;  %s13386_s29 = sld [smem:[#allocation166_spill]] }
 0xf2e   : > { %s9065_s1 = smov 4096   ;;  %s9066_s0 = smov 8192  }
 0xf2f   : > { %7602 = sst [smem:[#allocation38]] (%p13385_p9), %s9065_s1  ;;  %s9067_s16 = smov 16  }
 0xf30   : > { %7603 = sst [smem:[#allocation38 + $0x1]] (%p13385_p9), %s9066_s0  ;;  %s9068_s20 = smov 256  }
 0xf31   : > { %7604 = sst [smem:[#allocation38 + $0x2]] (%p13385_p9), %s9067_s16  ;;  %s9069_s3 = smov [#allocation37]  }
 0xf32   : > { %7605 = sst [smem:[#allocation38 + $0x3]] (%p13385_p9), %s9068_s20  ;;  %s9070_s23 = smov 0  }
 0xf33   : > { %s6346_s25 = scalar_lea.hbm %s13386_s29, %s6810_s10  ;;  %7606 = sst [smem:[#allocation38 + $0x4]] (%p13385_p9), %s9068_s20 }
 0xf34   : > { %7607 = sst [smem:[#allocation38 + $0x5]] (%p13385_p9), %s9067_s16 }
 0xf35   : > { %7608 = dma.general (%p13385_p9), %s6364_s8, 16384, %s6346_s25, %s6313_s22, %s9069_s3, [#allocation38], %s9070_s23, 0  }
 0xf36 PF: > { %s13387_s11 = sld [smem:[#allocation50_spill]]  ;;  %p7704_p7 = scmp.ge.s32.totalorder %s9032_s2, 2 }
 0xf37   : > { %p13388_p6 = scmp.ne.s32.totalorder %s13050_s7, 0 }
 0xf39   : > { %p7665_p5 = pnand %p7704_p7, %p13388_p6 }
 0xf3c   : > { %s6391_s9 = sand.u32 1, %s13387_s11  }
 0xf3d   : > { %s6392_s27 = scalar_lea.sflag [#allocation9], %s6391_s9 }
 0xf3e   : > { %8983 = dma.done.wait (!%p7665_p5), %s6392_s27, 2048  }
 0xf3f   : > { %8985 = vsyncadd (!%p7665_p5), %s6392_s27, 4294965248  ;;  %s6401_s4 = scalar_lea.sflag [#allocation36], %s6391_s9 }
 0xf40   : > { %8987 = dma.done.wait (!%p7665_p5), %s6401_s4, 16384  }
 0xf41   : > { %8989 = vsyncadd (!%p7665_p5), %s6401_s4, 4294950912  ;;  %s46_s2 = sadd.s32 1, %s9032_s2   ;;  %s13389_s27 = sld [smem:[#allocation51_spill]] }
 0xf42   : > { %p43_p11 = scmp.ge.s32.totalorder %s46_s2, 6   ;;  %s13390_s28 = sld [smem:[#allocation52_spill]] }
 0xf43   : > { %s13391_s30 = sld [smem:[#allocation54_spill]]  ;;  %s13392_s0 = sld [smem:[#allocation55_spill]] }
 0xf44   : > { %s13393_s20 = sld [smem:[#allocation58_spill]]  ;;  %s13394_s29 = smov %s13406_s19 }
 0xf45   : > { %s13395_s19 = smov %s9641_s5  ;;  %s13396_s1 = smov %s9024_s21 }
 0xf46   : > { %s13397_s21 = smov %s13400_s18  ;;  %s13398_s22 = smov %s13404_s24 }
 0xf47   :  { %45 = sbr.rel (!%p43_p11) target bundleno = 35 (0x23), region = 233 }
 0xf4e   :  { %6406 = vsyncpa [#allocation8], 1 }
 0xf4f   :  { %6408 = vsyncpa [#allocation8 + $0x1], 1 }
 0xf50   :  { %6409 = vsyncpa [#allocation11], 1 }
 0xf51   :  { %6410 = vsyncpa [#allocation14], 1 }
 0xf52   :  { %6411 = vsyncpa [#allocation17], 1 }
 0xf53   :  { %6412 = vsyncpa [#allocation20], 1 }
 0xf54   :  { %6413 = vsyncpa [#allocation23], 1 }
 0xf55   :  { %6414 = vsyncpa [#allocation26], 1 }
 0xf56   :  { %6415 = vsyncpa [#allocation29], 1 }
 0xf57   :  { %6416 = vsyncpa [#allocation32], 1 }
 0xf58   :  { %6417 = vsyncpa [#allocation9], 1 }
 0xf59   :  { %6419 = vsyncpa [#allocation9 + $0x1], 1 }
 0xf5a   :  { %6420 = vsyncpa [#allocation36], 1 }
 0xf5b   :  { %6422 = vsyncpa [#allocation36 + $0x1], 1 }

</bundles_post_ra>
